<compile_context>
chip_gen: v6e
topology: v6e:2x2x1
jax: 0.10.0
libtpu: 0.0.40
codegen_flags: <defaults>
</compile_context>

<pallas_src>
import jax
import jax.numpy as jnp
from jax.experimental import pallas as pl
from jax.experimental.pallas import tpu as pltpu

NUM_LAYERS = 9
NUM_RELU_LAYERS = 6   # conv1..conv6 have ReLU
EDGE_LAYER = 5        # conv6's (0-indexed) output is h_edge
BIAS_ROWS = 16        # bf16-sublane-aligned block of ones used to fold the bias


def _ceil16(n):
    return ((n + 15) // 16) * 16


def _layer_meta(params):
    """Static channel bookkeeping (all Python ints)."""
    cins = [int(w.shape[2]) for (w, _) in params]
    couts = [int(w.shape[3]) for (w, _) in params]
    cin_p = [_ceil16(c) for c in cins]     # bf16 sublane packing -> pad to 16
    cout_p = [_ceil16(c) for c in couts]
    row_off = [0]
    for c in cout_p[:-1]:
        row_off.append(row_off[-1] + c)
    cmax_p = max(cin_p)
    n_rows = row_off[-1] + cout_p[-1]
    n_cols = BIAS_ROWS + 9 * cmax_p
    return cins, couts, cin_p, cout_p, row_off, cmax_p, n_rows, n_cols


def pack_params(params):
    """Collapse all 9 conv layers into ONE bf16 weight slab.

    Layer l occupies rows [row_off[l], row_off[l]+cout_p[l]):
      column 0                         -> bias (columns 1..BIAS_ROWS-1 are 0)
      columns BIAS_ROWS + t*cin_p[l]+ci -> w[dy,dx,ci,:] for tap t = dy*3+dx
    Zero padding rows/columns keep padded channels exactly inert.
    """
    cins, couts, cin_p, _, row_off, _, n_rows, n_cols = _layer_meta(params)
    slab = jnp.zeros((n_rows, n_cols), jnp.float32)
    for l, (w, b) in enumerate(params):
        cin, cout = cins[l], couts[l]
        r0 = row_off[l]
        slab = slab.at[r0:r0 + cout, 0].set(b.astype(jnp.float32))
        for dy in range(3):
            for dx in range(3):
                t = dy * 3 + dx
                c0 = BIAS_ROWS + t * cin_p[l]
                slab = slab.at[r0:r0 + cout, c0:c0 + cin].set(
                    w[dy, dx].T.astype(jnp.float32))
    return slab.astype(jnp.bfloat16)


def _build_mask_slab(H, W, images_per_block, cmax_p):
    """Pre-broadcast boundary masks: (9*cmax_p, images_per_block*H*W) f32.

    Mask for tap t occupies rows [t*cmax_p, (t+1)*cmax_p).  Computed modulo
    H*W so lane-batched images never leak into each other through the rolls.
    """
    HW = H * W
    lanes = images_per_block * HW
    q = jnp.arange(lanes, dtype=jnp.int32) % HW      # pixel index within image
    yy = q // W
    xx = q % W
    rows = []
    for dy in range(3):
        for dx in range(3):
            oy, ox = dy - 1, dx - 1
            m = jnp.ones((lanes,), jnp.bool_)
            if oy == -1:
                m = m & (yy >= 1)
            if oy == 1:
                m = m & (yy <= H - 2)
            if ox == -1:
                m = m & (xx >= 1)
            if ox == 1:
                m = m & (xx <= W - 2)
            rows.append(m)
    masks = jnp.stack(rows).astype(jnp.float32)                  # (9, lanes)
    masks = jnp.broadcast_to(masks[:, None, :], (9, cmax_p, lanes))
    return masks.reshape(9 * cmax_p, lanes)


def _choose_images_per_block(N, HW, cmax_p, vmem_budget_bytes=8 << 20):
    """Largest divisor of N s.t. patch+mask buffers fit the budget and, when
    N >= 2, the grid keeps >=2 steps (so v7x's two TensorCores both work)."""
    per_image = HW * ((BIAS_ROWS + 9 * cmax_p) * 2 + 9 * cmax_p * 4)
    cap = max(1, vmem_budget_bytes // per_image)
    best = 1
    for d in range(1, N + 1):
        if N % d or d > cap:
            continue
        if N >= 2 and (N // d) < 2:
            continue
        best = d
    return best


def ftp_psp5_forward(x_nchw, params, images_per_block=None):
    """Forward pass of ftp_psp5. Input/outputs are NCHW like the PyTorch module."""
    N, C, H, W = x_nchw.shape
    HW = H * W
    cins, couts, cin_p, cout_p, row_off, cmax_p, _, _ = _layer_meta(params)
    assert C == cins[0]

    if images_per_block is None:
        images_per_block = _choose_images_per_block(N, HW, cmax_p)
    ipb = images_per_block
    assert N % ipb == 0
    lanes = ipb * HW
    grid = (N // ipb,)

    w_slab = pack_params(params)                       # (sum cout_p, BIAS+9*cmax_p) bf16
    mask_slab = _build_mask_slab(H, W, ipb, cmax_p)    # (9*cmax_p, lanes) f32

    # NCHW -> channels-in-sublanes, (batch*pixels)-in-lanes.  No channel pad.
    x = jnp.transpose(x_nchw, (1, 0, 2, 3)).reshape(C, N * HW)

    # Per-tap (roll shift over the full lane axis, needs-boundary-mask flag).
    taps = []
    for dy in range(3):
        for dx in range(3):
            delta = (dy - 1) * W + (dx - 1)
            taps.append(((-delta) % lanes, (dy, dx) != (1, 1)))

    c_last, c_edge = couts[-1], couts[EDGE_LAYER]
    patch_rows = BIAS_ROWS + 9 * cmax_p

    def kernel(x_ref, w_ref, m_ref, h_ref, hedge_ref, patches_ref):
        # Constant ones rows -> bias folded into the matmul.
        patches_ref[0:BIAS_ROWS, :] = jnp.ones((BIAS_ROWS, lanes), jnp.bfloat16)
        # Layer 0 reads the UNPADDED input; zero the strip rows it won't cover
        # (the matching weight columns are zero, this just keeps garbage out).
        if cins[0] < cin_p[0]:
            patches_ref[BIAS_ROWS:BIAS_ROWS + 9 * cin_p[0], :] = jnp.zeros(
                (9 * cin_p[0], lanes), jnp.bfloat16)

        a = x_ref[...]                                   # (cin0, lanes) f32
        for l in range(NUM_LAYERS):
            cp = cin_p[l]
            op = cout_p[l]
            k = BIAS_ROWS + 9 * cp
            rows = a.shape[0]
            # im2col: write each rolled+masked tap straight into the scratch.
            for t, (shift, needs_mask) in enumerate(taps):
                s = a if shift == 0 else pltpu.roll(a, shift, 1)
                if needs_mask:
                    s = s * m_ref[t * cmax_p:t * cmax_p + rows, :]
                r0 = BIAS_ROWS + t * cp
                patches_ref[r0:r0 + rows, :] = s.astype(jnp.bfloat16)

            # One deep-K bf16 MXU matmul per layer, f32 accumulation.
            wl = w_ref[row_off[l]:row_off[l] + op, 0:k]          # (op, k) bf16
            acc = jnp.dot(wl, patches_ref[0:k, :],
                          preferred_element_type=jnp.float32)    # (op, lanes) f32
            if l < NUM_RELU_LAYERS:
                acc = jnp.maximum(acc, 0.0)
            a = acc

            if l == EDGE_LAYER:
                hedge_ref[...] = a[:c_edge, :].astype(hedge_ref.dtype)

        h_ref[...] = a[:c_last, :].astype(h_ref.dtype)

    out_shape = (
        jax.ShapeDtypeStruct((c_last, N * HW), jnp.float32),
        jax.ShapeDtypeStruct((c_edge, N * HW), jnp.float32),
    )
    in_specs = [
        pl.BlockSpec((C, lanes), lambda n: (0, n)),          # input chunk
        pl.BlockSpec(w_slab.shape, lambda n: (0, 0)),        # grid-invariant
        pl.BlockSpec(mask_slab.shape, lambda n: (0, 0)),     # grid-invariant
    ]
    out_specs = [
        pl.BlockSpec((c_last, lanes), lambda n: (0, n)),
        pl.BlockSpec((c_edge, lanes), lambda n: (0, n)),
    ]

    h_flat, hedge_flat = pl.pallas_call(
        kernel,
        out_shape=out_shape,
        grid_spec=pltpu.PrefetchScalarGridSpec(
            num_scalar_prefetch=0,
            grid=grid,
            in_specs=in_specs,
            out_specs=out_specs,
            scratch_shapes=[pltpu.VMEM((patch_rows, lanes), jnp.bfloat16)],
        ),
        compiler_params=pltpu.CompilerParams(
            dimension_semantics=("parallel",),   # chunks split across TCs
        ),
    )(x, w_slab, mask_slab)

    # Un-flatten back to NCHW (no channel-padding slices needed).
    h = h_flat.reshape(c_last, N, H, W).transpose(1, 0, 2, 3)
    h_edge = hedge_flat.reshape(c_edge, N, H, W).transpose(1, 0, 2, 3)
    return h, h_edge


def init_params(inp_ch, key):
    """Deterministic parameter init matching the shapes of ftp_psp5.__init__."""
    out_ch1, out_ch2, out_ch3, out_ch4 = 10, 20, 30, 40
    channel_plan = [
        (inp_ch, out_ch1), (out_ch1, out_ch2), (out_ch2, out_ch3),
        (out_ch3, out_ch4), (out_ch4, out_ch3), (out_ch3, inp_ch),
        (inp_ch, out_ch2), (out_ch2, out_ch1), (out_ch1, inp_ch),
    ]
    params = []
    for (cin, cout) in channel_plan:
        key, kw, kb = jax.random.split(key, 3)
        fan_in = cin * 3 * 3
        bound = 1.0 / jnp.sqrt(fan_in)
        # weights stored as HWIO (kh, kw, Cin, Cout)
        w = jax.random.uniform(kw, (3, 3, cin, cout), jnp.float32, -bound, bound)
        b = jax.random.uniform(kb, (cout,), jnp.float32, -bound, bound)
        params.append((w, b))
    return params


def _reference_forward(x_nchw, params):
    """Pure-JAX reference (lax.conv, f32) for correctness checking."""
    x = jnp.transpose(x_nchw, (0, 2, 3, 1))

    def conv(x, w, b, relu):
        y = jax.lax.conv_general_dilated(
            x, w, window_strides=(1, 1), padding="SAME",
            dimension_numbers=("NHWC", "HWIO", "NHWC"),
        ) + b
        return jnp.maximum(y, 0.0) if relu else y

    h = x
    for i in range(5):
        h = conv(h, *params[i], relu=True)
    h_edge = conv(h, *params[5], relu=True)
    h = h_edge
    for i in range(6, 9):
        h = conv(h, *params[i], relu=False)
    return jnp.transpose(h, (0, 3, 1, 2)), jnp.transpose(h_edge, (0, 3, 1, 2))


if __name__ == "__main__":
    key = jax.random.PRNGKey(0)
    inp_ch = 4
    N, H, W = 2, 16, 16

    kx, kp = jax.random.split(key)
    x = jax.random.normal(kx, (N, inp_ch, H, W), dtype=jnp.float32)  # NCHW
    params = init_params(inp_ch, kp)

    h, h_edge = ftp_psp5_forward(x, params)
    h = jax.block_until_ready(h)
    h_edge = jax.block_until_ready(h_edge)

    # Sanity-check against a pure-JAX f32 reference (tolerance loosened for
    # the bf16 MXU operands over 9 chained convolutions).
    h_ref, h_edge_ref = _reference_forward(x, params)
    assert h.shape == (N, inp_ch, H, W)
    assert h_edge.shape == (N, inp_ch, H, W)
    assert jnp.allclose(h, h_ref, rtol=2e-2, atol=2e-2)
    assert jnp.allclose(h_edge, h_edge_ref, rtol=2e-2, atol=2e-2)

    print("KERNEL_OK")
</pallas_src>

<mosaic_0001>
module attributes {stable_mosaic.version = 11 : i64} {
  func.func @kernel(%arg0: i32, %arg1: memref<4x256xf32, #tpu.memory_space<vmem>>, %arg2: memref<240x448xbf16, #tpu.memory_space<vmem>>, %arg3: memref<432x256xf32, #tpu.memory_space<vmem>>, %arg4: memref<4x256xf32, #tpu.memory_space<vmem>>, %arg5: memref<4x256xf32, #tpu.memory_space<vmem>>, %arg6: memref<448x256xbf16, #tpu.memory_space<vmem>>) attributes {dimension_semantics = [#tpu.dimension_semantics<parallel>], iteration_bounds = array<i64: 2>, scalar_prefetch = 0 : i64, scratch_operands = 1 : i64, tpu.core_type = #tpu.core_type<tc>, window_params = [{transform_indices = @transform_0, window_bounds = array<i64: 4, 256>}, {pipeline_mode = #tpu.pipeline_mode<synchronous>, transform_indices = @transform_1, window_bounds = array<i64: 240, 448>}, {pipeline_mode = #tpu.pipeline_mode<synchronous>, transform_indices = @transform_2, window_bounds = array<i64: 432, 256>}, {transform_indices = @transform_3, window_bounds = array<i64: 4, 256>}, {transform_indices = @transform_4, window_bounds = array<i64: 4, 256>}]} {
    %cst = arith.constant 1.000000e+00 : bf16
    %0 = vector.broadcast %cst : bf16 to vector<16x256xbf16>
    %c0 = arith.constant 0 : index
    %c0_0 = arith.constant 0 : index
    %1 = vector.load %arg6[%c0, %c0_0] : memref<448x256xbf16, #tpu.memory_space<vmem>>, vector<16x256xbf16>
    tpu.vector_store %arg6[%c0, %c0_0], %0 {strides = array<i32>} : memref<448x256xbf16, #tpu.memory_space<vmem>>, vector<16x256xbf16>,
    %cst_1 = arith.constant 0.000000e+00 : bf16
    %2 = vector.broadcast %cst_1 : bf16 to vector<144x256xbf16>
    %c16 = arith.constant 16 : index
    %c0_2 = arith.constant 0 : index
    %3 = vector.load %arg6[%c16, %c0_2] : memref<448x256xbf16, #tpu.memory_space<vmem>>, vector<144x256xbf16>
    tpu.vector_store %arg6[%c16, %c0_2], %2 {strides = array<i32>} : memref<448x256xbf16, #tpu.memory_space<vmem>>, vector<144x256xbf16>,
    %c0_3 = arith.constant 0 : index
    %c0_4 = arith.constant 0 : index
    %4 = vector.load %arg1[%c0_3, %c0_4] : memref<4x256xf32, #tpu.memory_space<vmem>>, vector<4x256xf32>
    %c17_i32 = arith.constant 17 : i32
    %5 = tpu.dynamic_rotate %4 by %c17_i32 dim 1 : vector<4x256xf32>, i32 -> vector<4x256xf32>
    %c0_5 = arith.constant 0 : index
    %c0_6 = arith.constant 0 : index
    %6 = vector.load %arg3[%c0_5, %c0_6] : memref<432x256xf32, #tpu.memory_space<vmem>>, vector<4x256xf32>
    %7 = arith.mulf %5, %6 : vector<4x256xf32>
    %8 = arith.truncf %7 : vector<4x256xf32> to vector<4x256xbf16>
    %c16_7 = arith.constant 16 : index
    %c0_8 = arith.constant 0 : index
    %9 = vector.load %arg6[%c16_7, %c0_8] : memref<448x256xbf16, #tpu.memory_space<vmem>>, vector<4x256xbf16>
    tpu.vector_store %arg6[%c16_7, %c0_8], %8 {strides = array<i32>} : memref<448x256xbf16, #tpu.memory_space<vmem>>, vector<4x256xbf16>,
    %c16_i32 = arith.constant 16 : i32
    %10 = tpu.dynamic_rotate %4 by %c16_i32 dim 1 : vector<4x256xf32>, i32 -> vector<4x256xf32>
    %c48 = arith.constant 48 : index
    %c0_9 = arith.constant 0 : index
    %11 = vector.load %arg3[%c48, %c0_9] : memref<432x256xf32, #tpu.memory_space<vmem>>, vector<4x256xf32>
    %12 = arith.mulf %10, %11 : vector<4x256xf32>
    %13 = arith.truncf %12 : vector<4x256xf32> to vector<4x256xbf16>
    %c32 = arith.constant 32 : index
    %c0_10 = arith.constant 0 : index
    %14 = vector.load %arg6[%c32, %c0_10] : memref<448x256xbf16, #tpu.memory_space<vmem>>, vector<4x256xbf16>
    tpu.vector_store %arg6[%c32, %c0_10], %13 {strides = array<i32>} : memref<448x256xbf16, #tpu.memory_space<vmem>>, vector<4x256xbf16>,
    %c15_i32 = arith.constant 15 : i32
    %15 = tpu.dynamic_rotate %4 by %c15_i32 dim 1 : vector<4x256xf32>, i32 -> vector<4x256xf32>
    %c96 = arith.constant 96 : index
    %c0_11 = arith.constant 0 : index
    %16 = vector.load %arg3[%c96, %c0_11] : memref<432x256xf32, #tpu.memory_space<vmem>>, vector<4x256xf32>
    %17 = arith.mulf %15, %16 : vector<4x256xf32>
    %18 = arith.truncf %17 : vector<4x256xf32> to vector<4x256xbf16>
    %c48_12 = arith.constant 48 : index
    %c0_13 = arith.constant 0 : index
    %19 = vector.load %arg6[%c48_12, %c0_13] : memref<448x256xbf16, #tpu.memory_space<vmem>>, vector<4x256xbf16>
    tpu.vector_store %arg6[%c48_12, %c0_13], %18 {strides = array<i32>} : memref<448x256xbf16, #tpu.memory_space<vmem>>, vector<4x256xbf16>,
    %c1_i32 = arith.constant 1 : i32
    %20 = tpu.dynamic_rotate %4 by %c1_i32 dim 1 : vector<4x256xf32>, i32 -> vector<4x256xf32>
    %c144 = arith.constant 144 : index
    %c0_14 = arith.constant 0 : index
    %21 = vector.load %arg3[%c144, %c0_14] : memref<432x256xf32, #tpu.memory_space<vmem>>, vector<4x256xf32>
    %22 = arith.mulf %20, %21 : vector<4x256xf32>
    %23 = arith.truncf %22 : vector<4x256xf32> to vector<4x256xbf16>
    %c64 = arith.constant 64 : index
    %c0_15 = arith.constant 0 : index
    %24 = vector.load %arg6[%c64, %c0_15] : memref<448x256xbf16, #tpu.memory_space<vmem>>, vector<4x256xbf16>
    tpu.vector_store %arg6[%c64, %c0_15], %23 {strides = array<i32>} : memref<448x256xbf16, #tpu.memory_space<vmem>>, vector<4x256xbf16>,
    %25 = arith.truncf %4 : vector<4x256xf32> to vector<4x256xbf16>
    %c80 = arith.constant 80 : index
    %c0_16 = arith.constant 0 : index
    %26 = vector.load %arg6[%c80, %c0_16] : memref<448x256xbf16, #tpu.memory_space<vmem>>, vector<4x256xbf16>
    tpu.vector_store %arg6[%c80, %c0_16], %25 {strides = array<i32>} : memref<448x256xbf16, #tpu.memory_space<vmem>>, vector<4x256xbf16>,
    %c255_i32 = arith.constant 255 : i32
    %27 = tpu.dynamic_rotate %4 by %c255_i32 dim 1 : vector<4x256xf32>, i32 -> vector<4x256xf32>
    %c240 = arith.constant 240 : index
    %c0_17 = arith.constant 0 : index
    %28 = vector.load %arg3[%c240, %c0_17] : memref<432x256xf32, #tpu.memory_space<vmem>>, vector<4x256xf32>
    %29 = arith.mulf %27, %28 : vector<4x256xf32>
    %30 = arith.truncf %29 : vector<4x256xf32> to vector<4x256xbf16>
    %c96_18 = arith.constant 96 : index
    %c0_19 = arith.constant 0 : index
    %31 = vector.load %arg6[%c96_18, %c0_19] : memref<448x256xbf16, #tpu.memory_space<vmem>>, vector<4x256xbf16>
    tpu.vector_store %arg6[%c96_18, %c0_19], %30 {strides = array<i32>} : memref<448x256xbf16, #tpu.memory_space<vmem>>, vector<4x256xbf16>,
    %c241_i32 = arith.constant 241 : i32
    %32 = tpu.dynamic_rotate %4 by %c241_i32 dim 1 : vector<4x256xf32>, i32 -> vector<4x256xf32>
    %c288 = arith.constant 288 : index
    %c0_20 = arith.constant 0 : index
    %33 = vector.load %arg3[%c288, %c0_20] : memref<432x256xf32, #tpu.memory_space<vmem>>, vector<4x256xf32>
    %34 = arith.mulf %32, %33 : vector<4x256xf32>
    %35 = arith.truncf %34 : vector<4x256xf32> to vector<4x256xbf16>
    %c112 = arith.constant 112 : index
    %c0_21 = arith.constant 0 : index
    %36 = vector.load %arg6[%c112, %c0_21] : memref<448x256xbf16, #tpu.memory_space<vmem>>, vector<4x256xbf16>
    tpu.vector_store %arg6[%c112, %c0_21], %35 {strides = array<i32>} : memref<448x256xbf16, #tpu.memory_space<vmem>>, vector<4x256xbf16>,
    %c240_i32 = arith.constant 240 : i32
    %37 = tpu.dynamic_rotate %4 by %c240_i32 dim 1 : vector<4x256xf32>, i32 -> vector<4x256xf32>
    %c336 = arith.constant 336 : index
    %c0_22 = arith.constant 0 : index
    %38 = vector.load %arg3[%c336, %c0_22] : memref<432x256xf32, #tpu.memory_space<vmem>>, vector<4x256xf32>
    %39 = arith.mulf %37, %38 : vector<4x256xf32>
    %40 = arith.truncf %39 : vector<4x256xf32> to vector<4x256xbf16>
    %c128 = arith.constant 128 : index
    %c0_23 = arith.constant 0 : index
    %41 = vector.load %arg6[%c128, %c0_23] : memref<448x256xbf16, #tpu.memory_space<vmem>>, vector<4x256xbf16>
    tpu.vector_store %arg6[%c128, %c0_23], %40 {strides = array<i32>} : memref<448x256xbf16, #tpu.memory_space<vmem>>, vector<4x256xbf16>,
    %c239_i32 = arith.constant 239 : i32
    %42 = tpu.dynamic_rotate %4 by %c239_i32 dim 1 : vector<4x256xf32>, i32 -> vector<4x256xf32>
    %c384 = arith.constant 384 : index
    %c0_24 = arith.constant 0 : index
    %43 = vector.load %arg3[%c384, %c0_24] : memref<432x256xf32, #tpu.memory_space<vmem>>, vector<4x256xf32>
    %44 = arith.mulf %42, %43 : vector<4x256xf32>
    %45 = arith.truncf %44 : vector<4x256xf32> to vector<4x256xbf16>
    %c144_25 = arith.constant 144 : index
    %c0_26 = arith.constant 0 : index
    %46 = vector.load %arg6[%c144_25, %c0_26] : memref<448x256xbf16, #tpu.memory_space<vmem>>, vector<4x256xbf16>
    tpu.vector_store %arg6[%c144_25, %c0_26], %45 {strides = array<i32>} : memref<448x256xbf16, #tpu.memory_space<vmem>>, vector<4x256xbf16>,
    %c0_27 = arith.constant 0 : index
    %c0_28 = arith.constant 0 : index
    %47 = vector.load %arg2[%c0_27, %c0_28] : memref<240x448xbf16, #tpu.memory_space<vmem>>, vector<16x160xbf16>
    %c0_29 = arith.constant 0 : index
    %c0_30 = arith.constant 0 : index
    %48 = vector.load %arg6[%c0_29, %c0_30] : memref<448x256xbf16, #tpu.memory_space<vmem>>, vector<160x256xbf16>
    %cst_31 = arith.constant dense<0.000000e+00> : vector<16x256xf32>
    %49 = tpu.matmul %47, %48, %cst_31 {dimension_numbers = #tpu.dot_dimension_numbers<[1], [0], [0], [1], [0, 0, 1, 1], [], []>} : vector<16x160xbf16>, vector<160x256xbf16>, vector<16x256xf32> -> vector<16x256xf32>
    %cst_32 = arith.constant 0.000000e+00 : f32
    %50 = vector.broadcast %cst_32 : f32 to vector<16x256xf32>
    %51 = arith.maximumf %49, %50 : vector<16x256xf32>
    %c17_i32_33 = arith.constant 17 : i32
    %52 = tpu.dynamic_rotate %51 by %c17_i32_33 dim 1 : vector<16x256xf32>, i32 -> vector<16x256xf32>
    %c0_34 = arith.constant 0 : index
    %c0_35 = arith.constant 0 : index
    %53 = vector.load %arg3[%c0_34, %c0_35] : memref<432x256xf32, #tpu.memory_space<vmem>>, vector<16x256xf32>
    %54 = arith.mulf %52, %53 : vector<16x256xf32>
    %55 = arith.truncf %54 : vector<16x256xf32> to vector<16x256xbf16>
    %c16_36 = arith.constant 16 : index
    %c0_37 = arith.constant 0 : index
    %56 = vector.load %arg6[%c16_36, %c0_37] : memref<448x256xbf16, #tpu.memory_space<vmem>>, vector<16x256xbf16>
    tpu.vector_store %arg6[%c16_36, %c0_37], %55 {strides = array<i32>} : memref<448x256xbf16, #tpu.memory_space<vmem>>, vector<16x256xbf16>,
    %c16_i32_38 = arith.constant 16 : i32
    %57 = tpu.dynamic_rotate %51 by %c16_i32_38 dim 1 : vector<16x256xf32>, i32 -> vector<16x256xf32>
    %c48_39 = arith.constant 48 : index
    %c0_40 = arith.constant 0 : index
    %58 = vector.load %arg3[%c48_39, %c0_40] : memref<432x256xf32, #tpu.memory_space<vmem>>, vector<16x256xf32>
    %59 = arith.mulf %57, %58 : vector<16x256xf32>
    %60 = arith.truncf %59 : vector<16x256xf32> to vector<16x256xbf16>
    %c32_41 = arith.constant 32 : index
    %c0_42 = arith.constant 0 : index
    %61 = vector.load %arg6[%c32_41, %c0_42] : memref<448x256xbf16, #tpu.memory_space<vmem>>, vector<16x256xbf16>
    tpu.vector_store %arg6[%c32_41, %c0_42], %60 {strides = array<i32>} : memref<448x256xbf16, #tpu.memory_space<vmem>>, vector<16x256xbf16>,
    %c15_i32_43 = arith.constant 15 : i32
    %62 = tpu.dynamic_rotate %51 by %c15_i32_43 dim 1 : vector<16x256xf32>, i32 -> vector<16x256xf32>
    %c96_44 = arith.constant 96 : index
    %c0_45 = arith.constant 0 : index
    %63 = vector.load %arg3[%c96_44, %c0_45] : memref<432x256xf32, #tpu.memory_space<vmem>>, vector<16x256xf32>
    %64 = arith.mulf %62, %63 : vector<16x256xf32>
    %65 = arith.truncf %64 : vector<16x256xf32> to vector<16x256xbf16>
    %c48_46 = arith.constant 48 : index
    %c0_47 = arith.constant 0 : index
    %66 = vector.load %arg6[%c48_46, %c0_47] : memref<448x256xbf16, #tpu.memory_space<vmem>>, vector<16x256xbf16>
    tpu.vector_store %arg6[%c48_46, %c0_47], %65 {strides = array<i32>} : memref<448x256xbf16, #tpu.memory_space<vmem>>, vector<16x256xbf16>,
    %c1_i32_48 = arith.constant 1 : i32
    %67 = tpu.dynamic_rotate %51 by %c1_i32_48 dim 1 : vector<16x256xf32>, i32 -> vector<16x256xf32>
    %c144_49 = arith.constant 144 : index
    %c0_50 = arith.constant 0 : index
    %68 = vector.load %arg3[%c144_49, %c0_50] : memref<432x256xf32, #tpu.memory_space<vmem>>, vector<16x256xf32>
    %69 = arith.mulf %67, %68 : vector<16x256xf32>
    %70 = arith.truncf %69 : vector<16x256xf32> to vector<16x256xbf16>
    %c64_51 = arith.constant 64 : index
    %c0_52 = arith.constant 0 : index
    %71 = vector.load %arg6[%c64_51, %c0_52] : memref<448x256xbf16, #tpu.memory_space<vmem>>, vector<16x256xbf16>
    tpu.vector_store %arg6[%c64_51, %c0_52], %70 {strides = array<i32>} : memref<448x256xbf16, #tpu.memory_space<vmem>>, vector<16x256xbf16>,
    %72 = arith.truncf %51 : vector<16x256xf32> to vector<16x256xbf16>
    %c80_53 = arith.constant 80 : index
    %c0_54 = arith.constant 0 : index
    %73 = vector.load %arg6[%c80_53, %c0_54] : memref<448x256xbf16, #tpu.memory_space<vmem>>, vector<16x256xbf16>
    tpu.vector_store %arg6[%c80_53, %c0_54], %72 {strides = array<i32>} : memref<448x256xbf16, #tpu.memory_space<vmem>>, vector<16x256xbf16>,
    %c255_i32_55 = arith.constant 255 : i32
    %74 = tpu.dynamic_rotate %51 by %c255_i32_55 dim 1 : vector<16x256xf32>, i32 -> vector<16x256xf32>
    %c240_56 = arith.constant 240 : index
    %c0_57 = arith.constant 0 : index
    %75 = vector.load %arg3[%c240_56, %c0_57] : memref<432x256xf32, #tpu.memory_space<vmem>>, vector<16x256xf32>
    %76 = arith.mulf %74, %75 : vector<16x256xf32>
    %77 = arith.truncf %76 : vector<16x256xf32> to vector<16x256xbf16>
    %c96_58 = arith.constant 96 : index
    %c0_59 = arith.constant 0 : index
    %78 = vector.load %arg6[%c96_58, %c0_59] : memref<448x256xbf16, #tpu.memory_space<vmem>>, vector<16x256xbf16>
    tpu.vector_store %arg6[%c96_58, %c0_59], %77 {strides = array<i32>} : memref<448x256xbf16, #tpu.memory_space<vmem>>, vector<16x256xbf16>,
    %c241_i32_60 = arith.constant 241 : i32
    %79 = tpu.dynamic_rotate %51 by %c241_i32_60 dim 1 : vector<16x256xf32>, i32 -> vector<16x256xf32>
    %c288_61 = arith.constant 288 : index
    %c0_62 = arith.constant 0 : index
    %80 = vector.load %arg3[%c288_61, %c0_62] : memref<432x256xf32, #tpu.memory_space<vmem>>, vector<16x256xf32>
    %81 = arith.mulf %79, %80 : vector<16x256xf32>
    %82 = arith.truncf %81 : vector<16x256xf32> to vector<16x256xbf16>
    %c112_63 = arith.constant 112 : index
    %c0_64 = arith.constant 0 : index
    %83 = vector.load %arg6[%c112_63, %c0_64] : memref<448x256xbf16, #tpu.memory_space<vmem>>, vector<16x256xbf16>
    tpu.vector_store %arg6[%c112_63, %c0_64], %82 {strides = array<i32>} : memref<448x256xbf16, #tpu.memory_space<vmem>>, vector<16x256xbf16>,
    %c240_i32_65 = arith.constant 240 : i32
    %84 = tpu.dynamic_rotate %51 by %c240_i32_65 dim 1 : vector<16x256xf32>, i32 -> vector<16x256xf32>
    %c336_66 = arith.constant 336 : index
    %c0_67 = arith.constant 0 : index
    %85 = vector.load %arg3[%c336_66, %c0_67] : memref<432x256xf32, #tpu.memory_space<vmem>>, vector<16x256xf32>
    %86 = arith.mulf %84, %85 : vector<16x256xf32>
    %87 = arith.truncf %86 : vector<16x256xf32> to vector<16x256xbf16>
    %c128_68 = arith.constant 128 : index
    %c0_69 = arith.constant 0 : index
    %88 = vector.load %arg6[%c128_68, %c0_69] : memref<448x256xbf16, #tpu.memory_space<vmem>>, vector<16x256xbf16>
    tpu.vector_store %arg6[%c128_68, %c0_69], %87 {strides = array<i32>} : memref<448x256xbf16, #tpu.memory_space<vmem>>, vector<16x256xbf16>,
    %c239_i32_70 = arith.constant 239 : i32
    %89 = tpu.dynamic_rotate %51 by %c239_i32_70 dim 1 : vector<16x256xf32>, i32 -> vector<16x256xf32>
    %c384_71 = arith.constant 384 : index
    %c0_72 = arith.constant 0 : index
    %90 = vector.load %arg3[%c384_71, %c0_72] : memref<432x256xf32, #tpu.memory_space<vmem>>, vector<16x256xf32>
    %91 = arith.mulf %89, %90 : vector<16x256xf32>
    %92 = arith.truncf %91 : vector<16x256xf32> to vector<16x256xbf16>
    %c144_73 = arith.constant 144 : index
    %c0_74 = arith.constant 0 : index
    %93 = vector.load %arg6[%c144_73, %c0_74] : memref<448x256xbf16, #tpu.memory_space<vmem>>, vector<16x256xbf16>
    tpu.vector_store %arg6[%c144_73, %c0_74], %92 {strides = array<i32>} : memref<448x256xbf16, #tpu.memory_space<vmem>>, vector<16x256xbf16>,
    %c16_75 = arith.constant 16 : index
    %c0_76 = arith.constant 0 : index
    %94 = vector.load %arg2[%c16_75, %c0_76] : memref<240x448xbf16, #tpu.memory_space<vmem>>, vector<32x160xbf16>
    %c0_77 = arith.constant 0 : index
    %c0_78 = arith.constant 0 : index
    %95 = vector.load %arg6[%c0_77, %c0_78] : memref<448x256xbf16, #tpu.memory_space<vmem>>, vector<160x256xbf16>
    %cst_79 = arith.constant dense<0.000000e+00> : vector<32x256xf32>
    %96 = tpu.matmul %94, %95, %cst_79 {dimension_numbers = #tpu.dot_dimension_numbers<[1], [0], [0], [1], [0, 0, 1, 1], [], []>} : vector<32x160xbf16>, vector<160x256xbf16>, vector<32x256xf32> -> vector<32x256xf32>
    %cst_80 = arith.constant 0.000000e+00 : f32
    %97 = vector.broadcast %cst_80 : f32 to vector<32x256xf32>
    %98 = arith.maximumf %96, %97 : vector<32x256xf32>
    %c17_i32_81 = arith.constant 17 : i32
    %99 = tpu.dynamic_rotate %98 by %c17_i32_81 dim 1 : vector<32x256xf32>, i32 -> vector<32x256xf32>
    %c0_82 = arith.constant 0 : index
    %c0_83 = arith.constant 0 : index
    %100 = vector.load %arg3[%c0_82, %c0_83] : memref<432x256xf32, #tpu.memory_space<vmem>>, vector<32x256xf32>
    %101 = arith.mulf %99, %100 : vector<32x256xf32>
    %102 = arith.truncf %101 : vector<32x256xf32> to vector<32x256xbf16>
    %c16_84 = arith.constant 16 : index
    %c0_85 = arith.constant 0 : index
    %103 = vector.load %arg6[%c16_84, %c0_85] : memref<448x256xbf16, #tpu.memory_space<vmem>>, vector<32x256xbf16>
    tpu.vector_store %arg6[%c16_84, %c0_85], %102 {strides = array<i32>} : memref<448x256xbf16, #tpu.memory_space<vmem>>, vector<32x256xbf16>,
    %c16_i32_86 = arith.constant 16 : i32
    %104 = tpu.dynamic_rotate %98 by %c16_i32_86 dim 1 : vector<32x256xf32>, i32 -> vector<32x256xf32>
    %c48_87 = arith.constant 48 : index
    %c0_88 = arith.constant 0 : index
    %105 = vector.load %arg3[%c48_87, %c0_88] : memref<432x256xf32, #tpu.memory_space<vmem>>, vector<32x256xf32>
    %106 = arith.mulf %104, %105 : vector<32x256xf32>
    %107 = arith.truncf %106 : vector<32x256xf32> to vector<32x256xbf16>
    %c48_89 = arith.constant 48 : index
    %c0_90 = arith.constant 0 : index
    %108 = vector.load %arg6[%c48_89, %c0_90] : memref<448x256xbf16, #tpu.memory_space<vmem>>, vector<32x256xbf16>
    tpu.vector_store %arg6[%c48_89, %c0_90], %107 {strides = array<i32>} : memref<448x256xbf16, #tpu.memory_space<vmem>>, vector<32x256xbf16>,
    %c15_i32_91 = arith.constant 15 : i32
    %109 = tpu.dynamic_rotate %98 by %c15_i32_91 dim 1 : vector<32x256xf32>, i32 -> vector<32x256xf32>
    %c96_92 = arith.constant 96 : index
    %c0_93 = arith.constant 0 : index
    %110 = vector.load %arg3[%c96_92, %c0_93] : memref<432x256xf32, #tpu.memory_space<vmem>>, vector<32x256xf32>
    %111 = arith.mulf %109, %110 : vector<32x256xf32>
    %112 = arith.truncf %111 : vector<32x256xf32> to vector<32x256xbf16>
    %c80_94 = arith.constant 80 : index
    %c0_95 = arith.constant 0 : index
    %113 = vector.load %arg6[%c80_94, %c0_95] : memref<448x256xbf16, #tpu.memory_space<vmem>>, vector<32x256xbf16>
    tpu.vector_store %arg6[%c80_94, %c0_95], %112 {strides = array<i32>} : memref<448x256xbf16, #tpu.memory_space<vmem>>, vector<32x256xbf16>,
    %c1_i32_96 = arith.constant 1 : i32
    %114 = tpu.dynamic_rotate %98 by %c1_i32_96 dim 1 : vector<32x256xf32>, i32 -> vector<32x256xf32>
    %c144_97 = arith.constant 144 : index
    %c0_98 = arith.constant 0 : index
    %115 = vector.load %arg3[%c144_97, %c0_98] : memref<432x256xf32, #tpu.memory_space<vmem>>, vector<32x256xf32>
    %116 = arith.mulf %114, %115 : vector<32x256xf32>
    %117 = arith.truncf %116 : vector<32x256xf32> to vector<32x256xbf16>
    %c112_99 = arith.constant 112 : index
    %c0_100 = arith.constant 0 : index
    %118 = vector.load %arg6[%c112_99, %c0_100] : memref<448x256xbf16, #tpu.memory_space<vmem>>, vector<32x256xbf16>
    tpu.vector_store %arg6[%c112_99, %c0_100], %117 {strides = array<i32>} : memref<448x256xbf16, #tpu.memory_space<vmem>>, vector<32x256xbf16>,
    %119 = arith.truncf %98 : vector<32x256xf32> to vector<32x256xbf16>
    %c144_101 = arith.constant 144 : index
    %c0_102 = arith.constant 0 : index
    %120 = vector.load %arg6[%c144_101, %c0_102] : memref<448x256xbf16, #tpu.memory_space<vmem>>, vector<32x256xbf16>
    tpu.vector_store %arg6[%c144_101, %c0_102], %119 {strides = array<i32>} : memref<448x256xbf16, #tpu.memory_space<vmem>>, vector<32x256xbf16>,
    %c255_i32_103 = arith.constant 255 : i32
    %121 = tpu.dynamic_rotate %98 by %c255_i32_103 dim 1 : vector<32x256xf32>, i32 -> vector<32x256xf32>
    %c240_104 = arith.constant 240 : index
    %c0_105 = arith.constant 0 : index
    %122 = vector.load %arg3[%c240_104, %c0_105] : memref<432x256xf32, #tpu.memory_space<vmem>>, vector<32x256xf32>
    %123 = arith.mulf %121, %122 : vector<32x256xf32>
    %124 = arith.truncf %123 : vector<32x256xf32> to vector<32x256xbf16>
    %c176 = arith.constant 176 : index
    %c0_106 = arith.constant 0 : index
    %125 = vector.load %arg6[%c176, %c0_106] : memref<448x256xbf16, #tpu.memory_space<vmem>>, vector<32x256xbf16>
    tpu.vector_store %arg6[%c176, %c0_106], %124 {strides = array<i32>} : memref<448x256xbf16, #tpu.memory_space<vmem>>, vector<32x256xbf16>,
    %c241_i32_107 = arith.constant 241 : i32
    %126 = tpu.dynamic_rotate %98 by %c241_i32_107 dim 1 : vector<32x256xf32>, i32 -> vector<32x256xf32>
    %c288_108 = arith.constant 288 : index
    %c0_109 = arith.constant 0 : index
    %127 = vector.load %arg3[%c288_108, %c0_109] : memref<432x256xf32, #tpu.memory_space<vmem>>, vector<32x256xf32>
    %128 = arith.mulf %126, %127 : vector<32x256xf32>
    %129 = arith.truncf %128 : vector<32x256xf32> to vector<32x256xbf16>
    %c208 = arith.constant 208 : index
    %c0_110 = arith.constant 0 : index
    %130 = vector.load %arg6[%c208, %c0_110] : memref<448x256xbf16, #tpu.memory_space<vmem>>, vector<32x256xbf16>
    tpu.vector_store %arg6[%c208, %c0_110], %129 {strides = array<i32>} : memref<448x256xbf16, #tpu.memory_space<vmem>>, vector<32x256xbf16>,
    %c240_i32_111 = arith.constant 240 : i32
    %131 = tpu.dynamic_rotate %98 by %c240_i32_111 dim 1 : vector<32x256xf32>, i32 -> vector<32x256xf32>
    %c336_112 = arith.constant 336 : index
    %c0_113 = arith.constant 0 : index
    %132 = vector.load %arg3[%c336_112, %c0_113] : memref<432x256xf32, #tpu.memory_space<vmem>>, vector<32x256xf32>
    %133 = arith.mulf %131, %132 : vector<32x256xf32>
    %134 = arith.truncf %133 : vector<32x256xf32> to vector<32x256xbf16>
    %c240_114 = arith.constant 240 : index
    %c0_115 = arith.constant 0 : index
    %135 = vector.load %arg6[%c240_114, %c0_115] : memref<448x256xbf16, #tpu.memory_space<vmem>>, vector<32x256xbf16>
    tpu.vector_store %arg6[%c240_114, %c0_115], %134 {strides = array<i32>} : memref<448x256xbf16, #tpu.memory_space<vmem>>, vector<32x256xbf16>,
    %c239_i32_116 = arith.constant 239 : i32
    %136 = tpu.dynamic_rotate %98 by %c239_i32_116 dim 1 : vector<32x256xf32>, i32 -> vector<32x256xf32>
    %c384_117 = arith.constant 384 : index
    %c0_118 = arith.constant 0 : index
    %137 = vector.load %arg3[%c384_117, %c0_118] : memref<432x256xf32, #tpu.memory_space<vmem>>, vector<32x256xf32>
    %138 = arith.mulf %136, %137 : vector<32x256xf32>
    %139 = arith.truncf %138 : vector<32x256xf32> to vector<32x256xbf16>
    %c272 = arith.constant 272 : index
    %c0_119 = arith.constant 0 : index
    %140 = vector.load %arg6[%c272, %c0_119] : memref<448x256xbf16, #tpu.memory_space<vmem>>, vector<32x256xbf16>
    tpu.vector_store %arg6[%c272, %c0_119], %139 {strides = array<i32>} : memref<448x256xbf16, #tpu.memory_space<vmem>>, vector<32x256xbf16>,
    %c48_120 = arith.constant 48 : index
    %c0_121 = arith.constant 0 : index
    %141 = vector.load %arg2[%c48_120, %c0_121] : memref<240x448xbf16, #tpu.memory_space<vmem>>, vector<32x304xbf16>
    %c0_122 = arith.constant 0 : index
    %c0_123 = arith.constant 0 : index
    %142 = vector.load %arg6[%c0_122, %c0_123] : memref<448x256xbf16, #tpu.memory_space<vmem>>, vector<304x256xbf16>
    %cst_124 = arith.constant dense<0.000000e+00> : vector<32x256xf32>
    %143 = tpu.matmul %141, %142, %cst_124 {dimension_numbers = #tpu.dot_dimension_numbers<[1], [0], [0], [1], [0, 0, 1, 1], [], []>} : vector<32x304xbf16>, vector<304x256xbf16>, vector<32x256xf32> -> vector<32x256xf32>
    %cst_125 = arith.constant 0.000000e+00 : f32
    %144 = vector.broadcast %cst_125 : f32 to vector<32x256xf32>
    %145 = arith.maximumf %143, %144 : vector<32x256xf32>
    %c17_i32_126 = arith.constant 17 : i32
    %146 = tpu.dynamic_rotate %145 by %c17_i32_126 dim 1 : vector<32x256xf32>, i32 -> vector<32x256xf32>
    %c0_127 = arith.constant 0 : index
    %c0_128 = arith.constant 0 : index
    %147 = vector.load %arg3[%c0_127, %c0_128] : memref<432x256xf32, #tpu.memory_space<vmem>>, vector<32x256xf32>
    %148 = arith.mulf %146, %147 : vector<32x256xf32>
    %149 = arith.truncf %148 : vector<32x256xf32> to vector<32x256xbf16>
    %c16_129 = arith.constant 16 : index
    %c0_130 = arith.constant 0 : index
    %150 = vector.load %arg6[%c16_129, %c0_130] : memref<448x256xbf16, #tpu.memory_space<vmem>>, vector<32x256xbf16>
    tpu.vector_store %arg6[%c16_129, %c0_130], %149 {strides = array<i32>} : memref<448x256xbf16, #tpu.memory_space<vmem>>, vector<32x256xbf16>,
    %c16_i32_131 = arith.constant 16 : i32
    %151 = tpu.dynamic_rotate %145 by %c16_i32_131 dim 1 : vector<32x256xf32>, i32 -> vector<32x256xf32>
    %c48_132 = arith.constant 48 : index
    %c0_133 = arith.constant 0 : index
    %152 = vector.load %arg3[%c48_132, %c0_133] : memref<432x256xf32, #tpu.memory_space<vmem>>, vector<32x256xf32>
    %153 = arith.mulf %151, %152 : vector<32x256xf32>
    %154 = arith.truncf %153 : vector<32x256xf32> to vector<32x256xbf16>
    %c48_134 = arith.constant 48 : index
    %c0_135 = arith.constant 0 : index
    %155 = vector.load %arg6[%c48_134, %c0_135] : memref<448x256xbf16, #tpu.memory_space<vmem>>, vector<32x256xbf16>
    tpu.vector_store %arg6[%c48_134, %c0_135], %154 {strides = array<i32>} : memref<448x256xbf16, #tpu.memory_space<vmem>>, vector<32x256xbf16>,
    %c15_i32_136 = arith.constant 15 : i32
    %156 = tpu.dynamic_rotate %145 by %c15_i32_136 dim 1 : vector<32x256xf32>, i32 -> vector<32x256xf32>
    %c96_137 = arith.constant 96 : index
    %c0_138 = arith.constant 0 : index
    %157 = vector.load %arg3[%c96_137, %c0_138] : memref<432x256xf32, #tpu.memory_space<vmem>>, vector<32x256xf32>
    %158 = arith.mulf %156, %157 : vector<32x256xf32>
    %159 = arith.truncf %158 : vector<32x256xf32> to vector<32x256xbf16>
    %c80_139 = arith.constant 80 : index
    %c0_140 = arith.constant 0 : index
    %160 = vector.load %arg6[%c80_139, %c0_140] : memref<448x256xbf16, #tpu.memory_space<vmem>>, vector<32x256xbf16>
    tpu.vector_store %arg6[%c80_139, %c0_140], %159 {strides = array<i32>} : memref<448x256xbf16, #tpu.memory_space<vmem>>, vector<32x256xbf16>,
    %c1_i32_141 = arith.constant 1 : i32
    %161 = tpu.dynamic_rotate %145 by %c1_i32_141 dim 1 : vector<32x256xf32>, i32 -> vector<32x256xf32>
    %c144_142 = arith.constant 144 : index
    %c0_143 = arith.constant 0 : index
    %162 = vector.load %arg3[%c144_142, %c0_143] : memref<432x256xf32, #tpu.memory_space<vmem>>, vector<32x256xf32>
    %163 = arith.mulf %161, %162 : vector<32x256xf32>
    %164 = arith.truncf %163 : vector<32x256xf32> to vector<32x256xbf16>
    %c112_144 = arith.constant 112 : index
    %c0_145 = arith.constant 0 : index
    %165 = vector.load %arg6[%c112_144, %c0_145] : memref<448x256xbf16, #tpu.memory_space<vmem>>, vector<32x256xbf16>
    tpu.vector_store %arg6[%c112_144, %c0_145], %164 {strides = array<i32>} : memref<448x256xbf16, #tpu.memory_space<vmem>>, vector<32x256xbf16>,
    %166 = arith.truncf %145 : vector<32x256xf32> to vector<32x256xbf16>
    %c144_146 = arith.constant 144 : index
    %c0_147 = arith.constant 0 : index
    %167 = vector.load %arg6[%c144_146, %c0_147] : memref<448x256xbf16, #tpu.memory_space<vmem>>, vector<32x256xbf16>
    tpu.vector_store %arg6[%c144_146, %c0_147], %166 {strides = array<i32>} : memref<448x256xbf16, #tpu.memory_space<vmem>>, vector<32x256xbf16>,
    %c255_i32_148 = arith.constant 255 : i32
    %168 = tpu.dynamic_rotate %145 by %c255_i32_148 dim 1 : vector<32x256xf32>, i32 -> vector<32x256xf32>
    %c240_149 = arith.constant 240 : index
    %c0_150 = arith.constant 0 : index
    %169 = vector.load %arg3[%c240_149, %c0_150] : memref<432x256xf32, #tpu.memory_space<vmem>>, vector<32x256xf32>
    %170 = arith.mulf %168, %169 : vector<32x256xf32>
    %171 = arith.truncf %170 : vector<32x256xf32> to vector<32x256xbf16>
    %c176_151 = arith.constant 176 : index
    %c0_152 = arith.constant 0 : index
    %172 = vector.load %arg6[%c176_151, %c0_152] : memref<448x256xbf16, #tpu.memory_space<vmem>>, vector<32x256xbf16>
    tpu.vector_store %arg6[%c176_151, %c0_152], %171 {strides = array<i32>} : memref<448x256xbf16, #tpu.memory_space<vmem>>, vector<32x256xbf16>,
    %c241_i32_153 = arith.constant 241 : i32
    %173 = tpu.dynamic_rotate %145 by %c241_i32_153 dim 1 : vector<32x256xf32>, i32 -> vector<32x256xf32>
    %c288_154 = arith.constant 288 : index
    %c0_155 = arith.constant 0 : index
    %174 = vector.load %arg3[%c288_154, %c0_155] : memref<432x256xf32, #tpu.memory_space<vmem>>, vector<32x256xf32>
    %175 = arith.mulf %173, %174 : vector<32x256xf32>
    %176 = arith.truncf %175 : vector<32x256xf32> to vector<32x256xbf16>
    %c208_156 = arith.constant 208 : index
    %c0_157 = arith.constant 0 : index
    %177 = vector.load %arg6[%c208_156, %c0_157] : memref<448x256xbf16, #tpu.memory_space<vmem>>, vector<32x256xbf16>
    tpu.vector_store %arg6[%c208_156, %c0_157], %176 {strides = array<i32>} : memref<448x256xbf16, #tpu.memory_space<vmem>>, vector<32x256xbf16>,
    %c240_i32_158 = arith.constant 240 : i32
    %178 = tpu.dynamic_rotate %145 by %c240_i32_158 dim 1 : vector<32x256xf32>, i32 -> vector<32x256xf32>
    %c336_159 = arith.constant 336 : index
    %c0_160 = arith.constant 0 : index
    %179 = vector.load %arg3[%c336_159, %c0_160] : memref<432x256xf32, #tpu.memory_space<vmem>>, vector<32x256xf32>
    %180 = arith.mulf %178, %179 : vector<32x256xf32>
    %181 = arith.truncf %180 : vector<32x256xf32> to vector<32x256xbf16>
    %c240_161 = arith.constant 240 : index
    %c0_162 = arith.constant 0 : index
    %182 = vector.load %arg6[%c240_161, %c0_162] : memref<448x256xbf16, #tpu.memory_space<vmem>>, vector<32x256xbf16>
    tpu.vector_store %arg6[%c240_161, %c0_162], %181 {strides = array<i32>} : memref<448x256xbf16, #tpu.memory_space<vmem>>, vector<32x256xbf16>,
    %c239_i32_163 = arith.constant 239 : i32
    %183 = tpu.dynamic_rotate %145 by %c239_i32_163 dim 1 : vector<32x256xf32>, i32 -> vector<32x256xf32>
    %c384_164 = arith.constant 384 : index
    %c0_165 = arith.constant 0 : index
    %184 = vector.load %arg3[%c384_164, %c0_165] : memref<432x256xf32, #tpu.memory_space<vmem>>, vector<32x256xf32>
    %185 = arith.mulf %183, %184 : vector<32x256xf32>
    %186 = arith.truncf %185 : vector<32x256xf32> to vector<32x256xbf16>
    %c272_166 = arith.constant 272 : index
    %c0_167 = arith.constant 0 : index
    %187 = vector.load %arg6[%c272_166, %c0_167] : memref<448x256xbf16, #tpu.memory_space<vmem>>, vector<32x256xbf16>
    tpu.vector_store %arg6[%c272_166, %c0_167], %186 {strides = array<i32>} : memref<448x256xbf16, #tpu.memory_space<vmem>>, vector<32x256xbf16>,
    %c80_168 = arith.constant 80 : index
    %c0_169 = arith.constant 0 : index
    %188 = vector.load %arg2[%c80_168, %c0_169] : memref<240x448xbf16, #tpu.memory_space<vmem>>, vector<48x304xbf16>
    %c0_170 = arith.constant 0 : index
    %c0_171 = arith.constant 0 : index
    %189 = vector.load %arg6[%c0_170, %c0_171] : memref<448x256xbf16, #tpu.memory_space<vmem>>, vector<304x256xbf16>
    %cst_172 = arith.constant dense<0.000000e+00> : vector<48x256xf32>
    %190 = tpu.matmul %188, %189, %cst_172 {dimension_numbers = #tpu.dot_dimension_numbers<[1], [0], [0], [1], [0, 0, 1, 1], [], []>} : vector<48x304xbf16>, vector<304x256xbf16>, vector<48x256xf32> -> vector<48x256xf32>
    %cst_173 = arith.constant 0.000000e+00 : f32
    %191 = vector.broadcast %cst_173 : f32 to vector<48x256xf32>
    %192 = arith.maximumf %190, %191 : vector<48x256xf32>
    %c17_i32_174 = arith.constant 17 : i32
    %193 = tpu.dynamic_rotate %192 by %c17_i32_174 dim 1 : vector<48x256xf32>, i32 -> vector<48x256xf32>
    %c0_175 = arith.constant 0 : index
    %c0_176 = arith.constant 0 : index
    %194 = vector.load %arg3[%c0_175, %c0_176] : memref<432x256xf32, #tpu.memory_space<vmem>>, vector<48x256xf32>
    %195 = arith.mulf %193, %194 : vector<48x256xf32>
    %196 = arith.truncf %195 : vector<48x256xf32> to vector<48x256xbf16>
    %c16_177 = arith.constant 16 : index
    %c0_178 = arith.constant 0 : index
    %197 = vector.load %arg6[%c16_177, %c0_178] : memref<448x256xbf16, #tpu.memory_space<vmem>>, vector<48x256xbf16>
    tpu.vector_store %arg6[%c16_177, %c0_178], %196 {strides = array<i32>} : memref<448x256xbf16, #tpu.memory_space<vmem>>, vector<48x256xbf16>,
    %c16_i32_179 = arith.constant 16 : i32
    %198 = tpu.dynamic_rotate %192 by %c16_i32_179 dim 1 : vector<48x256xf32>, i32 -> vector<48x256xf32>
    %c48_180 = arith.constant 48 : index
    %c0_181 = arith.constant 0 : index
    %199 = vector.load %arg3[%c48_180, %c0_181] : memref<432x256xf32, #tpu.memory_space<vmem>>, vector<48x256xf32>
    %200 = arith.mulf %198, %199 : vector<48x256xf32>
    %201 = arith.truncf %200 : vector<48x256xf32> to vector<48x256xbf16>
    %c64_182 = arith.constant 64 : index
    %c0_183 = arith.constant 0 : index
    %202 = vector.load %arg6[%c64_182, %c0_183] : memref<448x256xbf16, #tpu.memory_space<vmem>>, vector<48x256xbf16>
    tpu.vector_store %arg6[%c64_182, %c0_183], %201 {strides = array<i32>} : memref<448x256xbf16, #tpu.memory_space<vmem>>, vector<48x256xbf16>,
    %c15_i32_184 = arith.constant 15 : i32
    %203 = tpu.dynamic_rotate %192 by %c15_i32_184 dim 1 : vector<48x256xf32>, i32 -> vector<48x256xf32>
    %c96_185 = arith.constant 96 : index
    %c0_186 = arith.constant 0 : index
    %204 = vector.load %arg3[%c96_185, %c0_186] : memref<432x256xf32, #tpu.memory_space<vmem>>, vector<48x256xf32>
    %205 = arith.mulf %203, %204 : vector<48x256xf32>
    %206 = arith.truncf %205 : vector<48x256xf32> to vector<48x256xbf16>
    %c112_187 = arith.constant 112 : index
    %c0_188 = arith.constant 0 : index
    %207 = vector.load %arg6[%c112_187, %c0_188] : memref<448x256xbf16, #tpu.memory_space<vmem>>, vector<48x256xbf16>
    tpu.vector_store %arg6[%c112_187, %c0_188], %206 {strides = array<i32>} : memref<448x256xbf16, #tpu.memory_space<vmem>>, vector<48x256xbf16>,
    %c1_i32_189 = arith.constant 1 : i32
    %208 = tpu.dynamic_rotate %192 by %c1_i32_189 dim 1 : vector<48x256xf32>, i32 -> vector<48x256xf32>
    %c144_190 = arith.constant 144 : index
    %c0_191 = arith.constant 0 : index
    %209 = vector.load %arg3[%c144_190, %c0_191] : memref<432x256xf32, #tpu.memory_space<vmem>>, vector<48x256xf32>
    %210 = arith.mulf %208, %209 : vector<48x256xf32>
    %211 = arith.truncf %210 : vector<48x256xf32> to vector<48x256xbf16>
    %c160 = arith.constant 160 : index
    %c0_192 = arith.constant 0 : index
    %212 = vector.load %arg6[%c160, %c0_192] : memref<448x256xbf16, #tpu.memory_space<vmem>>, vector<48x256xbf16>
    tpu.vector_store %arg6[%c160, %c0_192], %211 {strides = array<i32>} : memref<448x256xbf16, #tpu.memory_space<vmem>>, vector<48x256xbf16>,
    %213 = arith.truncf %192 : vector<48x256xf32> to vector<48x256xbf16>
    %c208_193 = arith.constant 208 : index
    %c0_194 = arith.constant 0 : index
    %214 = vector.load %arg6[%c208_193, %c0_194] : memref<448x256xbf16, #tpu.memory_space<vmem>>, vector<48x256xbf16>
    tpu.vector_store %arg6[%c208_193, %c0_194], %213 {strides = array<i32>} : memref<448x256xbf16, #tpu.memory_space<vmem>>, vector<48x256xbf16>,
    %c255_i32_195 = arith.constant 255 : i32
    %215 = tpu.dynamic_rotate %192 by %c255_i32_195 dim 1 : vector<48x256xf32>, i32 -> vector<48x256xf32>
    %c240_196 = arith.constant 240 : index
    %c0_197 = arith.constant 0 : index
    %216 = vector.load %arg3[%c240_196, %c0_197] : memref<432x256xf32, #tpu.memory_space<vmem>>, vector<48x256xf32>
    %217 = arith.mulf %215, %216 : vector<48x256xf32>
    %218 = arith.truncf %217 : vector<48x256xf32> to vector<48x256xbf16>
    %c256 = arith.constant 256 : index
    %c0_198 = arith.constant 0 : index
    %219 = vector.load %arg6[%c256, %c0_198] : memref<448x256xbf16, #tpu.memory_space<vmem>>, vector<48x256xbf16>
    tpu.vector_store %arg6[%c256, %c0_198], %218 {strides = array<i32>} : memref<448x256xbf16, #tpu.memory_space<vmem>>, vector<48x256xbf16>,
    %c241_i32_199 = arith.constant 241 : i32
    %220 = tpu.dynamic_rotate %192 by %c241_i32_199 dim 1 : vector<48x256xf32>, i32 -> vector<48x256xf32>
    %c288_200 = arith.constant 288 : index
    %c0_201 = arith.constant 0 : index
    %221 = vector.load %arg3[%c288_200, %c0_201] : memref<432x256xf32, #tpu.memory_space<vmem>>, vector<48x256xf32>
    %222 = arith.mulf %220, %221 : vector<48x256xf32>
    %223 = arith.truncf %222 : vector<48x256xf32> to vector<48x256xbf16>
    %c304 = arith.constant 304 : index
    %c0_202 = arith.constant 0 : index
    %224 = vector.load %arg6[%c304, %c0_202] : memref<448x256xbf16, #tpu.memory_space<vmem>>, vector<48x256xbf16>
    tpu.vector_store %arg6[%c304, %c0_202], %223 {strides = array<i32>} : memref<448x256xbf16, #tpu.memory_space<vmem>>, vector<48x256xbf16>,
    %c240_i32_203 = arith.constant 240 : i32
    %225 = tpu.dynamic_rotate %192 by %c240_i32_203 dim 1 : vector<48x256xf32>, i32 -> vector<48x256xf32>
    %c336_204 = arith.constant 336 : index
    %c0_205 = arith.constant 0 : index
    %226 = vector.load %arg3[%c336_204, %c0_205] : memref<432x256xf32, #tpu.memory_space<vmem>>, vector<48x256xf32>
    %227 = arith.mulf %225, %226 : vector<48x256xf32>
    %228 = arith.truncf %227 : vector<48x256xf32> to vector<48x256xbf16>
    %c352 = arith.constant 352 : index
    %c0_206 = arith.constant 0 : index
    %229 = vector.load %arg6[%c352, %c0_206] : memref<448x256xbf16, #tpu.memory_space<vmem>>, vector<48x256xbf16>
    tpu.vector_store %arg6[%c352, %c0_206], %228 {strides = array<i32>} : memref<448x256xbf16, #tpu.memory_space<vmem>>, vector<48x256xbf16>,
    %c239_i32_207 = arith.constant 239 : i32
    %230 = tpu.dynamic_rotate %192 by %c239_i32_207 dim 1 : vector<48x256xf32>, i32 -> vector<48x256xf32>
    %c384_208 = arith.constant 384 : index
    %c0_209 = arith.constant 0 : index
    %231 = vector.load %arg3[%c384_208, %c0_209] : memref<432x256xf32, #tpu.memory_space<vmem>>, vector<48x256xf32>
    %232 = arith.mulf %230, %231 : vector<48x256xf32>
    %233 = arith.truncf %232 : vector<48x256xf32> to vector<48x256xbf16>
    %c400 = arith.constant 400 : index
    %c0_210 = arith.constant 0 : index
    %234 = vector.load %arg6[%c400, %c0_210] : memref<448x256xbf16, #tpu.memory_space<vmem>>, vector<48x256xbf16>
    tpu.vector_store %arg6[%c400, %c0_210], %233 {strides = array<i32>} : memref<448x256xbf16, #tpu.memory_space<vmem>>, vector<48x256xbf16>,
    %c128_211 = arith.constant 128 : index
    %c0_212 = arith.constant 0 : index
    %235 = vector.load %arg2[%c128_211, %c0_212] : memref<240x448xbf16, #tpu.memory_space<vmem>>, vector<32x448xbf16>
    %c0_213 = arith.constant 0 : index
    %c0_214 = arith.constant 0 : index
    %236 = vector.load %arg6[%c0_213, %c0_214] : memref<448x256xbf16, #tpu.memory_space<vmem>>, vector<448x256xbf16>
    %cst_215 = arith.constant dense<0.000000e+00> : vector<32x256xf32>
    %237 = tpu.matmul %235, %236, %cst_215 {dimension_numbers = #tpu.dot_dimension_numbers<[1], [0], [0], [1], [0, 0, 1, 1], [], []>} : vector<32x448xbf16>, vector<448x256xbf16>, vector<32x256xf32> -> vector<32x256xf32>
    %cst_216 = arith.constant 0.000000e+00 : f32
    %238 = vector.broadcast %cst_216 : f32 to vector<32x256xf32>
    %239 = arith.maximumf %237, %238 : vector<32x256xf32>
    %c17_i32_217 = arith.constant 17 : i32
    %240 = tpu.dynamic_rotate %239 by %c17_i32_217 dim 1 : vector<32x256xf32>, i32 -> vector<32x256xf32>
    %c0_218 = arith.constant 0 : index
    %c0_219 = arith.constant 0 : index
    %241 = vector.load %arg3[%c0_218, %c0_219] : memref<432x256xf32, #tpu.memory_space<vmem>>, vector<32x256xf32>
    %242 = arith.mulf %240, %241 : vector<32x256xf32>
    %243 = arith.truncf %242 : vector<32x256xf32> to vector<32x256xbf16>
    %c16_220 = arith.constant 16 : index
    %c0_221 = arith.constant 0 : index
    %244 = vector.load %arg6[%c16_220, %c0_221] : memref<448x256xbf16, #tpu.memory_space<vmem>>, vector<32x256xbf16>
    tpu.vector_store %arg6[%c16_220, %c0_221], %243 {strides = array<i32>} : memref<448x256xbf16, #tpu.memory_space<vmem>>, vector<32x256xbf16>,
    %c16_i32_222 = arith.constant 16 : i32
    %245 = tpu.dynamic_rotate %239 by %c16_i32_222 dim 1 : vector<32x256xf32>, i32 -> vector<32x256xf32>
    %c48_223 = arith.constant 48 : index
    %c0_224 = arith.constant 0 : index
    %246 = vector.load %arg3[%c48_223, %c0_224] : memref<432x256xf32, #tpu.memory_space<vmem>>, vector<32x256xf32>
    %247 = arith.mulf %245, %246 : vector<32x256xf32>
    %248 = arith.truncf %247 : vector<32x256xf32> to vector<32x256xbf16>
    %c48_225 = arith.constant 48 : index
    %c0_226 = arith.constant 0 : index
    %249 = vector.load %arg6[%c48_225, %c0_226] : memref<448x256xbf16, #tpu.memory_space<vmem>>, vector<32x256xbf16>
    tpu.vector_store %arg6[%c48_225, %c0_226], %248 {strides = array<i32>} : memref<448x256xbf16, #tpu.memory_space<vmem>>, vector<32x256xbf16>,
    %c15_i32_227 = arith.constant 15 : i32
    %250 = tpu.dynamic_rotate %239 by %c15_i32_227 dim 1 : vector<32x256xf32>, i32 -> vector<32x256xf32>
    %c96_228 = arith.constant 96 : index
    %c0_229 = arith.constant 0 : index
    %251 = vector.load %arg3[%c96_228, %c0_229] : memref<432x256xf32, #tpu.memory_space<vmem>>, vector<32x256xf32>
    %252 = arith.mulf %250, %251 : vector<32x256xf32>
    %253 = arith.truncf %252 : vector<32x256xf32> to vector<32x256xbf16>
    %c80_230 = arith.constant 80 : index
    %c0_231 = arith.constant 0 : index
    %254 = vector.load %arg6[%c80_230, %c0_231] : memref<448x256xbf16, #tpu.memory_space<vmem>>, vector<32x256xbf16>
    tpu.vector_store %arg6[%c80_230, %c0_231], %253 {strides = array<i32>} : memref<448x256xbf16, #tpu.memory_space<vmem>>, vector<32x256xbf16>,
    %c1_i32_232 = arith.constant 1 : i32
    %255 = tpu.dynamic_rotate %239 by %c1_i32_232 dim 1 : vector<32x256xf32>, i32 -> vector<32x256xf32>
    %c144_233 = arith.constant 144 : index
    %c0_234 = arith.constant 0 : index
    %256 = vector.load %arg3[%c144_233, %c0_234] : memref<432x256xf32, #tpu.memory_space<vmem>>, vector<32x256xf32>
    %257 = arith.mulf %255, %256 : vector<32x256xf32>
    %258 = arith.truncf %257 : vector<32x256xf32> to vector<32x256xbf16>
    %c112_235 = arith.constant 112 : index
    %c0_236 = arith.constant 0 : index
    %259 = vector.load %arg6[%c112_235, %c0_236] : memref<448x256xbf16, #tpu.memory_space<vmem>>, vector<32x256xbf16>
    tpu.vector_store %arg6[%c112_235, %c0_236], %258 {strides = array<i32>} : memref<448x256xbf16, #tpu.memory_space<vmem>>, vector<32x256xbf16>,
    %260 = arith.truncf %239 : vector<32x256xf32> to vector<32x256xbf16>
    %c144_237 = arith.constant 144 : index
    %c0_238 = arith.constant 0 : index
    %261 = vector.load %arg6[%c144_237, %c0_238] : memref<448x256xbf16, #tpu.memory_space<vmem>>, vector<32x256xbf16>
    tpu.vector_store %arg6[%c144_237, %c0_238], %260 {strides = array<i32>} : memref<448x256xbf16, #tpu.memory_space<vmem>>, vector<32x256xbf16>,
    %c255_i32_239 = arith.constant 255 : i32
    %262 = tpu.dynamic_rotate %239 by %c255_i32_239 dim 1 : vector<32x256xf32>, i32 -> vector<32x256xf32>
    %c240_240 = arith.constant 240 : index
    %c0_241 = arith.constant 0 : index
    %263 = vector.load %arg3[%c240_240, %c0_241] : memref<432x256xf32, #tpu.memory_space<vmem>>, vector<32x256xf32>
    %264 = arith.mulf %262, %263 : vector<32x256xf32>
    %265 = arith.truncf %264 : vector<32x256xf32> to vector<32x256xbf16>
    %c176_242 = arith.constant 176 : index
    %c0_243 = arith.constant 0 : index
    %266 = vector.load %arg6[%c176_242, %c0_243] : memref<448x256xbf16, #tpu.memory_space<vmem>>, vector<32x256xbf16>
    tpu.vector_store %arg6[%c176_242, %c0_243], %265 {strides = array<i32>} : memref<448x256xbf16, #tpu.memory_space<vmem>>, vector<32x256xbf16>,
    %c241_i32_244 = arith.constant 241 : i32
    %267 = tpu.dynamic_rotate %239 by %c241_i32_244 dim 1 : vector<32x256xf32>, i32 -> vector<32x256xf32>
    %c288_245 = arith.constant 288 : index
    %c0_246 = arith.constant 0 : index
    %268 = vector.load %arg3[%c288_245, %c0_246] : memref<432x256xf32, #tpu.memory_space<vmem>>, vector<32x256xf32>
    %269 = arith.mulf %267, %268 : vector<32x256xf32>
    %270 = arith.truncf %269 : vector<32x256xf32> to vector<32x256xbf16>
    %c208_247 = arith.constant 208 : index
    %c0_248 = arith.constant 0 : index
    %271 = vector.load %arg6[%c208_247, %c0_248] : memref<448x256xbf16, #tpu.memory_space<vmem>>, vector<32x256xbf16>
    tpu.vector_store %arg6[%c208_247, %c0_248], %270 {strides = array<i32>} : memref<448x256xbf16, #tpu.memory_space<vmem>>, vector<32x256xbf16>,
    %c240_i32_249 = arith.constant 240 : i32
    %272 = tpu.dynamic_rotate %239 by %c240_i32_249 dim 1 : vector<32x256xf32>, i32 -> vector<32x256xf32>
    %c336_250 = arith.constant 336 : index
    %c0_251 = arith.constant 0 : index
    %273 = vector.load %arg3[%c336_250, %c0_251] : memref<432x256xf32, #tpu.memory_space<vmem>>, vector<32x256xf32>
    %274 = arith.mulf %272, %273 : vector<32x256xf32>
    %275 = arith.truncf %274 : vector<32x256xf32> to vector<32x256xbf16>
    %c240_252 = arith.constant 240 : index
    %c0_253 = arith.constant 0 : index
    %276 = vector.load %arg6[%c240_252, %c0_253] : memref<448x256xbf16, #tpu.memory_space<vmem>>, vector<32x256xbf16>
    tpu.vector_store %arg6[%c240_252, %c0_253], %275 {strides = array<i32>} : memref<448x256xbf16, #tpu.memory_space<vmem>>, vector<32x256xbf16>,
    %c239_i32_254 = arith.constant 239 : i32
    %277 = tpu.dynamic_rotate %239 by %c239_i32_254 dim 1 : vector<32x256xf32>, i32 -> vector<32x256xf32>
    %c384_255 = arith.constant 384 : index
    %c0_256 = arith.constant 0 : index
    %278 = vector.load %arg3[%c384_255, %c0_256] : memref<432x256xf32, #tpu.memory_space<vmem>>, vector<32x256xf32>
    %279 = arith.mulf %277, %278 : vector<32x256xf32>
    %280 = arith.truncf %279 : vector<32x256xf32> to vector<32x256xbf16>
    %c272_257 = arith.constant 272 : index
    %c0_258 = arith.constant 0 : index
    %281 = vector.load %arg6[%c272_257, %c0_258] : memref<448x256xbf16, #tpu.memory_space<vmem>>, vector<32x256xbf16>
    tpu.vector_store %arg6[%c272_257, %c0_258], %280 {strides = array<i32>} : memref<448x256xbf16, #tpu.memory_space<vmem>>, vector<32x256xbf16>,
    %c160_259 = arith.constant 160 : index
    %c0_260 = arith.constant 0 : index
    %282 = vector.load %arg2[%c160_259, %c0_260] : memref<240x448xbf16, #tpu.memory_space<vmem>>, vector<16x304xbf16>
    %c0_261 = arith.constant 0 : index
    %c0_262 = arith.constant 0 : index
    %283 = vector.load %arg6[%c0_261, %c0_262] : memref<448x256xbf16, #tpu.memory_space<vmem>>, vector<304x256xbf16>
    %cst_263 = arith.constant dense<0.000000e+00> : vector<16x256xf32>
    %284 = tpu.matmul %282, %283, %cst_263 {dimension_numbers = #tpu.dot_dimension_numbers<[1], [0], [0], [1], [0, 0, 1, 1], [], []>} : vector<16x304xbf16>, vector<304x256xbf16>, vector<16x256xf32> -> vector<16x256xf32>
    %cst_264 = arith.constant 0.000000e+00 : f32
    %285 = vector.broadcast %cst_264 : f32 to vector<16x256xf32>
    %286 = arith.maximumf %284, %285 : vector<16x256xf32>
    %287 = vector.extract_strided_slice %286 {offsets = [0, 0], sizes = [4, 256], strides = [1, 1]} : vector<16x256xf32> to vector<4x256xf32>
    %c0_265 = arith.constant 0 : index
    %c0_266 = arith.constant 0 : index
    %288 = vector.load %arg5[%c0_265, %c0_266] : memref<4x256xf32, #tpu.memory_space<vmem>>, vector<4x256xf32>
    tpu.vector_store %arg5[%c0_265, %c0_266], %287 {strides = array<i32>} : memref<4x256xf32, #tpu.memory_space<vmem>>, vector<4x256xf32>,
    %c17_i32_267 = arith.constant 17 : i32
    %289 = tpu.dynamic_rotate %286 by %c17_i32_267 dim 1 : vector<16x256xf32>, i32 -> vector<16x256xf32>
    %c0_268 = arith.constant 0 : index
    %c0_269 = arith.constant 0 : index
    %290 = vector.load %arg3[%c0_268, %c0_269] : memref<432x256xf32, #tpu.memory_space<vmem>>, vector<16x256xf32>
    %291 = arith.mulf %289, %290 : vector<16x256xf32>
    %292 = arith.truncf %291 : vector<16x256xf32> to vector<16x256xbf16>
    %c16_270 = arith.constant 16 : index
    %c0_271 = arith.constant 0 : index
    %293 = vector.load %arg6[%c16_270, %c0_271] : memref<448x256xbf16, #tpu.memory_space<vmem>>, vector<16x256xbf16>
    tpu.vector_store %arg6[%c16_270, %c0_271], %292 {strides = array<i32>} : memref<448x256xbf16, #tpu.memory_space<vmem>>, vector<16x256xbf16>,
    %c16_i32_272 = arith.constant 16 : i32
    %294 = tpu.dynamic_rotate %286 by %c16_i32_272 dim 1 : vector<16x256xf32>, i32 -> vector<16x256xf32>
    %c48_273 = arith.constant 48 : index
    %c0_274 = arith.constant 0 : index
    %295 = vector.load %arg3[%c48_273, %c0_274] : memref<432x256xf32, #tpu.memory_space<vmem>>, vector<16x256xf32>
    %296 = arith.mulf %294, %295 : vector<16x256xf32>
    %297 = arith.truncf %296 : vector<16x256xf32> to vector<16x256xbf16>
    %c32_275 = arith.constant 32 : index
    %c0_276 = arith.constant 0 : index
    %298 = vector.load %arg6[%c32_275, %c0_276] : memref<448x256xbf16, #tpu.memory_space<vmem>>, vector<16x256xbf16>
    tpu.vector_store %arg6[%c32_275, %c0_276], %297 {strides = array<i32>} : memref<448x256xbf16, #tpu.memory_space<vmem>>, vector<16x256xbf16>,
    %c15_i32_277 = arith.constant 15 : i32
    %299 = tpu.dynamic_rotate %286 by %c15_i32_277 dim 1 : vector<16x256xf32>, i32 -> vector<16x256xf32>
    %c96_278 = arith.constant 96 : index
    %c0_279 = arith.constant 0 : index
    %300 = vector.load %arg3[%c96_278, %c0_279] : memref<432x256xf32, #tpu.memory_space<vmem>>, vector<16x256xf32>
    %301 = arith.mulf %299, %300 : vector<16x256xf32>
    %302 = arith.truncf %301 : vector<16x256xf32> to vector<16x256xbf16>
    %c48_280 = arith.constant 48 : index
    %c0_281 = arith.constant 0 : index
    %303 = vector.load %arg6[%c48_280, %c0_281] : memref<448x256xbf16, #tpu.memory_space<vmem>>, vector<16x256xbf16>
    tpu.vector_store %arg6[%c48_280, %c0_281], %302 {strides = array<i32>} : memref<448x256xbf16, #tpu.memory_space<vmem>>, vector<16x256xbf16>,
    %c1_i32_282 = arith.constant 1 : i32
    %304 = tpu.dynamic_rotate %286 by %c1_i32_282 dim 1 : vector<16x256xf32>, i32 -> vector<16x256xf32>
    %c144_283 = arith.constant 144 : index
    %c0_284 = arith.constant 0 : index
    %305 = vector.load %arg3[%c144_283, %c0_284] : memref<432x256xf32, #tpu.memory_space<vmem>>, vector<16x256xf32>
    %306 = arith.mulf %304, %305 : vector<16x256xf32>
    %307 = arith.truncf %306 : vector<16x256xf32> to vector<16x256xbf16>
    %c64_285 = arith.constant 64 : index
    %c0_286 = arith.constant 0 : index
    %308 = vector.load %arg6[%c64_285, %c0_286] : memref<448x256xbf16, #tpu.memory_space<vmem>>, vector<16x256xbf16>
    tpu.vector_store %arg6[%c64_285, %c0_286], %307 {strides = array<i32>} : memref<448x256xbf16, #tpu.memory_space<vmem>>, vector<16x256xbf16>,
    %309 = arith.truncf %286 : vector<16x256xf32> to vector<16x256xbf16>
    %c80_287 = arith.constant 80 : index
    %c0_288 = arith.constant 0 : index
    %310 = vector.load %arg6[%c80_287, %c0_288] : memref<448x256xbf16, #tpu.memory_space<vmem>>, vector<16x256xbf16>
    tpu.vector_store %arg6[%c80_287, %c0_288], %309 {strides = array<i32>} : memref<448x256xbf16, #tpu.memory_space<vmem>>, vector<16x256xbf16>,
    %c255_i32_289 = arith.constant 255 : i32
    %311 = tpu.dynamic_rotate %286 by %c255_i32_289 dim 1 : vector<16x256xf32>, i32 -> vector<16x256xf32>
    %c240_290 = arith.constant 240 : index
    %c0_291 = arith.constant 0 : index
    %312 = vector.load %arg3[%c240_290, %c0_291] : memref<432x256xf32, #tpu.memory_space<vmem>>, vector<16x256xf32>
    %313 = arith.mulf %311, %312 : vector<16x256xf32>
    %314 = arith.truncf %313 : vector<16x256xf32> to vector<16x256xbf16>
    %c96_292 = arith.constant 96 : index
    %c0_293 = arith.constant 0 : index
    %315 = vector.load %arg6[%c96_292, %c0_293] : memref<448x256xbf16, #tpu.memory_space<vmem>>, vector<16x256xbf16>
    tpu.vector_store %arg6[%c96_292, %c0_293], %314 {strides = array<i32>} : memref<448x256xbf16, #tpu.memory_space<vmem>>, vector<16x256xbf16>,
    %c241_i32_294 = arith.constant 241 : i32
    %316 = tpu.dynamic_rotate %286 by %c241_i32_294 dim 1 : vector<16x256xf32>, i32 -> vector<16x256xf32>
    %c288_295 = arith.constant 288 : index
    %c0_296 = arith.constant 0 : index
    %317 = vector.load %arg3[%c288_295, %c0_296] : memref<432x256xf32, #tpu.memory_space<vmem>>, vector<16x256xf32>
    %318 = arith.mulf %316, %317 : vector<16x256xf32>
    %319 = arith.truncf %318 : vector<16x256xf32> to vector<16x256xbf16>
    %c112_297 = arith.constant 112 : index
    %c0_298 = arith.constant 0 : index
    %320 = vector.load %arg6[%c112_297, %c0_298] : memref<448x256xbf16, #tpu.memory_space<vmem>>, vector<16x256xbf16>
    tpu.vector_store %arg6[%c112_297, %c0_298], %319 {strides = array<i32>} : memref<448x256xbf16, #tpu.memory_space<vmem>>, vector<16x256xbf16>,
    %c240_i32_299 = arith.constant 240 : i32
    %321 = tpu.dynamic_rotate %286 by %c240_i32_299 dim 1 : vector<16x256xf32>, i32 -> vector<16x256xf32>
    %c336_300 = arith.constant 336 : index
    %c0_301 = arith.constant 0 : index
    %322 = vector.load %arg3[%c336_300, %c0_301] : memref<432x256xf32, #tpu.memory_space<vmem>>, vector<16x256xf32>
    %323 = arith.mulf %321, %322 : vector<16x256xf32>
    %324 = arith.truncf %323 : vector<16x256xf32> to vector<16x256xbf16>
    %c128_302 = arith.constant 128 : index
    %c0_303 = arith.constant 0 : index
    %325 = vector.load %arg6[%c128_302, %c0_303] : memref<448x256xbf16, #tpu.memory_space<vmem>>, vector<16x256xbf16>
    tpu.vector_store %arg6[%c128_302, %c0_303], %324 {strides = array<i32>} : memref<448x256xbf16, #tpu.memory_space<vmem>>, vector<16x256xbf16>,
    %c239_i32_304 = arith.constant 239 : i32
    %326 = tpu.dynamic_rotate %286 by %c239_i32_304 dim 1 : vector<16x256xf32>, i32 -> vector<16x256xf32>
    %c384_305 = arith.constant 384 : index
    %c0_306 = arith.constant 0 : index
    %327 = vector.load %arg3[%c384_305, %c0_306] : memref<432x256xf32, #tpu.memory_space<vmem>>, vector<16x256xf32>
    %328 = arith.mulf %326, %327 : vector<16x256xf32>
    %329 = arith.truncf %328 : vector<16x256xf32> to vector<16x256xbf16>
    %c144_307 = arith.constant 144 : index
    %c0_308 = arith.constant 0 : index
    %330 = vector.load %arg6[%c144_307, %c0_308] : memref<448x256xbf16, #tpu.memory_space<vmem>>, vector<16x256xbf16>
    tpu.vector_store %arg6[%c144_307, %c0_308], %329 {strides = array<i32>} : memref<448x256xbf16, #tpu.memory_space<vmem>>, vector<16x256xbf16>,
    %c176_309 = arith.constant 176 : index
    %c0_310 = arith.constant 0 : index
    %331 = vector.load %arg2[%c176_309, %c0_310] : memref<240x448xbf16, #tpu.memory_space<vmem>>, vector<32x160xbf16>
    %c0_311 = arith.constant 0 : index
    %c0_312 = arith.constant 0 : index
    %332 = vector.load %arg6[%c0_311, %c0_312] : memref<448x256xbf16, #tpu.memory_space<vmem>>, vector<160x256xbf16>
    %cst_313 = arith.constant dense<0.000000e+00> : vector<32x256xf32>
    %333 = tpu.matmul %331, %332, %cst_313 {dimension_numbers = #tpu.dot_dimension_numbers<[1], [0], [0], [1], [0, 0, 1, 1], [], []>} : vector<32x160xbf16>, vector<160x256xbf16>, vector<32x256xf32> -> vector<32x256xf32>
    %c17_i32_314 = arith.constant 17 : i32
    %334 = tpu.dynamic_rotate %333 by %c17_i32_314 dim 1 : vector<32x256xf32>, i32 -> vector<32x256xf32>
    %c0_315 = arith.constant 0 : index
    %c0_316 = arith.constant 0 : index
    %335 = vector.load %arg3[%c0_315, %c0_316] : memref<432x256xf32, #tpu.memory_space<vmem>>, vector<32x256xf32>
    %336 = arith.mulf %334, %335 : vector<32x256xf32>
    %337 = arith.truncf %336 : vector<32x256xf32> to vector<32x256xbf16>
    %c16_317 = arith.constant 16 : index
    %c0_318 = arith.constant 0 : index
    %338 = vector.load %arg6[%c16_317, %c0_318] : memref<448x256xbf16, #tpu.memory_space<vmem>>, vector<32x256xbf16>
    tpu.vector_store %arg6[%c16_317, %c0_318], %337 {strides = array<i32>} : memref<448x256xbf16, #tpu.memory_space<vmem>>, vector<32x256xbf16>,
    %c16_i32_319 = arith.constant 16 : i32
    %339 = tpu.dynamic_rotate %333 by %c16_i32_319 dim 1 : vector<32x256xf32>, i32 -> vector<32x256xf32>
    %c48_320 = arith.constant 48 : index
    %c0_321 = arith.constant 0 : index
    %340 = vector.load %arg3[%c48_320, %c0_321] : memref<432x256xf32, #tpu.memory_space<vmem>>, vector<32x256xf32>
    %341 = arith.mulf %339, %340 : vector<32x256xf32>
    %342 = arith.truncf %341 : vector<32x256xf32> to vector<32x256xbf16>
    %c48_322 = arith.constant 48 : index
    %c0_323 = arith.constant 0 : index
    %343 = vector.load %arg6[%c48_322, %c0_323] : memref<448x256xbf16, #tpu.memory_space<vmem>>, vector<32x256xbf16>
    tpu.vector_store %arg6[%c48_322, %c0_323], %342 {strides = array<i32>} : memref<448x256xbf16, #tpu.memory_space<vmem>>, vector<32x256xbf16>,
    %c15_i32_324 = arith.constant 15 : i32
    %344 = tpu.dynamic_rotate %333 by %c15_i32_324 dim 1 : vector<32x256xf32>, i32 -> vector<32x256xf32>
    %c96_325 = arith.constant 96 : index
    %c0_326 = arith.constant 0 : index
    %345 = vector.load %arg3[%c96_325, %c0_326] : memref<432x256xf32, #tpu.memory_space<vmem>>, vector<32x256xf32>
    %346 = arith.mulf %344, %345 : vector<32x256xf32>
    %347 = arith.truncf %346 : vector<32x256xf32> to vector<32x256xbf16>
    %c80_327 = arith.constant 80 : index
    %c0_328 = arith.constant 0 : index
    %348 = vector.load %arg6[%c80_327, %c0_328] : memref<448x256xbf16, #tpu.memory_space<vmem>>, vector<32x256xbf16>
    tpu.vector_store %arg6[%c80_327, %c0_328], %347 {strides = array<i32>} : memref<448x256xbf16, #tpu.memory_space<vmem>>, vector<32x256xbf16>,
    %c1_i32_329 = arith.constant 1 : i32
    %349 = tpu.dynamic_rotate %333 by %c1_i32_329 dim 1 : vector<32x256xf32>, i32 -> vector<32x256xf32>
    %c144_330 = arith.constant 144 : index
    %c0_331 = arith.constant 0 : index
    %350 = vector.load %arg3[%c144_330, %c0_331] : memref<432x256xf32, #tpu.memory_space<vmem>>, vector<32x256xf32>
    %351 = arith.mulf %349, %350 : vector<32x256xf32>
    %352 = arith.truncf %351 : vector<32x256xf32> to vector<32x256xbf16>
    %c112_332 = arith.constant 112 : index
    %c0_333 = arith.constant 0 : index
    %353 = vector.load %arg6[%c112_332, %c0_333] : memref<448x256xbf16, #tpu.memory_space<vmem>>, vector<32x256xbf16>
    tpu.vector_store %arg6[%c112_332, %c0_333], %352 {strides = array<i32>} : memref<448x256xbf16, #tpu.memory_space<vmem>>, vector<32x256xbf16>,
    %354 = arith.truncf %333 : vector<32x256xf32> to vector<32x256xbf16>
    %c144_334 = arith.constant 144 : index
    %c0_335 = arith.constant 0 : index
    %355 = vector.load %arg6[%c144_334, %c0_335] : memref<448x256xbf16, #tpu.memory_space<vmem>>, vector<32x256xbf16>
    tpu.vector_store %arg6[%c144_334, %c0_335], %354 {strides = array<i32>} : memref<448x256xbf16, #tpu.memory_space<vmem>>, vector<32x256xbf16>,
    %c255_i32_336 = arith.constant 255 : i32
    %356 = tpu.dynamic_rotate %333 by %c255_i32_336 dim 1 : vector<32x256xf32>, i32 -> vector<32x256xf32>
    %c240_337 = arith.constant 240 : index
    %c0_338 = arith.constant 0 : index
    %357 = vector.load %arg3[%c240_337, %c0_338] : memref<432x256xf32, #tpu.memory_space<vmem>>, vector<32x256xf32>
    %358 = arith.mulf %356, %357 : vector<32x256xf32>
    %359 = arith.truncf %358 : vector<32x256xf32> to vector<32x256xbf16>
    %c176_339 = arith.constant 176 : index
    %c0_340 = arith.constant 0 : index
    %360 = vector.load %arg6[%c176_339, %c0_340] : memref<448x256xbf16, #tpu.memory_space<vmem>>, vector<32x256xbf16>
    tpu.vector_store %arg6[%c176_339, %c0_340], %359 {strides = array<i32>} : memref<448x256xbf16, #tpu.memory_space<vmem>>, vector<32x256xbf16>,
    %c241_i32_341 = arith.constant 241 : i32
    %361 = tpu.dynamic_rotate %333 by %c241_i32_341 dim 1 : vector<32x256xf32>, i32 -> vector<32x256xf32>
    %c288_342 = arith.constant 288 : index
    %c0_343 = arith.constant 0 : index
    %362 = vector.load %arg3[%c288_342, %c0_343] : memref<432x256xf32, #tpu.memory_space<vmem>>, vector<32x256xf32>
    %363 = arith.mulf %361, %362 : vector<32x256xf32>
    %364 = arith.truncf %363 : vector<32x256xf32> to vector<32x256xbf16>
    %c208_344 = arith.constant 208 : index
    %c0_345 = arith.constant 0 : index
    %365 = vector.load %arg6[%c208_344, %c0_345] : memref<448x256xbf16, #tpu.memory_space<vmem>>, vector<32x256xbf16>
    tpu.vector_store %arg6[%c208_344, %c0_345], %364 {strides = array<i32>} : memref<448x256xbf16, #tpu.memory_space<vmem>>, vector<32x256xbf16>,
    %c240_i32_346 = arith.constant 240 : i32
    %366 = tpu.dynamic_rotate %333 by %c240_i32_346 dim 1 : vector<32x256xf32>, i32 -> vector<32x256xf32>
    %c336_347 = arith.constant 336 : index
    %c0_348 = arith.constant 0 : index
    %367 = vector.load %arg3[%c336_347, %c0_348] : memref<432x256xf32, #tpu.memory_space<vmem>>, vector<32x256xf32>
    %368 = arith.mulf %366, %367 : vector<32x256xf32>
    %369 = arith.truncf %368 : vector<32x256xf32> to vector<32x256xbf16>
    %c240_349 = arith.constant 240 : index
    %c0_350 = arith.constant 0 : index
    %370 = vector.load %arg6[%c240_349, %c0_350] : memref<448x256xbf16, #tpu.memory_space<vmem>>, vector<32x256xbf16>
    tpu.vector_store %arg6[%c240_349, %c0_350], %369 {strides = array<i32>} : memref<448x256xbf16, #tpu.memory_space<vmem>>, vector<32x256xbf16>,
    %c239_i32_351 = arith.constant 239 : i32
    %371 = tpu.dynamic_rotate %333 by %c239_i32_351 dim 1 : vector<32x256xf32>, i32 -> vector<32x256xf32>
    %c384_352 = arith.constant 384 : index
    %c0_353 = arith.constant 0 : index
    %372 = vector.load %arg3[%c384_352, %c0_353] : memref<432x256xf32, #tpu.memory_space<vmem>>, vector<32x256xf32>
    %373 = arith.mulf %371, %372 : vector<32x256xf32>
    %374 = arith.truncf %373 : vector<32x256xf32> to vector<32x256xbf16>
    %c272_354 = arith.constant 272 : index
    %c0_355 = arith.constant 0 : index
    %375 = vector.load %arg6[%c272_354, %c0_355] : memref<448x256xbf16, #tpu.memory_space<vmem>>, vector<32x256xbf16>
    tpu.vector_store %arg6[%c272_354, %c0_355], %374 {strides = array<i32>} : memref<448x256xbf16, #tpu.memory_space<vmem>>, vector<32x256xbf16>,
    %c208_356 = arith.constant 208 : index
    %c0_357 = arith.constant 0 : index
    %376 = vector.load %arg2[%c208_356, %c0_357] : memref<240x448xbf16, #tpu.memory_space<vmem>>, vector<16x304xbf16>
    %c0_358 = arith.constant 0 : index
    %c0_359 = arith.constant 0 : index
    %377 = vector.load %arg6[%c0_358, %c0_359] : memref<448x256xbf16, #tpu.memory_space<vmem>>, vector<304x256xbf16>
    %cst_360 = arith.constant dense<0.000000e+00> : vector<16x256xf32>
    %378 = tpu.matmul %376, %377, %cst_360 {dimension_numbers = #tpu.dot_dimension_numbers<[1], [0], [0], [1], [0, 0, 1, 1], [], []>} : vector<16x304xbf16>, vector<304x256xbf16>, vector<16x256xf32> -> vector<16x256xf32>
    %c17_i32_361 = arith.constant 17 : i32
    %379 = tpu.dynamic_rotate %378 by %c17_i32_361 dim 1 : vector<16x256xf32>, i32 -> vector<16x256xf32>
    %c0_362 = arith.constant 0 : index
    %c0_363 = arith.constant 0 : index
    %380 = vector.load %arg3[%c0_362, %c0_363] : memref<432x256xf32, #tpu.memory_space<vmem>>, vector<16x256xf32>
    %381 = arith.mulf %379, %380 : vector<16x256xf32>
    %382 = arith.truncf %381 : vector<16x256xf32> to vector<16x256xbf16>
    %c16_364 = arith.constant 16 : index
    %c0_365 = arith.constant 0 : index
    %383 = vector.load %arg6[%c16_364, %c0_365] : memref<448x256xbf16, #tpu.memory_space<vmem>>, vector<16x256xbf16>
    tpu.vector_store %arg6[%c16_364, %c0_365], %382 {strides = array<i32>} : memref<448x256xbf16, #tpu.memory_space<vmem>>, vector<16x256xbf16>,
    %c16_i32_366 = arith.constant 16 : i32
    %384 = tpu.dynamic_rotate %378 by %c16_i32_366 dim 1 : vector<16x256xf32>, i32 -> vector<16x256xf32>
    %c48_367 = arith.constant 48 : index
    %c0_368 = arith.constant 0 : index
    %385 = vector.load %arg3[%c48_367, %c0_368] : memref<432x256xf32, #tpu.memory_space<vmem>>, vector<16x256xf32>
    %386 = arith.mulf %384, %385 : vector<16x256xf32>
    %387 = arith.truncf %386 : vector<16x256xf32> to vector<16x256xbf16>
    %c32_369 = arith.constant 32 : index
    %c0_370 = arith.constant 0 : index
    %388 = vector.load %arg6[%c32_369, %c0_370] : memref<448x256xbf16, #tpu.memory_space<vmem>>, vector<16x256xbf16>
    tpu.vector_store %arg6[%c32_369, %c0_370], %387 {strides = array<i32>} : memref<448x256xbf16, #tpu.memory_space<vmem>>, vector<16x256xbf16>,
    %c15_i32_371 = arith.constant 15 : i32
    %389 = tpu.dynamic_rotate %378 by %c15_i32_371 dim 1 : vector<16x256xf32>, i32 -> vector<16x256xf32>
    %c96_372 = arith.constant 96 : index
    %c0_373 = arith.constant 0 : index
    %390 = vector.load %arg3[%c96_372, %c0_373] : memref<432x256xf32, #tpu.memory_space<vmem>>, vector<16x256xf32>
    %391 = arith.mulf %389, %390 : vector<16x256xf32>
    %392 = arith.truncf %391 : vector<16x256xf32> to vector<16x256xbf16>
    %c48_374 = arith.constant 48 : index
    %c0_375 = arith.constant 0 : index
    %393 = vector.load %arg6[%c48_374, %c0_375] : memref<448x256xbf16, #tpu.memory_space<vmem>>, vector<16x256xbf16>
    tpu.vector_store %arg6[%c48_374, %c0_375], %392 {strides = array<i32>} : memref<448x256xbf16, #tpu.memory_space<vmem>>, vector<16x256xbf16>,
    %c1_i32_376 = arith.constant 1 : i32
    %394 = tpu.dynamic_rotate %378 by %c1_i32_376 dim 1 : vector<16x256xf32>, i32 -> vector<16x256xf32>
    %c144_377 = arith.constant 144 : index
    %c0_378 = arith.constant 0 : index
    %395 = vector.load %arg3[%c144_377, %c0_378] : memref<432x256xf32, #tpu.memory_space<vmem>>, vector<16x256xf32>
    %396 = arith.mulf %394, %395 : vector<16x256xf32>
    %397 = arith.truncf %396 : vector<16x256xf32> to vector<16x256xbf16>
    %c64_379 = arith.constant 64 : index
    %c0_380 = arith.constant 0 : index
    %398 = vector.load %arg6[%c64_379, %c0_380] : memref<448x256xbf16, #tpu.memory_space<vmem>>, vector<16x256xbf16>
    tpu.vector_store %arg6[%c64_379, %c0_380], %397 {strides = array<i32>} : memref<448x256xbf16, #tpu.memory_space<vmem>>, vector<16x256xbf16>,
    %399 = arith.truncf %378 : vector<16x256xf32> to vector<16x256xbf16>
    %c80_381 = arith.constant 80 : index
    %c0_382 = arith.constant 0 : index
    %400 = vector.load %arg6[%c80_381, %c0_382] : memref<448x256xbf16, #tpu.memory_space<vmem>>, vector<16x256xbf16>
    tpu.vector_store %arg6[%c80_381, %c0_382], %399 {strides = array<i32>} : memref<448x256xbf16, #tpu.memory_space<vmem>>, vector<16x256xbf16>,
    %c255_i32_383 = arith.constant 255 : i32
    %401 = tpu.dynamic_rotate %378 by %c255_i32_383 dim 1 : vector<16x256xf32>, i32 -> vector<16x256xf32>
    %c240_384 = arith.constant 240 : index
    %c0_385 = arith.constant 0 : index
    %402 = vector.load %arg3[%c240_384, %c0_385] : memref<432x256xf32, #tpu.memory_space<vmem>>, vector<16x256xf32>
    %403 = arith.mulf %401, %402 : vector<16x256xf32>
    %404 = arith.truncf %403 : vector<16x256xf32> to vector<16x256xbf16>
    %c96_386 = arith.constant 96 : index
    %c0_387 = arith.constant 0 : index
    %405 = vector.load %arg6[%c96_386, %c0_387] : memref<448x256xbf16, #tpu.memory_space<vmem>>, vector<16x256xbf16>
    tpu.vector_store %arg6[%c96_386, %c0_387], %404 {strides = array<i32>} : memref<448x256xbf16, #tpu.memory_space<vmem>>, vector<16x256xbf16>,
    %c241_i32_388 = arith.constant 241 : i32
    %406 = tpu.dynamic_rotate %378 by %c241_i32_388 dim 1 : vector<16x256xf32>, i32 -> vector<16x256xf32>
    %c288_389 = arith.constant 288 : index
    %c0_390 = arith.constant 0 : index
    %407 = vector.load %arg3[%c288_389, %c0_390] : memref<432x256xf32, #tpu.memory_space<vmem>>, vector<16x256xf32>
    %408 = arith.mulf %406, %407 : vector<16x256xf32>
    %409 = arith.truncf %408 : vector<16x256xf32> to vector<16x256xbf16>
    %c112_391 = arith.constant 112 : index
    %c0_392 = arith.constant 0 : index
    %410 = vector.load %arg6[%c112_391, %c0_392] : memref<448x256xbf16, #tpu.memory_space<vmem>>, vector<16x256xbf16>
    tpu.vector_store %arg6[%c112_391, %c0_392], %409 {strides = array<i32>} : memref<448x256xbf16, #tpu.memory_space<vmem>>, vector<16x256xbf16>,
    %c240_i32_393 = arith.constant 240 : i32
    %411 = tpu.dynamic_rotate %378 by %c240_i32_393 dim 1 : vector<16x256xf32>, i32 -> vector<16x256xf32>
    %c336_394 = arith.constant 336 : index
    %c0_395 = arith.constant 0 : index
    %412 = vector.load %arg3[%c336_394, %c0_395] : memref<432x256xf32, #tpu.memory_space<vmem>>, vector<16x256xf32>
    %413 = arith.mulf %411, %412 : vector<16x256xf32>
    %414 = arith.truncf %413 : vector<16x256xf32> to vector<16x256xbf16>
    %c128_396 = arith.constant 128 : index
    %c0_397 = arith.constant 0 : index
    %415 = vector.load %arg6[%c128_396, %c0_397] : memref<448x256xbf16, #tpu.memory_space<vmem>>, vector<16x256xbf16>
    tpu.vector_store %arg6[%c128_396, %c0_397], %414 {strides = array<i32>} : memref<448x256xbf16, #tpu.memory_space<vmem>>, vector<16x256xbf16>,
    %c239_i32_398 = arith.constant 239 : i32
    %416 = tpu.dynamic_rotate %378 by %c239_i32_398 dim 1 : vector<16x256xf32>, i32 -> vector<16x256xf32>
    %c384_399 = arith.constant 384 : index
    %c0_400 = arith.constant 0 : index
    %417 = vector.load %arg3[%c384_399, %c0_400] : memref<432x256xf32, #tpu.memory_space<vmem>>, vector<16x256xf32>
    %418 = arith.mulf %416, %417 : vector<16x256xf32>
    %419 = arith.truncf %418 : vector<16x256xf32> to vector<16x256xbf16>
    %c144_401 = arith.constant 144 : index
    %c0_402 = arith.constant 0 : index
    %420 = vector.load %arg6[%c144_401, %c0_402] : memref<448x256xbf16, #tpu.memory_space<vmem>>, vector<16x256xbf16>
    tpu.vector_store %arg6[%c144_401, %c0_402], %419 {strides = array<i32>} : memref<448x256xbf16, #tpu.memory_space<vmem>>, vector<16x256xbf16>,
    %c224 = arith.constant 224 : index
    %c0_403 = arith.constant 0 : index
    %421 = vector.load %arg2[%c224, %c0_403] : memref<240x448xbf16, #tpu.memory_space<vmem>>, vector<16x160xbf16>
    %c0_404 = arith.constant 0 : index
    %c0_405 = arith.constant 0 : index
    %422 = vector.load %arg6[%c0_404, %c0_405] : memref<448x256xbf16, #tpu.memory_space<vmem>>, vector<160x256xbf16>
    %cst_406 = arith.constant dense<0.000000e+00> : vector<16x256xf32>
    %423 = tpu.matmul %421, %422, %cst_406 {dimension_numbers = #tpu.dot_dimension_numbers<[1], [0], [0], [1], [0, 0, 1, 1], [], []>} : vector<16x160xbf16>, vector<160x256xbf16>, vector<16x256xf32> -> vector<16x256xf32>
    %424 = vector.extract_strided_slice %423 {offsets = [0, 0], sizes = [4, 256], strides = [1, 1]} : vector<16x256xf32> to vector<4x256xf32>
    %c0_407 = arith.constant 0 : index
    %c0_408 = arith.constant 0 : index
    %425 = vector.load %arg4[%c0_407, %c0_408] : memref<4x256xf32, #tpu.memory_space<vmem>>, vector<4x256xf32>
    tpu.vector_store %arg4[%c0_407, %c0_408], %424 {strides = array<i32>} : memref<4x256xf32, #tpu.memory_space<vmem>>, vector<4x256xf32>,
    return
  }
  func.func @transform_0(%arg0: i32) -> (i32, i32) {
    %c0_i32 = arith.constant 0 : i32
    %c0_i32_0 = arith.constant 0 : i32
    return %c0_i32, %arg0 : i32, i32
  }
  func.func @transform_1(%arg0: i32) -> (i32, i32) {
    %c0_i32 = arith.constant 0 : i32
    %c0_i32_0 = arith.constant 0 : i32
    %c0_i32_1 = arith.constant 0 : i32
    return %c0_i32, %c0_i32_0 : i32, i32
  }
  func.func @transform_2(%arg0: i32) -> (i32, i32) {
    %c0_i32 = arith.constant 0 : i32
    %c0_i32_0 = arith.constant 0 : i32
    %c0_i32_1 = arith.constant 0 : i32
    return %c0_i32, %c0_i32_0 : i32, i32
  }
  func.func @transform_3(%arg0: i32) -> (i32, i32) {
    %c0_i32 = arith.constant 0 : i32
    %c0_i32_0 = arith.constant 0 : i32
    return %c0_i32, %arg0 : i32, i32
  }
  func.func @transform_4(%arg0: i32) -> (i32, i32) {
    %c0_i32 = arith.constant 0 : i32
    %c0_i32_0 = arith.constant 0 : i32
    return %c0_i32, %arg0 : i32, i32
  }
}

</mosaic_0001>

<bundles_post_ra>
// kernel: tpu_custom_call.1
= control target key start
LH: loop header
LB: loop body
LE: loop exit
PB: predicated region body
PF: predicated region fallthrough
CT: control target
= control target key end

     0   :  { %10 = vsyncpa [#allocation4], 0  ;;  %s13578_s0 = inlined_call_operand.vmem [shape: f32[4,512], index: 0, kind: input, shape index: {}]   ;;  %s13579_s1 = inlined_call_operand.vmem [shape: bf16[240,448], index: 1, kind: input, shape index: {}]   ;;  %s13580_s2 = inlined_call_operand.vmem [shape: f32[432,256], index: 2, kind: input, shape index: {}]   ;;  %s13581_s3 = inlined_call_operand.hbm [shape: f32[4,512], index: 3, kind: output, shape index: {0}]   ;;  %s13582_s4 = inlined_call_operand.hbm [shape: f32[4,512], index: 4, kind: output, shape index: {1}]  }
   0x1   :  { %12 = vsyncpa [#allocation4 + $0x1], 0 }
   0x2   :  { %13 = vsyncpa [#allocation6], 0 }
   0x3   :  { %15 = vsyncpa [#allocation6 + $0x1], 0  ;;  %s8699_s15 = smov 0   ;;  %s8701_s16 = smov 0  }
   0x4   :  { %s8703_s17 = smov 0   ;;  %s8705_s18 = smov 0  }
   0x5 LB: > { %s8720_s19 = sadd.s32 4294967295, %s8660_s18   ;;  %s7312_s20 = sadd.s32 4294967294, %s8660_s18   ;;  %s8660_s18 = sphi %s8705_s18, %s13721_s18   ;;  %s8656_s17 = sphi %s8703_s17, %s13720_s17   ;;  %s8652_s16 = sphi %s8701_s16, %s13719_s16   ;;  %s8648_s15 = sphi %s8699_s15, %s13718_s15  }
   0x6   : > { %s8724_s21 = sadd.s32 1, %s8660_s18   ;;  %s96_s22 = sadd.s32 1, %s8656_s17 }
   0x7   : > { %s93_s23 = ssub.s32 %s8660_s18, %s8724_s21  ;;  %p106_p0 = scmp.ne.s32.totalorder %s8656_s17, %s8652_s16 }
   0x8   : > { %p94_p1 = scmp.eq.s32.totalorder %s93_s23, 0  ;;  %p107_p2 = scmp.eq.s32.totalorder %s8720_s19, 1 }
   0x9   : > { %p112_p3 = scmp.ne.s32.totalorder %s8652_s16, %s8648_s15  ;;  %p113_p4 = scmp.eq.s32.totalorder %s7312_s20, 1 }
   0xa   : > { %s8735_s24 = scalar_select %p94_p1, %s8656_s17, %s96_s22  }
   0xb   : > { %p8737_p5 = por %p107_p2, %p106_p0  ;;  %p8741_p6 = por %p113_p4, %p112_p3 }
   0xc   : > { %p7315_p7 = scmp.ge.s32.totalorder %s8660_s18, 1  ;;  %p172_p8 = scmp.lt.s32.totalorder %s8660_s18, 3 }
   0xe   : > { %p173_p9 = pnand %p7315_p7, %p172_p8 }
  0x10   : > { %176 = sbr.rel (%p173_p9) target bundleno = 3878 (0xf26), region = 32 }
  0x15   : > { %s7318_s27 = sshll.u32 %s8720_s19, 1  ;;  %v13583_v0 = vmov 0   ;;  %s13616_s6 = smov 127   ;;  %v8671_v4 = vmov 1065369472   ;;  %vm539_vm0 = vcmask 261120   ;;  %v241_v6 = vlaneseq }
  0x16   : > { %p204_p10 = scmp.lt.s32.totalorder %s7318_s27, 3  ;;  %225 = vst [vmem:[#allocation2 + $0x120] sm:$0xff] %v13583_v0  ;;  %215 = vst [vmem:[#allocation2 + $0xd8] sm:$0xff] %v13583_v0  ;;  %s13618_s7 = smov 113   ;;  %v8253_v5 = vld [vmem:[%s13579_s1 + $0x4] ss:$16 sps:$4 sm:$0xff]  }
  0x17   : > { %217 = vst [vmem:[#allocation2 + $0x50] sm:$0xff] %v13583_v0  ;;  %219 = vst [vmem:[#allocation2 + $0x130] sm:$0xff] %v13583_v0  ;;  %s8665_s8 = smov 1   ;;  %s8666_s9 = smov 15   ;;  %7351 = vmatprep.mubr.msk.bf16.mxu0 %vm539_vm0, %v8253_v5  ;;  %v8781_v7 = vand.u32 127, %v241_v6  ;;  %vm1923_vm9 = vcmask 392192  }
  0x18   : > { %221 = vst [vmem:[#allocation2 + $0x180] sm:$0xff] %v13583_v0  ;;  %223 = vst [vmem:[#allocation2 + $0x118] sm:$0xff] %v13583_v0  ;;  %s13723_s27 = smov (!%p204_p10, %s7318_s27), 3  ;;  %s13630_s10 = smov 16   ;;  %v335_v10 = vld [vmem:[%s13580_s2 + $0x1e0] sm:$0xf] }
  0x19   : > { %227 = vst [vmem:[#allocation2 + $0x108] sm:$0xff] %v13583_v0  ;;  %229 = vst [vmem:[#allocation2 + $0xe0] sm:$0xff] %v13583_v0  ;;  %s7319_s28 = sshll.u32 %s13723_s27, 2  ;;  %s13628_s11 = smov 17   ;;  %vm332_vm1 = vcmp.lt.s32.totalorder %v8781_v7, 127  ;;  %vm352_vm2 = vcmp.lt.s32.totalorder %v8781_v7, 113 }
  0x1a   : > { %231 = vst [vmem:[#allocation2 + $0x138] sm:$0xff] %v13583_v0  ;;  %s207_s5 = scalar_lea.vmem %s13578_s0, %s7319_s28  ;;  %s13614_s12 = smov 111   ;;  %213 = vst [vmem:[#allocation2 + $0xb0] sm:$0xff] %v8671_v4  ;;  %v336_v11 = vld [vmem:[%s13580_s2 + $0x1e8] sm:$0xf]  ;;  %vm303_vm3 = vcmp.lt.s32.totalorder %v8781_v7, 1 }
  0x1b   : > { %v233_v1 = vld [vmem:[%s207_s5] sm:$0xff]  ;;  %s13626_s13 = smov 112   ;;  %v356_v13 = vld [vmem:[%s13580_s2 + $0x248] sm:$0xf]  ;;  %vm283_vm4 = vcmp.lt.s32.totalorder %v8781_v7, 15  ;;  %vm263_vm5 = vcmp.lt.s32.totalorder %v8781_v7, 16 }
  0x1c   : > { %328 = vrot.lane.b32.xlu1 %v233_v1, %s13616_s6  ;;  %348 = vrot.lane.b32.xlu0 %v233_v1, %s13618_s7  ;;  %v235_v2 = vcombine.high %v233_v1, %v233_v1  ;;  %v355_v12 = vld [vmem:[%s13580_s2 + $0x240] sm:$0xf]  ;;  %v307_v25 = vld [vmem:[%s13580_s2 + $0x128] sm:$0xf]  ;;  %vm243_vm6 = vcmp.lt.s32.totalorder %v8781_v7, 17  ;;  %vm392_vm7 = vcmp.lt.s32.totalorder %v8781_v7, 111 }
  0x1d   : > { %v306_v24 = vld [vmem:[%s13580_s2 + $0x120] sm:$0xf]  ;;  %v287_v35 = vld [vmem:[%s13580_s2 + $0xc8] sm:$0xf]  ;;  %vm372_vm8 = vcmp.lt.s32.totalorder %v8781_v7, 112  ;;  %vm4288_vm10 = vcmask 523264  }
  0x1e   : > { %v7937_v3 = vpack.c.bf16 %v235_v2, %v233_v1  ;;  %v286_v34 = vld [vmem:[%s13580_s2 + $0xc0] sm:$0xf]  ;;  %v267_v46 = vld [vmem:[%s13580_s2 + $0x68] sm:$0xf]  ;;  %s13705_s14 = smov 113   ;;  %s13706_s20 = smov 127  }
  0x1f   : > { %v266_v43 = vld [vmem:[%s13580_s2 + $0x60] sm:$0xf]  ;;  %v247_v57 = vld [vmem:[%s13580_s2 + $0x8] sm:$0xf]  ;;  %s13707_s22 = smov 111   ;;  %s12263_s23 = sand.u32 1, %s8652_s16  }
  0x20   : > { %330 = vrot.lane.b32.xlu1 %v235_v2, %s13616_s6  ;;  %350 = vrot.lane.b32.xlu0 %v235_v2, %s13618_s7  ;;  %327 = vst [vmem:[#allocation2 + $0x118] sm:$0x33] %v7937_v3  ;;  %v246_v56 = vld [vmem:[%s13580_s2] sm:$0xf]  ;;  %s13625_s27 = sshll.u32 %s12263_s23, 3 }
  0x21   : > { %s12284_s28 = scalar_lea.vmem [#allocation5], %s13625_s27  ;;  %v8317_v7 = vld [vmem:[%s13579_s1 + $0x1c0] ss:$16 sps:$4 sm:$0xff]  }
  0x24   : > { %301 = vrot.lane.b32.xlu1 %v235_v2, %s8665_s8  ;;  %299 = vrot.lane.b32.xlu0 %v233_v1, %s8665_s8 }
  0x27   : > { %v420_v58 = vld [vmem:[#allocation2 + $0x118] sm:$0xff] }
  0x28   : > { %281 = vrot.lane.b32.xlu1 %v235_v2, %s8666_s9  ;;  %279 = vrot.lane.b32.xlu0 %v233_v1, %s8666_s9  ;;  %v7342_v5 = vcombine.high %v420_v58, %v13583_v0 }
  0x2c   : > { %261 = vrot.lane.b32.xlu1 %v235_v2, %s13630_s10  ;;  %259 = vrot.lane.b32.xlu0 %v233_v1, %s13630_s10 }
  0x30   : > { %239 = vrot.lane.b32.xlu1 %v235_v2, %s13628_s11  ;;  %237 = vrot.lane.b32.xlu0 %v233_v1, %s13628_s11 }
  0x34   : > { %390 = vrot.lane.b32.xlu1 %v235_v2, %s13614_s12  ;;  %388 = vrot.lane.b32.xlu0 %v233_v1, %s13614_s12 }
  0x38   : > { %370 = vrot.lane.b32.xlu1 %v235_v2, %s13626_s13  ;;  %368 = vrot.lane.b32.xlu0 %v233_v1, %s13626_s13 }
  0x8e   : > { %v329_v8 = vpop.permute.xlu1 %328  ;;  %v349_v9 = vpop.permute.xlu0 %348 }
  0x92   : > { %v331_v14 = vpop.permute.xlu1 %330  ;;  %v351_v15 = vpop.permute.xlu0 %350 }
  0x93   : > { %v333_v16 = vsel %vm332_vm1, %v329_v8, %v331_v14  ;;  %v334_v17 = vsel %vm332_vm1, %v331_v14, %v329_v8  ;;  %v353_v18 = vsel %vm352_vm2, %v349_v9, %v351_v15  ;;  %v354_v19 = vsel %vm352_vm2, %v351_v15, %v349_v9  ;;  %v395_v9 = vld [vmem:[%s13580_s2 + $0x300] sm:$0xf] }
  0x94   : > { %v337_v20 = vmul.f32 %v335_v10, %v333_v16  ;;  %v338_v21 = vmul.f32 %v336_v11, %v334_v17  ;;  %v357_v22 = vmul.f32 %v355_v12, %v353_v18  ;;  %v358_v23 = vmul.f32 %v356_v13, %v354_v19  ;;  %v396_v10 = vld [vmem:[%s13580_s2 + $0x308] sm:$0xf] }
  0x95   : > { %v7341_v14 = vcombine.low %v420_v58, %v13583_v0  ;;  %v8256_v58 = vld [vmem:[%s13579_s1 + $0x24] ss:$16 sps:$4 sm:$0xff]  }
  0x96   : > { %v7938_v26 = vpack.c.bf16 %v338_v21, %v337_v20  ;;  %v7939_v27 = vpack.c.bf16 %v358_v23, %v357_v22  ;;  %v302_v28 = vpop.permute.xlu1 %301  ;;  %v300_v29 = vpop.permute.xlu0 %299  ;;  %v375_v21 = vld [vmem:[%s13580_s2 + $0x2a0] sm:$0xf]  ;;  %v376_v22 = vld [vmem:[%s13580_s2 + $0x2a8] sm:$0xf]  ;;  %7394 = vmatprep.mubr.msk.bf16.mxu1 %vm539_vm0, %v8256_v58 }
  0x97   : > { %v304_v30 = vsel %vm303_vm3, %v300_v29, %v302_v28  ;;  %v305_v31 = vsel %vm303_vm3, %v302_v28, %v300_v29 }
  0x98   : > { %347 = vst [vmem:[#allocation2 + $0x120] sm:$0x33] %v7938_v26  ;;  %367 = vst [vmem:[#allocation2 + $0x108] sm:$0x33] %v7939_v27  ;;  %v308_v32 = vmul.f32 %v306_v24, %v305_v31  ;;  %v309_v33 = vmul.f32 %v307_v25, %v304_v30 }
  0x9a   : > { %v7936_v36 = vpack.c.bf16 %v309_v33, %v308_v32  ;;  %v282_v37 = vpop.permute.xlu1 %281  ;;  %v280_v38 = vpop.permute.xlu0 %279 }
  0x9b   : > { %v284_v39 = vsel %vm283_vm4, %v280_v38, %v282_v37  ;;  %v285_v40 = vsel %vm283_vm4, %v282_v37, %v280_v38 }
  0x9c   : > { %318 = vst [vmem:[#allocation2 + $0x180] sm:$0x33] %v7936_v36  ;;  %v288_v41 = vmul.f32 %v286_v34, %v285_v40  ;;  %v289_v42 = vmul.f32 %v287_v35, %v284_v39  ;;  %v8887_v40 = vcombine.high %v8671_v4, %v8671_v4 }
  0x9e   : > { %v7935_v44 = vpack.c.bf16 %v289_v42, %v288_v41  ;;  %v262_v45 = vpop.permute.xlu1 %261  ;;  %v260_v47 = vpop.permute.xlu0 %259  ;;  %v8891_v42 = vcombine.low %v8671_v4, %v8671_v4  ;;  %v8251_v4 = vld [vmem:[%s13579_s1] ss:$16 sps:$4 sm:$0xff]  }
  0x9f   : > { %v424_v48 = vld [vmem:[#allocation2 + $0x108] sm:$0xff]  ;;  %v422_v49 = vld [vmem:[#allocation2 + $0x120] sm:$0xff]  ;;  %v264_v50 = vsel %vm263_vm5, %v260_v47, %v262_v45  ;;  %v265_v51 = vsel %vm263_vm5, %v262_v45, %v260_v47 }
  0xa0   : > { %v7346_v52 = vcombine.high %v424_v48, %v13583_v0  ;;  %298 = vst [vmem:[#allocation2 + $0x130] sm:$0x33] %v7935_v44  ;;  %v7345_v53 = vcombine.low %v424_v48, %v13583_v0  ;;  %v268_v54 = vmul.f32 %v266_v43, %v265_v51  ;;  %v269_v55 = vmul.f32 %v267_v46, %v264_v50 }
  0xa1   : > { %v7344_v59 = vcombine.high %v422_v49, %v13583_v0  ;;  %v7343_v6 = vcombine.low %v422_v49, %v13583_v0 }
  0xa2   : > { %543 = vmatprep.subr.bf16.mxu0 %v7346_v52  ;;  %v240_v60 = vpop.permute.xlu1 %239  ;;  %v238_v61 = vpop.permute.xlu0 %237  ;;  %v7934_v62 = vpack.c.bf16 %v269_v55, %v268_v54 }
  0xa3   : > { %544 = vmatpush1.bf16.msra.mxu0 %v7345_v53  ;;  %v244_v63 = vsel %vm243_vm6, %v238_v61, %v240_v60  ;;  %v245_v1 = vsel %vm243_vm6, %v240_v60, %v238_v61  ;;  %v418_v8 = vld [vmem:[#allocation2 + $0x180] sm:$0xff] }
  0xa4   : > { %545 = vmatprep.subr.bf16.mxu0 %v7344_v59  ;;  %v248_v2 = vmul.f32 %v246_v56, %v245_v1  ;;  %v249_v3 = vmul.f32 %v247_v57, %v244_v63  ;;  %278 = vst [vmem:[#allocation2 + $0x50] sm:$0x33] %v7934_v62  ;;  %v7340_v17 = vcombine.high %v418_v8, %v13583_v0 }
  0xa5   : > { %v7339_v26 = vcombine.low %v418_v8, %v13583_v0 }
  0xa6   : > { %v7933_v11 = vpack.c.bf16 %v249_v3, %v248_v2  ;;  %v391_v12 = vpop.permute.xlu1 %390  ;;  %v389_v13 = vpop.permute.xlu0 %388 }
  0xa7   : > { %546 = vmatpush1.bf16.msra.mxu0 %v7343_v6  ;;  %v393_v15 = vsel %vm392_vm7, %v389_v13, %v391_v12  ;;  %v394_v16 = vsel %vm392_vm7, %v391_v12, %v389_v13  ;;  %v416_v20 = vld [vmem:[#allocation2 + $0x130] sm:$0xff]  ;;  %v9000_v12 = vld [vmem:[%s13580_s2 + $0x248] sm:$0xff] }
  0xa8   : > { %258 = vst [vmem:[#allocation2 + $0xd8] sm:$0x33] %v7933_v11  ;;  %547 = vmatprep.subr.bf16.mxu0 %v7342_v5  ;;  %v397_v18 = vmul.f32 %v395_v9, %v393_v15  ;;  %v398_v19 = vmul.f32 %v396_v10, %v394_v16  ;;  %v7338_v29 = vcombine.high %v416_v20, %v13583_v0  ;;  %v8995_v11 = vld [vmem:[%s13580_s2 + $0x240] sm:$0xff]  ;;  %13634 = vst [vmem:[#allocation9_spill] sm:$0xff] %v9000_v12  ;;  %v9009_v15 = vld [vmem:[%s13580_s2 + $0x250] sm:$0xff] }
  0xa9   : > { %v7337_v34 = vcombine.low %v416_v20, %v13583_v0  ;;  %v9014_v16 = vld [vmem:[%s13580_s2 + $0x258] sm:$0xff] }
  0xaa   : > { %v7941_v23 = vpack.c.bf16 %v398_v19, %v397_v18  ;;  %v371_v24 = vpop.permute.xlu1 %370  ;;  %v369_v25 = vpop.permute.xlu0 %368 }
  0xab   : > { %548 = vmatpush1.bf16.msra.mxu0 %v7341_v14  ;;  %v373_v27 = vsel %vm372_vm8, %v369_v25, %v371_v24  ;;  %v374_v28 = vsel %vm372_vm8, %v371_v24, %v369_v25  ;;  %v414_v32 = vld [vmem:[#allocation2 + $0x50] sm:$0xff] }
  0xac   : > { %549 = vmatprep.subr.bf16.mxu0 %v7340_v17  ;;  %407 = vst [vmem:[#allocation2 + $0x138] sm:$0x33] %v7941_v23  ;;  %v377_v30 = vmul.f32 %v375_v21, %v373_v27  ;;  %v378_v31 = vmul.f32 %v376_v22, %v374_v28  ;;  %v7336_v35 = vcombine.high %v414_v32, %v13583_v0  ;;  %v752_v21 = vld [vmem:[%s13580_s2 + $0x1e0] sm:$0xff]  ;;  %v753_v22 = vld [vmem:[%s13580_s2 + $0x1e8] sm:$0xff] }
  0xad   : > { %v7335_v37 = vcombine.low %v414_v32, %v13583_v0 }
  0xae   : > { %v7940_v33 = vpack.c.bf16 %v378_v31, %v377_v30  ;;  %v9042_v30 = vld [vmem:[%s13580_s2 + $0x1f8] sm:$0xff] }
  0xaf   : > { %550 = vmatpush1.bf16.msra.mxu0 %v7339_v26  ;;  %v412_v36 = vld [vmem:[#allocation2 + $0xd8] sm:$0xff]  ;;  %13636 = vst [vmem:[#allocation11_spill] sm:$0xff] %v9042_v30 }
  0xb0   : > { %551 = vmatprep.subr.bf16.mxu0 %v7338_v29  ;;  %387 = vst [vmem:[#allocation2 + $0xe0] sm:$0x33] %v7940_v33  ;;  %v7334_v38 = vcombine.high %v412_v36, %v13583_v0  ;;  %v7333_v39 = vcombine.low %v412_v36, %v13583_v0  ;;  %v9037_v29 = vld [vmem:[%s13580_s2 + $0x1f0] sm:$0xff] }
  0xb1   : > { %13635 = vst [vmem:[#allocation10_spill] sm:$0xff] %v9037_v29 }
  0xb3   : > { %552 = vmatpush1.bf16.msra.mxu0 %v7337_v34  ;;  %v428_v41 = vld [vmem:[#allocation2 + $0x138] sm:$0xff] }
  0xb4   : > { %553 = vmatprep.subr.bf16.mxu0 %v7336_v35  ;;  %v7350_v43 = vcombine.high %v428_v41, %v13583_v0  ;;  %v7349_v45 = vcombine.low %v428_v41, %v13583_v0 }
  0xb7   : > { %554 = vmatpush1.bf16.msra.mxu0 %v7335_v37  ;;  %v426_v44 = vld [vmem:[#allocation2 + $0xe0] sm:$0xff] }
  0xb8   : > { %555 = vmatprep.subr.bf16.mxu0 %v7334_v38  ;;  %v7348_v46 = vcombine.high %v426_v44, %v13583_v0  ;;  %v7347_v47 = vcombine.low %v426_v44, %v13583_v0 }
  0xbb   : > { %556 = vmatpush1.bf16.msra.mxu0 %v7333_v39 }
  0xbc   : > { %557 = vmatprep.subr.bf16.mxu0 %v8887_v40 }
  0xbf   : > { %558 = vmatpush1.bf16.msra.mxu0 %v8891_v42 }
  0xc0   : > { %571 = vmatprep.subr.bf16.mxu0 %v7350_v43 }
  0xc3   : > { %572 = vmatpush2.bf16.msra.mxu0 %v7349_v45  ;;  %v9057_v45 = vld [vmem:[%s13580_s2 + $0x120] sm:$0xff] }
  0xc4   : > { %573 = vmatprep.subr.bf16.mxu0 %v7348_v46  ;;  %v9062_v46 = vld [vmem:[%s13580_s2 + $0x128] sm:$0xff] }
  0xc7   : > { %574 = vmatpush2.bf16.msra.mxu0 %v7347_v47 }
  0xca   : > { %576 = vmatmul.mubr.bf16.vlgmr.msra.gmra.mxu0 %v8251_v4 }
 0x18a   : > { %v577_v48 = vpop.f32.mrf.mxu0 }
 0x18b   : > { %v8902_v49 = vmax.f32 %v577_v48, 0.0 }
 0x18c   : > { %v579_v50 = vpop.f32.mrf.mxu0 }
 0x18d   : > { %v8904_v51 = vmax.f32 %v579_v50, 0.0  ;;  %774 = vrot.lane.b32.xlu0 %v8902_v49, %s13618_s7 }
 0x18e   : > { %v581_v52 = vpop.f32.mrf.mxu0 }
 0x18f   : > { %v8908_v53 = vmax.f32 %v581_v52, 0.0  ;;  %v9071_v52 = vld [vmem:[%s13580_s2 + $0x130] sm:$0xff] }
 0x190   : > { %v583_v54 = vpop.f32.mrf.mxu0 }
 0x191   : > { %v8910_v55 = vmax.f32 %v583_v54, 0.0  ;;  %740 = vrot.lane.b32.xlu0 %v8902_v49, %s13616_s6  ;;  %776 = vrot.lane.b32.xlu1 %v8908_v53, %s13618_s7  ;;  %v8325_v57 = vpack.c.bf16 %v8908_v53, %v8902_v49  ;;  %v9076_v54 = vld [vmem:[%s13580_s2 + $0x138] sm:$0xff] }
 0x193   : > { %v8324_v56 = vpack.c.bf16 %v8910_v55, %v8904_v51 }
 0x195   : > { %692 = vrot.lane.b32.xlu0 %v8902_v49, %s8665_s8  ;;  %742 = vrot.lane.b32.xlu1 %v8908_v53, %s13616_s6 }
 0x199   : > { %658 = vrot.lane.b32.xlu0 %v8902_v49, %s8666_s9  ;;  %694 = vrot.lane.b32.xlu1 %v8908_v53, %s8665_s8 }
 0x19d   : > { %624 = vrot.lane.b32.xlu0 %v8902_v49, %s13630_s10  ;;  %660 = vrot.lane.b32.xlu1 %v8908_v53, %s8666_s9 }
 0x1a1   : > { %590 = vrot.lane.b32.xlu0 %v8902_v49, %s13628_s11  ;;  %626 = vrot.lane.b32.xlu1 %v8908_v53, %s13630_s10 }
 0x1a5   : > { %778 = vrot.lane.b32.xlu0 %v8904_v51, %s13618_s7  ;;  %592 = vrot.lane.b32.xlu1 %v8908_v53, %s13628_s11 }
 0x1a9   : > { %744 = vrot.lane.b32.xlu0 %v8904_v51, %s13616_s6  ;;  %780 = vrot.lane.b32.xlu1 %v8910_v55, %s13618_s7 }
 0x1ad   : > { %842 = vrot.lane.b32.xlu0 %v8902_v49, %s13614_s12  ;;  %746 = vrot.lane.b32.xlu1 %v8910_v55, %s13616_s6 }
 0x1b1   : > { %696 = vrot.lane.b32.xlu0 %v8904_v51, %s8665_s8  ;;  %844 = vrot.lane.b32.xlu1 %v8908_v53, %s13614_s12 }
 0x1b5   : > { %662 = vrot.lane.b32.xlu0 %v8904_v51, %s8666_s9  ;;  %698 = vrot.lane.b32.xlu1 %v8910_v55, %s8665_s8 }
 0x1b9   : > { %628 = vrot.lane.b32.xlu0 %v8904_v51, %s13630_s10  ;;  %664 = vrot.lane.b32.xlu1 %v8910_v55, %s8666_s9 }
 0x1bd   : > { %594 = vrot.lane.b32.xlu0 %v8904_v51, %s13628_s11  ;;  %630 = vrot.lane.b32.xlu1 %v8910_v55, %s13630_s10 }
 0x1c1   : > { %846 = vrot.lane.b32.xlu0 %v8904_v51, %s13614_s12  ;;  %596 = vrot.lane.b32.xlu1 %v8910_v55, %s13628_s11 }
 0x1c5   : > { %808 = vrot.lane.b32.xlu0 %v8902_v49, %s13626_s13  ;;  %810 = vrot.lane.b32.xlu1 %v8908_v53, %s13626_s13 }
 0x1c9   : > { %812 = vrot.lane.b32.xlu0 %v8904_v51, %s13626_s13  ;;  %848 = vrot.lane.b32.xlu1 %v8910_v55, %s13614_s12  ;;  %v9118_v51 = vld [vmem:[%s13580_s2 + $0x60] sm:$0xff] }
 0x1cd   : > { %814 = vrot.lane.b32.xlu1 %v8910_v55, %s13626_s13  ;;  %v9123_v55 = vld [vmem:[%s13580_s2 + $0x68] sm:$0xff] }
 0x1ff   : > { %v775_v59 = vpop.permute.xlu0 %774 }
 0x203   : > { %v741_v60 = vpop.permute.xlu0 %740  ;;  %v777_v61 = vpop.permute.xlu1 %776 }
 0x207   : > { %v693_v62 = vpop.permute.xlu0 %692  ;;  %v743_v63 = vpop.permute.xlu1 %742 }
 0x20b   : > { %v659_v1 = vpop.permute.xlu0 %658  ;;  %v695_v2 = vpop.permute.xlu1 %694 }
 0x20f   : > { %v8982_v3 = vpop.permute.xlu0 %624  ;;  %v8984_v5 = vpop.permute.xlu1 %660 }
 0x213   : > { %v8986_v6 = vpop.permute.xlu0 %590  ;;  %v8988_v8 = vpop.permute.xlu1 %626 }
 0x217   : > { %v779_v9 = vpop.permute.xlu0 %778  ;;  %v8990_v10 = vpop.permute.xlu1 %592 }
 0x218   : > { %v782_v13 = vsel %vm352_vm2, %v775_v59, %v779_v9  ;;  %v784_v14 = vsel %vm352_vm2, %v779_v9, %v775_v59 }
 0x219   : > { %v790_v17 = vmul.f32 %v8995_v11, %v782_v13  ;;  %v791_v18 = vmul.f32 %v9000_v12, %v784_v14 }
 0x21b   : > { %v745_v19 = vpop.permute.xlu0 %744  ;;  %v781_v20 = vpop.permute.xlu1 %780 }
 0x21c   : > { %v748_v23 = vsel %vm332_vm1, %v741_v60, %v745_v19  ;;  %v750_v24 = vsel %vm332_vm1, %v745_v19, %v741_v60  ;;  %v783_v25 = vsel %vm352_vm2, %v777_v61, %v781_v20  ;;  %v785_v26 = vsel %vm352_vm2, %v781_v20, %v777_v61  ;;  %v9106_v20 = vld [vmem:[%s13580_s2 + $0xd0] sm:$0xff] }
 0x21d   : > { %v792_v27 = vmul.f32 %v9009_v15, %v783_v25  ;;  %v793_v28 = vmul.f32 %v9014_v16, %v785_v26  ;;  %v756_v31 = vmul.f32 %v752_v21, %v748_v23  ;;  %v757_v32 = vmul.f32 %v753_v22, %v750_v24 }
 0x21f   : > { %v9044_v33 = vpop.permute.xlu0 %842  ;;  %v747_v34 = vpop.permute.xlu1 %746  ;;  %v8326_v39 = vpack.c.bf16 %v793_v28, %v791_v18  ;;  %v8327_v41 = vpack.c.bf16 %v792_v27, %v790_v17 }
 0x220   : > { %v749_v35 = vsel %vm332_vm1, %v743_v63, %v747_v34  ;;  %v751_v36 = vsel %vm332_vm1, %v747_v34, %v743_v63  ;;  %v9088_v63 = vld [vmem:[%s13580_s2 + $0xc8] sm:$0xff] }
 0x221   : > { %v758_v37 = vmul.f32 %v9037_v29, %v749_v35  ;;  %v759_v38 = vmul.f32 %v9042_v30, %v751_v36  ;;  %1024 = vmatprep.subr.bf16.mxu1 %v8326_v39  ;;  %v9157_v35 = vld [vmem:[%s13580_s2] sm:$0xff]  ;;  %v9162_v36 = vld [vmem:[%s13580_s2 + $0x8] sm:$0xff] }
 0x222   : > { %1025 = vmatpush1.bf16.msra.mxu1 %v8327_v41 }
 0x223   : > { %v697_v43 = vpop.permute.xlu0 %696  ;;  %v9052_v44 = vpop.permute.xlu1 %844  ;;  %v8328_v48 = vpack.c.bf16 %v759_v38, %v757_v32  ;;  %v8329_v50 = vpack.c.bf16 %v758_v37, %v756_v31  ;;  %v9150_v31 = vld [vmem:[%s13580_s2 + $0x78] sm:$0xff] }
 0x224   : > { %v700_v47 = vsel %vm303_vm3, %v693_v62, %v697_v43  ;;  %v702_v4 = vsel %vm303_vm3, %v697_v43, %v693_v62  ;;  %v9083_v62 = vld [vmem:[%s13580_s2 + $0xc0] sm:$0xff] }
 0x225   : > { %v708_v58 = vmul.f32 %v9057_v45, %v702_v4  ;;  %v709_v59 = vmul.f32 %v9062_v46, %v700_v47  ;;  %1026 = vmatprep.subr.bf16.mxu1 %v8328_v48  ;;  %v9181_v4 = vld [vmem:[%s13580_s2 + $0x10] sm:$0xff] }
 0x226   : > { %1027 = vmatpush1.bf16.msra.mxu1 %v8329_v50 }
 0x227   : > { %v663_v60 = vpop.permute.xlu0 %662  ;;  %v699_v61 = vpop.permute.xlu1 %698  ;;  %1028 = vmatprep.subr.bf16.mxu1 %v8324_v56 }
 0x228   : > { %v666_v9 = vsel %vm283_vm4, %v659_v1, %v663_v60  ;;  %v668_v13 = vsel %vm283_vm4, %v663_v60, %v659_v1  ;;  %v701_v14 = vsel %vm303_vm3, %v695_v2, %v699_v61  ;;  %v703_v17 = vsel %vm303_vm3, %v699_v61, %v695_v2  ;;  %v9111_v1 = vld [vmem:[%s13580_s2 + $0xd8] sm:$0xff] }
 0x229   : > { %v710_v18 = vmul.f32 %v9071_v52, %v703_v17  ;;  %v711_v19 = vmul.f32 %v9076_v54, %v701_v14  ;;  %v674_v2 = vmul.f32 %v9083_v62, %v668_v13  ;;  %v675_v21 = vmul.f32 %v9088_v63, %v666_v9 }
 0x22a   : > { %1029 = vmatpush1.bf16.msra.mxu1 %v8325_v57 }
 0x22b   : > { %v629_v22 = vpop.permute.xlu0 %628  ;;  %v665_v23 = vpop.permute.xlu1 %664  ;;  %v8330_v32 = vpack.c.bf16 %v711_v19, %v709_v59 }
 0x22c   : > { %v632_v56 = vsel %vm263_vm5, %v8982_v3, %v629_v22  ;;  %v634_v24 = vsel %vm263_vm5, %v629_v22, %v8982_v3  ;;  %v667_v25 = vsel %vm283_vm4, %v8984_v5, %v665_v23  ;;  %v669_v26 = vsel %vm283_vm4, %v665_v23, %v8984_v5  ;;  %v9145_v3 = vld [vmem:[%s13580_s2 + $0x70] sm:$0xff]  ;;  %v9206_v22 = vld [vmem:[%s13580_s2 + $0x308] sm:$0xff] }
 0x22d   : > { %v676_v27 = vmul.f32 %v9106_v20, %v669_v26  ;;  %v677_v28 = vmul.f32 %v9111_v1, %v667_v25  ;;  %v8331_v5 = vpack.c.bf16 %v710_v18, %v708_v58  ;;  %v640_v34 = vmul.f32 %v9118_v51, %v634_v24  ;;  %1030 = vmatprep.subr.bf16.mxu1 %v8330_v32  ;;  %v9217_v25 = vld [vmem:[%s13580_s2 + $0x310] sm:$0xff]  ;;  %v9222_v26 = vld [vmem:[%s13580_s2 + $0x318] sm:$0xff] }
 0x22e   : > { %v641_v49 = vmul.f32 %v9123_v55, %v632_v56  ;;  %13638 = vst [vmem:[#allocation13_spill] sm:$0xff] %v9206_v22  ;;  %13639 = vst [vmem:[#allocation14_spill] sm:$0xff] %v9217_v25 }
 0x22f   : > { %v595_v53 = vpop.permute.xlu0 %594  ;;  %v631_v57 = vpop.permute.xlu1 %630  ;;  %1031 = vmatpush1.bf16.msra.mxu1 %v8331_v5  ;;  %v8332_v48 = vpack.c.bf16 %v677_v28, %v675_v21  ;;  %v8333_v50 = vpack.c.bf16 %v676_v27, %v674_v2  ;;  %v9201_v21 = vld [vmem:[%s13580_s2 + $0x300] sm:$0xff]  ;;  %13640 = vst [vmem:[#allocation15_spill] sm:$0xff] %v9222_v26 }
 0x230   : > { %v598_v37 = vsel %vm243_vm6, %v8986_v6, %v595_v53  ;;  %v600_v38 = vsel %vm243_vm6, %v595_v53, %v8986_v6  ;;  %v633_v39 = vsel %vm263_vm5, %v8988_v8, %v631_v57  ;;  %v635_v41 = vsel %vm263_vm5, %v631_v57, %v8988_v8  ;;  %v9186_v6 = vld [vmem:[%s13580_s2 + $0x18] sm:$0xff]  ;;  %13637 = vst [vmem:[#allocation12_spill] sm:$0xff] %v9201_v21  ;;  %v9229_v5 = vld [vmem:[%s13580_s2 + $0x2a0] sm:$0xff] }
 0x231   : > { %v642_v43 = vmul.f32 %v9145_v3, %v635_v41  ;;  %v643_v47 = vmul.f32 %v9150_v31, %v633_v39  ;;  %v606_v8 = vmul.f32 %v9157_v35, %v600_v38  ;;  %v607_v58 = vmul.f32 %v9162_v36, %v598_v37  ;;  %1032 = vmatprep.subr.bf16.mxu1 %v8332_v48  ;;  %v9251_v41 = vld [vmem:[%s13580_s2 + $0x2b0] sm:$0xff] }
 0x233   : > { %v847_v59 = vpop.permute.xlu0 %846  ;;  %v597_v60 = vpop.permute.xlu1 %596  ;;  %1033 = vmatpush1.bf16.msra.mxu1 %v8333_v50  ;;  %v8334_v17 = vpack.c.bf16 %v643_v47, %v641_v49  ;;  %v8335_v18 = vpack.c.bf16 %v642_v43, %v640_v34  ;;  %v9234_v34 = vld [vmem:[%s13580_s2 + $0x2a8] sm:$0xff]  ;;  %v9256_v43 = vld [vmem:[%s13580_s2 + $0x2b8] sm:$0xff] }
 0x234   : > { %v599_v61 = vsel %vm243_vm6, %v8990_v10, %v597_v60  ;;  %v601_v9 = vsel %vm243_vm6, %v597_v60, %v8990_v10  ;;  %v850_v10 = vsel %vm392_vm7, %v9044_v33, %v847_v59  ;;  %v852_v23 = vsel %vm392_vm7, %v847_v59, %v9044_v33 }
 0x235   : > { %v608_v13 = vmul.f32 %v9181_v4, %v601_v9  ;;  %v609_v14 = vmul.f32 %v9186_v6, %v599_v61  ;;  %1034 = vmatprep.subr.bf16.mxu1 %v8334_v17  ;;  %v858_v27 = vmul.f32 %v9201_v21, %v850_v10  ;;  %v859_v28 = vmul.f32 %v9206_v22, %v852_v23 }
 0x237   : > { %v809_v19 = vpop.permute.xlu0 %808  ;;  %v811_v2 = vpop.permute.xlu1 %810  ;;  %1035 = vmatpush1.bf16.msra.mxu1 %v8335_v18  ;;  %v8336_v56 = vpack.c.bf16 %v609_v14, %v607_v58  ;;  %v8337_v24 = vpack.c.bf16 %v608_v13, %v606_v8  ;;  %v8254_v13 = vld [vmem:[%s13579_s1 + $0x20] ss:$16 sps:$4 sm:$0xff]   ;;  %v8257_v14 = vld [vmem:[%s13579_s1 + $0x44] ss:$16 sps:$4 sm:$0xff]  }
 0x239   : > { %1036 = vmatprep.subr.bf16.mxu1 %v8336_v56 }
 0x23b   : > { %v813_v32 = vpop.permute.xlu0 %812  ;;  %v849_v33 = vpop.permute.xlu1 %848  ;;  %1037 = vmatpush1.bf16.msra.mxu1 %v8337_v24 }
 0x23c   : > { %v816_v49 = vsel %vm372_vm8, %v809_v19, %v813_v32  ;;  %v818_v53 = vsel %vm372_vm8, %v813_v32, %v809_v19  ;;  %v851_v57 = vsel %vm392_vm7, %v9052_v44, %v849_v33  ;;  %v853_v37 = vsel %vm392_vm7, %v849_v33, %v9052_v44  ;;  %1038 = vmatprep.subr.bf16.mxu1 %v8887_v40 }
 0x23d   : > { %v860_v38 = vmul.f32 %v9217_v25, %v851_v57  ;;  %v861_v39 = vmul.f32 %v9222_v26, %v853_v37  ;;  %v824_v47 = vmul.f32 %v9229_v5, %v816_v49  ;;  %v825_v44 = vmul.f32 %v9234_v34, %v818_v53  ;;  %v1252_v25 = vld [vmem:[%s13580_s2 + $0xf8] sm:$0xff] }
 0x23f   : > { %v815_v48 = vpop.permute.xlu1 %814  ;;  %1039 = vmatpush1.bf16.msra.mxu1 %v8891_v42  ;;  %v8338_v60 = vpack.c.bf16 %v861_v39, %v859_v28  ;;  %v8339_v61 = vpack.c.bf16 %v860_v38, %v858_v27  ;;  %v8259_v42 = vld [vmem:[%s13579_s1 + $0x40] ss:$16 sps:$4 sm:$0xff]  }
 0x240   : > { %v817_v50 = vsel %vm372_vm8, %v811_v2, %v815_v48  ;;  %v819_v8 = vsel %vm372_vm8, %v815_v48, %v811_v2 }
 0x241   : > { %v826_v58 = vmul.f32 %v9251_v41, %v817_v50  ;;  %v827_v59 = vmul.f32 %v9256_v43, %v819_v8  ;;  %1052 = vmatprep.subr.bf16.mxu1 %v8338_v60  ;;  %v8262_v50 = vld [vmem:[%s13579_s1 + $0x64] ss:$16 sps:$4 sm:$0xff]  }
 0x242   : > { %1962 = vmatprep.mubr.bf16.mxu0 %v8262_v50 }
 0x243   : > { %1053 = vmatpush2.bf16.msra.mxu1 %v8339_v61  ;;  %v8340_v40 = vpack.c.bf16 %v827_v59, %v825_v44  ;;  %v8341_v9 = vpack.c.bf16 %v826_v58, %v824_v47 }
 0x245   : > { %1054 = vmatprep.subr.bf16.mxu1 %v8340_v40 }
 0x247   : > { %1055 = vmatpush2.bf16.msra.mxu1 %v8341_v9 }
 0x24a   : > { %1057 = vmatmul.mubr.bf16.vlgmr.msra.gmra.mxu1 %v8254_v13 }
 0x24b   : > { %7395 = vmatprep.mubr.msk.bf16.mxu1 %vm539_vm0, %v8257_v14 }
 0x252   : > { %1067 = vmatmul.mubr.bf16.gmra.mxu1 %v8259_v42 }
 0x253   : > { %2015 = vmatprep.mubr.bf16.mxu1 %v13583_v0 }
 0x30a   : > { %v1058_v17 = vpop.f32.mrf.mxu1 }
 0x30b   : > { %v9279_v18 = vmax.f32 %v1058_v17, 0.0 }
 0x30c   : > { %v1060_v19 = vpop.f32.mrf.mxu1 }
 0x30d   : > { %13641 = vst [vmem:[#allocation16_spill] sm:$0xff] %v9279_v18  ;;  %1289 = vrot.lane.b32.xlu0 %v9279_v18, %s8665_s8  ;;  %v9305_v23 = vmax.f32 %v1060_v19, 0.0 }
 0x30e   : > { %v1062_v2 = vpop.f32.mrf.mxu1 }
 0x30f   : > { %v9283_v10 = vmax.f32 %v1062_v2, 0.0  ;;  %13643 = vst [vmem:[#allocation18_spill] sm:$0xff] %v9305_v23 }
 0x310   : > { %v1064_v56 = vpop.f32.mrf.mxu1 }
 0x311   : > { %13642 = vst [vmem:[#allocation17_spill] sm:$0xff] %v9283_v10  ;;  %1221 = vrot.lane.b32.xlu0 %v9279_v18, %s8666_s9  ;;  %1291 = vrot.lane.b32.xlu1 %v9283_v10, %s8665_s8  ;;  %v9311_v24 = vmax.f32 %v1064_v56, 0.0 }
 0x312   : > { %v1068_v27 = vpop.f32.mrf.mxu1 }
 0x313   : > { %13644 = vst [vmem:[#allocation19_spill] sm:$0xff] %v9311_v24  ;;  %v9329_v28 = vmax.f32 %v1068_v27, 0.0 }
 0x314   : > { %v1070_v32 = vpop.f32.mrf.mxu1 }
 0x315   : > { %1153 = vrot.lane.b32.xlu0 %v9279_v18, %s13630_s10  ;;  %1223 = vrot.lane.b32.xlu1 %v9283_v10, %s8666_s9  ;;  %13645 = vst [vmem:[#allocation20_spill] sm:$0xff] %v9329_v28  ;;  %v9357_v53 = vmax.f32 %v1070_v32, 0.0 }
 0x316   : > { %v1072_v33 = vpop.f32.mrf.mxu1 }
 0x317   : > { %v9339_v49 = vmax.f32 %v1072_v33, 0.0  ;;  %13647 = vst [vmem:[#allocation22_spill] sm:$0xff] %v9357_v53 }
 0x318   : > { %v1074_v57 = vpop.f32.mrf.mxu1 }
 0x319   : > { %1085 = vrot.lane.b32.xlu0 %v9279_v18, %s13628_s11  ;;  %1155 = vrot.lane.b32.xlu1 %v9283_v10, %s13630_s10  ;;  %13646 = vst [vmem:[#allocation21_spill] sm:$0xff] %v9339_v49  ;;  %v9363_v37 = vmax.f32 %v1074_v57, 0.0 }
 0x31b   : > { %13648 = vst [vmem:[#allocation23_spill] sm:$0xff] %v9363_v37 }
 0x31d   : > { %1521 = vrot.lane.b32.xlu0 %v9279_v18, %s13626_s13  ;;  %1087 = vrot.lane.b32.xlu1 %v9283_v10, %s13628_s11 }
 0x321   : > { %1453 = vrot.lane.b32.xlu0 %v9279_v18, %s13618_s7  ;;  %1523 = vrot.lane.b32.xlu1 %v9283_v10, %s13626_s13 }
 0x325   : > { %1297 = vrot.lane.b32.xlu0 %v9305_v23, %s8665_s8  ;;  %1455 = vrot.lane.b32.xlu1 %v9283_v10, %s13618_s7 }
 0x329   : > { %1229 = vrot.lane.b32.xlu0 %v9305_v23, %s8666_s9  ;;  %1299 = vrot.lane.b32.xlu1 %v9311_v24, %s8665_s8 }
 0x32d   : > { %1161 = vrot.lane.b32.xlu0 %v9305_v23, %s13630_s10  ;;  %1231 = vrot.lane.b32.xlu1 %v9311_v24, %s8666_s9 }
 0x331   : > { %1093 = vrot.lane.b32.xlu0 %v9305_v23, %s13628_s11  ;;  %1163 = vrot.lane.b32.xlu1 %v9311_v24, %s13630_s10 }
 0x335   : > { %1529 = vrot.lane.b32.xlu0 %v9305_v23, %s13626_s13  ;;  %1095 = vrot.lane.b32.xlu1 %v9311_v24, %s13628_s11 }
 0x339   : > { %1461 = vrot.lane.b32.xlu0 %v9305_v23, %s13618_s7  ;;  %1531 = vrot.lane.b32.xlu1 %v9311_v24, %s13626_s13 }
 0x33d   : > { %1463 = vrot.lane.b32.xlu1 %v9311_v24, %s13618_s7  ;;  %1225 = vrot.lane.b32.xlu0 %v9329_v28, %s8666_s9 }
 0x341   : > { %1157 = vrot.lane.b32.xlu0 %v9329_v28, %s13630_s10  ;;  %1227 = vrot.lane.b32.xlu1 %v9339_v49, %s8666_s9 }
 0x345   : > { %1089 = vrot.lane.b32.xlu0 %v9329_v28, %s13628_s11  ;;  %1159 = vrot.lane.b32.xlu1 %v9339_v49, %s13630_s10 }
 0x349   : > { %1457 = vrot.lane.b32.xlu0 %v9329_v28, %s13618_s7  ;;  %1091 = vrot.lane.b32.xlu1 %v9339_v49, %s13628_s11 }
 0x34d   : > { %1389 = vrot.lane.b32.xlu0 %v9329_v28, %s13616_s6  ;;  %1459 = vrot.lane.b32.xlu1 %v9339_v49, %s13618_s7 }
 0x351   : > { %1233 = vrot.lane.b32.xlu0 %v9357_v53, %s8666_s9  ;;  %1391 = vrot.lane.b32.xlu1 %v9339_v49, %s13616_s6 }
 0x355   : > { %1385 = vrot.lane.b32.xlu0 %v9279_v18, %s13616_s6  ;;  %1235 = vrot.lane.b32.xlu1 %v9363_v37, %s8666_s9 }
 0x359   : > { %1165 = vrot.lane.b32.xlu0 %v9357_v53, %s13630_s10  ;;  %1387 = vrot.lane.b32.xlu1 %v9283_v10, %s13616_s6 }
 0x35d   : > { %1097 = vrot.lane.b32.xlu0 %v9357_v53, %s13628_s11  ;;  %1167 = vrot.lane.b32.xlu1 %v9363_v37, %s13630_s10 }
 0x361   : > { %1465 = vrot.lane.b32.xlu0 %v9357_v53, %s13618_s7  ;;  %1395 = vrot.lane.b32.xlu1 %v9311_v24, %s13616_s6 }
 0x365   : > { %1397 = vrot.lane.b32.xlu0 %v9357_v53, %s13616_s6  ;;  %1099 = vrot.lane.b32.xlu1 %v9363_v37, %s13628_s11 }
 0x369   : > { %1393 = vrot.lane.b32.xlu0 %v9305_v23, %s13616_s6  ;;  %1595 = vrot.lane.b32.xlu1 %v9339_v49, %s13614_s12 }
 0x36d   : > { %1593 = vrot.lane.b32.xlu0 %v9329_v28, %s13614_s12  ;;  %1591 = vrot.lane.b32.xlu1 %v9283_v10, %s13614_s12 }
 0x371   : > { %1601 = vrot.lane.b32.xlu0 %v9357_v53, %s13614_s12  ;;  %1599 = vrot.lane.b32.xlu1 %v9311_v24, %s13614_s12 }
 0x375   : > { %1589 = vrot.lane.b32.xlu0 %v9279_v18, %s13614_s12  ;;  %1467 = vrot.lane.b32.xlu1 %v9363_v37, %s13618_s7 }
 0x379   : > { %1597 = vrot.lane.b32.xlu0 %v9305_v23, %s13614_s12  ;;  %1295 = vrot.lane.b32.xlu1 %v9339_v49, %s8665_s8 }
 0x37d   : > { %1293 = vrot.lane.b32.xlu0 %v9329_v28, %s8665_s8  ;;  %1399 = vrot.lane.b32.xlu1 %v9363_v37, %s13616_s6 }
 0x37f   : > { %v1290_v38 = vpop.permute.xlu0 %1289 }
 0x381   : > { %1301 = vrot.lane.b32.xlu0 %v9357_v53, %s8665_s8  ;;  %1527 = vrot.lane.b32.xlu1 %v9339_v49, %s13626_s13  ;;  %v1249_v49 = vld [vmem:[%s13580_s2 + $0xe0] sm:$0xff] }
 0x383   : > { %v1222_v39 = vpop.permute.xlu0 %1221  ;;  %v1292_v47 = vpop.permute.xlu1 %1291 }
 0x385   : > { %1525 = vrot.lane.b32.xlu0 %v9329_v28, %s13626_s13  ;;  %1603 = vrot.lane.b32.xlu1 %v9363_v37, %s13614_s12  ;;  %v1250_v28 = vld [vmem:[%s13580_s2 + $0xe8] sm:$0xff] }
 0x387   : > { %v9417_v44 = vpop.permute.xlu0 %1153  ;;  %v1224_v48 = vpop.permute.xlu1 %1223 }
 0x389   : > { %1533 = vrot.lane.b32.xlu0 %v9357_v53, %s13626_s13  ;;  %1303 = vrot.lane.b32.xlu1 %v9363_v37, %s8665_s8 }
 0x38b   : > { %v9426_v8 = vpop.permute.xlu0 %1085  ;;  %v9428_v58 = vpop.permute.xlu1 %1155 }
 0x38d   : > { %1535 = vrot.lane.b32.xlu1 %v9363_v37, %s13626_s13 }
 0x38f   : > { %v9432_v59 = vpop.permute.xlu0 %1521  ;;  %v9434_v60 = vpop.permute.xlu1 %1087 }
 0x393   : > { %v9436_v61 = vpop.permute.xlu0 %1453  ;;  %v9438_v40 = vpop.permute.xlu1 %1523 }
 0x397   : > { %v1298_v9 = vpop.permute.xlu0 %1297  ;;  %v9440_v13 = vpop.permute.xlu1 %1455 }
 0x398   : > { %v1305_v14 = vsel %vm303_vm3, %v1290_v38, %v1298_v9  ;;  %v1309_v42 = vsel %vm303_vm3, %v1298_v9, %v1290_v38 }
 0x399   : > { %v1321_v2 = vmul.f32 %v1309_v42, %v9057_v45  ;;  %v1322_v56 = vmul.f32 %v1305_v14, %v9062_v46 }
 0x39b   : > { %v1230_v17 = vpop.permute.xlu0 %1229  ;;  %v1300_v19 = vpop.permute.xlu1 %1299 }
 0x39c   : > { %v1306_v27 = vsel %vm303_vm3, %v1292_v47, %v1300_v19  ;;  %v1310_v32 = vsel %vm303_vm3, %v1300_v19, %v1292_v47  ;;  %v1237_v26 = vsel %vm283_vm4, %v1222_v39, %v1230_v17 }
 0x39d   : > { %v1323_v33 = vmul.f32 %v1310_v32, %v9071_v52  ;;  %v1324_v57 = vmul.f32 %v1306_v27, %v9076_v54 }
 0x39f   : > { %v1162_v50 = vpop.permute.xlu0 %1161  ;;  %v1232_v0 = vpop.permute.xlu1 %1231  ;;  %v8342_v10 = vpack.c.bf16 %v1324_v57, %v1322_v56  ;;  %v8343_v38 = vpack.c.bf16 %v1323_v33, %v1321_v2 }
 0x3a0   : > { %v1238_v24 = vsel %vm283_vm4, %v1224_v48, %v1232_v0  ;;  %v1242_v23 = vsel %vm283_vm4, %v1232_v0, %v1224_v48  ;;  %v1241_v0 = vsel %vm283_vm4, %v1230_v17, %v1222_v39  ;;  %v1251_v48 = vld [vmem:[%s13580_s2 + $0xf0] sm:$0xff]  ;;  %v1254_v39 = vmul.f32 %v1237_v26, %v9088_v63  ;;  %v1181_v63 = vld [vmem:[%s13580_s2 + $0x80] sm:$0xff] }
 0x3a1   : > { %1930 = vmatprep.subr.bf16.mxu0 %v8342_v10  ;;  %v1255_v22 = vmul.f32 %v1242_v23, %v9106_v20  ;;  %v1256_v21 = vmul.f32 %v1238_v24, %v9111_v1 }
 0x3a2   : > { %1931 = vmatpush1.bf16.msra.mxu0 %v8343_v38 }
 0x3a3   : > { %v9454_v9 = vpop.permute.xlu0 %1093  ;;  %v1164_v18 = vpop.permute.xlu1 %1163 }
 0x3a4   : > { %v1170_v1 = vsel %vm263_vm5, %v9428_v58, %v1164_v18 }
 0x3a7   : > { %v9456_v45 = vpop.permute.xlu0 %1529  ;;  %v9458_v46 = vpop.permute.xlu1 %1095 }
 0x3ab   : > { %v9460_v14 = vpop.permute.xlu0 %1461  ;;  %v9462_v47 = vpop.permute.xlu1 %1531 }
 0x3af   : > { %v9464_v52 = vpop.permute.xlu1 %1463  ;;  %v1226_v54 = vpop.permute.xlu0 %1225 }
 0x3b3   : > { %v1158_v42 = vpop.permute.xlu0 %1157  ;;  %v1228_v19 = vpop.permute.xlu1 %1227 }
 0x3b7   : > { %v9466_v56 = vpop.permute.xlu0 %1089  ;;  %v1160_v2 = vpop.permute.xlu1 %1159 }
 0x3bb   : > { %v9468_v27 = vpop.permute.xlu0 %1457  ;;  %v9470_v10 = vpop.permute.xlu1 %1091 }
 0x3bf   : > { %v9472_v32 = vpop.permute.xlu0 %1389  ;;  %v9474_v33 = vpop.permute.xlu1 %1459 }
 0x3c0   : > { %13649 = vst [vmem:[#allocation24_spill] sm:$0xff] %v9472_v32  ;;  %13650 = vst [vmem:[#allocation25_spill] sm:$0xff] %v9474_v33 }
 0x3c3   : > { %v1234_v57 = vpop.permute.xlu0 %1233  ;;  %v9476_v38 = vpop.permute.xlu1 %1391 }
 0x3c4   : > { %13651 = vst [vmem:[#allocation26_spill] sm:$0xff] %v9476_v38  ;;  %v1239_v37 = vsel %vm283_vm4, %v1226_v54, %v1234_v57  ;;  %v1243_v53 = vsel %vm283_vm4, %v1234_v57, %v1226_v54  ;;  %v1253_v38 = vmul.f32 %v1241_v0, %v9083_v62  ;;  %v1174_v62 = vsel %vm263_vm5, %v1164_v18, %v9428_v58 }
 0x3c5   : > { %v1257_v30 = vmul.f32 %v1249_v49, %v1243_v53  ;;  %v1258_v54 = vmul.f32 %v1250_v28, %v1239_v37  ;;  %v1169_v18 = vsel %vm263_vm5, %v9417_v44, %v1162_v50  ;;  %v1183_v49 = vld [vmem:[%s13580_s2 + $0x90] sm:$0xff]  ;;  %v1184_v53 = vld [vmem:[%s13580_s2 + $0x98] sm:$0xff]  ;;  %v1173_v37 = vsel %vm263_vm5, %v1162_v50, %v9417_v44 }
 0x3c6   : > { %v1187_v58 = vmul.f32 %v1174_v62, %v9145_v3  ;;  %v1185_v3 = vmul.f32 %v1173_v37, %v9118_v51  ;;  %v8347_v44 = vpack.c.bf16 %v1255_v22, %v1253_v38  ;;  %v1114_v51 = vld [vmem:[%s13580_s2 + $0x28] sm:$0xff]  ;;  %v1102_v38 = vsel %vm243_vm6, %v9434_v60, %v9458_v46  ;;  %v1116_v62 = vld [vmem:[%s13580_s2 + $0x38] sm:$0xff] }
 0x3c7   : > { %v9504_v57 = vpop.permute.xlu0 %1385  ;;  %v1236_v29 = vpop.permute.xlu1 %1235 }
 0x3c8   : > { %v1240_v17 = vsel %vm283_vm4, %v1228_v19, %v1236_v29  ;;  %v1244_v32 = vsel %vm283_vm4, %v1236_v29, %v1228_v19  ;;  %v1182_v29 = vld [vmem:[%s13580_s2 + $0x88] sm:$0xff]  ;;  %v8346_v19 = vpack.c.bf16 %v1256_v21, %v1254_v39  ;;  %v1106_v39 = vsel %vm243_vm6, %v9458_v46, %v9434_v60 }
 0x3c9   : > { %v1259_v33 = vmul.f32 %v1251_v48, %v1244_v32  ;;  %v1260_v12 = vmul.f32 %v1252_v25, %v1240_v17  ;;  %v1105_v60 = vsel %vm243_vm6, %v9454_v9, %v9426_v8  ;;  %v1119_v46 = vmul.f32 %v1106_v39, %v9181_v4 }
 0x3ca   : > { %v1117_v4 = vmul.f32 %v1105_v60, %v9157_v35 }
 0x3cb   : > { %v1166_v20 = vpop.permute.xlu0 %1165  ;;  %v9512_v23 = vpop.permute.xlu1 %1387  ;;  %v8344_v24 = vpack.c.bf16 %v1260_v12, %v1258_v54  ;;  %v8345_v28 = vpack.c.bf16 %v1259_v33, %v1257_v30  ;;  %v1188_v12 = vmul.f32 %v1170_v1, %v9150_v31  ;;  %v1186_v31 = vmul.f32 %v1169_v18, %v9123_v55  ;;  %v1115_v1 = vld [vmem:[%s13580_s2 + $0x30] sm:$0xff] }
 0x3cc   : > { %v1171_v25 = vsel %vm263_vm5, %v1158_v42, %v1166_v20  ;;  %v1175_v26 = vsel %vm263_vm5, %v1166_v20, %v1158_v42  ;;  %v1101_v20 = vsel %vm243_vm6, %v9426_v8, %v9454_v9 }
 0x3cd   : > { %1932 = vmatprep.subr.bf16.mxu0 %v8344_v24  ;;  %v1189_v32 = vmul.f32 %v1181_v63, %v1175_v26  ;;  %v1190_v33 = vmul.f32 %v1182_v29, %v1171_v25  ;;  %v1118_v37 = vmul.f32 %v1101_v20, %v9162_v36  ;;  %v1537_v36 = vsel %vm372_vm8, %v9432_v59, %v9456_v45 }
 0x3ce   : > { %1933 = vmatpush1.bf16.msra.mxu0 %v8345_v28  ;;  %v1120_v28 = vmul.f32 %v1102_v38, %v9186_v6 }
 0x3cf   : > { %v1098_v30 = vpop.permute.xlu0 %1097  ;;  %v1168_v42 = vpop.permute.xlu1 %1167  ;;  %1934 = vmatprep.subr.bf16.mxu0 %v8346_v19 }
 0x3d0   : > { %v1172_v0 = vsel %vm263_vm5, %v1160_v2, %v1168_v42  ;;  %v1176_v48 = vsel %vm263_vm5, %v1168_v42, %v1160_v2  ;;  %v1113_v2 = vld [vmem:[%s13580_s2 + $0x20] sm:$0xff]  ;;  %v1103_v55 = vsel %vm243_vm6, %v9466_v56, %v1098_v30  ;;  %v1107_v22 = vsel %vm243_vm6, %v1098_v30, %v9466_v56 }
 0x3d1   : > { %v1191_v54 = vmul.f32 %v1183_v49, %v1176_v48  ;;  %v1192_v17 = vmul.f32 %v1184_v53, %v1172_v0  ;;  %v1121_v29 = vmul.f32 %v1113_v2, %v1107_v22  ;;  %v1122_v25 = vmul.f32 %v1114_v51, %v1103_v55  ;;  %v1483_v55 = vld [vmem:[%s13580_s2 + $0x270] sm:$0xff]  ;;  %v1484_v22 = vld [vmem:[%s13580_s2 + $0x278] sm:$0xff] }
 0x3d2   : > { %1935 = vmatpush1.bf16.msra.mxu0 %v8347_v44  ;;  %v8350_v53 = vpack.c.bf16 %v1188_v12, %v1186_v31  ;;  %v8351_v42 = vpack.c.bf16 %v1187_v58, %v1185_v3  ;;  %v1542_v12 = vsel %vm372_vm8, %v9462_v47, %v9438_v40  ;;  %v1541_v58 = vsel %vm372_vm8, %v9456_v45, %v9432_v59  ;;  %v1481_v31 = vld [vmem:[%s13580_s2 + $0x260] sm:$0xff]  ;;  %v1482_v44 = vld [vmem:[%s13580_s2 + $0x268] sm:$0xff] }
 0x3d3   : > { %v9550_v50 = vpop.permute.xlu0 %1465  ;;  %v9552_v21 = vpop.permute.xlu1 %1395  ;;  %v8348_v56 = vpack.c.bf16 %v1192_v17, %v1190_v33  ;;  %v8349_v63 = vpack.c.bf16 %v1191_v54, %v1189_v32  ;;  %v1556_v33 = vmul.f32 %v1542_v12, %v9256_v43  ;;  %v1553_v48 = vmul.f32 %v1537_v36, %v9229_v5  ;;  %v8318_v17 = vld [vmem:[#allocation2 + $0xb0] sm:$0xff] }
 0x3d4   : > { %v1554_v54 = vmul.f32 %v1541_v58, %v9234_v34  ;;  %v9628_v3 = vcombine.high %v8318_v17, %v8318_v17  ;;  %v8355_v45 = vpack.c.bf16 %v1119_v46, %v1117_v4  ;;  %v1470_v5 = vsel %vm352_vm2, %v9440_v13, %v9464_v52 }
 0x3d5   : > { %1936 = vmatprep.subr.bf16.mxu0 %v8348_v56  ;;  %v1474_v34 = vsel %vm352_vm2, %v9464_v52, %v9440_v13  ;;  %v1471_v39 = vsel %vm352_vm2, %v9468_v27, %v9550_v50  ;;  %v1475_v2 = vsel %vm352_vm2, %v9550_v50, %v9468_v27  ;;  %v1473_v13 = vsel %vm352_vm2, %v9460_v14, %v9436_v61 }
 0x3d6   : > { %1937 = vmatpush1.bf16.msra.mxu0 %v8349_v63  ;;  %v9664_v52 = vcombine.low %v8318_v17, %v8318_v17  ;;  %v1487_v27 = vmul.f32 %v1470_v5, %v9009_v15  ;;  %v1488_v50 = vmul.f32 %v1474_v34, %v9014_v16  ;;  %v8356_v60 = vpack.c.bf16 %v1556_v33, %v1554_v54  ;;  %v13656_v54 = vld [vmem:[#allocation10_spill] sm:$0xff] }
 0x3d7   : > { %v9589_v26 = vpop.permute.xlu0 %1397  ;;  %v1100_v24 = vpop.permute.xlu1 %1099  ;;  %1938 = vmatprep.subr.bf16.mxu0 %v8350_v53  ;;  %v1406_v12 = vsel %vm332_vm1, %v9552_v21, %v9512_v23 }
 0x3d8   : > { %v1104_v18 = vsel %vm243_vm6, %v9470_v10, %v1100_v24  ;;  %v1108_v49 = vsel %vm243_vm6, %v1100_v24, %v9470_v10  ;;  %v1538_v10 = vsel %vm372_vm8, %v9438_v40, %v9462_v47  ;;  %v8354_v47 = vpack.c.bf16 %v1120_v28, %v1118_v37  ;;  %v1413_v24 = vld [vmem:[%s13580_s2 + $0x200] sm:$0xff]  ;;  %v1414_v28 = vld [vmem:[%s13580_s2 + $0x208] sm:$0xff] }
 0x3d9   : > { %v1123_v8 = vmul.f32 %v1115_v1, %v1108_v49  ;;  %v1124_v9 = vmul.f32 %v1116_v62, %v1104_v18  ;;  %v1555_v32 = vmul.f32 %v1538_v10, %v9251_v41  ;;  %v1469_v41 = vsel %vm352_vm2, %v9436_v61, %v9460_v14  ;;  %v13652_v1 = vld [vmem:[#allocation9_spill] sm:$0xff]  ;;  %v13654_v18 = vld [vmem:[#allocation24_spill] sm:$0xff] }
 0x3da   : > { %1939 = vmatpush1.bf16.msra.mxu0 %v8351_v42  ;;  %v1485_v51 = vmul.f32 %v1469_v41, %v8995_v11  ;;  %v1489_v61 = vmul.f32 %v1481_v31, %v1471_v39  ;;  %v1490_v14 = vmul.f32 %v1482_v44, %v1475_v2  ;;  %v1486_v11 = vmul.f32 %v1473_v13, %v13652_v1  ;;  %v13653_v62 = vld [vmem:[#allocation25_spill] sm:$0xff]  ;;  %v13657_v41 = vld [vmem:[#allocation11_spill] sm:$0xff]  ;;  %v1618_v39 = vld [vmem:[%s13580_s2 + $0x328] sm:$0xff] }
 0x3db   : > { %v9600_v30 = vpop.permute.xlu0 %1393  ;;  %v9602_v6 = vpop.permute.xlu1 %1595  ;;  %v8352_v35 = vpack.c.bf16 %v1124_v9, %v1122_v25  ;;  %v8353_v19 = vpack.c.bf16 %v1123_v8, %v1121_v29  ;;  %v8357_v25 = vpack.c.bf16 %v1555_v32, %v1553_v48  ;;  %v1403_v49 = vsel %vm332_vm1, %v13654_v18, %v9589_v26  ;;  %v1409_v8 = vld [vmem:[%s13580_s2 + $0x1e0] sm:$0xff]  ;;  %v1410_v9 = vld [vmem:[%s13580_s2 + $0x1e8] sm:$0xff] }
 0x3dc   : > { %v1407_v53 = vsel %vm332_vm1, %v9589_v26, %v13654_v18  ;;  %v1401_v4 = vsel %vm332_vm1, %v9504_v57, %v9600_v30  ;;  %v1405_v37 = vsel %vm332_vm1, %v9600_v30, %v9504_v57  ;;  %v1402_v10 = vsel %vm332_vm1, %v9512_v23, %v9552_v21  ;;  %v1416_v57 = vld [vmem:[%s13580_s2 + $0x218] sm:$0xff]  ;;  %v13655_v48 = vld [vmem:[#allocation26_spill] sm:$0xff]  ;;  %v1617_v44 = vld [vmem:[%s13580_s2 + $0x320] sm:$0xff] }
 0x3dd   : > { %1940 = vmatprep.subr.bf16.mxu0 %v8352_v35  ;;  %v1415_v35 = vld [vmem:[%s13580_s2 + $0x210] sm:$0xff]  ;;  %v1421_v30 = vmul.f32 %v1413_v24, %v1403_v49  ;;  %v8360_v32 = vpack.c.bf16 %v1488_v50, %v1486_v11  ;;  %v1417_v33 = vmul.f32 %v1409_v8, %v1401_v4  ;;  %v1419_v17 = vmul.f32 %v1402_v10, %v13656_v54  ;;  %v13658_v11 = vld [vmem:[#allocation12_spill] sm:$0xff]  ;;  %v13662_v4 = vld [vmem:[#allocation22_spill] sm:$0xff] }
 0x3de   : > { %1941 = vmatpush1.bf16.msra.mxu0 %v8353_v19  ;;  %v1422_v19 = vmul.f32 %v1414_v28, %v1407_v53  ;;  %v8361_v31 = vpack.c.bf16 %v1487_v27, %v1485_v51  ;;  %v13661_v24 = vld [vmem:[#allocation15_spill] sm:$0xff]  ;;  %v1320_v8 = vld [vmem:[%s13580_s2 + $0x158] sm:$0xff] }
 0x3df   : > { %v9622_v0 = vpop.permute.xlu0 %1593  ;;  %v9624_v40 = vpop.permute.xlu1 %1591  ;;  %1942 = vmatprep.subr.bf16.mxu0 %v8354_v47  ;;  %v1418_v47 = vmul.f32 %v1410_v9, %v1405_v37  ;;  %v1319_v53 = vld [vmem:[%s13580_s2 + $0x150] sm:$0xff]  ;;  %v8365_v9 = vpack.c.bf16 %v1419_v17, %v1417_v33  ;;  %v1552_v17 = vld [vmem:[%s13580_s2 + $0x2d8] sm:$0xff] }
 0x3e0   : > { %v1551_v54 = vld [vmem:[%s13580_s2 + $0x2d0] sm:$0xff] }
 0x3e2   : > { %1943 = vmatpush1.bf16.msra.mxu0 %v8355_v45  ;;  %v1420_v45 = vmul.f32 %v1406_v12, %v13657_v41 }
 0x3e3   : > { %v9634_v43 = vpop.permute.xlu0 %1601  ;;  %v9636_v59 = vpop.permute.xlu1 %1599  ;;  %1944 = vmatprep.subr.bf16.mxu0 %v9628_v3 }
 0x3e4   : > { %v1607_v2 = vsel %vm392_vm7, %v9622_v0, %v9634_v43  ;;  %v1611_v13 = vsel %vm392_vm7, %v9634_v43, %v9622_v0  ;;  %v1606_v1 = vsel %vm392_vm7, %v9624_v40, %v9636_v59  ;;  %v1610_v0 = vsel %vm392_vm7, %v9636_v59, %v9624_v40  ;;  %v1619_v43 = vld [vmem:[%s13580_s2 + $0x330] sm:$0xff] }
 0x3e5   : > { %v8364_v59 = vpack.c.bf16 %v1420_v45, %v1418_v47  ;;  %v1624_v28 = vmul.f32 %v1610_v0, %v13661_v24 }
 0x3e6   : > { %1945 = vmatpush1.bf16.msra.mxu0 %v9664_v52 }
 0x3e7   : > { %v1590_v38 = vpop.permute.xlu0 %1589  ;;  %v1468_v20 = vpop.permute.xlu1 %1467  ;;  %1946 = vmatprep.subr.bf16.mxu0 %v8356_v60 }
 0x3e8   : > { %v1472_v56 = vsel %vm352_vm2, %v13653_v62, %v1468_v20  ;;  %v1476_v63 = vsel %vm352_vm2, %v1468_v20, %v13653_v62  ;;  %v1626_v20 = vmul.f32 %v1618_v39, %v1611_v13  ;;  %v13667_v13 = vld [vmem:[#allocation19_spill] sm:$0xff] }
 0x3e9   : > { %v1491_v46 = vmul.f32 %v1483_v55, %v1472_v56  ;;  %v1492_v29 = vmul.f32 %v1484_v22, %v1476_v63  ;;  %v13659_v56 = vld [vmem:[#allocation13_spill] sm:$0xff] }
 0x3ea   : > { %1947 = vmatpush2.bf16.msra.mxu0 %v8357_v25 }
 0x3eb   : > { %v1598_v15 = vpop.permute.xlu0 %1597  ;;  %v9684_v16 = vpop.permute.xlu1 %1295  ;;  %v8358_v26 = vpack.c.bf16 %v1492_v29, %v1490_v14  ;;  %v8359_v42 = vpack.c.bf16 %v1491_v46, %v1489_v61  ;;  %v1625_v14 = vmul.f32 %v1617_v44, %v1607_v2  ;;  %v13665_v44 = vld [vmem:[#allocation21_spill] sm:$0xff]  ;;  %v13666_v2 = vld [vmem:[#allocation18_spill] sm:$0xff] }
 0x3ec   : > { %v1605_v22 = vsel %vm392_vm7, %v1590_v38, %v1598_v15  ;;  %v1609_v27 = vsel %vm392_vm7, %v1598_v15, %v1590_v38  ;;  %v1620_v38 = vld [vmem:[%s13580_s2 + $0x338] sm:$0xff]  ;;  %v13660_v15 = vld [vmem:[#allocation14_spill] sm:$0xff] }
 0x3ed   : > { %1948 = vmatprep.subr.bf16.mxu0 %v8358_v26  ;;  %v1621_v62 = vmul.f32 %v1605_v22, %v13658_v11  ;;  %v1622_v63 = vmul.f32 %v1609_v27, %v13659_v56  ;;  %v1623_v25 = vmul.f32 %v1606_v1, %v13660_v15  ;;  %v1317_v26 = vld [vmem:[%s13580_s2 + $0x140] sm:$0xff] }
 0x3ee   : > { %1949 = vmatpush2.bf16.msra.mxu0 %v8359_v42  ;;  %v1318_v42 = vld [vmem:[%s13580_s2 + $0x148] sm:$0xff]  ;;  %v13669_v1 = vld [vmem:[#allocation17_spill] sm:$0xff] }
 0x3ef   : > { %v1294_v36 = vpop.permute.xlu0 %1293  ;;  %v1400_v58 = vpop.permute.xlu1 %1399  ;;  %1950 = vmatprep.subr.bf16.mxu0 %v8360_v32 }
 0x3f0   : > { %v1404_v23 = vsel %vm332_vm1, %v13655_v48, %v1400_v58  ;;  %v1408_v21 = vsel %vm332_vm1, %v1400_v58, %v13655_v48 }
 0x3f1   : > { %v1423_v5 = vmul.f32 %v1415_v35, %v1404_v23  ;;  %v1424_v34 = vmul.f32 %v1416_v57, %v1408_v21 }
 0x3f2   : > { %1951 = vmatpush2.bf16.msra.mxu0 %v8361_v31 }
 0x3f3   : > { %v1302_v55 = vpop.permute.xlu0 %1301  ;;  %v1528_v51 = vpop.permute.xlu1 %1527  ;;  %v8362_v50 = vpack.c.bf16 %v1424_v34, %v1422_v19  ;;  %v8363_v61 = vpack.c.bf16 %v1423_v5, %v1421_v30  ;;  %v1549_v30 = vld [vmem:[%s13580_s2 + $0x2c0] sm:$0xff]  ;;  %v1550_v19 = vld [vmem:[%s13580_s2 + $0x2c8] sm:$0xff] }
 0x3f4   : > { %v1307_v10 = vsel %vm303_vm3, %v1294_v36, %v1302_v55  ;;  %v1311_v12 = vsel %vm303_vm3, %v1302_v55, %v1294_v36  ;;  %v8370_v55 = vpack.c.bf16 %v13667_v13, %v13666_v2 }
 0x3f5   : > { %1952 = vmatprep.subr.bf16.mxu0 %v8362_v50  ;;  %v1325_v23 = vmul.f32 %v1317_v26, %v1311_v12  ;;  %v1326_v21 = vmul.f32 %v1318_v42, %v1307_v10  ;;  %v8371_v50 = vpack.c.bf16 %v1624_v28, %v1622_v63  ;;  %v8260_v63 = vld [vmem:[%s13579_s1 + $0x60] ss:$16 sps:$4 sm:$0xff]  }
 0x3f6   : > { %1953 = vmatpush2.bf16.msra.mxu0 %v8363_v61 }
 0x3f7   : > { %v1526_v60 = vpop.permute.xlu0 %1525  ;;  %v1604_v46 = vpop.permute.xlu1 %1603  ;;  %1954 = vmatprep.subr.bf16.mxu0 %v8364_v59 }
 0x3f8   : > { %v1608_v29 = vsel %vm392_vm7, %v9602_v6, %v1604_v46  ;;  %v1612_v40 = vsel %vm392_vm7, %v1604_v46, %v9602_v6  ;;  %v13663_v6 = vld [vmem:[#allocation23_spill] sm:$0xff]  ;;  %v13670_v46 = vmov 0  }
 0x3f9   : > { %v1627_v18 = vmul.f32 %v1619_v43, %v1608_v29  ;;  %v1628_v49 = vmul.f32 %v1620_v38, %v1612_v40  ;;  %v8366_v37 = vpack.c.bf16 %v13663_v6, %v13662_v4  ;;  %v8373_v43 = vpack.c.bf16 %v1623_v25, %v1621_v62  ;;  %v8264_v62 = vld [vmem:[%s13579_s1 + $0x84] ss:$16 sps:$4 sm:$0xff]   ;;  %v8266_v29 = vld [vmem:[%s13579_s1 + $0x80] ss:$16 sps:$4 sm:$0xff]   ;;  %v8267_v40 = vld [vmem:[%s13579_s1 + $0x88] ss:$16 sps:$4 sm:$0xff]  }
 0x3fa   : > { %1955 = vmatpush2.bf16.msra.mxu0 %v8365_v9 }
 0x3fb   : > { %v1534_v35 = vpop.permute.xlu0 %1533  ;;  %v1304_v57 = vpop.permute.xlu1 %1303  ;;  %1956 = vmatprep.subr.bf16.mxu0 %v8366_v37  ;;  %v8367_v41 = vpack.c.bf16 %v1628_v49, %v1626_v20  ;;  %v8368_v45 = vpack.c.bf16 %v1627_v18, %v1625_v14  ;;  %v13668_v14 = vld [vmem:[#allocation16_spill] sm:$0xff] }
 0x3fc   : > { %v1539_v58 = vsel %vm372_vm8, %v1526_v60, %v1534_v35  ;;  %v1543_v32 = vsel %vm372_vm8, %v1534_v35, %v1526_v60  ;;  %v1308_v36 = vsel %vm303_vm3, %v9684_v16, %v1304_v57  ;;  %v1312_v33 = vsel %vm303_vm3, %v1304_v57, %v9684_v16  ;;  %v13664_v16 = vld [vmem:[#allocation20_spill] sm:$0xff] }
 0x3fd   : > { %v1327_v47 = vmul.f32 %v1319_v53, %v1312_v33  ;;  %v1328_v48 = vmul.f32 %v1320_v8, %v1308_v36  ;;  %v1557_v5 = vmul.f32 %v1549_v30, %v1539_v58  ;;  %v1558_v34 = vmul.f32 %v1550_v19, %v1543_v32  ;;  %1993 = vmatprep.subr.bf16.mxu1 %v8367_v41  ;;  %v8263_v60 = vld [vmem:[%s13579_s1 + $0x68] ss:$16 sps:$4 sm:$0xff]  }
 0x3fe   : > { %v8369_v39 = vpack.c.bf16 %v13665_v44, %v13664_v16  ;;  %1994 = vmatpush1.bf16.msra.mxu1 %v8368_v45  ;;  %v8372_v0 = vpack.c.bf16 %v13669_v1, %v13668_v14  ;;  %v8270_v44 = vld [vmem:[%s13579_s1 + $0xa4] ss:$16 sps:$4 sm:$0xff]   ;;  %v2273_v14 = vld [vmem:[%s13580_s2 + $0x128] sm:$0xff] }
 0x3ff   : > { %v1536_v31 = vpop.permute.xlu1 %1535  ;;  %1995 = vmatprep.subr.bf16.mxu1 %v8371_v50  ;;  %v8374_v38 = vpack.c.bf16 %v1328_v48, %v1326_v21 }
 0x400   : > { %v1540_v22 = vsel %vm372_vm8, %v1528_v51, %v1536_v31  ;;  %v1544_v27 = vsel %vm372_vm8, %v1536_v31, %v1528_v51  ;;  %1957 = vmatpush2.bf16.msra.mxu0 %v8369_v39  ;;  %v8377_v51 = vpack.c.bf16 %v1327_v47, %v1325_v23 }
 0x401   : > { %v1559_v61 = vmul.f32 %v1551_v54, %v1540_v22  ;;  %v1560_v20 = vmul.f32 %v1552_v17, %v1544_v27  ;;  %1958 = vmatprep.subr.bf16.mxu0 %v8370_v55 }
 0x402   : > { %1996 = vmatpush1.bf16.msra.mxu1 %v8373_v43  ;;  %v2274_v43 = vld [vmem:[%s13580_s2 + $0x130] sm:$0xff] }
 0x403   : > { %v8375_v11 = vpack.c.bf16 %v1560_v20, %v1558_v34  ;;  %v8376_v56 = vpack.c.bf16 %v1559_v61, %v1557_v5  ;;  %v2272_v20 = vld [vmem:[%s13580_s2 + $0x120] sm:$0xff] }
 0x404   : > { %1959 = vmatpush2.bf16.msra.mxu0 %v8372_v0 }
 0x405   : > { %1960 = vmatprep.subr.bf16.mxu0 %v8374_v38  ;;  %1997 = vmatprep.subr.bf16.mxu1 %v8375_v11  ;;  %v2275_v38 = vld [vmem:[%s13580_s2 + $0x138] sm:$0xff] }
 0x406   : > { %1998 = vmatpush1.bf16.msra.mxu1 %v8376_v56 }
 0x408   : > { %1961 = vmatpush2.bf16.msra.mxu0 %v8377_v51 }
 0x409   : > { %7476 = vmatmul.mubr.msk.bf16.vlgmr.msra.gmra.mxu1 %vm1923_vm9, %v8263_v60 }
 0x40a   : > { %2025 = vmatprep.mubr.bf16.mxu1 %v13670_v46 }
 0x40b   : > { %1963 = vmatmul.mubr.bf16.vlgmr.msra.gmra.mxu0 %v8260_v63 }
 0x40c   : > { %1972 = vmatprep.mubr.bf16.mxu0 %v8264_v62 }
 0x411   : > { %7477 = vmatmul.mubr.msk.bf16.gmra.mxu1 %vm1923_vm9, %v8267_v40 }
 0x412   : > { %2942 = vmatprep.mubr.bf16.mxu1 %v8270_v44  ;;  %v2208_v44 = vld [vmem:[%s13580_s2 + $0xe0] sm:$0xff] }
 0x413   : > { %1973 = vmatmul.mubr.bf16.gmra.mxu0 %v8266_v29 }
 0x414   : > { %3005 = vmatprep.mubr.bf16.mxu0 %v13670_v46 }
 0x4c9   : > { %v2017_v15 = vpop.f32.mrf.mxu1 }
 0x4cb   : > { %v1964_v59 = vpop.f32.mrf.mxu0  ;;  %v2019_v28 = vpop.f32.mrf.mxu1 }
 0x4cc   : > { %v2018_v25 = vadd.f32 %v2017_v15, %v1964_v59 }
 0x4cd   : > { %v1966_v24 = vpop.f32.mrf.mxu0  ;;  %v2021_v53 = vpop.f32.mrf.mxu1 }
 0x4ce   : > { %v9847_v18 = vmax.f32 %v2018_v25, 0.0  ;;  %v2020_v4 = vadd.f32 %v2019_v28, %v1966_v24 }
 0x4cf   : > { %v1968_v49 = vpop.f32.mrf.mxu0  ;;  %v2023_v37 = vpop.f32.mrf.mxu1 }
 0x4d0   : > { %13671 = vst [vmem:[#allocation9_spill] sm:$0xff] %v9847_v18  ;;  %v2022_v8 = vadd.f32 %v2021_v53, %v1968_v49  ;;  %2248 = vrot.lane.b32.xlu0 %v9847_v18, %s8665_s8  ;;  %v9873_v26 = vmax.f32 %v2020_v4, 0.0 }
 0x4d1   : > { %v1970_v6 = vpop.f32.mrf.mxu0  ;;  %v2027_v35 = vpop.f32.mrf.mxu1 }
 0x4d2   : > { %v9851_v9 = vmax.f32 %v2022_v8, 0.0  ;;  %v2024_v42 = vadd.f32 %v2023_v37, %v1970_v6 }
 0x4d3   : > { %v1974_v12 = vpop.f32.mrf.mxu0  ;;  %v2029_v19 = vpop.f32.mrf.mxu1 }
 0x4d4   : > { %13672 = vst [vmem:[#allocation25_spill] sm:$0xff] %v9851_v9  ;;  %2180 = vrot.lane.b32.xlu0 %v9847_v18, %s8666_s9  ;;  %2250 = vrot.lane.b32.xlu1 %v9851_v9, %s8665_s8  ;;  %v9879_v10 = vmax.f32 %v2024_v42, 0.0  ;;  %v2028_v57 = vadd.f32 %v2027_v35, %v1974_v12 }
 0x4d5   : > { %v1976_v30 = vpop.f32.mrf.mxu0  ;;  %v2031_v36 = vpop.f32.mrf.mxu1 }
 0x4d6   : > { %v9897_v58 = vmax.f32 %v2028_v57, 0.0  ;;  %v2030_v48 = vadd.f32 %v2029_v19, %v1976_v30 }
 0x4d7   : > { %v1978_v32 = vpop.f32.mrf.mxu0  ;;  %v2033_v21 = vpop.f32.mrf.mxu1 }
 0x4d8   : > { %2112 = vrot.lane.b32.xlu0 %v9847_v18, %s13630_s10  ;;  %2182 = vrot.lane.b32.xlu1 %v9851_v9, %s8666_s9  ;;  %v2032_v33 = vadd.f32 %v2031_v36, %v1978_v32  ;;  %v9925_v54 = vmax.f32 %v2030_v48, 0.0  ;;  %v2206_v48 = vld [vmem:[%s13580_s2 + $0xd0] sm:$0xff] }
 0x4d9   : > { %v1980_v23 = vpop.f32.mrf.mxu0 }
 0x4da   : > { %v9907_v47 = vmax.f32 %v2032_v33, 0.0  ;;  %v2034_v17 = vadd.f32 %v2033_v21, %v1980_v23 }
 0x4dc   : > { %2044 = vrot.lane.b32.xlu0 %v9847_v18, %s13628_s11  ;;  %2114 = vrot.lane.b32.xlu1 %v9851_v9, %s13630_s10  ;;  %v9931_v41 = vmax.f32 %v2034_v17, 0.0  ;;  %v2207_v17 = vld [vmem:[%s13580_s2 + $0xd8] sm:$0xff] }
 0x4e0   : > { %2480 = vrot.lane.b32.xlu0 %v9847_v18, %s13626_s13  ;;  %2046 = vrot.lane.b32.xlu1 %v9851_v9, %s13628_s11 }
 0x4e4   : > { %2412 = vrot.lane.b32.xlu0 %v9847_v18, %s13618_s7  ;;  %2482 = vrot.lane.b32.xlu1 %v9851_v9, %s13626_s13 }
 0x4e8   : > { %2256 = vrot.lane.b32.xlu0 %v9873_v26, %s8665_s8  ;;  %2414 = vrot.lane.b32.xlu1 %v9851_v9, %s13618_s7 }
 0x4ec   : > { %2188 = vrot.lane.b32.xlu0 %v9873_v26, %s8666_s9  ;;  %2258 = vrot.lane.b32.xlu1 %v9879_v10, %s8665_s8 }
 0x4f0   : > { %2120 = vrot.lane.b32.xlu0 %v9873_v26, %s13630_s10  ;;  %2190 = vrot.lane.b32.xlu1 %v9879_v10, %s8666_s9 }
 0x4f4   : > { %2052 = vrot.lane.b32.xlu0 %v9873_v26, %s13628_s11  ;;  %2122 = vrot.lane.b32.xlu1 %v9879_v10, %s13630_s10 }
 0x4f8   : > { %2488 = vrot.lane.b32.xlu0 %v9873_v26, %s13626_s13  ;;  %2054 = vrot.lane.b32.xlu1 %v9879_v10, %s13628_s11 }
 0x4fc   : > { %2420 = vrot.lane.b32.xlu0 %v9873_v26, %s13618_s7  ;;  %2490 = vrot.lane.b32.xlu1 %v9879_v10, %s13626_s13 }
 0x500   : > { %2422 = vrot.lane.b32.xlu1 %v9879_v10, %s13618_s7  ;;  %2184 = vrot.lane.b32.xlu0 %v9897_v58, %s8666_s9 }
 0x504   : > { %2116 = vrot.lane.b32.xlu0 %v9897_v58, %s13630_s10  ;;  %2186 = vrot.lane.b32.xlu1 %v9907_v47, %s8666_s9 }
 0x508   : > { %2048 = vrot.lane.b32.xlu0 %v9897_v58, %s13628_s11  ;;  %2118 = vrot.lane.b32.xlu1 %v9907_v47, %s13630_s10 }
 0x50c   : > { %2416 = vrot.lane.b32.xlu0 %v9897_v58, %s13618_s7  ;;  %2050 = vrot.lane.b32.xlu1 %v9907_v47, %s13628_s11 }
 0x510   : > { %2348 = vrot.lane.b32.xlu0 %v9897_v58, %s13616_s6  ;;  %2418 = vrot.lane.b32.xlu1 %v9907_v47, %s13618_s7 }
 0x514   : > { %2192 = vrot.lane.b32.xlu0 %v9925_v54, %s8666_s9  ;;  %2350 = vrot.lane.b32.xlu1 %v9907_v47, %s13616_s6 }
 0x518   : > { %2344 = vrot.lane.b32.xlu0 %v9847_v18, %s13616_s6  ;;  %2194 = vrot.lane.b32.xlu1 %v9931_v41, %s8666_s9 }
 0x51c   : > { %2124 = vrot.lane.b32.xlu0 %v9925_v54, %s13630_s10  ;;  %2346 = vrot.lane.b32.xlu1 %v9851_v9, %s13616_s6 }
 0x520   : > { %2056 = vrot.lane.b32.xlu0 %v9925_v54, %s13628_s11  ;;  %2126 = vrot.lane.b32.xlu1 %v9931_v41, %s13630_s10 }
 0x524   : > { %2424 = vrot.lane.b32.xlu0 %v9925_v54, %s13618_s7  ;;  %2354 = vrot.lane.b32.xlu1 %v9879_v10, %s13616_s6 }
 0x528   : > { %2356 = vrot.lane.b32.xlu0 %v9925_v54, %s13616_s6  ;;  %2058 = vrot.lane.b32.xlu1 %v9931_v41, %s13628_s11 }
 0x52c   : > { %2352 = vrot.lane.b32.xlu0 %v9873_v26, %s13616_s6  ;;  %2554 = vrot.lane.b32.xlu1 %v9907_v47, %s13614_s12 }
 0x530   : > { %2552 = vrot.lane.b32.xlu0 %v9897_v58, %s13614_s12  ;;  %2550 = vrot.lane.b32.xlu1 %v9851_v9, %s13614_s12 }
 0x534   : > { %2560 = vrot.lane.b32.xlu0 %v9925_v54, %s13614_s12  ;;  %2558 = vrot.lane.b32.xlu1 %v9879_v10, %s13614_s12 }
 0x538   : > { %2548 = vrot.lane.b32.xlu0 %v9847_v18, %s13614_s12  ;;  %2426 = vrot.lane.b32.xlu1 %v9931_v41, %s13618_s7 }
 0x53c   : > { %2556 = vrot.lane.b32.xlu0 %v9873_v26, %s13614_s12  ;;  %2254 = vrot.lane.b32.xlu1 %v9907_v47, %s8665_s8 }
 0x540   : > { %2252 = vrot.lane.b32.xlu0 %v9897_v58, %s8665_s8  ;;  %2358 = vrot.lane.b32.xlu1 %v9931_v41, %s13616_s6 }
 0x542   : > { %v2249_v45 = vpop.permute.xlu0 %2248 }
 0x544   : > { %2260 = vrot.lane.b32.xlu0 %v9925_v54, %s8665_s8  ;;  %2486 = vrot.lane.b32.xlu1 %v9907_v47, %s13626_s13 }
 0x546   : > { %v9981_v5 = vpop.permute.xlu0 %2180  ;;  %v2251_v34 = vpop.permute.xlu1 %2250 }
 0x548   : > { %2484 = vrot.lane.b32.xlu0 %v9897_v58, %s13626_s13  ;;  %2562 = vrot.lane.b32.xlu1 %v9931_v41, %s13614_s12 }
 0x54a   : > { %v9987_v31 = vpop.permute.xlu0 %2112  ;;  %v2183_v16 = vpop.permute.xlu1 %2182 }
 0x54c   : > { %2492 = vrot.lane.b32.xlu0 %v9925_v54, %s13626_s13  ;;  %2262 = vrot.lane.b32.xlu1 %v9931_v41, %s8665_s8 }
 0x54e   : > { %v9996_v39 = vpop.permute.xlu0 %2044  ;;  %v9998_v2 = vpop.permute.xlu1 %2114 }
 0x550   : > { %2494 = vrot.lane.b32.xlu1 %v9931_v41, %s13626_s13 }
 0x552   : > { %v10002_v13 = vpop.permute.xlu0 %2480  ;;  %v10004_v55 = vpop.permute.xlu1 %2046 }
 0x556   : > { %v10006_v22 = vpop.permute.xlu0 %2412  ;;  %v10008_v27 = vpop.permute.xlu1 %2482 }
 0x55a   : > { %v2257_v50 = vpop.permute.xlu0 %2256  ;;  %v10010_v61 = vpop.permute.xlu1 %2414 }
 0x55b   : > { %v2264_v1 = vsel %vm303_vm3, %v2249_v45, %v2257_v50  ;;  %v2268_v0 = vsel %vm303_vm3, %v2257_v50, %v2249_v45  ;;  %v2209_v50 = vld [vmem:[%s13580_s2 + $0xe8] sm:$0xff] }
 0x55c   : > { %v2280_v51 = vmul.f32 %v2272_v20, %v2268_v0  ;;  %v2281_v63 = vmul.f32 %v2273_v14, %v2264_v1  ;;  %v2204_v1 = vld [vmem:[%s13580_s2 + $0xc0] sm:$0xff] }
 0x55e   : > { %v2189_v11 = vpop.permute.xlu0 %2188  ;;  %v2259_v56 = vpop.permute.xlu1 %2258 }
 0x55f   : > { %v2265_v60 = vsel %vm303_vm3, %v2251_v34, %v2259_v56  ;;  %v2269_v62 = vsel %vm303_vm3, %v2259_v56, %v2251_v34  ;;  %v2196_v0 = vsel %vm283_vm4, %v9981_v5, %v2189_v11  ;;  %v2211_v56 = vld [vmem:[%s13580_s2 + $0xf8] sm:$0xff] }
 0x560   : > { %v2282_v29 = vmul.f32 %v2274_v43, %v2269_v62  ;;  %v2283_v40 = vmul.f32 %v2275_v38, %v2265_v60  ;;  %v2200_v43 = vsel %vm283_vm4, %v2189_v11, %v9981_v5  ;;  %v2210_v38 = vld [vmem:[%s13580_s2 + $0xf0] sm:$0xff] }
 0x562   : > { %v10032_v59 = vpop.permute.xlu0 %2120  ;;  %v2191_v15 = vpop.permute.xlu1 %2190  ;;  %v8378_v25 = vpack.c.bf16 %v2283_v40, %v2281_v63  ;;  %v8379_v24 = vpack.c.bf16 %v2282_v29, %v2280_v51 }
 0x563   : > { %v2197_v45 = vsel %vm283_vm4, %v2183_v16, %v2191_v15  ;;  %v2201_v34 = vsel %vm283_vm4, %v2191_v15, %v2183_v16  ;;  %v2205_v16 = vld [vmem:[%s13580_s2 + $0xc8] sm:$0xff]  ;;  %v2212_v15 = vmul.f32 %v2204_v1, %v2200_v43  ;;  %v2132_v43 = vsel %vm263_vm5, %v10032_v59, %v9987_v31 }
 0x564   : > { %2910 = vmatprep.subr.bf16.mxu1 %v8378_v25  ;;  %v2214_v51 = vmul.f32 %v2206_v48, %v2201_v34  ;;  %v2215_v63 = vmul.f32 %v2207_v17, %v2197_v45  ;;  %v2213_v25 = vmul.f32 %v2205_v16, %v2196_v0  ;;  %v2138_v48 = vld [vmem:[%s13580_s2 + $0x70] sm:$0xff]  ;;  %v2139_v17 = vld [vmem:[%s13580_s2 + $0x78] sm:$0xff]  ;;  %v2140_v34 = vld [vmem:[%s13580_s2 + $0x80] sm:$0xff] }
 0x565   : > { %2911 = vmatpush1.bf16.msra.mxu1 %v8379_v24  ;;  %v2143_v16 = vld [vmem:[%s13580_s2 + $0x98] sm:$0xff]  ;;  %v2136_v0 = vld [vmem:[%s13580_s2 + $0x60] sm:$0xff] }
 0x566   : > { %v10034_v28 = vpop.permute.xlu0 %2052  ;;  %v2123_v49 = vpop.permute.xlu1 %2122  ;;  %v2144_v18 = vmul.f32 %v2136_v0, %v2132_v43 }
 0x567   : > { %v2129_v45 = vsel %vm263_vm5, %v9998_v2, %v2123_v49 }
 0x56a   : > { %v10036_v53 = vpop.permute.xlu0 %2488  ;;  %v10038_v8 = vpop.permute.xlu1 %2054 }
 0x56e   : > { %v10040_v4 = vpop.permute.xlu0 %2420  ;;  %v10042_v6 = vpop.permute.xlu1 %2490 }
 0x572   : > { %v10044_v37 = vpop.permute.xlu1 %2422  ;;  %v2185_v42 = vpop.permute.xlu0 %2184 }
 0x576   : > { %v2117_v12 = vpop.permute.xlu0 %2116  ;;  %v2187_v35 = vpop.permute.xlu1 %2186 }
 0x57a   : > { %v10046_v57 = vpop.permute.xlu0 %2048  ;;  %v2119_v30 = vpop.permute.xlu1 %2118 }
 0x57e   : > { %v10048_v19 = vpop.permute.xlu0 %2416  ;;  %v10050_v32 = vpop.permute.xlu1 %2050 }
 0x582   : > { %v10052_v36 = vpop.permute.xlu0 %2348  ;;  %v10054_v33 = vpop.permute.xlu1 %2418 }
 0x586   : > { %v2193_v23 = vpop.permute.xlu0 %2192  ;;  %v10059_v21 = vpop.permute.xlu1 %2350 }
 0x587   : > { %v2198_v20 = vsel %vm283_vm4, %v2185_v42, %v2193_v23  ;;  %v2202_v14 = vsel %vm283_vm4, %v2193_v23, %v2185_v42 }
 0x588   : > { %v2216_v60 = vmul.f32 %v2208_v44, %v2202_v14  ;;  %v2217_v62 = vmul.f32 %v2209_v50, %v2198_v20  ;;  %v2141_v44 = vld [vmem:[%s13580_s2 + $0x88] sm:$0xff] }
 0x58a   : > { %v10096_v29 = vpop.permute.xlu0 %2344  ;;  %v2195_v40 = vpop.permute.xlu1 %2194 }
 0x58b   : > { %v2199_v5 = vsel %vm283_vm4, %v2187_v35, %v2195_v40  ;;  %v2203_v11 = vsel %vm283_vm4, %v2195_v40, %v2187_v35  ;;  %v2133_v35 = vsel %vm263_vm5, %v2123_v49, %v9998_v2  ;;  %v2128_v2 = vsel %vm263_vm5, %v9987_v31, %v10032_v59  ;;  %v2142_v49 = vld [vmem:[%s13580_s2 + $0x90] sm:$0xff] }
 0x58c   : > { %v2218_v24 = vmul.f32 %v2210_v38, %v2203_v11  ;;  %v2219_v42 = vmul.f32 %v2211_v56, %v2199_v5  ;;  %v2146_v38 = vmul.f32 %v2138_v48, %v2133_v35  ;;  %v2147_v56 = vmul.f32 %v2139_v17, %v2129_v45  ;;  %v2071_v35 = vld [vmem:[%s13580_s2 + $0x18] sm:$0xff] }
 0x58d   : > { %v8382_v40 = vpack.c.bf16 %v2215_v63, %v2213_v25  ;;  %v8383_v59 = vpack.c.bf16 %v2214_v51, %v2212_v15  ;;  %v2070_v63 = vld [vmem:[%s13580_s2 + $0x10] sm:$0xff]  ;;  %v2072_v25 = vld [vmem:[%s13580_s2 + $0x20] sm:$0xff]  ;;  %v2073_v51 = vld [vmem:[%s13580_s2 + $0x28] sm:$0xff] }
 0x58e   : > { %v2125_v23 = vpop.permute.xlu0 %2124  ;;  %v10102_v46 = vpop.permute.xlu1 %2346  ;;  %v8380_v14 = vpack.c.bf16 %v2219_v42, %v2217_v62  ;;  %v8381_v1 = vpack.c.bf16 %v2218_v24, %v2216_v60 }
 0x58f   : > { %v2130_v50 = vsel %vm263_vm5, %v2117_v12, %v2125_v23  ;;  %v2134_v20 = vsel %vm263_vm5, %v2125_v23, %v2117_v12  ;;  %v2137_v12 = vld [vmem:[%s13580_s2 + $0x68] sm:$0xff] }
 0x590   : > { %2912 = vmatprep.subr.bf16.mxu1 %v8380_v14  ;;  %v2148_v5 = vmul.f32 %v2140_v34, %v2134_v20  ;;  %v2149_v11 = vmul.f32 %v2141_v44, %v2130_v50  ;;  %v2145_v31 = vmul.f32 %v2137_v12, %v2128_v2  ;;  %v2061_v34 = vsel %vm243_vm6, %v10004_v55, %v10038_v8  ;;  %v2074_v50 = vld [vmem:[%s13580_s2 + $0x30] sm:$0xff] }
 0x591   : > { %2913 = vmatpush1.bf16.msra.mxu1 %v8381_v1  ;;  %v2060_v44 = vsel %vm243_vm6, %v9996_v39, %v10034_v28  ;;  %v2068_v1 = vld [vmem:[%s13580_s2] sm:$0xff]  ;;  %v2079_v12 = vmul.f32 %v2071_v35, %v2061_v34 }
 0x592   : > { %v2057_v60 = vpop.permute.xlu0 %2056  ;;  %v2127_v62 = vpop.permute.xlu1 %2126  ;;  %2914 = vmatprep.subr.bf16.mxu1 %v8382_v40 }
 0x593   : > { %v2131_v24 = vsel %vm263_vm5, %v2119_v30, %v2127_v62  ;;  %v2135_v42 = vsel %vm263_vm5, %v2127_v62, %v2119_v30  ;;  %v2065_v30 = vsel %vm243_vm6, %v10038_v8, %v10004_v55  ;;  %v2062_v15 = vsel %vm243_vm6, %v10046_v57, %v2057_v60  ;;  %v2069_v55 = vld [vmem:[%s13580_s2 + $0x8] sm:$0xff] }
 0x594   : > { %v2150_v23 = vmul.f32 %v2142_v49, %v2135_v42  ;;  %v2151_v9 = vmul.f32 %v2143_v16, %v2131_v24  ;;  %v2066_v45 = vsel %vm243_vm6, %v2057_v60, %v10046_v57  ;;  %v2075_v57 = vld [vmem:[%s13580_s2 + $0x38] sm:$0xff]  ;;  %v2064_v8 = vsel %vm243_vm6, %v10034_v28, %v9996_v39 }
 0x595   : > { %2915 = vmatpush1.bf16.msra.mxu1 %v8383_v59  ;;  %v2078_v2 = vmul.f32 %v2070_v63, %v2065_v30  ;;  %v2080_v49 = vmul.f32 %v2072_v25, %v2066_v45  ;;  %v2081_v16 = vmul.f32 %v2073_v51, %v2062_v15  ;;  %v8386_v62 = vpack.c.bf16 %v2147_v56, %v2145_v31  ;;  %v2504_v59 = vld [vmem:[%s13580_s2 + $0x2a0] sm:$0xff]  ;;  %v2505_v63 = vld [vmem:[%s13580_s2 + $0x2a8] sm:$0xff] }
 0x596   : > { %v10150_v48 = vpop.permute.xlu0 %2424  ;;  %v10152_v17 = vpop.permute.xlu1 %2354  ;;  %v8384_v20 = vpack.c.bf16 %v2151_v9, %v2149_v11  ;;  %v8385_v14 = vpack.c.bf16 %v2150_v23, %v2148_v5  ;;  %v2076_v39 = vmul.f32 %v2068_v1, %v2064_v8  ;;  %v2077_v28 = vmul.f32 %v2069_v55, %v2060_v44  ;;  %v2506_v23 = vld [vmem:[%s13580_s2 + $0x2b0] sm:$0xff]  ;;  %v2436_v44 = vld [vmem:[%s13580_s2 + $0x240] sm:$0xff] }
 0x597   : > { %v8387_v42 = vpack.c.bf16 %v2146_v38, %v2144_v18  ;;  %v2497_v56 = vsel %vm372_vm8, %v10008_v27, %v10042_v6  ;;  %v2501_v31 = vsel %vm372_vm8, %v10042_v6, %v10008_v27  ;;  %v2496_v30 = vsel %vm372_vm8, %v10002_v13, %v10036_v53  ;;  %v2440_v8 = vld [vmem:[%s13580_s2 + $0x260] sm:$0xff] }
 0x598   : > { %2916 = vmatprep.subr.bf16.mxu1 %v8384_v20  ;;  %v2500_v27 = vsel %vm372_vm8, %v10036_v53, %v10002_v13  ;;  %v2514_v6 = vmul.f32 %v2506_v23, %v2497_v56  ;;  %v8390_v45 = vpack.c.bf16 %v2079_v12, %v2077_v28  ;;  %v2512_v35 = vmul.f32 %v2504_v59, %v2496_v30  ;;  %v2438_v53 = vld [vmem:[%s13580_s2 + $0x250] sm:$0xff]  ;;  %v2368_v59 = vld [vmem:[%s13580_s2 + $0x1e0] sm:$0xff] }
 0x599   : > { %2917 = vmatpush1.bf16.msra.mxu1 %v8385_v14  ;;  %v2513_v34 = vmul.f32 %v2505_v63, %v2500_v27  ;;  %v2428_v13 = vsel %vm352_vm2, %v10006_v22, %v10040_v4  ;;  %v8391_v20 = vpack.c.bf16 %v2078_v2, %v2076_v39  ;;  %v2439_v14 = vld [vmem:[%s13580_s2 + $0x258] sm:$0xff]  ;;  %v2429_v1 = vsel %vm352_vm2, %v10010_v61, %v10044_v37  ;;  %v2441_v2 = vld [vmem:[%s13580_s2 + $0x268] sm:$0xff]  ;;  %v2442_v12 = vld [vmem:[%s13580_s2 + $0x270] sm:$0xff] }
 0x59a   : > { %v10200_v0 = vpop.permute.xlu0 %2356  ;;  %v2059_v9 = vpop.permute.xlu1 %2058  ;;  %2918 = vmatprep.subr.bf16.mxu1 %v8386_v62  ;;  %v2433_v55 = vsel %vm352_vm2, %v10044_v37, %v10010_v61  ;;  %v2437_v61 = vld [vmem:[%s13580_s2 + $0x248] sm:$0xff]  ;;  %v2432_v37 = vsel %vm352_vm2, %v10040_v4, %v10006_v22  ;;  %v8393_v56 = vpack.c.bf16 %v2514_v6, %v2512_v35  ;;  %v2371_v6 = vld [vmem:[%s13580_s2 + $0x1f8] sm:$0xff] }
 0x59b   : > { %v2063_v43 = vsel %vm243_vm6, %v10050_v32, %v2059_v9  ;;  %v2067_v60 = vsel %vm243_vm6, %v2059_v9, %v10050_v32  ;;  %v2507_v32 = vld [vmem:[%s13580_s2 + $0x2b8] sm:$0xff]  ;;  %v10290_v9 = vmul.f32 %v2436_v44, %v2428_v13  ;;  %v2445_v22 = vmul.f32 %v2437_v61, %v2432_v37  ;;  %v2369_v63 = vld [vmem:[%s13580_s2 + $0x1e8] sm:$0xff] }
 0x59c   : > { %v2082_v40 = vmul.f32 %v2074_v50, %v2067_v60  ;;  %v2083_v5 = vmul.f32 %v2075_v57, %v2063_v43  ;;  %v2515_v25 = vmul.f32 %v2507_v32, %v2501_v31  ;;  %v2447_v43 = vmul.f32 %v2439_v14, %v2433_v55  ;;  %v2372_v31 = vld [vmem:[%s13580_s2 + $0x200] sm:$0xff]  ;;  %v2577_v61 = vld [vmem:[%s13580_s2 + $0x328] sm:$0xff] }
 0x59d   : > { %2919 = vmatpush1.bf16.msra.mxu1 %v8387_v42 }
 0x59e   : > { %v10208_v11 = vpop.permute.xlu0 %2352  ;;  %v10210_v24 = vpop.permute.xlu1 %2554  ;;  %v8388_v18 = vpack.c.bf16 %v2083_v5, %v2081_v16  ;;  %v8389_v38 = vpack.c.bf16 %v2082_v40, %v2080_v49  ;;  %v2430_v49 = vsel %vm352_vm2, %v10048_v19, %v10150_v48  ;;  %v2434_v16 = vsel %vm352_vm2, %v10150_v48, %v10048_v19  ;;  %v2443_v19 = vld [vmem:[%s13580_s2 + $0x278] sm:$0xff] }
 0x59f   : > { %v2446_v48 = vmul.f32 %v2438_v53, %v2429_v1  ;;  %v2448_v60 = vmul.f32 %v2440_v8, %v2430_v49  ;;  %v2449_v62 = vmul.f32 %v2441_v2, %v2434_v16  ;;  %v8392_v28 = vpack.c.bf16 %v2515_v25, %v2513_v34  ;;  %v2576_v16 = vld [vmem:[%s13580_s2 + $0x320] sm:$0xff] }
 0x5a0   : > { %2920 = vmatprep.subr.bf16.mxu1 %v8388_v18  ;;  %v2373_v18 = vld [vmem:[%s13580_s2 + $0x208] sm:$0xff]  ;;  %v2360_v30 = vsel %vm332_vm1, %v10096_v29, %v10208_v11  ;;  %v2361_v25 = vsel %vm332_vm1, %v10102_v46, %v10152_v17  ;;  %v8396_v53 = vpack.c.bf16 %v2447_v43, %v2445_v22 }
 0x5a1   : > { %2921 = vmatpush1.bf16.msra.mxu1 %v8389_v38  ;;  %v2370_v38 = vld [vmem:[%s13580_s2 + $0x1f0] sm:$0xff]  ;;  %v8397_v49 = vpack.c.bf16 %v2446_v48, %v10290_v9  ;;  %v2573_v48 = vld [vmem:[%s13580_s2 + $0x308] sm:$0xff] }
 0x5a2   : > { %v10240_v51 = vpop.permute.xlu0 %2552  ;;  %v10242_v15 = vpop.permute.xlu1 %2550  ;;  %2922 = vmatprep.subr.bf16.mxu1 %v8390_v45  ;;  %v2365_v45 = vsel %vm332_vm1, %v10152_v17, %v10102_v46  ;;  %v2378_v1 = vmul.f32 %v2370_v38, %v2361_v25 }
 0x5a3   : > { %v2379_v55 = vmul.f32 %v2371_v6, %v2365_v45 }
 0x5a5   : > { %2923 = vmatpush1.bf16.msra.mxu1 %v8391_v20  ;;  %v10356_v20 = vmul.f32 %v2368_v59, %v2360_v30  ;;  %v2279_v30 = vld [vmem:[%s13580_s2 + $0x158] sm:$0xff] }
 0x5a6   : > { %v10254_v50 = vpop.permute.xlu0 %2560  ;;  %v10256_v57 = vpop.permute.xlu1 %2558  ;;  %2924 = vmatprep.subr.bf16.mxu1 %v9628_v3 }
 0x5a7   : > { %v2570_v37 = vsel %vm392_vm7, %v10254_v50, %v10240_v51 }
 0x5a8   : > { %v2585_v22 = vmul.f32 %v2577_v61, %v2570_v37 }
 0x5a9   : > { %2925 = vmatpush1.bf16.msra.mxu1 %v9664_v52  ;;  %v2366_v52 = vsel %vm332_vm1, %v10200_v0, %v10052_v36 }
 0x5aa   : > { %v2549_v40 = vpop.permute.xlu0 %2548  ;;  %v2427_v5 = vpop.permute.xlu1 %2426  ;;  %2926 = vmatprep.subr.bf16.mxu1 %v8392_v28  ;;  %v2381_v34 = vmul.f32 %v2373_v18, %v2366_v52  ;;  %v2578_v28 = vld [vmem:[%s13580_s2 + $0x330] sm:$0xff] }
 0x5ab   : > { %v2431_v4 = vsel %vm352_vm2, %v10054_v33, %v2427_v5  ;;  %v2435_v39 = vsel %vm352_vm2, %v2427_v5, %v10054_v33  ;;  %v2362_v33 = vsel %vm332_vm1, %v10052_v36, %v10200_v0  ;;  %v2364_v36 = vsel %vm332_vm1, %v10208_v11, %v10096_v29  ;;  %v2374_v29 = vld [vmem:[%s13580_s2 + $0x210] sm:$0xff]  ;;  %v2375_v11 = vld [vmem:[%s13580_s2 + $0x218] sm:$0xff] }
 0x5ac   : > { %v2450_v42 = vmul.f32 %v2442_v12, %v2431_v4  ;;  %v2451_v23 = vmul.f32 %v2443_v19, %v2435_v39  ;;  %v2380_v35 = vmul.f32 %v2372_v31, %v2362_v33  ;;  %v2377_v14 = vmul.f32 %v2369_v63, %v2364_v36  ;;  %v2572_v19 = vld [vmem:[%s13580_s2 + $0x300] sm:$0xff]  ;;  %v2575_v4 = vld [vmem:[%s13580_s2 + $0x318] sm:$0xff]  ;;  %v2278_v63 = vld [vmem:[%s13580_s2 + $0x150] sm:$0xff] }
 0x5ad   : > { %2927 = vmatpush2.bf16.msra.mxu1 %v8393_v56  ;;  %v2565_v39 = vsel %vm392_vm7, %v10242_v15, %v10256_v57  ;;  %v8401_v36 = vpack.c.bf16 %v2378_v1, %v10356_v20 }
 0x5ae   : > { %v2557_v3 = vpop.permute.xlu0 %2556  ;;  %v10306_v32 = vpop.permute.xlu1 %2254  ;;  %v8394_v0 = vpack.c.bf16 %v2451_v23, %v2449_v62  ;;  %v8395_v27 = vpack.c.bf16 %v2450_v42, %v2448_v60  ;;  %v2579_v42 = vld [vmem:[%s13580_s2 + $0x338] sm:$0xff] }
 0x5af   : > { %v2564_v43 = vsel %vm392_vm7, %v2549_v40, %v2557_v3  ;;  %v2568_v60 = vsel %vm392_vm7, %v2557_v3, %v2549_v40  ;;  %v2569_v40 = vsel %vm392_vm7, %v10256_v57, %v10242_v15  ;;  %v8400_v57 = vpack.c.bf16 %v2379_v55, %v2377_v14 }
 0x5b0   : > { %2928 = vmatprep.subr.bf16.mxu1 %v8394_v0  ;;  %v2580_v23 = vmul.f32 %v2572_v19, %v2564_v43  ;;  %v2581_v3 = vmul.f32 %v2573_v48, %v2568_v60  ;;  %v2583_v52 = vmul.f32 %v2575_v4, %v2569_v40  ;;  %v2276_v0 = vld [vmem:[%s13580_s2 + $0x140] sm:$0xff]  ;;  %v8275_v4 = vld [vmem:[%s13579_s1 + $0xc8] ss:$16 sps:$4 sm:$0xff]  }
 0x5b1   : > { %2929 = vmatpush2.bf16.msra.mxu1 %v8395_v27  ;;  %v2277_v27 = vld [vmem:[%s13580_s2 + $0x148] sm:$0xff]  ;;  %v8278_v40 = vld [vmem:[%s13579_s1 + $0xe0] ss:$16 sps:$4 sm:$0xff]  }
 0x5b2   : > { %v2253_v44 = vpop.permute.xlu0 %2252  ;;  %v2359_v13 = vpop.permute.xlu1 %2358  ;;  %2930 = vmatprep.subr.bf16.mxu1 %v8396_v53  ;;  %v8407_v37 = vpack.c.bf16 %v2583_v52, %v2581_v3 }
 0x5b3   : > { %v2363_v46 = vsel %vm332_vm1, %v10059_v21, %v2359_v13  ;;  %v2367_v17 = vsel %vm332_vm1, %v2359_v13, %v10059_v21  ;;  %v2566_v21 = vsel %vm392_vm7, %v10240_v51, %v10254_v50  ;;  %v2574_v51 = vld [vmem:[%s13580_s2 + $0x310] sm:$0xff] }
 0x5b4   : > { %v2382_v8 = vmul.f32 %v2374_v29, %v2363_v46  ;;  %v2383_v2 = vmul.f32 %v2375_v11, %v2367_v17  ;;  %v2584_v5 = vmul.f32 %v2576_v16, %v2566_v21  ;;  %v2582_v33 = vmul.f32 %v2574_v51, %v2565_v39  ;;  %v10459_v46 = vld [vmem:[%s13580_s2 + $0x2d0] sm:$0xff]  ;;  %v10464_v17 = vld [vmem:[%s13580_s2 + $0x2d8] sm:$0xff] }
 0x5b5   : > { %2931 = vmatpush2.bf16.msra.mxu1 %v8397_v49  ;;  %v8405_v49 = vpack.c.bf16 %v9907_v47, %v9897_v58  ;;  %v8406_v16 = vpack.c.bf16 %v9879_v10, %v9873_v26  ;;  %v13673_v58 = vld [vmem:[#allocation9_spill] sm:$0xff] }
 0x5b6   : > { %v2261_v12 = vpop.permute.xlu0 %2260  ;;  %v10379_v9 = vpop.permute.xlu1 %2486  ;;  %v8398_v50 = vpack.c.bf16 %v2383_v2, %v2381_v34  ;;  %v8399_v62 = vpack.c.bf16 %v2382_v8, %v2380_v35  ;;  %v13674_v26 = vld [vmem:[#allocation25_spill] sm:$0xff]  ;;  %v8409_v47 = vpack.c.bf16 %v2582_v33, %v2580_v23 }
 0x5b7   : > { %v2266_v6 = vsel %vm303_vm3, %v2253_v44, %v2261_v12  ;;  %v2270_v25 = vsel %vm303_vm3, %v2261_v12, %v2253_v44  ;;  %v8408_v10 = vpack.c.bf16 %v13674_v26, %v13673_v58  ;;  %v8268_v51 = vld [vmem:[%s13579_s1 + $0xa0] ss:$16 sps:$4 sm:$0xff]   ;;  %v8276_v39 = vld [vmem:[%s13579_s1 + $0xe4] ss:$16 sps:$4 sm:$0xff]  }
 0x5b8   : > { %2932 = vmatprep.subr.bf16.mxu1 %v8398_v50  ;;  %v2284_v20 = vmul.f32 %v2276_v0, %v2270_v25  ;;  %v2285_v14 = vmul.f32 %v2277_v27, %v2266_v6  ;;  %v8271_v50 = vld [vmem:[%s13579_s1 + $0xa8] ss:$16 sps:$4 sm:$0xff]  }
 0x5b9   : > { %2933 = vmatpush2.bf16.msra.mxu1 %v8399_v62  ;;  %v8272_v62 = vld [vmem:[%s13579_s1 + $0xc4] ss:$16 sps:$4 sm:$0xff]  }
 0x5ba   : > { %v2485_v56 = vpop.permute.xlu0 %2484  ;;  %v2563_v31 = vpop.permute.xlu1 %2562  ;;  %2934 = vmatprep.subr.bf16.mxu1 %v8400_v57 }
 0x5bb   : > { %v2567_v18 = vsel %vm392_vm7, %v10210_v24, %v2563_v31  ;;  %v2571_v15 = vsel %vm392_vm7, %v2563_v31, %v10210_v24  ;;  %v8402_v24 = vpack.c.bf16 %v9931_v41, %v9925_v54  ;;  %v10439_v54 = vld [vmem:[%s13580_s2 + $0x2c0] sm:$0xff]  ;;  %v10444_v41 = vld [vmem:[%s13580_s2 + $0x2c8] sm:$0xff] }
 0x5bc   : > { %v2586_v38 = vmul.f32 %v2578_v28, %v2567_v18  ;;  %v2587_v59 = vmul.f32 %v2579_v42, %v2571_v15  ;;  %v8279_v28 = vld [vmem:[%s13579_s1 + $0xe8] ss:$16 sps:$4 sm:$0xff]  }
 0x5bd   : > { %2935 = vmatpush2.bf16.msra.mxu1 %v8401_v36 }
 0x5be   : > { %v2493_v45 = vpop.permute.xlu0 %2492  ;;  %v2263_v29 = vpop.permute.xlu1 %2262  ;;  %2936 = vmatprep.subr.bf16.mxu1 %v8402_v24  ;;  %v8403_v1 = vpack.c.bf16 %v2587_v59, %v2585_v22  ;;  %v8404_v55 = vpack.c.bf16 %v2586_v38, %v2584_v5  ;;  %v13675_v5 = vmov 0   ;;  %v8274_v22 = vld [vmem:[%s13579_s1 + $0xc0] ss:$16 sps:$4 sm:$0xff]  }
 0x5bf   : > { %v2498_v11 = vsel %vm372_vm8, %v2485_v56, %v2493_v45  ;;  %v2502_v35 = vsel %vm372_vm8, %v2493_v45, %v2485_v56  ;;  %v2267_v34 = vsel %vm303_vm3, %v10306_v32, %v2263_v29  ;;  %v2271_v44 = vsel %vm303_vm3, %v2263_v29, %v10306_v32 }
 0x5c0   : > { %v2286_v13 = vmul.f32 %v2278_v63, %v2271_v44  ;;  %v2287_v53 = vmul.f32 %v2279_v30, %v2267_v34  ;;  %v2516_v32 = vmul.f32 %v10439_v54, %v2498_v11  ;;  %v2517_v8 = vmul.f32 %v10444_v41, %v2502_v35  ;;  %2983 = vmatprep.subr.bf16.mxu0 %v8403_v1 }
 0x5c1   : > { %2937 = vmatpush2.bf16.msra.mxu1 %v8405_v49  ;;  %2984 = vmatpush1.bf16.msra.mxu0 %v8404_v55 }
 0x5c2   : > { %v2495_v2 = vpop.permute.xlu1 %2494  ;;  %2938 = vmatprep.subr.bf16.mxu1 %v8406_v16  ;;  %2985 = vmatprep.subr.bf16.mxu0 %v8407_v37  ;;  %v8410_v48 = vpack.c.bf16 %v2287_v53, %v2285_v14 }
 0x5c3   : > { %v2499_v61 = vsel %vm372_vm8, %v10379_v9, %v2495_v2  ;;  %v2503_v21 = vsel %vm372_vm8, %v2495_v2, %v10379_v9  ;;  %v8413_v9 = vpack.c.bf16 %v2286_v13, %v2284_v20 }
 0x5c4   : > { %v2518_v12 = vmul.f32 %v10459_v46, %v2499_v61  ;;  %v2519_v19 = vmul.f32 %v10464_v17, %v2503_v21 }
 0x5c5   : > { %2939 = vmatpush2.bf16.msra.mxu1 %v8408_v10  ;;  %2986 = vmatpush1.bf16.msra.mxu0 %v8409_v47 }
 0x5c6   : > { %v8411_v43 = vpack.c.bf16 %v2519_v19, %v2517_v8  ;;  %v8412_v60 = vpack.c.bf16 %v2518_v12, %v2516_v32  ;;  %2940 = vmatprep.subr.bf16.mxu1 %v8410_v48 }
 0x5c8   : > { %2987 = vmatprep.subr.bf16.mxu0 %v8411_v43 }
 0x5c9   : > { %2941 = vmatpush2.bf16.msra.mxu1 %v8413_v9  ;;  %2988 = vmatpush1.bf16.msra.mxu0 %v8412_v60 }
 0x5cc   : > { %2943 = vmatmul.mubr.bf16.vlgmr.msra.gmra.mxu1 %v8268_v51  ;;  %7561 = vmatmul.mubr.msk.bf16.vlgmr.msra.gmra.mxu0 %vm1923_vm9, %v8271_v50 }
 0x5cd   : > { %2952 = vmatprep.mubr.bf16.mxu1 %v8272_v62  ;;  %3015 = vmatprep.mubr.bf16.mxu0 %v13675_v5 }
 0x5d4   : > { %2953 = vmatmul.mubr.bf16.gmra.mxu1 %v8274_v22  ;;  %7562 = vmatmul.mubr.msk.bf16.gmra.mxu0 %vm1923_vm9, %v8275_v4 }
 0x5d5   : > { %2962 = vmatprep.mubr.bf16.mxu1 %v8276_v39  ;;  %3025 = vmatprep.mubr.bf16.mxu0 %v13675_v5 }
 0x5dc   : > { %2963 = vmatmul.mubr.bf16.gmra.mxu1 %v8278_v40  ;;  %7563 = vmatmul.mubr.msk.bf16.gmra.mxu0 %vm1923_vm9, %v8279_v28 }
 0x68c   : > { %v2944_v42 = vpop.f32.mrf.mxu1  ;;  %v3007_v23 = vpop.f32.mrf.mxu0 }
 0x68d   : > { %v3008_v3 = vadd.f32 %v3007_v23, %v2944_v42 }
 0x68e   : > { %v2946_v56 = vpop.f32.mrf.mxu1  ;;  %v3009_v31 = vpop.f32.mrf.mxu0 }
 0x68f   : > { %v10511_v18 = vmax.f32 %v3008_v3, 0.0  ;;  %v3010_v15 = vadd.f32 %v3009_v31, %v2946_v56 }
 0x690   : > { %v2948_v57 = vpop.f32.mrf.mxu1  ;;  %v3011_v33 = vpop.f32.mrf.mxu0 }
 0x691   : > { %v10513_v52 = vmax.f32 %v3010_v15, 0.0  ;;  %v3012_v38 = vadd.f32 %v3011_v33, %v2948_v57  ;;  %3252 = vrot.lane.b32.xlu0 %v10511_v18, %s8666_s9 }
 0x692   : > { %v2950_v59 = vpop.f32.mrf.mxu1  ;;  %v3013_v63 = vpop.f32.mrf.mxu0 }
 0x693   : > { %v8056_v30 = vpack.c.bf16 %v10513_v52, %v10511_v18  ;;  %v10519_v36 = vmax.f32 %v3012_v38, 0.0  ;;  %v3014_v24 = vadd.f32 %v3013_v63, %v2950_v59 }
 0x694   : > { %v2954_v0 = vpop.f32.mrf.mxu1  ;;  %v3017_v27 = vpop.f32.mrf.mxu0 }
 0x695   : > { %3492 = vst [vmem:[#allocation2 + $0x190] sm:$0xff] %v8056_v30  ;;  %v10521_v6 = vmax.f32 %v3014_v24, 0.0  ;;  %3150 = vrot.lane.b32.xlu0 %v10511_v18, %s13630_s10  ;;  %3254 = vrot.lane.b32.xlu1 %v10519_v36, %s8666_s9  ;;  %v3018_v25 = vadd.f32 %v3017_v27, %v2954_v0  ;;  %v3288_v30 = vld [vmem:[%s13580_s2 + $0xc0] sm:$0xff]  ;;  %v3289_v24 = vld [vmem:[%s13580_s2 + $0xc8] sm:$0xff] }
 0x696   : > { %v2956_v45 = vpop.f32.mrf.mxu1  ;;  %v3019_v29 = vpop.f32.mrf.mxu0 }
 0x697   : > { %v8057_v11 = vpack.c.bf16 %v10521_v6, %v10519_v36  ;;  %v10529_v35 = vmax.f32 %v3018_v25, 0.0  ;;  %v3020_v34 = vadd.f32 %v3019_v29, %v2956_v45  ;;  %v3290_v25 = vld [vmem:[%s13580_s2 + $0xd0] sm:$0xff]  ;;  %v3291_v45 = vld [vmem:[%s13580_s2 + $0xd8] sm:$0xff] }
 0x698   : > { %v2958_v44 = vpop.f32.mrf.mxu1  ;;  %v3021_v13 = vpop.f32.mrf.mxu0 }
 0x699   : > { %3493 = vst [vmem:[#allocation2 + $0xb8] sm:$0xff] %v8057_v11  ;;  %3702 = vrot.lane.b32.xlu0 %v10511_v18, %s13626_s13  ;;  %3152 = vrot.lane.b32.xlu1 %v10519_v36, %s13630_s10  ;;  %v10535_v53 = vmax.f32 %v3020_v34, 0.0  ;;  %v3022_v20 = vadd.f32 %v3021_v13, %v2958_v44 }
 0x69a   : > { %v2960_v14 = vpop.f32.mrf.mxu1  ;;  %v3023_v1 = vpop.f32.mrf.mxu0 }
 0x69b   : > { %v8058_v55 = vpack.c.bf16 %v10535_v53, %v10529_v35  ;;  %v10539_v32 = vmax.f32 %v3022_v20, 0.0  ;;  %v3024_v8 = vadd.f32 %v3023_v1, %v2960_v14 }
 0x69c   : > { %v2964_v2 = vpop.f32.mrf.mxu1  ;;  %v3027_v49 = vpop.f32.mrf.mxu0 }
 0x69d   : > { %3048 = vrot.lane.b32.xlu0 %v10511_v18, %s13628_s11  ;;  %3704 = vrot.lane.b32.xlu1 %v10519_v36, %s13626_s13  ;;  %3494 = vst [vmem:[#allocation2 + $0x90] sm:$0xff] %v8058_v55  ;;  %v10545_v16 = vmax.f32 %v3024_v8, 0.0  ;;  %v3028_v61 = vadd.f32 %v3027_v49, %v2964_v2  ;;  %v3738_v55 = vld [vmem:[%s13580_s2 + $0x2a0] sm:$0xff]  ;;  %v3739_v8 = vld [vmem:[%s13580_s2 + $0x2a8] sm:$0xff] }
 0x69e   : > { %v2966_v21 = vpop.f32.mrf.mxu1  ;;  %v3029_v37 = vpop.f32.mrf.mxu0 }
 0x69f   : > { %v8059_v12 = vpack.c.bf16 %v10545_v16, %v10539_v32  ;;  %v10549_v19 = vmax.f32 %v3028_v61, 0.0  ;;  %v3030_v58 = vadd.f32 %v3029_v37, %v2966_v21 }
 0x6a0   : > { %v2968_v26 = vpop.f32.mrf.mxu1  ;;  %v3031_v10 = vpop.f32.mrf.mxu0 }
 0x6a1   : > { %3600 = vrot.lane.b32.xlu0 %v10511_v18, %s13618_s7  ;;  %3050 = vrot.lane.b32.xlu1 %v10519_v36, %s13628_s11  ;;  %3495 = vst [vmem:[#allocation2 + $0xc0] sm:$0xff] %v8059_v12  ;;  %v10555_v47 = vmax.f32 %v3030_v58, 0.0  ;;  %v3032_v48 = vadd.f32 %v3031_v10, %v2968_v26  ;;  %v3740_v58 = vld [vmem:[%s13580_s2 + $0x2b0] sm:$0xff]  ;;  %v3741_v26 = vld [vmem:[%s13580_s2 + $0x2b8] sm:$0xff] }
 0x6a2   : > { %v2970_v43 = vpop.f32.mrf.mxu1  ;;  %v3033_v60 = vpop.f32.mrf.mxu0 }
 0x6a3   : > { %v8060_v9 = vpack.c.bf16 %v10555_v47, %v10549_v19  ;;  %v10559_v51 = vmax.f32 %v3032_v48, 0.0  ;;  %v3034_v50 = vadd.f32 %v3033_v60, %v2970_v43 }
 0x6a5   : > { %3498 = vrot.lane.b32.xlu0 %v10511_v18, %s13616_s6  ;;  %3602 = vrot.lane.b32.xlu1 %v10519_v36, %s13618_s7  ;;  %3496 = vst [vmem:[#allocation2 + $0x178] sm:$0xff] %v8060_v9  ;;  %v10565_v62 = vmax.f32 %v3034_v50, 0.0 }
 0x6a7   : > { %v8061_v22 = vpack.c.bf16 %v10565_v62, %v10559_v51 }
 0x6a9   : > { %3354 = vrot.lane.b32.xlu0 %v10511_v18, %s8665_s8  ;;  %3500 = vrot.lane.b32.xlu1 %v10519_v36, %s13616_s6  ;;  %3497 = vst [vmem:[#allocation2 + $0xc8] sm:$0xff] %v8061_v22 }
 0x6ad   : > { %3264 = vrot.lane.b32.xlu0 %v10513_v52, %s8666_s9  ;;  %3356 = vrot.lane.b32.xlu1 %v10519_v36, %s8665_s8 }
 0x6b1   : > { %3162 = vrot.lane.b32.xlu0 %v10513_v52, %s13630_s10  ;;  %3266 = vrot.lane.b32.xlu1 %v10521_v6, %s8666_s9 }
 0x6b5   : > { %3714 = vrot.lane.b32.xlu0 %v10513_v52, %s13626_s13  ;;  %3164 = vrot.lane.b32.xlu1 %v10521_v6, %s13630_s10 }
 0x6b9   : > { %3060 = vrot.lane.b32.xlu0 %v10513_v52, %s13628_s11  ;;  %3716 = vrot.lane.b32.xlu1 %v10521_v6, %s13626_s13 }
 0x6bd   : > { %3612 = vrot.lane.b32.xlu0 %v10513_v52, %s13618_s7  ;;  %3062 = vrot.lane.b32.xlu1 %v10521_v6, %s13628_s11 }
 0x6c1   : > { %3510 = vrot.lane.b32.xlu0 %v10513_v52, %s13616_s6  ;;  %3614 = vrot.lane.b32.xlu1 %v10521_v6, %s13618_s7 }
 0x6c5   : > { %3366 = vrot.lane.b32.xlu0 %v10513_v52, %s8665_s8  ;;  %3512 = vrot.lane.b32.xlu1 %v10521_v6, %s13616_s6 }
 0x6c9   : > { %3368 = vrot.lane.b32.xlu1 %v10521_v6, %s8665_s8  ;;  %3154 = vrot.lane.b32.xlu0 %v10529_v35, %s13630_s10 }
 0x6cd   : > { %3706 = vrot.lane.b32.xlu0 %v10529_v35, %s13626_s13  ;;  %3156 = vrot.lane.b32.xlu1 %v10539_v32, %s13630_s10 }
 0x6d1   : > { %3052 = vrot.lane.b32.xlu0 %v10529_v35, %s13628_s11  ;;  %3708 = vrot.lane.b32.xlu1 %v10539_v32, %s13626_s13 }
 0x6d5   : > { %3604 = vrot.lane.b32.xlu0 %v10529_v35, %s13618_s7  ;;  %3054 = vrot.lane.b32.xlu1 %v10539_v32, %s13628_s11 }
 0x6d9   : > { %3502 = vrot.lane.b32.xlu0 %v10529_v35, %s13616_s6  ;;  %3606 = vrot.lane.b32.xlu1 %v10539_v32, %s13618_s7 }
 0x6dd   : > { %3358 = vrot.lane.b32.xlu0 %v10529_v35, %s8665_s8  ;;  %3504 = vrot.lane.b32.xlu1 %v10539_v32, %s13616_s6 }
 0x6e1   : > { %3808 = vrot.lane.b32.xlu0 %v10529_v35, %s13614_s12  ;;  %3360 = vrot.lane.b32.xlu1 %v10539_v32, %s8665_s8 }
 0x6e5   : > { %3166 = vrot.lane.b32.xlu0 %v10535_v53, %s13630_s10  ;;  %3810 = vrot.lane.b32.xlu1 %v10539_v32, %s13614_s12 }
 0x6e9   : > { %3718 = vrot.lane.b32.xlu0 %v10535_v53, %s13626_s13  ;;  %3168 = vrot.lane.b32.xlu1 %v10545_v16, %s13630_s10 }
 0x6ed   : > { %3064 = vrot.lane.b32.xlu0 %v10535_v53, %s13628_s11  ;;  %3720 = vrot.lane.b32.xlu1 %v10545_v16, %s13626_s13 }
 0x6f1   : > { %3616 = vrot.lane.b32.xlu0 %v10535_v53, %s13618_s7  ;;  %3066 = vrot.lane.b32.xlu1 %v10545_v16, %s13628_s11 }
 0x6f5   : > { %3514 = vrot.lane.b32.xlu0 %v10535_v53, %s13616_s6  ;;  %3618 = vrot.lane.b32.xlu1 %v10545_v16, %s13618_s7 }
 0x6f9   : > { %3370 = vrot.lane.b32.xlu0 %v10535_v53, %s8665_s8  ;;  %3516 = vrot.lane.b32.xlu1 %v10545_v16, %s13616_s6 }
 0x6fd   : > { %3372 = vrot.lane.b32.xlu1 %v10545_v16, %s8665_s8  ;;  %3158 = vrot.lane.b32.xlu0 %v10549_v19, %s13630_s10 }
 0x701   : > { %3056 = vrot.lane.b32.xlu0 %v10549_v19, %s13628_s11  ;;  %3160 = vrot.lane.b32.xlu1 %v10559_v51, %s13630_s10 }
 0x703   : > { %v3253_v4 = vpop.permute.xlu0 %3252 }
 0x705   : > { %3608 = vrot.lane.b32.xlu0 %v10549_v19, %s13618_s7  ;;  %3058 = vrot.lane.b32.xlu1 %v10559_v51, %s13628_s11 }
 0x707   : > { %v10665_v39 = vpop.permute.xlu0 %3150  ;;  %v3255_v40 = vpop.permute.xlu1 %3254 }
 0x709   : > { %3506 = vrot.lane.b32.xlu0 %v10549_v19, %s13616_s6  ;;  %3610 = vrot.lane.b32.xlu1 %v10559_v51, %s13618_s7 }
 0x70b   : > { %v3703_v28 = vpop.permute.xlu0 %3702  ;;  %v10671_v42 = vpop.permute.xlu1 %3152 }
 0x70d   : > { %3362 = vrot.lane.b32.xlu0 %v10549_v19, %s8665_s8  ;;  %3508 = vrot.lane.b32.xlu1 %v10559_v51, %s13616_s6 }
 0x70f   : > { %v10677_v23 = vpop.permute.xlu0 %3048  ;;  %v3705_v3 = vpop.permute.xlu1 %3704 }
 0x711   : > { %3812 = vrot.lane.b32.xlu0 %v10549_v19, %s13614_s12  ;;  %3364 = vrot.lane.b32.xlu1 %v10559_v51, %s8665_s8 }
 0x713   : > { %v3601_v56 = vpop.permute.xlu0 %3600  ;;  %v10683_v31 = vpop.permute.xlu1 %3050 }
 0x715   : > { %3170 = vrot.lane.b32.xlu0 %v10555_v47, %s13630_s10  ;;  %3814 = vrot.lane.b32.xlu1 %v10559_v51, %s13614_s12 }
 0x717   : > { %v10689_v15 = vpop.permute.xlu0 %3498  ;;  %v10691_v57 = vpop.permute.xlu1 %3602 }
 0x719   : > { %3820 = vrot.lane.b32.xlu0 %v10535_v53, %s13614_s12  ;;  %3172 = vrot.lane.b32.xlu1 %v10565_v62, %s13630_s10 }
 0x71b   : > { %v10697_v33 = vpop.permute.xlu0 %3354  ;;  %v10699_v38 = vpop.permute.xlu1 %3500 }
 0x71d   : > { %3068 = vrot.lane.b32.xlu0 %v10555_v47, %s13628_s11  ;;  %3822 = vrot.lane.b32.xlu1 %v10545_v16, %s13614_s12 }
 0x71f   : > { %v3265_v59 = vpop.permute.xlu0 %3264  ;;  %v10705_v63 = vpop.permute.xlu1 %3356 }
 0x720   : > { %v3276_v0 = vsel %vm283_vm4, %v3253_v4, %v3265_v59  ;;  %v3282_v27 = vsel %vm283_vm4, %v3265_v59, %v3253_v4  ;;  %v3636_v4 = vld [vmem:[%s13580_s2 + $0x240] sm:$0xff] }
 0x721   : > { %3620 = vrot.lane.b32.xlu0 %v10555_v47, %s13618_s7  ;;  %3262 = vrot.lane.b32.xlu1 %v10559_v51, %s8666_s9  ;;  %v3300_v34 = vmul.f32 %v3288_v30, %v3282_v27  ;;  %v3301_v44 = vmul.f32 %v3289_v24, %v3276_v0  ;;  %v3638_v27 = vld [vmem:[%s13580_s2 + $0x250] sm:$0xff] }
 0x723   : > { %v10727_v29 = vpop.permute.xlu0 %3162  ;;  %v3267_v11 = vpop.permute.xlu1 %3266 }
 0x724   : > { %v3277_v13 = vsel %vm283_vm4, %v3255_v40, %v3267_v11  ;;  %v3283_v20 = vsel %vm283_vm4, %v3267_v11, %v3255_v40  ;;  %v3637_v40 = vld [vmem:[%s13580_s2 + $0x248] sm:$0xff] }
 0x725   : > { %v3302_v14 = vmul.f32 %v3290_v25, %v3283_v20  ;;  %v3303_v1 = vmul.f32 %v3291_v45, %v3277_v13  ;;  %3518 = vrot.lane.b32.xlu0 %v10555_v47, %s13616_s6  ;;  %3070 = vrot.lane.b32.xlu1 %v10565_v62, %s13628_s11  ;;  %v3639_v25 = vld [vmem:[%s13580_s2 + $0x258] sm:$0xff] }
 0x727   : > { %v3715_v2 = vpop.permute.xlu0 %3714  ;;  %v10743_v49 = vpop.permute.xlu1 %3164  ;;  %v8414_v10 = vpack.c.bf16 %v3303_v1, %v3301_v44  ;;  %v8415_v48 = vpack.c.bf16 %v3302_v14, %v3300_v34 }
 0x728   : > { %v3726_v61 = vsel %vm372_vm8, %v3703_v28, %v3715_v2  ;;  %v3732_v21 = vsel %vm372_vm8, %v3715_v2, %v3703_v28 }
 0x729   : > { %v10749_v37 = vmul.f32 %v3738_v55, %v3726_v61  ;;  %v10751_v12 = vmul.f32 %v3739_v8, %v3732_v21  ;;  %3374 = vrot.lane.b32.xlu0 %v10555_v47, %s8665_s8  ;;  %3806 = vrot.lane.b32.xlu1 %v10519_v36, %s13614_s12 }
 0x72a   : > { %4295 = vmatprep.subr.bf16.mxu0 %v8414_v10 }
 0x72b   : > { %v10763_v43 = vpop.permute.xlu0 %3060  ;;  %v3717_v60 = vpop.permute.xlu1 %3716  ;;  %4296 = vmatpush1.bf16.msra.mxu0 %v8415_v48 }
 0x72c   : > { %v3727_v9 = vsel %vm372_vm8, %v3705_v3, %v3717_v60  ;;  %v3733_v50 = vsel %vm372_vm8, %v3717_v60, %v3705_v3 }
 0x72d   : > { %v10769_v36 = vmul.f32 %v3740_v58, %v3727_v9  ;;  %v10771_v22 = vmul.f32 %v3741_v26, %v3733_v50  ;;  %3824 = vrot.lane.b32.xlu0 %v10555_v47, %s13614_s12  ;;  %3622 = vrot.lane.b32.xlu1 %v10565_v62, %s13618_s7  ;;  %s13714_s7 = smov 16  }
 0x72f   : > { %v3613_v28 = vpop.permute.xlu0 %3612  ;;  %v10783_v3 = vpop.permute.xlu1 %3062 }
 0x730   : > { %v3624_v59 = vsel %vm352_vm2, %v3601_v56, %v3613_v28  ;;  %v3630_v30 = vsel %vm352_vm2, %v3613_v28, %v3601_v56 }
 0x731   : > { %v10789_v24 = vmul.f32 %v3636_v4, %v3624_v59  ;;  %v10791_v0 = vmul.f32 %v3637_v40, %v3630_v30  ;;  %3260 = vrot.lane.b32.xlu0 %v10549_v19, %s8666_s9  ;;  %3818 = vrot.lane.b32.xlu1 %v10521_v6, %s13614_s12 }
 0x733   : > { %13676 = vst [vmem:[#allocation24_spill] sm:$0xff] %v10789_v24  ;;  %13677 = vst [vmem:[#allocation26_spill] sm:$0xff] %v10791_v0  ;;  %v10803_v45 = vpop.permute.xlu0 %3510  ;;  %v3615_v56 = vpop.permute.xlu1 %3614  ;;  %v3174_v24 = vsel %vm263_vm5, %v10665_v39, %v10727_v29  ;;  %v3187_v0 = vld [vmem:[%s13580_s2 + $0x68] sm:$0xff] }
 0x734   : > { %v3625_v11 = vsel %vm352_vm2, %v10691_v57, %v3615_v56  ;;  %v3631_v34 = vsel %vm352_vm2, %v3615_v56, %v10691_v57  ;;  %v3640_v56 = vld [vmem:[%s13580_s2 + $0x260] sm:$0xff]  ;;  %v3193_v57 = vld [vmem:[%s13580_s2 + $0x98] sm:$0xff] }
 0x735   : > { %v10811_v6 = vmul.f32 %v3638_v27, %v3625_v11  ;;  %v10813_v44 = vmul.f32 %v3639_v25, %v3631_v34  ;;  %3272 = vrot.lane.b32.xlu0 %v10555_v47, %s8666_s9  ;;  %3258 = vrot.lane.b32.xlu1 %v10539_v32, %s8666_s9 }
 0x737   : > { %13678 = vst [vmem:[#allocation10_spill] sm:$0xff] %v10811_v6  ;;  %13679 = vst [vmem:[#allocation11_spill] sm:$0xff] %v10813_v44  ;;  %v10819_v13 = vpop.permute.xlu0 %3366  ;;  %v10821_v20 = vpop.permute.xlu1 %3512  ;;  %v3175_v6 = vsel %vm263_vm5, %v10671_v42, %v10743_v49 }
 0x739   : > { %3804 = vrot.lane.b32.xlu0 %v10511_v18, %s13614_s12  ;;  %3520 = vrot.lane.b32.xlu1 %v10565_v62, %s13616_s6 }
 0x73b   : > { %v10831_v1 = vpop.permute.xlu1 %3368  ;;  %v10833_v55 = vpop.permute.xlu0 %3154 }
 0x73d   : > { %3816 = vrot.lane.b32.xlu0 %v10513_v52, %s13614_s12  ;;  %3270 = vrot.lane.b32.xlu1 %v10545_v16, %s8666_s9 }
 0x73f   : > { %v3707_v18 = vpop.permute.xlu0 %3706  ;;  %v10839_v32 = vpop.permute.xlu1 %3156 }
 0x741   : > { %3256 = vrot.lane.b32.xlu0 %v10529_v35, %s8666_s9  ;;  %3376 = vrot.lane.b32.xlu1 %v10565_v62, %s8665_s8 }
 0x743   : > { %v10845_v8 = vpop.permute.xlu0 %3052  ;;  %v3709_v2 = vpop.permute.xlu1 %3708 }
 0x745   : > { %3268 = vrot.lane.b32.xlu0 %v10535_v53, %s8666_s9  ;;  %3826 = vrot.lane.b32.xlu1 %v10565_v62, %s13614_s12  ;;  %v8291_v53 = vld [vmem:[%s13579_s1 + $0x104] ss:$16 sps:$4 sm:$0xff]   ;;  %s13715_s12 = smov 17  }
 0x746   : > { %4327 = vmatprep.mubr.bf16.mxu0 %v8291_v53  ;;  %v3643_v53 = vld [vmem:[%s13580_s2 + $0x278] sm:$0xff] }
 0x747   : > { %v3605_v52 = vpop.permute.xlu0 %3604  ;;  %v10851_v16 = vpop.permute.xlu1 %3054 }
 0x749   : > { %3710 = vrot.lane.b32.xlu0 %v10549_v19, %s13626_s13  ;;  %3712 = vrot.lane.b32.xlu1 %v10559_v51, %s13626_s13  ;;  %v8294_v19 = vld [vmem:[%s13579_s1 + $0x10c] ss:$16 sps:$4 sm:$0xff]  }
 0x74a   : > { %7682 = vmatprep.mubr.msk.bf16.mxu1 %vm4288_vm10, %v8294_v19 }
 0x74b   : > { %v10857_v35 = vpop.permute.xlu0 %3502  ;;  %v3607_v61 = vpop.permute.xlu1 %3606 }
 0x74d   : > { %3722 = vrot.lane.b32.xlu0 %v10555_v47, %s13626_s13  ;;  %3274 = vrot.lane.b32.xlu1 %v10565_v62, %s8666_s9 }
 0x74f   : > { %v10866_v21 = vpop.permute.xlu0 %3358  ;;  %v10868_v58 = vpop.permute.xlu1 %3504 }
 0x750   : > { %13680 = vst [vmem:[#allocation12_spill] sm:$0xff] %v10866_v21 }
 0x751   : > { %3724 = vrot.lane.b32.xlu1 %v10565_v62, %s13626_s13 }
 0x753   : > { %v10876_v47 = vpop.permute.xlu0 %3808  ;;  %v10878_v51 = vpop.permute.xlu1 %3360 }
 0x754   : > { %13681 = vst [vmem:[#allocation13_spill] sm:$0xff] %v10878_v51  ;;  %v3197_v51 = vld [vmem:[%s13580_s2 + $0xb8] sm:$0xff] }
 0x757   : > { %v3167_v26 = vpop.permute.xlu0 %3166  ;;  %v10880_v10 = vpop.permute.xlu1 %3810 }
 0x75b   : > { %v3719_v48 = vpop.permute.xlu0 %3718  ;;  %v3169_v60 = vpop.permute.xlu1 %3168 }
 0x75c   : > { %v3728_v9 = vsel %vm372_vm8, %v3707_v18, %v3719_v48  ;;  %v3734_v50 = vsel %vm372_vm8, %v3719_v48, %v3707_v18  ;;  %v3177_v14 = vsel %vm263_vm5, %v10839_v32, %v3169_v60  ;;  %v3183_v5 = vsel %vm263_vm5, %v3169_v60, %v10839_v32  ;;  %v3844_v60 = vld [vmem:[%s13580_s2 + $0x320] sm:$0xff] }
 0x75d   : > { %v3754_v4 = vmul.f32 %v3728_v9, %v10439_v54  ;;  %v3755_v40 = vmul.f32 %v3734_v50, %v10444_v41  ;;  %v3641_v54 = vld [vmem:[%s13580_s2 + $0x268] sm:$0xff]  ;;  %v3180_v32 = vsel %vm263_vm5, %v10727_v29, %v10665_v39  ;;  %v3196_v29 = vld [vmem:[%s13580_s2 + $0xb0] sm:$0xff] }
 0x75e   : > { %v3845_v39 = vld [vmem:[%s13580_s2 + $0x328] sm:$0xff] }
 0x75f   : > { %v10888_v62 = vpop.permute.xlu0 %3064  ;;  %v3721_v28 = vpop.permute.xlu1 %3720 }
 0x760   : > { %v3729_v59 = vsel %vm372_vm8, %v3709_v2, %v3721_v28  ;;  %v3735_v30 = vsel %vm372_vm8, %v3721_v28, %v3709_v2  ;;  %v3642_v2 = vld [vmem:[%s13580_s2 + $0x270] sm:$0xff] }
 0x761   : > { %v3756_v27 = vmul.f32 %v3729_v59, %v10459_v46  ;;  %v3757_v25 = vmul.f32 %v3735_v30, %v10464_v17  ;;  %v8420_v59 = vpack.c.bf16 %v10771_v22, %v10751_v12 }
 0x763   : > { %v3617_v41 = vpop.permute.xlu0 %3616  ;;  %v10902_v11 = vpop.permute.xlu1 %3066  ;;  %v8418_v19 = vpack.c.bf16 %v3756_v27, %v3754_v4  ;;  %v8419_v48 = vpack.c.bf16 %v3757_v25, %v3755_v40  ;;  %v8421_v27 = vpack.c.bf16 %v10769_v36, %v10749_v37 }
 0x764   : > { %v3626_v34 = vsel %vm352_vm2, %v3605_v52, %v3617_v41  ;;  %v3632_v18 = vsel %vm352_vm2, %v3617_v41, %v3605_v52 }
 0x765   : > { %v10908_v46 = vmul.f32 %v3640_v56, %v3626_v34  ;;  %v10910_v17 = vmul.f32 %v3641_v54, %v3632_v18  ;;  %4348 = vmatprep.subr.bf16.mxu1 %v8419_v48  ;;  %v3191_v48 = vld [vmem:[%s13580_s2 + $0x88] sm:$0xff] }
 0x766   : > { %4349 = vmatpush1.bf16.msra.mxu1 %v8418_v19  ;;  %v3190_v19 = vld [vmem:[%s13580_s2 + $0x80] sm:$0xff] }
 0x767   : > { %v10918_v9 = vpop.permute.xlu0 %3514  ;;  %v3619_v50 = vpop.permute.xlu1 %3618  ;;  %4350 = vmatprep.subr.bf16.mxu1 %v8420_v59 }
 0x768   : > { %v3627_v52 = vsel %vm352_vm2, %v3607_v61, %v3619_v50  ;;  %v3633_v28 = vsel %vm352_vm2, %v3619_v50, %v3607_v61  ;;  %v3176_v50 = vsel %vm263_vm5, %v10833_v55, %v3167_v26 }
 0x769   : > { %v10926_v30 = vmul.f32 %v3642_v2, %v3627_v52  ;;  %v10928_v56 = vmul.f32 %v3643_v53, %v3633_v28  ;;  %v3182_v52 = vsel %vm263_vm5, %v3167_v26, %v10833_v55  ;;  %v3192_v28 = vld [vmem:[%s13580_s2 + $0x90] sm:$0xff]  ;;  %v3194_v55 = vld [vmem:[%s13580_s2 + $0xa0] sm:$0xff]  ;;  %v3195_v26 = vld [vmem:[%s13580_s2 + $0xa8] sm:$0xff] }
 0x76a   : > { %4351 = vmatpush1.bf16.msra.mxu1 %v8421_v27 }
 0x76b   : > { %13682 = vst [vmem:[#allocation14_spill] sm:$0xff] %v10926_v30  ;;  %v10930_v4 = vpop.permute.xlu0 %3370  ;;  %v10932_v40 = vpop.permute.xlu1 %3516 }
 0x76c   : > { %13683 = vst [vmem:[#allocation15_spill] sm:$0xff] %v10930_v4 }
 0x76f   : > { %v10936_v25 = vpop.permute.xlu1 %3372  ;;  %v3159_v61 = vpop.permute.xlu0 %3158 }
 0x770   : > { %13684 = vst [vmem:[#allocation22_spill] sm:$0xff] %v10936_v25  ;;  %v3186_v25 = vld [vmem:[%s13580_s2 + $0x60] sm:$0xff] }
 0x773   : > { %v10938_v54 = vpop.permute.xlu0 %3056  ;;  %v3161_v12 = vpop.permute.xlu1 %3160 }
 0x777   : > { %v10940_v22 = vpop.permute.xlu0 %3608  ;;  %v10942_v41 = vpop.permute.xlu1 %3058 }
 0x77b   : > { %v10944_v34 = vpop.permute.xlu0 %3506  ;;  %v10946_v18 = vpop.permute.xlu1 %3610 }
 0x77f   : > { %v10948_v2 = vpop.permute.xlu0 %3362  ;;  %v10950_v53 = vpop.permute.xlu1 %3508 }
 0x780   : > { %13685 = vst [vmem:[#allocation23_spill] sm:$0xff] %v10948_v2  ;;  %13686 = vst [vmem:[#allocation20_spill] sm:$0xff] %v10950_v53  ;;  %v3203_v2 = vmul.f32 %v3191_v48, %v3176_v50  ;;  %v3205_v48 = vmul.f32 %v3193_v57, %v3177_v14 }
 0x783   : > { %v10952_v37 = vpop.permute.xlu0 %3812  ;;  %v10954_v36 = vpop.permute.xlu1 %3364 }
 0x784   : > { %13687 = vst [vmem:[#allocation21_spill] sm:$0xff] %v10954_v36 }
 0x787   : > { %v3171_v59 = vpop.permute.xlu0 %3170  ;;  %v10971_v27 = vpop.permute.xlu1 %3814 }
 0x788   : > { %13688 = vst [vmem:[#allocation18_spill] sm:$0xff] %v10971_v27  ;;  %v3178_v27 = vsel %vm263_vm5, %v3159_v61, %v3171_v59  ;;  %v3184_v36 = vsel %vm263_vm5, %v3171_v59, %v3159_v61  ;;  %v3181_v61 = vsel %vm263_vm5, %v10743_v49, %v10671_v42  ;;  %v11011_v59 = vmul.f32 %v3190_v19, %v3182_v52  ;;  %v3188_v42 = vld [vmem:[%s13580_s2 + $0x70] sm:$0xff]  ;;  %v3189_v49 = vld [vmem:[%s13580_s2 + $0x78] sm:$0xff] }
 0x789   : > { %v11031_v19 = vmul.f32 %v3192_v28, %v3183_v5  ;;  %v3206_v50 = vmul.f32 %v3194_v55, %v3184_v36  ;;  %v3207_v52 = vmul.f32 %v3195_v26, %v3178_v27  ;;  %v11050_v55 = vmul.f32 %v3186_v25, %v3180_v32  ;;  %v3644_v32 = vld [vmem:[%s13580_s2 + $0x280] sm:$0xff] }
 0x78a   : > { %v11052_v26 = vmul.f32 %v3188_v42, %v3181_v61  ;;  %v3201_v30 = vmul.f32 %v3189_v49, %v3175_v6  ;;  %v3075_v42 = vsel %vm243_vm6, %v10851_v16, %v10902_v11  ;;  %v3081_v49 = vsel %vm243_vm6, %v10902_v11, %v10851_v16  ;;  %v3093_v16 = vld [vmem:[%s13580_s2 + $0x48] sm:$0xff] }
 0x78b   : > { %v3821_v4 = vpop.permute.xlu0 %3820  ;;  %v3173_v21 = vpop.permute.xlu1 %3172 }
 0x78c   : > { %v3830_v44 = vsel %vm392_vm7, %v10876_v47, %v3821_v4  ;;  %v3836_v53 = vsel %vm392_vm7, %v3821_v4, %v10876_v47  ;;  %v3179_v5 = vsel %vm263_vm5, %v3161_v12, %v3173_v21  ;;  %v3185_v57 = vsel %vm263_vm5, %v3173_v21, %v3161_v12  ;;  %v3846_v47 = vld [vmem:[%s13580_s2 + $0x330] sm:$0xff]  ;;  %v3847_v4 = vld [vmem:[%s13580_s2 + $0x338] sm:$0xff] }
 0x78d   : > { %v11046_v14 = vmul.f32 %v3844_v60, %v3830_v44  ;;  %v11048_v36 = vmul.f32 %v3845_v39, %v3836_v53  ;;  %v3208_v28 = vmul.f32 %v3196_v29, %v3185_v57  ;;  %v3209_v27 = vmul.f32 %v3197_v51, %v3179_v5 }
 0x78e   : > { %v3199_v21 = vmul.f32 %v3187_v0, %v3174_v24  ;;  %v3645_v24 = vld [vmem:[%s13580_s2 + $0x288] sm:$0xff]  ;;  %v8424_v29 = vpack.c.bf16 %v3205_v48, %v3203_v2  ;;  %v3091_v48 = vld [vmem:[%s13580_s2 + $0x38] sm:$0xff] }
 0x78f   : > { %v3069_v44 = vpop.permute.xlu0 %3068  ;;  %v3823_v12 = vpop.permute.xlu1 %3822  ;;  %v8422_v0 = vpack.c.bf16 %v3209_v27, %v3207_v52  ;;  %v8423_v60 = vpack.c.bf16 %v3208_v28, %v3206_v50  ;;  %v3092_v52 = vld [vmem:[%s13580_s2 + $0x40] sm:$0xff]  ;;  %v3072_v28 = vsel %vm243_vm6, %v10677_v23, %v10763_v43  ;;  %v3078_v27 = vsel %vm243_vm6, %v10763_v43, %v10677_v23 }
 0x790   : > { %v3831_v51 = vsel %vm392_vm7, %v10880_v10, %v3823_v12  ;;  %v3837_v25 = vsel %vm392_vm7, %v3823_v12, %v10880_v10  ;;  %v3090_v10 = vld [vmem:[%s13580_s2 + $0x30] sm:$0xff]  ;;  %v3076_v11 = vsel %vm243_vm6, %v10938_v54, %v3069_v44  ;;  %v3074_v23 = vsel %vm243_vm6, %v10845_v8, %v10888_v62 }
 0x791   : > { %v11066_v6 = vmul.f32 %v3846_v47, %v3831_v51  ;;  %v11068_v53 = vmul.f32 %v3847_v4, %v3837_v25  ;;  %4297 = vmatprep.subr.bf16.mxu0 %v8422_v0  ;;  %v3088_v47 = vld [vmem:[%s13580_s2 + $0x20] sm:$0xff]  ;;  %v8425_v4 = vpack.c.bf16 %v3201_v30, %v3199_v21  ;;  %v3080_v43 = vsel %vm243_vm6, %v10888_v62, %v10845_v8  ;;  %v3094_v30 = vld [vmem:[%s13580_s2 + $0x50] sm:$0xff]  ;;  %v3095_v21 = vld [vmem:[%s13580_s2 + $0x58] sm:$0xff] }
 0x792   : > { %4298 = vmatpush1.bf16.msra.mxu0 %v8423_v60  ;;  %v8426_v51 = vpack.c.bf16 %v11031_v19, %v11011_v59  ;;  %v3084_v25 = vld [vmem:[%s13580_s2] sm:$0xff]  ;;  %v3085_v8 = vld [vmem:[%s13580_s2 + $0x8] sm:$0xff]  ;;  %v3086_v62 = vld [vmem:[%s13580_s2 + $0x10] sm:$0xff]  ;;  %v3105_v60 = vmul.f32 %v3093_v16, %v3076_v11  ;;  %v3073_v19 = vsel %vm243_vm6, %v10683_v31, %v10783_v3 }
 0x793   : > { %v3621_v61 = vpop.permute.xlu0 %3620  ;;  %v11076_v39 = vpop.permute.xlu1 %3262  ;;  %4299 = vmatprep.subr.bf16.mxu0 %v8424_v29  ;;  %v3087_v59 = vld [vmem:[%s13580_s2 + $0x18] sm:$0xff] }
 0x794   : > { %v3628_v50 = vsel %vm352_vm2, %v10940_v22, %v3621_v61  ;;  %v3634_v2 = vsel %vm352_vm2, %v3621_v61, %v10940_v22  ;;  %v3082_v22 = vsel %vm243_vm6, %v3069_v44, %v10938_v54  ;;  %v3079_v54 = vsel %vm243_vm6, %v10783_v3, %v10683_v31  ;;  %v3089_v44 = vld [vmem:[%s13580_s2 + $0x28] sm:$0xff] }
 0x795   : > { %v11110_v5 = vmul.f32 %v3644_v32, %v3628_v50  ;;  %v11112_v57 = vmul.f32 %v3645_v24, %v3634_v2  ;;  %v11159_v32 = vmul.f32 %v3090_v10, %v3081_v49  ;;  %v3103_v24 = vmul.f32 %v3091_v48, %v3075_v42 }
 0x796   : > { %v3104_v0 = vmul.f32 %v3092_v52, %v3082_v22  ;;  %4300 = vmatpush1.bf16.msra.mxu0 %v8426_v51  ;;  %v3100_v42 = vmul.f32 %v3088_v47, %v3080_v43  ;;  %v3101_v49 = vmul.f32 %v3089_v44, %v3074_v23  ;;  %v11174_v48 = vmul.f32 %v3084_v25, %v3078_v27  ;;  %v3849_v27 = vld [vmem:[%s13580_s2 + $0x348] sm:$0xff] }
 0x797   : > { %v11140_v12 = vpop.permute.xlu0 %3518  ;;  %v3071_v61 = vpop.permute.xlu1 %3070  ;;  %4301 = vmatprep.subr.bf16.mxu0 %v8425_v4  ;;  %v3097_v52 = vmul.f32 %v3085_v8, %v3072_v28  ;;  %v11176_v16 = vmul.f32 %v3086_v62, %v3079_v54  ;;  %v8427_v3 = vpack.c.bf16 %v11052_v26, %v11050_v55  ;;  %v3099_v11 = vmul.f32 %v3087_v59, %v3073_v19  ;;  %v3646_v4 = vld [vmem:[%s13580_s2 + $0x290] sm:$0xff]  ;;  %v3647_v55 = vld [vmem:[%s13580_s2 + $0x298] sm:$0xff] }
 0x798   : > { %v3077_v29 = vsel %vm243_vm6, %v10942_v41, %v3071_v61  ;;  %v3083_v10 = vsel %vm243_vm6, %v3071_v61, %v10942_v41  ;;  %v3848_v41 = vld [vmem:[%s13580_s2 + $0x340] sm:$0xff]  ;;  %v8430_v43 = vpack.c.bf16 %v3103_v24, %v3101_v49  ;;  %v3537_v8 = vld [vmem:[%s13580_s2 + $0x1f8] sm:$0xff]  ;;  %v3523_v62 = vsel %vm332_vm1, %v10699_v38, %v10821_v20  ;;  %v3842_v61 = vld [vmem:[%s13580_s2 + $0x310] sm:$0xff] }
 0x799   : > { %v3106_v50 = vmul.f32 %v3094_v30, %v3083_v10  ;;  %v3107_v2 = vmul.f32 %v3095_v21, %v3077_v29  ;;  %v3529_v24 = vsel %vm332_vm1, %v10821_v20, %v10699_v38  ;;  %v3843_v59 = vld [vmem:[%s13580_s2 + $0x318] sm:$0xff]  ;;  %v8431_v19 = vpack.c.bf16 %v11159_v32, %v3100_v42  ;;  %v8319_v29 = vld [vmem:[#allocation2 + $0xb0] sm:$0xff] }
 0x79a   : > { %4302 = vmatpush1.bf16.msra.mxu0 %v8427_v3  ;;  %v7626_v10 = vcombine.low %v8319_v29, %v8319_v29  ;;  %v7627_v49 = vcombine.high %v8319_v29, %v8319_v29  ;;  %v3522_v38 = vsel %vm332_vm1, %v10689_v15, %v10803_v45  ;;  %v3528_v20 = vsel %vm332_vm1, %v10803_v45, %v10689_v15  ;;  %v8280_v29 = vld [vmem:[#allocation2 + $0x17c] ss:$-176 sps:$4 sm:$0xff]  }
 0x79b   : > { %v11178_v31 = vpop.permute.xlu0 %3374  ;;  %v3807_v22 = vpop.permute.xlu1 %3806  ;;  %v8428_v47 = vpack.c.bf16 %v3107_v2, %v3105_v60  ;;  %v8429_v28 = vpack.c.bf16 %v3106_v50, %v3104_v0  ;;  %v8432_v2 = vpack.c.bf16 %v3099_v11, %v3097_v52  ;;  %v8320_v52 = vld [vmem:[%s13580_s2 + $0x1e0] sm:$0xff] }
 0x79c   : > { %v11258_v11 = vmul.f32 %v8320_v52, %v3522_v38  ;;  %v13690_v38 = vld [vmem:[#allocation20_spill] sm:$0xff] }
 0x79d   : > { %4303 = vmatprep.subr.bf16.mxu0 %v8428_v47  ;;  %v13694_v52 = vld [vmem:[#allocation12_spill] sm:$0xff] }
 0x79e   : > { %4304 = vmatpush1.bf16.msra.mxu0 %v8429_v28 }
 0x79f   : > { %v3825_v54 = vpop.permute.xlu0 %3824  ;;  %v3623_v23 = vpop.permute.xlu1 %3622  ;;  %4305 = vmatprep.subr.bf16.mxu0 %v8430_v43  ;;  %v3385_v43 = vsel %vm303_vm3, %v10831_v1, %v10705_v63 }
 0x7a0   : > { %v3832_v26 = vsel %vm392_vm7, %v10952_v37, %v3825_v54  ;;  %v3838_v44 = vsel %vm392_vm7, %v3825_v54, %v10952_v37  ;;  %v3629_v51 = vsel %vm352_vm2, %v10946_v18, %v3623_v23  ;;  %v3635_v25 = vsel %vm352_vm2, %v3623_v23, %v10946_v18  ;;  %v3536_v37 = vld [vmem:[%s13580_s2 + $0x1f0] sm:$0xff] }
 0x7a1   : > { %v11200_v30 = vmul.f32 %v3848_v41, %v3832_v26  ;;  %v11202_v21 = vmul.f32 %v3849_v27, %v3838_v44  ;;  %v3658_v18 = vmul.f32 %v3646_v4, %v3629_v51  ;;  %v3659_v0 = vmul.f32 %v3647_v55, %v3635_v25  ;;  %v3540_v4 = vld [vmem:[%s13580_s2 + $0x210] sm:$0xff]  ;;  %v3541_v55 = vld [vmem:[%s13580_s2 + $0x218] sm:$0xff]  ;;  %v3542_v51 = vld [vmem:[%s13580_s2 + $0x220] sm:$0xff] }
 0x7a2   : > { %v11241_v3 = vmul.f32 %v3536_v37, %v3523_v62  ;;  %v11243_v41 = vmul.f32 %v3537_v8, %v3529_v24  ;;  %4306 = vmatpush1.bf16.msra.mxu0 %v8431_v19  ;;  %v11269_v54 = vsel %vm303_vm3, %v10697_v33, %v10819_v13  ;;  %v3525_v26 = vsel %vm332_vm1, %v10868_v58, %v10932_v40  ;;  %v3538_v25 = vld [vmem:[%s13580_s2 + $0x200] sm:$0xff]  ;;  %v3544_v62 = vld [vmem:[%s13580_s2 + $0x230] sm:$0xff]  ;;  %v3545_v24 = vld [vmem:[%s13580_s2 + $0x238] sm:$0xff] }
 0x7a3   : > { %v11224_v60 = vpop.permute.xlu0 %3260  ;;  %v3819_v50 = vpop.permute.xlu1 %3818  ;;  %4307 = vmatprep.subr.bf16.mxu0 %v8432_v2  ;;  %v8433_v15 = vpack.c.bf16 %v3658_v18, %v11110_v5  ;;  %v8434_v45 = vpack.c.bf16 %v3659_v0, %v11112_v57  ;;  %v8435_v57 = vpack.c.bf16 %v11176_v16, %v11174_v48  ;;  %v3531_v44 = vsel %vm332_vm1, %v10932_v40, %v10868_v58  ;;  %v3392_v16 = vld [vmem:[%s13580_s2 + $0x130] sm:$0xff]  ;;  %v3543_v58 = vld [vmem:[%s13580_s2 + $0x228] sm:$0xff]  ;;  %v3840_v2 = vld [vmem:[%s13580_s2 + $0x300] sm:$0xff] }
 0x7a4   : > { %v3829_v32 = vsel %vm392_vm7, %v3807_v22, %v3819_v50  ;;  %v3835_v42 = vsel %vm392_vm7, %v3819_v50, %v3807_v22  ;;  %v8321_v22 = vld [vmem:[%s13580_s2 + $0x1e8] sm:$0xff]  ;;  %v8436_v48 = vpack.c.bf16 %v10928_v56, %v10910_v17  ;;  %v3526_v17 = vsel %vm332_vm1, %v10944_v34, %v11140_v12 }
 0x7a5   : > { %v11249_v27 = vmul.f32 %v3842_v61, %v3829_v32  ;;  %v11251_v47 = vmul.f32 %v3843_v59, %v3835_v42  ;;  %v11263_v28 = vmul.f32 %v8321_v22, %v3528_v20  ;;  %4352 = vmatprep.subr.bf16.mxu1 %v8434_v45  ;;  %v3532_v56 = vsel %vm332_vm1, %v11140_v12, %v10944_v34  ;;  %v3539_v34 = vld [vmem:[%s13580_s2 + $0x208] sm:$0xff]  ;;  %v13691_v42 = vld [vmem:[#allocation11_spill] sm:$0xff] }
 0x7a6   : > { %4308 = vmatpush1.bf16.msra.mxu0 %v8435_v57  ;;  %4353 = vmatpush1.bf16.msra.mxu1 %v8433_v15  ;;  %v11318_v40 = vsel %vm303_vm3, %v10819_v13, %v10697_v33  ;;  %v3524_v37 = vsel %vm332_vm1, %v10857_v35, %v10918_v9  ;;  %v3530_v33 = vsel %vm332_vm1, %v10918_v9, %v10857_v35  ;;  %v13689_v18 = vld [vmem:[#allocation14_spill] sm:$0xff]  ;;  %v13695_v22 = vld [vmem:[#allocation15_spill] sm:$0xff] }
 0x7a7   : > { %v11271_v5 = vpop.permute.xlu0 %3272  ;;  %v11289_v23 = vpop.permute.xlu1 %3258  ;;  %4354 = vmatprep.subr.bf16.mxu1 %v8436_v48  ;;  %4309 = vmatprep.subr.bf16.mxu0 %v7627_v49  ;;  %v11334_v13 = vmul.f32 %v3540_v4, %v3525_v26  ;;  %v11336_v12 = vmul.f32 %v3541_v55, %v3531_v44  ;;  %v8437_v0 = vpack.c.bf16 %v13689_v18, %v10908_v46  ;;  %v3841_v32 = vld [vmem:[%s13580_s2 + $0x308] sm:$0xff]  ;;  %v13697_v4 = vld [vmem:[#allocation13_spill] sm:$0xff] }
 0x7a8   : > { %v3379_v35 = vsel %vm303_vm3, %v10705_v63, %v10831_v1  ;;  %v11350_v9 = vmul.f32 %v3392_v16, %v3385_v43  ;;  %v11352_v61 = vmul.f32 %v3542_v51, %v3526_v17  ;;  %v3555_v59 = vmul.f32 %v3543_v58, %v3532_v56  ;;  %v13692_v15 = vld [vmem:[#allocation26_spill] sm:$0xff]  ;;  %v8283_v16 = vld [vmem:[#allocation2 + $0x94] ss:$48 sps:$4 sm:$0xff]   ;;  %v3393_v43 = vld [vmem:[%s13580_s2 + $0x138] sm:$0xff] }
 0x7a9   : > { %v11354_v49 = vmul.f32 %v3538_v25, %v3524_v37  ;;  %v3551_v63 = vmul.f32 %v3539_v34, %v3530_v33  ;;  %v13693_v45 = vpack.c.bf16 %v13691_v42, %v13692_v15  ;;  %v13696_v57 = vld [vmem:[#allocation22_spill] sm:$0xff]  ;;  %v3396_v51 = vld [vmem:[%s13580_s2 + $0x150] sm:$0xff]  ;;  %v3397_v58 = vld [vmem:[%s13580_s2 + $0x158] sm:$0xff] }
 0x7aa   : > { %4310 = vmatpush1.bf16.msra.mxu0 %v7626_v10  ;;  %4355 = vmatpush1.bf16.msra.mxu1 %v8437_v0  ;;  %v3386_v10 = vsel %vm303_vm3, %v13695_v22, %v13694_v52  ;;  %v3381_v55 = vsel %vm303_vm3, %v13697_v4, %v13696_v57  ;;  %v3387_v26 = vsel %vm303_vm3, %v13696_v57, %v13697_v4  ;;  %v8282_v48 = vld [vmem:[#allocation2 + $0x178] ss:$-176 sps:$4 sm:$0xff]   ;;  %v3394_v37 = vld [vmem:[%s13580_s2 + $0x140] sm:$0xff]  ;;  %v3400_v15 = vld [vmem:[%s13580_s2 + $0x170] sm:$0xff] }
 0x7ab   : > { %v3805_v8 = vpop.permute.xlu0 %3804  ;;  %v3521_v19 = vpop.permute.xlu1 %3520  ;;  %4311 = vmatprep.subr.bf16.mxu0 %v8280_v29  ;;  %4356 = vmatprep.subr.bf16.mxu1 %v13693_v45  ;;  %v3398_v34 = vld [vmem:[%s13580_s2 + $0x160] sm:$0xff]  ;;  %v3399_v33 = vld [vmem:[%s13580_s2 + $0x168] sm:$0xff]  ;;  %v3380_v29 = vsel %vm303_vm3, %v13694_v52, %v13695_v22  ;;  %v3401_v45 = vld [vmem:[%s13580_s2 + $0x178] sm:$0xff]  ;;  %v11446_v57 = vmul.f32 %v3393_v43, %v3379_v35  ;;  %v11448_v4 = vmul.f32 %v3394_v37, %v3386_v10 }
 0x7ac   : > { %v3527_v20 = vsel %vm332_vm1, %v13690_v38, %v3521_v19  ;;  %v3533_v46 = vsel %vm332_vm1, %v3521_v19, %v13690_v38  ;;  %v3395_v19 = vld [vmem:[%s13580_s2 + $0x148] sm:$0xff]  ;;  %v8285_v52 = vld [vmem:[#allocation2 + $0x90] ss:$48 sps:$4 sm:$0xff]   ;;  %v8440_v35 = vpack.c.bf16 %v11336_v12, %v3551_v63 }
 0x7ad   : > { %v3556_v1 = vmul.f32 %v3544_v62, %v3527_v20  ;;  %v3557_v50 = vmul.f32 %v3545_v24, %v3533_v46  ;;  %v13698_v62 = vld [vmem:[#allocation23_spill] sm:$0xff]  ;;  %v13699_v38 = vld [vmem:[#allocation10_spill] sm:$0xff]  ;;  %v13700_v20 = vld [vmem:[#allocation24_spill] sm:$0xff] }
 0x7ae   : > { %v3382_v24 = vsel %vm303_vm3, %v13698_v62, %v11178_v31  ;;  %4312 = vmatpush2.bf16.msra.mxu0 %v8282_v48  ;;  %v13701_v46 = vpack.c.bf16 %v13699_v38, %v13700_v20  ;;  %v8286_v48 = vld [vmem:[#allocation2 + $0x194] ss:$-216 sps:$4 sm:$0xff]   ;;  %v8288_v12 = vld [vmem:[#allocation2 + $0x190] ss:$-216 sps:$4 sm:$0xff]  }
 0x7af   : > { %v3817_v44 = vpop.permute.xlu0 %3816  ;;  %v11396_v25 = vpop.permute.xlu1 %3270  ;;  %4313 = vmatprep.subr.bf16.mxu0 %v8283_v16  ;;  %v8439_v22 = vpack.c.bf16 %v3556_v1, %v11352_v61  ;;  %v3407_v16 = vmul.f32 %v3395_v19, %v3380_v29  ;;  %v3850_v37 = vld [vmem:[%s13580_s2 + $0x350] sm:$0xff] }
 0x7b0   : > { %v3828_v17 = vsel %vm392_vm7, %v3805_v8, %v3817_v44  ;;  %v3834_v56 = vsel %vm392_vm7, %v3817_v44, %v3805_v8  ;;  %v3388_v8 = vsel %vm303_vm3, %v11178_v31, %v13698_v62  ;;  %4357 = vmatpush1.bf16.msra.mxu1 %v13701_v46  ;;  %v8438_v31 = vpack.c.bf16 %v3557_v50, %v3555_v59  ;;  %v3390_v59 = vld [vmem:[%s13580_s2 + $0x120] sm:$0xff]  ;;  %v3391_v50 = vld [vmem:[%s13580_s2 + $0x128] sm:$0xff] }
 0x7b1   : > { %v11415_v18 = vmul.f32 %v3840_v2, %v3828_v17  ;;  %v11417_v0 = vmul.f32 %v3841_v32, %v3834_v56  ;;  %v11429_v2 = vmul.f32 %v3396_v51, %v3387_v26  ;;  %v11431_v32 = vmul.f32 %v3397_v58, %v3381_v55  ;;  %v13702_v51 = vld [vmem:[#allocation21_spill] sm:$0xff]  ;;  %v3297_v46 = vld [vmem:[%s13580_s2 + $0x108] sm:$0xff] }
 0x7b2   : > { %v3410_v55 = vmul.f32 %v3398_v34, %v3388_v8  ;;  %v3411_v26 = vmul.f32 %v3399_v33, %v3382_v24  ;;  %4358 = vmatprep.subr.bf16.mxu1 %v8438_v31  ;;  %4314 = vmatpush2.bf16.msra.mxu0 %v8285_v52  ;;  %v11458_v58 = vmul.f32 %v3390_v59, %v11318_v40  ;;  %v3851_v34 = vld [vmem:[%s13580_s2 + $0x358] sm:$0xff]  ;;  %v3746_v59 = vld [vmem:[%s13580_s2 + $0x2e0] sm:$0xff] }
 0x7b3   : > { %v3257_v42 = vpop.permute.xlu0 %3256  ;;  %v3377_v44 = vpop.permute.xlu1 %3376  ;;  %4315 = vmatprep.subr.bf16.mxu0 %v8286_v48  ;;  %v11461_v17 = vmul.f32 %v3391_v50, %v11269_v54  ;;  %v8441_v33 = vpack.c.bf16 %v11334_v13, %v11354_v49  ;;  %v8442_v40 = vpack.c.bf16 %v11243_v41, %v11263_v28  ;;  %v13703_v54 = vld [vmem:[#allocation18_spill] sm:$0xff]  ;;  %v3296_v13 = vld [vmem:[%s13580_s2 + $0x100] sm:$0xff]  ;;  %v3280_v41 = vsel %vm283_vm4, %v11224_v60, %v11271_v5 }
 0x7b4   : > { %v3383_v61 = vsel %vm303_vm3, %v13702_v51, %v3377_v44  ;;  %v3389_v1 = vsel %vm303_vm3, %v3377_v44, %v13702_v51  ;;  %4359 = vmatpush1.bf16.msra.mxu1 %v8439_v22  ;;  %v8445_v49 = vpack.c.bf16 %v11241_v3, %v11258_v11  ;;  %v8446_v20 = vpack.c.bf16 %v11431_v32, %v3407_v16  ;;  %v11504_v3 = vld [vmem:[%s13580_s2 + $0xf8] sm:$0xff]  ;;  %v11517_v32 = vld [vmem:[%s13580_s2 + $0xe0] sm:$0xff]  ;;  %v3747_v50 = vld [vmem:[%s13580_s2 + $0x2e8] sm:$0xff] }
 0x7b5   : > { %v3412_v43 = vmul.f32 %v3400_v15, %v3389_v1  ;;  %v3413_v10 = vmul.f32 %v3401_v45, %v3383_v61  ;;  %4360 = vmatprep.subr.bf16.mxu1 %v8440_v35  ;;  %v3286_v31 = vsel %vm283_vm4, %v11271_v5, %v11224_v60  ;;  %v11499_v15 = vld [vmem:[%s13580_s2 + $0xf0] sm:$0xff]  ;;  %v3279_v11 = vsel %vm283_vm4, %v11289_v23, %v11396_v25  ;;  %v11522_v45 = vld [vmem:[%s13580_s2 + $0xe8] sm:$0xff] }
 0x7b6   : > { %4316 = vmatpush2.bf16.msra.mxu0 %v8288_v12  ;;  %v3285_v60 = vsel %vm283_vm4, %v11396_v25, %v11289_v23  ;;  %v8447_v23 = vpack.c.bf16 %v11429_v2, %v11448_v4  ;;  %v8448_v25 = vpack.c.bf16 %v11446_v57, %v11461_v17  ;;  %v8451_v2 = vpack.c.bf16 %v11068_v53, %v11048_v36  ;;  %v3298_v16 = vld [vmem:[%s13580_s2 + $0x110] sm:$0xff] }
 0x7b7   : > { %v3269_v56 = vpop.permute.xlu0 %3268  ;;  %v3827_v63 = vpop.permute.xlu1 %3826  ;;  %v8443_v29 = vpack.c.bf16 %v3413_v10, %v3411_v26  ;;  %v8444_v38 = vpack.c.bf16 %v3412_v43, %v3410_v55  ;;  %v3308_v4 = vmul.f32 %v3296_v13, %v3286_v31  ;;  %v3309_v26 = vmul.f32 %v3297_v46, %v3280_v41  ;;  %v8300_v13 = vld [vmem:[%s13579_s1 + $0x128] ss:$16 sps:$4 sm:$0xff]  }
 0x7b8   : > { %v3833_v62 = vsel %vm392_vm7, %v13703_v54, %v3827_v63  ;;  %v3839_v24 = vsel %vm392_vm7, %v3827_v63, %v13703_v54  ;;  %4361 = vmatpush1.bf16.msra.mxu1 %v8441_v33  ;;  %v3278_v52 = vsel %vm283_vm4, %v3257_v42, %v3269_v56  ;;  %v3284_v22 = vsel %vm283_vm4, %v3269_v56, %v3257_v42 }
 0x7b9   : > { %v3862_v8 = vmul.f32 %v3850_v37, %v3833_v62  ;;  %v3863_v19 = vmul.f32 %v3851_v34, %v3839_v24  ;;  %4362 = vmatprep.subr.bf16.mxu1 %v8442_v40  ;;  %4317 = vmatprep.subr.bf16.mxu0 %v8443_v29  ;;  %v3306_v57 = vmul.f32 %v11499_v15, %v3285_v60  ;;  %v3748_v37 = vld [vmem:[%s13580_s2 + $0x2f0] sm:$0xff]  ;;  %v3749_v34 = vld [vmem:[%s13580_s2 + $0x2f8] sm:$0xff]  ;;  %v13704_v41 = vmov 0  }
 0x7ba   : > { %4318 = vmatpush2.bf16.msra.mxu0 %v8444_v38  ;;  %v3307_v44 = vmul.f32 %v11504_v3, %v3279_v11  ;;  %v3305_v51 = vmul.f32 %v11522_v45, %v3278_v52  ;;  %v8452_v12 = vpack.c.bf16 %v11350_v9, %v11458_v58  ;;  %v8454_v54 = vpack.c.bf16 %v11251_v47, %v11417_v0  ;;  %v8289_v47 = vld [vmem:[%s13579_s1 + $0x100] ss:$16 sps:$4 sm:$0xff]   ;;  %v8292_v0 = vld [vmem:[%s13579_s1 + $0x108] ss:$16 sps:$4 sm:$0xff]  }
 0x7bb   : > { %v3711_v28 = vpop.permute.xlu0 %3710  ;;  %v3713_v5 = vpop.permute.xlu1 %3712  ;;  %4319 = vmatprep.subr.bf16.mxu0 %v8446_v20  ;;  %v8449_v55 = vpack.c.bf16 %v3862_v8, %v11200_v30  ;;  %v8450_v42 = vpack.c.bf16 %v3863_v19, %v11202_v21  ;;  %v3299_v30 = vld [vmem:[%s13580_s2 + $0x118] sm:$0xff]  ;;  %v3304_v21 = vmul.f32 %v11517_v32, %v3284_v22  ;;  %v8457_v9 = vpack.c.bf16 %v11249_v27, %v11415_v18  ;;  %v8295_v27 = vld [vmem:[%s13579_s1 + $0x124] ss:$16 sps:$4 sm:$0xff]   ;;  %v8299_v38 = vld [vmem:[%s13579_s1 + $0x120] ss:$16 sps:$4 sm:$0xff]  }
 0x7bc   : > { %4363 = vmatpush1.bf16.msra.mxu1 %v8445_v49  ;;  %v8297_v18 = vld [vmem:[%s13579_s1 + $0x12c] ss:$16 sps:$4 sm:$0xff]  }
 0x7bd   : > { %4372 = vmatprep.subr.bf16.mxu1 %v8450_v42  ;;  %v8461_v29 = vpack.c.bf16 %v3306_v57, %v3304_v21 }
 0x7be   : > { %4320 = vmatpush2.bf16.msra.mxu0 %v8447_v23 }
 0x7bf   : > { %v3723_v48 = vpop.permute.xlu0 %3722  ;;  %v3275_v61 = vpop.permute.xlu1 %3274  ;;  %4321 = vmatprep.subr.bf16.mxu0 %v8448_v25 }
 0x7c0   : > { %v3730_v36 = vsel %vm372_vm8, %v3711_v28, %v3723_v48  ;;  %v3736_v53 = vsel %vm372_vm8, %v3723_v48, %v3711_v28  ;;  %v3281_v43 = vsel %vm283_vm4, %v11076_v39, %v3275_v61  ;;  %v3287_v10 = vsel %vm283_vm4, %v3275_v61, %v11076_v39  ;;  %4373 = vmatpush2.bf16.msra.mxu1 %v8449_v55 }
 0x7c1   : > { %v3758_v1 = vmul.f32 %v3746_v59, %v3730_v36  ;;  %v3759_v35 = vmul.f32 %v3747_v50, %v3736_v53  ;;  %v3310_v17 = vmul.f32 %v3298_v16, %v3287_v10  ;;  %v3311_v56 = vmul.f32 %v3299_v30, %v3281_v43  ;;  %4374 = vmatprep.subr.bf16.mxu1 %v8451_v2 }
 0x7c2   : > { %v8453_v39 = vpack.c.bf16 %v11066_v6, %v11046_v14  ;;  %4322 = vmatpush2.bf16.msra.mxu0 %v8452_v12  ;;  %v8458_v14 = vpack.c.bf16 %v3307_v44, %v3305_v51  ;;  %v8303_v12 = vld [vmem:[%s13579_s1 + $0x144] ss:$16 sps:$4 sm:$0xff]  }
 0x7c3   : > { %v3725_v63 = vpop.permute.xlu1 %3724  ;;  %v8455_v8 = vpack.c.bf16 %v3311_v56, %v3309_v26  ;;  %v8456_v19 = vpack.c.bf16 %v3310_v17, %v3308_v4 }
 0x7c4   : > { %v3731_v33 = vsel %vm372_vm8, %v3713_v5, %v3725_v63  ;;  %v3737_v40 = vsel %vm372_vm8, %v3725_v63, %v3713_v5  ;;  %4375 = vmatpush2.bf16.msra.mxu1 %v8453_v39 }
 0x7c5   : > { %v3760_v62 = vmul.f32 %v3748_v37, %v3731_v33  ;;  %v3761_v24 = vmul.f32 %v3749_v34, %v3737_v40  ;;  %4376 = vmatprep.subr.bf16.mxu1 %v8454_v54  ;;  %4323 = vmatprep.subr.bf16.mxu0 %v8455_v8 }
 0x7c6   : > { %4324 = vmatpush2.bf16.msra.mxu0 %v8456_v19  ;;  %v4637_v19 = vld [vmem:[%s13580_s2 + $0x120] sm:$0xff] }
 0x7c7   : > { %4325 = vmatprep.subr.bf16.mxu0 %v8458_v14  ;;  %v8459_v6 = vpack.c.bf16 %v3760_v62, %v3758_v1  ;;  %v8460_v58 = vpack.c.bf16 %v3761_v24, %v3759_v35 }
 0x7c8   : > { %4377 = vmatpush2.bf16.msra.mxu1 %v8457_v9  ;;  %v4638_v9 = vld [vmem:[%s13580_s2 + $0x128] sm:$0xff] }
 0x7c9   : > { %4378 = vmatprep.subr.bf16.mxu1 %v8460_v58  ;;  %v4639_v58 = vld [vmem:[%s13580_s2 + $0x130] sm:$0xff] }
 0x7ca   : > { %4326 = vmatpush2.bf16.msra.mxu0 %v8461_v29  ;;  %v4640_v29 = vld [vmem:[%s13580_s2 + $0x138] sm:$0xff] }
 0x7cc   : > { %4379 = vmatpush2.bf16.msra.mxu1 %v8459_v6 }
 0x7cd   : > { %4328 = vmatmul.mubr.bf16.vlgmr.msra.gmra.mxu0 %v8289_v47 }
 0x7ce   : > { %4337 = vmatprep.mubr.bf16.mxu0 %v8295_v27 }
 0x7cf   : > { %4381 = vmatmul.mubr.bf16.vlgmr.msra.gmra.mxu1 %v8292_v0 }
 0x7d0   : > { %7683 = vmatprep.mubr.msk.bf16.mxu1 %vm4288_vm10, %v8297_v18 }
 0x7d5   : > { %4338 = vmatmul.mubr.bf16.gmra.mxu0 %v8299_v38 }
 0x7d6   : > { %5306 = vmatprep.mubr.bf16.mxu0 %v13704_v41 }
 0x7d7   : > { %4391 = vmatmul.mubr.bf16.gmra.mxu1 %v8300_v13 }
 0x7d8   : > { %5263 = vmatprep.mubr.bf16.mxu1 %v8303_v12 }
 0x88d   : > { %v4329_v28 = vpop.f32.mrf.mxu0 }
 0x88f   : > { %v4382_v49 = vpop.f32.mrf.mxu1  ;;  %v4331_v46 = vpop.f32.mrf.mxu0 }
 0x890   : > { %v4383_v20 = vadd.f32 %v4382_v49, %v4329_v28 }
 0x891   : > { %v4384_v31 = vpop.f32.mrf.mxu1  ;;  %v4333_v60 = vpop.f32.mrf.mxu0 }
 0x892   : > { %v11600_v11 = vmax.f32 %v4383_v20, 0.0  ;;  %v4385_v23 = vadd.f32 %v4384_v31, %v4331_v46 }
 0x893   : > { %v4386_v5 = vpop.f32.mrf.mxu1  ;;  %v4335_v25 = vpop.f32.mrf.mxu0 }
 0x894   : > { %v4387_v52 = vadd.f32 %v4386_v5, %v4333_v60  ;;  %4613 = vrot.lane.b32.xlu0 %v11600_v11, %s8665_s8  ;;  %v11626_v50 = vmax.f32 %v4385_v23, 0.0 }
 0x895   : > { %v4388_v59 = vpop.f32.mrf.mxu1  ;;  %v4339_v2 = vpop.f32.mrf.mxu0 }
 0x896   : > { %v11604_v22 = vmax.f32 %v4387_v52, 0.0  ;;  %v4389_v55 = vadd.f32 %v4388_v59, %v4335_v25 }
 0x897   : > { %v4392_v4 = vpop.f32.mrf.mxu1  ;;  %v4341_v57 = vpop.f32.mrf.mxu0 }
 0x898   : > { %4545 = vrot.lane.b32.xlu0 %v11600_v11, %s8666_s9  ;;  %4615 = vrot.lane.b32.xlu1 %v11604_v22, %s8665_s8  ;;  %v11632_v42 = vmax.f32 %v4389_v55, 0.0  ;;  %v4393_v26 = vadd.f32 %v4392_v4, %v4339_v2 }
 0x899   : > { %v4394_v44 = vpop.f32.mrf.mxu1  ;;  %v4343_v16 = vpop.f32.mrf.mxu0 }
 0x89a   : > { %v11650_v48 = vmax.f32 %v4393_v26, 0.0  ;;  %v4395_v36 = vadd.f32 %v4394_v44, %v4341_v57 }
 0x89b   : > { %v4396_v30 = vpop.f32.mrf.mxu1  ;;  %v4345_v53 = vpop.f32.mrf.mxu0 }
 0x89c   : > { %4477 = vrot.lane.b32.xlu0 %v11600_v11, %s13630_s10  ;;  %4547 = vrot.lane.b32.xlu1 %v11604_v22, %s8666_s9  ;;  %v4397_v21 = vadd.f32 %v4396_v30, %v4343_v16  ;;  %v11678_v1 = vmax.f32 %v4395_v36, 0.0 }
 0x89d   : > { %v4398_v61 = vpop.f32.mrf.mxu1 }
 0x89e   : > { %v11660_v51 = vmax.f32 %v4397_v21, 0.0  ;;  %v4399_v35 = vadd.f32 %v4398_v61, %v4345_v53 }
 0x8a0   : > { %4409 = vrot.lane.b32.xlu0 %v11600_v11, %s13628_s11  ;;  %4479 = vrot.lane.b32.xlu1 %v11604_v22, %s13630_s10  ;;  %v11684_v43 = vmax.f32 %v4399_v35, 0.0 }
 0x8a4   : > { %4845 = vrot.lane.b32.xlu0 %v11600_v11, %s13626_s13  ;;  %4411 = vrot.lane.b32.xlu1 %v11604_v22, %s13628_s11 }
 0x8a8   : > { %4777 = vrot.lane.b32.xlu0 %v11600_v11, %s13705_s14  ;;  %4847 = vrot.lane.b32.xlu1 %v11604_v22, %s13626_s13 }
 0x8ac   : > { %4621 = vrot.lane.b32.xlu0 %v11626_v50, %s8665_s8  ;;  %4779 = vrot.lane.b32.xlu1 %v11604_v22, %s13705_s14 }
 0x8b0   : > { %4553 = vrot.lane.b32.xlu0 %v11626_v50, %s8666_s9  ;;  %4623 = vrot.lane.b32.xlu1 %v11632_v42, %s8665_s8 }
 0x8b4   : > { %4485 = vrot.lane.b32.xlu0 %v11626_v50, %s13630_s10  ;;  %4555 = vrot.lane.b32.xlu1 %v11632_v42, %s8666_s9 }
 0x8b8   : > { %4417 = vrot.lane.b32.xlu0 %v11626_v50, %s13628_s11  ;;  %4487 = vrot.lane.b32.xlu1 %v11632_v42, %s13630_s10 }
 0x8bc   : > { %4853 = vrot.lane.b32.xlu0 %v11626_v50, %s13626_s13  ;;  %4419 = vrot.lane.b32.xlu1 %v11632_v42, %s13628_s11 }
 0x8c0   : > { %4785 = vrot.lane.b32.xlu0 %v11626_v50, %s13705_s14  ;;  %4855 = vrot.lane.b32.xlu1 %v11632_v42, %s13626_s13 }
 0x8c4   : > { %4787 = vrot.lane.b32.xlu1 %v11632_v42, %s13705_s14  ;;  %4549 = vrot.lane.b32.xlu0 %v11650_v48, %s8666_s9 }
 0x8c8   : > { %4481 = vrot.lane.b32.xlu0 %v11650_v48, %s13630_s10  ;;  %4551 = vrot.lane.b32.xlu1 %v11660_v51, %s8666_s9 }
 0x8cc   : > { %4413 = vrot.lane.b32.xlu0 %v11650_v48, %s13628_s11  ;;  %4483 = vrot.lane.b32.xlu1 %v11660_v51, %s13630_s10 }
 0x8d0   : > { %4781 = vrot.lane.b32.xlu0 %v11650_v48, %s13705_s14  ;;  %4415 = vrot.lane.b32.xlu1 %v11660_v51, %s13628_s11 }
 0x8d4   : > { %4713 = vrot.lane.b32.xlu0 %v11650_v48, %s13706_s20  ;;  %4783 = vrot.lane.b32.xlu1 %v11660_v51, %s13705_s14 }
 0x8d8   : > { %4557 = vrot.lane.b32.xlu0 %v11678_v1, %s8666_s9  ;;  %4715 = vrot.lane.b32.xlu1 %v11660_v51, %s13706_s20 }
 0x8dc   : > { %4709 = vrot.lane.b32.xlu0 %v11600_v11, %s13706_s20  ;;  %4559 = vrot.lane.b32.xlu1 %v11684_v43, %s8666_s9 }
 0x8e0   : > { %4489 = vrot.lane.b32.xlu0 %v11678_v1, %s13630_s10  ;;  %4711 = vrot.lane.b32.xlu1 %v11604_v22, %s13706_s20 }
 0x8e4   : > { %4421 = vrot.lane.b32.xlu0 %v11678_v1, %s13628_s11  ;;  %4491 = vrot.lane.b32.xlu1 %v11684_v43, %s13630_s10 }
 0x8e8   : > { %4789 = vrot.lane.b32.xlu0 %v11678_v1, %s13705_s14  ;;  %4719 = vrot.lane.b32.xlu1 %v11632_v42, %s13706_s20 }
 0x8ec   : > { %4721 = vrot.lane.b32.xlu0 %v11678_v1, %s13706_s20  ;;  %4423 = vrot.lane.b32.xlu1 %v11684_v43, %s13628_s11 }
 0x8f0   : > { %4717 = vrot.lane.b32.xlu0 %v11626_v50, %s13706_s20  ;;  %4919 = vrot.lane.b32.xlu1 %v11660_v51, %s13707_s22 }
 0x8f4   : > { %4917 = vrot.lane.b32.xlu0 %v11650_v48, %s13707_s22  ;;  %4915 = vrot.lane.b32.xlu1 %v11604_v22, %s13707_s22 }
 0x8f8   : > { %4925 = vrot.lane.b32.xlu0 %v11678_v1, %s13707_s22  ;;  %4923 = vrot.lane.b32.xlu1 %v11632_v42, %s13707_s22 }
 0x8fc   : > { %4913 = vrot.lane.b32.xlu0 %v11600_v11, %s13707_s22  ;;  %4791 = vrot.lane.b32.xlu1 %v11684_v43, %s13705_s14 }
 0x900   : > { %4921 = vrot.lane.b32.xlu0 %v11626_v50, %s13707_s22  ;;  %4619 = vrot.lane.b32.xlu1 %v11660_v51, %s8665_s8 }
 0x904   : > { %4617 = vrot.lane.b32.xlu0 %v11650_v48, %s8665_s8  ;;  %4723 = vrot.lane.b32.xlu1 %v11684_v43, %s13706_s20 }
 0x906   : > { %v4614_v10 = vpop.permute.xlu0 %4613 }
 0x908   : > { %4625 = vrot.lane.b32.xlu0 %v11678_v1, %s8665_s8  ;;  %4851 = vrot.lane.b32.xlu1 %v11660_v51, %s13626_s13 }
 0x90a   : > { %v11734_v17 = vpop.permute.xlu0 %4545  ;;  %v4616_v56 = vpop.permute.xlu1 %4615 }
 0x90c   : > { %4849 = vrot.lane.b32.xlu0 %v11650_v48, %s13626_s13  ;;  %4927 = vrot.lane.b32.xlu1 %v11684_v43, %s13707_s22 }
 0x90e   : > { %v11740_v37 = vpop.permute.xlu0 %4477  ;;  %v4548_v34 = vpop.permute.xlu1 %4547 }
 0x910   : > { %4857 = vrot.lane.b32.xlu0 %v11678_v1, %s13626_s13  ;;  %4627 = vrot.lane.b32.xlu1 %v11684_v43, %s8665_s8 }
 0x912   : > { %v11749_v63 = vpop.permute.xlu0 %4409  ;;  %v11751_v39 = vpop.permute.xlu1 %4479 }
 0x914   : > { %4859 = vrot.lane.b32.xlu1 %v11684_v43, %s13626_s13 }
 0x916   : > { %v11755_v33 = vpop.permute.xlu0 %4845  ;;  %v11757_v40 = vpop.permute.xlu1 %4411 }
 0x91a   : > { %v11759_v54 = vpop.permute.xlu0 %4777  ;;  %v11761_v62 = vpop.permute.xlu1 %4847 }
 0x91e   : > { %v4622_v24 = vpop.permute.xlu0 %4621  ;;  %v11763_v8 = vpop.permute.xlu1 %4779 }
 0x91f   : > { %v4629_v14 = vsel %vm303_vm3, %v4614_v10, %v4622_v24  ;;  %v4633_v6 = vsel %vm303_vm3, %v4622_v24, %v4614_v10  ;;  %v4571_v10 = vld [vmem:[%s13580_s2 + $0xd0] sm:$0xff] }
 0x920   : > { %v4645_v27 = vmul.f32 %v4637_v19, %v4633_v6  ;;  %v4646_v18 = vmul.f32 %v4638_v9, %v4629_v14  ;;  %v4569_v14 = vld [vmem:[%s13580_s2 + $0xc0] sm:$0xff]  ;;  %v4570_v6 = vld [vmem:[%s13580_s2 + $0xc8] sm:$0xff] }
 0x922   : > { %v4554_v47 = vpop.permute.xlu0 %4553  ;;  %v4624_v0 = vpop.permute.xlu1 %4623 }
 0x923   : > { %v4630_v38 = vsel %vm303_vm3, %v4616_v56, %v4624_v0  ;;  %v4634_v13 = vsel %vm303_vm3, %v4624_v0, %v4616_v56  ;;  %v4572_v56 = vld [vmem:[%s13580_s2 + $0xd8] sm:$0xff] }
 0x924   : > { %v4647_v28 = vmul.f32 %v4639_v58, %v4634_v13  ;;  %v4648_v49 = vmul.f32 %v4640_v29, %v4630_v38  ;;  %v4561_v58 = vsel %vm283_vm4, %v11734_v17, %v4554_v47 }
 0x926   : > { %v11785_v20 = vpop.permute.xlu0 %4485  ;;  %v4556_v46 = vpop.permute.xlu1 %4555  ;;  %v8462_v31 = vpack.c.bf16 %v4648_v49, %v4646_v18  ;;  %v8463_v60 = vpack.c.bf16 %v4647_v28, %v4645_v27  ;;  %v4578_v49 = vmul.f32 %v4570_v6, %v4561_v58 }
 0x927   : > { %v4562_v12 = vsel %vm283_vm4, %v4548_v34, %v4556_v46  ;;  %v4566_v24 = vsel %vm283_vm4, %v4556_v46, %v4548_v34  ;;  %v4565_v34 = vsel %vm283_vm4, %v4554_v47, %v11734_v17 }
 0x928   : > { %5231 = vmatprep.subr.bf16.mxu1 %v8462_v31  ;;  %v4579_v29 = vmul.f32 %v4571_v10, %v4566_v24  ;;  %v4580_v0 = vmul.f32 %v4572_v56, %v4562_v12  ;;  %v4577_v28 = vmul.f32 %v4569_v14, %v4565_v34  ;;  %v4497_v14 = vsel %vm263_vm5, %v11785_v20, %v11740_v37 }
 0x929   : > { %5232 = vmatpush1.bf16.msra.mxu1 %v8463_v60 }
 0x92a   : > { %v11787_v5 = vpop.permute.xlu0 %4417  ;;  %v4488_v52 = vpop.permute.xlu1 %4487 }
 0x92e   : > { %v11789_v23 = vpop.permute.xlu0 %4853  ;;  %v11791_v25 = vpop.permute.xlu1 %4419 }
 0x932   : > { %v11793_v59 = vpop.permute.xlu0 %4785  ;;  %v11795_v55 = vpop.permute.xlu1 %4855 }
 0x936   : > { %v11797_v2 = vpop.permute.xlu1 %4787  ;;  %v4550_v4 = vpop.permute.xlu0 %4549 }
 0x93a   : > { %v4482_v26 = vpop.permute.xlu0 %4481  ;;  %v4552_v57 = vpop.permute.xlu1 %4551 }
 0x93e   : > { %v11799_v44 = vpop.permute.xlu0 %4413  ;;  %v4484_v16 = vpop.permute.xlu1 %4483 }
 0x942   : > { %v11801_v30 = vpop.permute.xlu0 %4781  ;;  %v11803_v21 = vpop.permute.xlu1 %4415 }
 0x946   : > { %v11805_v36 = vpop.permute.xlu0 %4713  ;;  %v11807_v53 = vpop.permute.xlu1 %4783 }
 0x94a   : > { %v4558_v61 = vpop.permute.xlu0 %4557  ;;  %v11809_v35 = vpop.permute.xlu1 %4715 }
 0x94b   : > { %v4563_v19 = vsel %vm283_vm4, %v4550_v4, %v4558_v61  ;;  %v4567_v9 = vsel %vm283_vm4, %v4558_v61, %v4550_v4  ;;  %v4494_v61 = vsel %vm263_vm5, %v11751_v39, %v4488_v52 }
 0x94c   : > { %v4581_v27 = vmul.f32 %v4567_v9, %v11517_v32  ;;  %v4582_v18 = vmul.f32 %v4563_v19, %v11522_v45  ;;  %v4503_v32 = vld [vmem:[%s13580_s2 + $0x70] sm:$0xff]  ;;  %v4504_v45 = vld [vmem:[%s13580_s2 + $0x78] sm:$0xff]  ;;  %v4501_v9 = vld [vmem:[%s13580_s2 + $0x60] sm:$0xff] }
 0x94d   : > { %v4508_v19 = vld [vmem:[%s13580_s2 + $0x98] sm:$0xff]  ;;  %v4512_v58 = vmul.f32 %v4504_v45, %v4494_v61  ;;  %v4509_v41 = vmul.f32 %v4501_v9, %v4497_v14 }
 0x94e   : > { %v11839_v38 = vpop.permute.xlu0 %4709  ;;  %v4560_v13 = vpop.permute.xlu1 %4559 }
 0x94f   : > { %v4564_v46 = vsel %vm283_vm4, %v4552_v57, %v4560_v13  ;;  %v4568_v31 = vsel %vm283_vm4, %v4560_v13, %v4552_v57  ;;  %v4506_v57 = vld [vmem:[%s13580_s2 + $0x88] sm:$0xff] }
 0x950   : > { %v4583_v60 = vmul.f32 %v4568_v31, %v11499_v15  ;;  %v4584_v17 = vmul.f32 %v4564_v46, %v11504_v3  ;;  %v4498_v15 = vsel %vm263_vm5, %v4488_v52, %v11751_v39  ;;  %v4505_v3 = vld [vmem:[%s13580_s2 + $0x80] sm:$0xff]  ;;  %v4493_v39 = vsel %vm263_vm5, %v11740_v37, %v11785_v20  ;;  %v4507_v52 = vld [vmem:[%s13580_s2 + $0x90] sm:$0xff] }
 0x951   : > { %v4511_v6 = vmul.f32 %v4503_v32, %v4498_v15  ;;  %v8467_v20 = vpack.c.bf16 %v4579_v29, %v4577_v28  ;;  %v4438_v29 = vld [vmem:[%s13580_s2 + $0x28] sm:$0xff]  ;;  %v4436_v15 = vld [vmem:[%s13580_s2 + $0x18] sm:$0xff] }
 0x952   : > { %v4490_v47 = vpop.permute.xlu0 %4489  ;;  %v11847_v4 = vpop.permute.xlu1 %4711  ;;  %v8464_v12 = vpack.c.bf16 %v4584_v17, %v4582_v18  ;;  %v8465_v24 = vpack.c.bf16 %v4583_v60, %v4581_v27  ;;  %v8466_v18 = vpack.c.bf16 %v4580_v0, %v4578_v49  ;;  %v4435_v0 = vld [vmem:[%s13580_s2 + $0x10] sm:$0xff]  ;;  %v4437_v49 = vld [vmem:[%s13580_s2 + $0x20] sm:$0xff] }
 0x953   : > { %v4495_v10 = vsel %vm263_vm5, %v4482_v26, %v4490_v47  ;;  %v4499_v56 = vsel %vm263_vm5, %v4490_v47, %v4482_v26  ;;  %v4502_v26 = vld [vmem:[%s13580_s2 + $0x68] sm:$0xff] }
 0x954   : > { %5233 = vmatprep.subr.bf16.mxu1 %v8464_v12  ;;  %v4513_v13 = vmul.f32 %v4505_v3, %v4499_v56  ;;  %v4514_v46 = vmul.f32 %v4506_v57, %v4495_v10  ;;  %v4510_v37 = vmul.f32 %v4502_v26, %v4493_v39  ;;  %v4426_v3 = vsel %vm243_vm6, %v11757_v40, %v11791_v25  ;;  %v4439_v10 = vld [vmem:[%s13580_s2 + $0x30] sm:$0xff] }
 0x955   : > { %5234 = vmatpush1.bf16.msra.mxu1 %v8465_v24  ;;  %v4425_v57 = vsel %vm243_vm6, %v11749_v63, %v11787_v5  ;;  %v4433_v24 = vld [vmem:[%s13580_s2] sm:$0xff]  ;;  %v4444_v14 = vmul.f32 %v4436_v15, %v4426_v3 }
 0x956   : > { %v4422_v34 = vpop.permute.xlu0 %4421  ;;  %v4492_v27 = vpop.permute.xlu1 %4491  ;;  %5235 = vmatprep.subr.bf16.mxu1 %v8466_v18  ;;  %v8470_v18 = vpack.c.bf16 %v4512_v58, %v4510_v37  ;;  %v4862_v58 = vsel %vm372_vm8, %v11761_v62, %v11795_v55  ;;  %v4866_v37 = vsel %vm372_vm8, %v11795_v55, %v11761_v62  ;;  %v4865_v62 = vsel %vm372_vm8, %v11789_v23, %v11755_v33 }
 0x957   : > { %v4496_v31 = vsel %vm263_vm5, %v4484_v16, %v4492_v27  ;;  %v4500_v60 = vsel %vm263_vm5, %v4492_v27, %v4484_v16  ;;  %v4430_v16 = vsel %vm243_vm6, %v11791_v25, %v11757_v40  ;;  %v4427_v28 = vsel %vm243_vm6, %v11799_v44, %v4422_v34  ;;  %v4434_v40 = vld [vmem:[%s13580_s2 + $0x8] sm:$0xff] }
 0x958   : > { %v4515_v17 = vmul.f32 %v4507_v52, %v4500_v60  ;;  %v4516_v47 = vmul.f32 %v4508_v19, %v4496_v31  ;;  %v4431_v61 = vsel %vm243_vm6, %v4422_v34, %v11799_v44  ;;  %v4440_v44 = vld [vmem:[%s13580_s2 + $0x38] sm:$0xff]  ;;  %v4429_v25 = vsel %vm243_vm6, %v11787_v5, %v11749_v63 }
 0x959   : > { %5236 = vmatpush1.bf16.msra.mxu1 %v8467_v20  ;;  %v4443_v39 = vmul.f32 %v4435_v0, %v4430_v16  ;;  %v4445_v52 = vmul.f32 %v4437_v49, %v4431_v61  ;;  %v4446_v19 = vmul.f32 %v4438_v29, %v4427_v28  ;;  %v4441_v63 = vmul.f32 %v4433_v24, %v4429_v25  ;;  %v4869_v20 = vld [vmem:[%s13580_s2 + $0x2a0] sm:$0xff]  ;;  %v4870_v0 = vld [vmem:[%s13580_s2 + $0x2a8] sm:$0xff] }
 0x95a   : > { %v11895_v32 = vpop.permute.xlu0 %4789  ;;  %v11897_v45 = vpop.permute.xlu1 %4719  ;;  %v8468_v56 = vpack.c.bf16 %v4516_v47, %v4514_v46  ;;  %v8469_v12 = vpack.c.bf16 %v4515_v17, %v4513_v13  ;;  %v4442_v5 = vmul.f32 %v4434_v40, %v4425_v57  ;;  %v8471_v17 = vpack.c.bf16 %v4511_v6, %v4509_v41  ;;  %v4871_v47 = vld [vmem:[%s13580_s2 + $0x2b0] sm:$0xff]  ;;  %v12012_v40 = vld [vmem:[%s13580_s2 + $0x258] sm:$0xff] }
 0x95b   : > { %v4861_v16 = vsel %vm372_vm8, %v11755_v33, %v11789_v23  ;;  %v4879_v55 = vmul.f32 %v4871_v47, %v4862_v58  ;;  %v4878_v3 = vmul.f32 %v4870_v0, %v4865_v62  ;;  %v8322_v57 = vld [vmem:[#allocation2 + $0xb0] sm:$0xff]  ;;  %v4793_v33 = vsel %vm352_vm2, %v11759_v54, %v11793_v59  ;;  %v4737_v0 = vld [vmem:[%s13580_s2 + $0x200] sm:$0xff] }
 0x95c   : > { %5237 = vmatprep.subr.bf16.mxu1 %v8468_v56  ;;  %v8474_v61 = vpack.c.bf16 %v4444_v14, %v4442_v5  ;;  %v4877_v15 = vmul.f32 %v4869_v20, %v4861_v16  ;;  %v12003_v23 = vld [vmem:[%s13580_s2 + $0x250] sm:$0xff]  ;;  %v8475_v24 = vpack.c.bf16 %v4443_v39, %v4441_v63  ;;  %v4794_v25 = vsel %vm352_vm2, %v11763_v8, %v11797_v2  ;;  %v4806_v39 = vld [vmem:[%s13580_s2 + $0x268] sm:$0xff] }
 0x95d   : > { %5238 = vmatpush1.bf16.msra.mxu1 %v8469_v12  ;;  %v4799_v14 = vsel %vm352_vm2, %v11895_v32, %v11801_v30  ;;  %v4738_v16 = vld [vmem:[%s13580_s2 + $0x208] sm:$0xff] }
 0x95e   : > { %v11945_v9 = vpop.permute.xlu0 %4721  ;;  %v4424_v26 = vpop.permute.xlu1 %4423  ;;  %5239 = vmatprep.subr.bf16.mxu1 %v8470_v18  ;;  %v4811_v18 = vmul.f32 %v12003_v23, %v4794_v25  ;;  %v8477_v20 = vpack.c.bf16 %v4879_v55, %v4877_v15  ;;  %v12086_v55 = vld [vmem:[%s13580_s2 + $0x1f0] sm:$0xff] }
 0x95f   : > { %v4428_v34 = vsel %vm243_vm6, %v11803_v21, %v4424_v26  ;;  %v4432_v27 = vsel %vm243_vm6, %v4424_v26, %v11803_v21  ;;  %v4872_v21 = vld [vmem:[%s13580_s2 + $0x2b8] sm:$0xff]  ;;  %v4795_v26 = vsel %vm352_vm2, %v11801_v30, %v11895_v32  ;;  %v4807_v30 = vld [vmem:[%s13580_s2 + $0x270] sm:$0xff]  ;;  %v4731_v62 = vsel %vm332_vm1, %v11945_v9, %v11805_v36 }
 0x960   : > { %v4447_v13 = vmul.f32 %v4439_v10, %v4432_v27  ;;  %v4448_v46 = vmul.f32 %v4440_v44, %v4428_v34  ;;  %v4880_v49 = vmul.f32 %v4872_v21, %v4866_v37  ;;  %v11989_v10 = vcombine.high %v8322_v57, %v8322_v57  ;;  %v11994_v44 = vld [vmem:[%s13580_s2 + $0x240] sm:$0xff]  ;;  %v4808_v32 = vld [vmem:[%s13580_s2 + $0x278] sm:$0xff] }
 0x961   : > { %5240 = vmatpush1.bf16.msra.mxu1 %v8471_v17  ;;  %v12045_v34 = vcombine.low %v8322_v57, %v8322_v57  ;;  %v12048_v27 = vmul.f32 %v11994_v44, %v4793_v33  ;;  %v12109_v57 = vld [vmem:[%s13580_s2 + $0x1f8] sm:$0xff]  ;;  %v4726_v33 = vsel %vm332_vm1, %v11847_v4, %v11897_v45 }
 0x962   : > { %v11953_v31 = vpop.permute.xlu0 %4717  ;;  %v11955_v60 = vpop.permute.xlu1 %4919  ;;  %v8472_v41 = vpack.c.bf16 %v4448_v46, %v4446_v19  ;;  %v8473_v6 = vpack.c.bf16 %v4447_v13, %v4445_v52  ;;  %v4798_v52 = vsel %vm352_vm2, %v11797_v2, %v11763_v8  ;;  %v4805_v19 = vld [vmem:[%s13580_s2 + $0x260] sm:$0xff]  ;;  %v12039_v8 = vld [vmem:[%s13580_s2 + $0x248] sm:$0xff]  ;;  %v4797_v2 = vsel %vm352_vm2, %v11793_v59, %v11759_v54 }
 0x963   : > { %v4812_v54 = vmul.f32 %v12012_v40, %v4798_v52  ;;  %v4813_v59 = vmul.f32 %v4805_v19, %v4795_v26  ;;  %v4814_v13 = vmul.f32 %v4806_v39, %v4799_v14  ;;  %v4810_v5 = vmul.f32 %v12039_v8, %v4797_v2 }
 0x964   : > { %5241 = vmatprep.subr.bf16.mxu1 %v8472_v41  ;;  %v8476_v21 = vpack.c.bf16 %v4880_v49, %v4878_v3  ;;  %v12091_v49 = vld [vmem:[%s13580_s2 + $0x1e0] sm:$0xff]  ;;  %v4746_v52 = vmul.f32 %v4738_v16, %v4731_v62  ;;  %v4943_v62 = vld [vmem:[%s13580_s2 + $0x330] sm:$0xff] }
 0x965   : > { %5242 = vmatpush1.bf16.msra.mxu1 %v8473_v6  ;;  %v8480_v26 = vpack.c.bf16 %v4812_v54, %v4810_v5  ;;  %v8481_v54 = vpack.c.bf16 %v4811_v18, %v12048_v27  ;;  %v4942_v5 = vld [vmem:[%s13580_s2 + $0x328] sm:$0xff]  ;;  %v12157_v18 = vld [vmem:[%s13580_s2 + $0x300] sm:$0xff] }
 0x966   : > { %v11985_v29 = vpop.permute.xlu0 %4917  ;;  %v11987_v28 = vpop.permute.xlu1 %4915  ;;  %5243 = vmatprep.subr.bf16.mxu1 %v8474_v61  ;;  %v12096_v61 = vld [vmem:[%s13580_s2 + $0x1e8] sm:$0xff] }
 0x969   : > { %5244 = vmatpush1.bf16.msra.mxu1 %v8475_v24  ;;  %v4730_v24 = vsel %vm332_vm1, %v11897_v45, %v11847_v4 }
 0x96a   : > { %v12005_v56 = vpop.permute.xlu0 %4925  ;;  %v12007_v12 = vpop.permute.xlu1 %4923  ;;  %5245 = vmatprep.subr.bf16.mxu1 %v11989_v10 }
 0x96d   : > { %5246 = vmatpush1.bf16.msra.mxu1 %v12045_v34 }
 0x96e   : > { %v4914_v46 = vpop.permute.xlu0 %4913  ;;  %v4792_v63 = vpop.permute.xlu1 %4791  ;;  %5247 = vmatprep.subr.bf16.mxu1 %v8476_v21  ;;  %v12162_v21 = vld [vmem:[%s13580_s2 + $0x308] sm:$0xff] }
 0x96f   : > { %v4796_v17 = vsel %vm352_vm2, %v11807_v53, %v4792_v63  ;;  %v4800_v47 = vsel %vm352_vm2, %v4792_v63, %v11807_v53  ;;  %v4727_v53 = vsel %vm332_vm1, %v11805_v36, %v11945_v9  ;;  %v4725_v36 = vsel %vm332_vm1, %v11839_v38, %v11953_v31  ;;  %v4941_v63 = vld [vmem:[%s13580_s2 + $0x320] sm:$0xff] }
 0x970   : > { %v4815_v58 = vmul.f32 %v4807_v30, %v4796_v17  ;;  %v4816_v37 = vmul.f32 %v4808_v32, %v4800_v47  ;;  %v4729_v9 = vsel %vm332_vm1, %v11953_v31, %v11839_v38  ;;  %v4739_v38 = vld [vmem:[%s13580_s2 + $0x210] sm:$0xff]  ;;  %v4740_v31 = vld [vmem:[%s13580_s2 + $0x218] sm:$0xff]  ;;  %v4745_v25 = vmul.f32 %v4737_v0, %v4727_v53 }
 0x971   : > { %5248 = vmatpush2.bf16.msra.mxu1 %v8477_v20  ;;  %v12126_v14 = vmul.f32 %v12091_v49, %v4725_v36  ;;  %v4742_v2 = vmul.f32 %v12096_v61, %v4729_v9  ;;  %v4743_v30 = vmul.f32 %v12086_v55, %v4726_v33  ;;  %v4744_v32 = vmul.f32 %v12109_v57, %v4730_v24  ;;  %v12176_v53 = vld [vmem:[%s13580_s2 + $0x318] sm:$0xff] }
 0x972   : > { %v4922_v41 = vpop.permute.xlu0 %4921  ;;  %v12067_v6 = vpop.permute.xlu1 %4619  ;;  %v8478_v15 = vpack.c.bf16 %v4816_v37, %v4814_v13  ;;  %v8479_v3 = vpack.c.bf16 %v4815_v58, %v4813_v59  ;;  %v4935_v17 = vsel %vm392_vm7, %v12005_v56, %v11985_v29  ;;  %v4944_v36 = vld [vmem:[%s13580_s2 + $0x338] sm:$0xff] }
 0x973   : > { %v4929_v58 = vsel %vm392_vm7, %v4914_v46, %v4922_v41  ;;  %v4933_v37 = vsel %vm392_vm7, %v4922_v41, %v4914_v46  ;;  %v4950_v16 = vmul.f32 %v4942_v5, %v4935_v17  ;;  %v4930_v46 = vsel %vm392_vm7, %v11987_v28, %v12007_v12 }
 0x974   : > { %5249 = vmatprep.subr.bf16.mxu1 %v8478_v15  ;;  %v4934_v41 = vsel %vm392_vm7, %v12007_v12, %v11987_v28  ;;  %v4945_v9 = vmul.f32 %v12157_v18, %v4929_v58  ;;  %v4946_v15 = vmul.f32 %v12162_v21, %v4933_v37  ;;  %v8484_v12 = vpack.c.bf16 %v4744_v32, %v4742_v2  ;;  %v4641_v2 = vld [vmem:[%s13580_s2 + $0x140] sm:$0xff]  ;;  %v4875_v58 = vld [vmem:[%s13580_s2 + $0x2d0] sm:$0xff]  ;;  %v4876_v37 = vld [vmem:[%s13580_s2 + $0x2d8] sm:$0xff] }
 0x975   : > { %5250 = vmatpush2.bf16.msra.mxu1 %v8479_v3 }
 0x976   : > { %v4618_v19 = vpop.permute.xlu0 %4617  ;;  %v4724_v39 = vpop.permute.xlu1 %4723  ;;  %5251 = vmatprep.subr.bf16.mxu1 %v8480_v26  ;;  %v4644_v26 = vld [vmem:[%s13580_s2 + $0x158] sm:$0xff] }
 0x977   : > { %v4728_v4 = vsel %vm332_vm1, %v11809_v35, %v4724_v39  ;;  %v4732_v45 = vsel %vm332_vm1, %v4724_v39, %v11809_v35  ;;  %v4931_v35 = vsel %vm392_vm7, %v11985_v29, %v12005_v56  ;;  %v12171_v29 = vld [vmem:[%s13580_s2 + $0x310] sm:$0xff] }
 0x978   : > { %v4747_v59 = vmul.f32 %v4739_v38, %v4728_v4  ;;  %v4748_v13 = vmul.f32 %v4740_v31, %v4732_v45  ;;  %v4949_v0 = vmul.f32 %v4941_v63, %v4931_v35  ;;  %v4947_v38 = vmul.f32 %v12171_v29, %v4930_v46  ;;  %v4643_v39 = vld [vmem:[%s13580_s2 + $0x150] sm:$0xff]  ;;  %v4642_v45 = vld [vmem:[%s13580_s2 + $0x148] sm:$0xff] }
 0x979   : > { %5252 = vmatpush2.bf16.msra.mxu1 %v8481_v54  ;;  %v4948_v31 = vmul.f32 %v12176_v53, %v4934_v41  ;;  %v8485_v4 = vpack.c.bf16 %v4743_v30, %v12126_v14 }
 0x97a   : > { %v4626_v47 = vpop.permute.xlu0 %4625  ;;  %v12152_v27 = vpop.permute.xlu1 %4851  ;;  %v8482_v56 = vpack.c.bf16 %v4748_v13, %v4746_v52  ;;  %v8483_v20 = vpack.c.bf16 %v4747_v59, %v4745_v25 }
 0x97b   : > { %v4631_v32 = vsel %vm303_vm3, %v4618_v19, %v4626_v47  ;;  %v4635_v59 = vsel %vm303_vm3, %v4626_v47, %v4618_v19 }
 0x97c   : > { %5253 = vmatprep.subr.bf16.mxu1 %v8482_v56  ;;  %v4649_v17 = vmul.f32 %v4641_v2, %v4635_v59  ;;  %v4650_v47 = vmul.f32 %v4642_v45, %v4631_v32 }
 0x97d   : > { %5254 = vmatpush2.bf16.msra.mxu1 %v8483_v20 }
 0x97e   : > { %v4850_v3 = vpop.permute.xlu0 %4849  ;;  %v4928_v33 = vpop.permute.xlu1 %4927  ;;  %5255 = vmatprep.subr.bf16.mxu1 %v8484_v12  ;;  %v8304_v12 = vld [vmem:[%s13579_s1 + $0x148] ss:$16 sps:$4 sm:$0xff]  }
 0x97f   : > { %v4932_v24 = vsel %vm392_vm7, %v11955_v60, %v4928_v33  ;;  %v4936_v28 = vsel %vm392_vm7, %v4928_v33, %v11955_v60  ;;  %v8486_v60 = vpack.c.bf16 %v11684_v43, %v11678_v1  ;;  %v4873_v1 = vld [vmem:[%s13580_s2 + $0x2c0] sm:$0xff]  ;;  %v4874_v43 = vld [vmem:[%s13580_s2 + $0x2c8] sm:$0xff] }
 0x980   : > { %v4951_v25 = vmul.f32 %v4943_v62, %v4932_v24  ;;  %v4952_v52 = vmul.f32 %v4944_v36, %v4936_v28  ;;  %v8490_v36 = vpack.c.bf16 %v11632_v42, %v11626_v50  ;;  %v8493_v50 = vpack.c.bf16 %v4947_v38, %v4945_v9 }
 0x981   : > { %5256 = vmatpush2.bf16.msra.mxu1 %v8485_v4 }
 0x982   : > { %v4858_v13 = vpop.permute.xlu0 %4857  ;;  %v4628_v54 = vpop.permute.xlu1 %4627  ;;  %5257 = vmatprep.subr.bf16.mxu1 %v8486_v60  ;;  %v8487_v56 = vpack.c.bf16 %v4952_v52, %v4950_v16  ;;  %v8488_v20 = vpack.c.bf16 %v4951_v25, %v4949_v0  ;;  %v8491_v16 = vpack.c.bf16 %v4948_v31, %v4946_v15  ;;  %v8301_v15 = vld [vmem:[%s13579_s1 + $0x140] ss:$16 sps:$4 sm:$0xff]  }
 0x983   : > { %v4863_v14 = vsel %vm372_vm8, %v4850_v3, %v4858_v13  ;;  %v4867_v30 = vsel %vm372_vm8, %v4858_v13, %v4850_v3  ;;  %v4632_v19 = vsel %vm303_vm3, %v12067_v6, %v4628_v54  ;;  %v4636_v63 = vsel %vm303_vm3, %v4628_v54, %v12067_v6 }
 0x984   : > { %v4651_v5 = vmul.f32 %v4643_v39, %v4636_v63  ;;  %v4652_v35 = vmul.f32 %v4644_v26, %v4632_v19  ;;  %v4881_v46 = vmul.f32 %v4873_v1, %v4863_v14  ;;  %v4882_v41 = vmul.f32 %v4874_v43, %v4867_v30  ;;  %5284 = vmatprep.subr.bf16.mxu0 %v8487_v56  ;;  %v8305_v14 = vld [vmem:[%s13579_s1 + $0x164] ss:$16 sps:$4 sm:$0xff]  }
 0x985   : > { %v8489_v6 = vpack.c.bf16 %v11660_v51, %v11650_v48  ;;  %5285 = vmatpush1.bf16.msra.mxu0 %v8488_v20  ;;  %v8492_v48 = vpack.c.bf16 %v11604_v22, %v11600_v11 }
 0x986   : > { %v4860_v62 = vpop.permute.xlu1 %4859  ;;  %5286 = vmatprep.subr.bf16.mxu0 %v8491_v16  ;;  %v8494_v42 = vpack.c.bf16 %v4652_v35, %v4650_v47 }
 0x987   : > { %v4864_v3 = vsel %vm372_vm8, %v12152_v27, %v4860_v62  ;;  %v4868_v33 = vsel %vm372_vm8, %v4860_v62, %v12152_v27  ;;  %5258 = vmatpush2.bf16.msra.mxu1 %v8489_v6  ;;  %v8497_v27 = vpack.c.bf16 %v4651_v5, %v4649_v17 }
 0x988   : > { %v4883_v0 = vmul.f32 %v4875_v58, %v4864_v3  ;;  %v4884_v24 = vmul.f32 %v4876_v37, %v4868_v33  ;;  %5259 = vmatprep.subr.bf16.mxu1 %v8490_v36 }
 0x989   : > { %5287 = vmatpush1.bf16.msra.mxu0 %v8493_v50 }
 0x98a   : > { %v8495_v51 = vpack.c.bf16 %v4884_v24, %v4882_v41  ;;  %v8496_v28 = vpack.c.bf16 %v4883_v0, %v4881_v46 }
 0x98b   : > { %5260 = vmatpush2.bf16.msra.mxu1 %v8492_v48 }
 0x98c   : > { %5261 = vmatprep.subr.bf16.mxu1 %v8494_v42  ;;  %5288 = vmatprep.subr.bf16.mxu0 %v8495_v51 }
 0x98d   : > { %5289 = vmatpush1.bf16.msra.mxu0 %v8496_v28 }
 0x98f   : > { %5262 = vmatpush2.bf16.msra.mxu1 %v8497_v27 }
 0x990   : > { %7761 = vmatmul.mubr.msk.bf16.vlgmr.msra.gmra.mxu0 %vm1923_vm9, %v8304_v12 }
 0x991   : > { %7804 = vmatprep.mubr.msk.bf16.mxu0 %vm539_vm0, %v8305_v14  ;;  %v12425_v14 = vld [vmem:[%s13580_s2 + $0xc8] sm:$0xff] }
 0x992   : > { %5264 = vmatmul.mubr.bf16.vlgmr.msra.gmra.mxu1 %v8301_v15 }
 0xa50   : > { %v5308_v22 = vpop.f32.mrf.mxu0 }
 0xa52   : > { %v5265_v11 = vpop.f32.mrf.mxu1  ;;  %v5310_v31 = vpop.f32.mrf.mxu0 }
 0xa53   : > { %v5309_v9 = vadd.f32 %v5308_v22, %v5265_v11 }
 0xa54   : > { %v5267_v38 = vpop.f32.mrf.mxu1  ;;  %v5312_v26 = vpop.f32.mrf.mxu0 }
 0xa55   : > { %v12265_v25 = vmax.f32 %v5309_v9, 0.0  ;;  %v5311_v52 = vadd.f32 %v5310_v31, %v5267_v38 }
 0xa56   : > { %v5269_v39 = vpop.f32.mrf.mxu1  ;;  %v5314_v45 = vpop.f32.mrf.mxu0 }
 0xa57   : > { %v12268_v4 = vmax.f32 %v5311_v52, 0.0  ;;  %v5313_v60 = vadd.f32 %v5312_v26, %v5269_v39  ;;  %5510 = vrot.lane.b32.xlu0 %v12265_v25, %s13705_s14  ;;  %v12408_v39 = vld [vmem:[%s13580_s2 + $0x130] sm:$0xff]  ;;  %v12413_v26 = vld [vmem:[%s13580_s2 + $0x138] sm:$0xff] }
 0xa58   : > { %v5271_v2 = vpop.f32.mrf.mxu1 }
 0xa59   : > { %v12272_v32 = vmax.f32 %v5313_v60, 0.0  ;;  %v5315_v59 = vadd.f32 %v5314_v45, %v5271_v2  ;;  %v5323_v13 = vcombine.low %v12265_v25, %v12268_v4 }
 0xa5b   : > { %v12276_v54 = vmax.f32 %v5315_v59, 0.0  ;;  %5476 = vrot.lane.b32.xlu0 %v12265_v25, %s13706_s20  ;;  %5512 = vrot.lane.b32.xlu1 %v12272_v32, %s13705_s14  ;;  %5325 = vst [vmem:[%s12284_s28] sm:$0xff] %v5323_v13  ;;  %v8499_v43 = vpack.c.bf16 %v12272_v32, %v12265_v25  ;;  %v12420_v13 = vld [vmem:[%s13580_s2 + $0xc0] sm:$0xff] }
 0xa5d   : > { %v8498_v1 = vpack.c.bf16 %v12276_v54, %v12268_v4 }
 0xa5f   : > { %5428 = vrot.lane.b32.xlu0 %v12265_v25, %s8665_s8  ;;  %5478 = vrot.lane.b32.xlu1 %v12272_v32, %s13706_s20 }
 0xa63   : > { %5394 = vrot.lane.b32.xlu0 %v12265_v25, %s8666_s9  ;;  %5430 = vrot.lane.b32.xlu1 %v12272_v32, %s8665_s8 }
 0xa67   : > { %5360 = vrot.lane.b32.xlu0 %v12265_v25, %s13630_s10  ;;  %5396 = vrot.lane.b32.xlu1 %v12272_v32, %s8666_s9 }
 0xa6b   : > { %5326 = vrot.lane.b32.xlu0 %v12265_v25, %s13628_s11  ;;  %5362 = vrot.lane.b32.xlu1 %v12272_v32, %s13630_s10 }
 0xa6f   : > { %5514 = vrot.lane.b32.xlu0 %v12268_v4, %s13705_s14  ;;  %5328 = vrot.lane.b32.xlu1 %v12272_v32, %s13628_s11 }
 0xa73   : > { %5480 = vrot.lane.b32.xlu0 %v12268_v4, %s13706_s20  ;;  %5516 = vrot.lane.b32.xlu1 %v12276_v54, %s13705_s14 }
 0xa77   : > { %5578 = vrot.lane.b32.xlu0 %v12265_v25, %s13707_s22  ;;  %5482 = vrot.lane.b32.xlu1 %v12276_v54, %s13706_s20 }
 0xa7b   : > { %5432 = vrot.lane.b32.xlu0 %v12268_v4, %s8665_s8  ;;  %5580 = vrot.lane.b32.xlu1 %v12272_v32, %s13707_s22 }
 0xa7f   : > { %5398 = vrot.lane.b32.xlu0 %v12268_v4, %s8666_s9  ;;  %5434 = vrot.lane.b32.xlu1 %v12276_v54, %s8665_s8 }
 0xa83   : > { %5364 = vrot.lane.b32.xlu0 %v12268_v4, %s13630_s10  ;;  %5400 = vrot.lane.b32.xlu1 %v12276_v54, %s8666_s9 }
 0xa87   : > { %5330 = vrot.lane.b32.xlu0 %v12268_v4, %s13628_s11  ;;  %5366 = vrot.lane.b32.xlu1 %v12276_v54, %s13630_s10 }
 0xa8b   : > { %5582 = vrot.lane.b32.xlu0 %v12268_v4, %s13707_s22  ;;  %5332 = vrot.lane.b32.xlu1 %v12276_v54, %s13628_s11 }
 0xa8f   : > { %5544 = vrot.lane.b32.xlu0 %v12265_v25, %s13626_s13  ;;  %5546 = vrot.lane.b32.xlu1 %v12272_v32, %s13626_s13 }
 0xa93   : > { %5548 = vrot.lane.b32.xlu0 %v12268_v4, %s13626_s13  ;;  %5584 = vrot.lane.b32.xlu1 %v12276_v54, %s13707_s22  ;;  %v12455_v4 = vld [vmem:[%s13580_s2 + $0x60] sm:$0xff] }
 0xa97   : > { %5550 = vrot.lane.b32.xlu1 %v12276_v54, %s13626_s13  ;;  %v12460_v54 = vld [vmem:[%s13580_s2 + $0x68] sm:$0xff] }
 0xac9   : > { %v5511_v30 = vpop.permute.xlu0 %5510 }
 0xacd   : > { %v5477_v19 = vpop.permute.xlu0 %5476  ;;  %v5513_v63 = vpop.permute.xlu1 %5512 }
 0xad1   : > { %v5429_v5 = vpop.permute.xlu0 %5428  ;;  %v5479_v35 = vpop.permute.xlu1 %5478 }
 0xad5   : > { %v5395_v17 = vpop.permute.xlu0 %5394  ;;  %v5431_v47 = vpop.permute.xlu1 %5430 }
 0xad9   : > { %v12353_v58 = vpop.permute.xlu0 %5360  ;;  %v12355_v37 = vpop.permute.xlu1 %5396 }
 0xadd   : > { %v12357_v56 = vpop.permute.xlu0 %5326  ;;  %v12359_v20 = vpop.permute.xlu1 %5362 }
 0xae1   : > { %v5515_v46 = vpop.permute.xlu0 %5514  ;;  %v12361_v41 = vpop.permute.xlu1 %5328 }
 0xae2   : > { %v5518_v62 = vsel %vm352_vm2, %v5511_v30, %v5515_v46  ;;  %v5520_v6 = vsel %vm352_vm2, %v5515_v46, %v5511_v30 }
 0xae3   : > { %v5526_v36 = vmul.f32 %v5518_v62, %v11994_v44  ;;  %v5527_v3 = vmul.f32 %v5520_v6, %v12039_v8  ;;  %v12443_v62 = vld [vmem:[%s13580_s2 + $0xd0] sm:$0xff] }
 0xae5   : > { %v5481_v33 = vpop.permute.xlu0 %5480  ;;  %v5517_v16 = vpop.permute.xlu1 %5516 }
 0xae6   : > { %v5484_v0 = vsel %vm332_vm1, %v5477_v19, %v5481_v33  ;;  %v5486_v24 = vsel %vm332_vm1, %v5481_v33, %v5477_v19  ;;  %v5519_v48 = vsel %vm352_vm2, %v5513_v63, %v5517_v16  ;;  %v5521_v50 = vsel %vm352_vm2, %v5517_v16, %v5513_v63 }
 0xae7   : > { %v5528_v42 = vmul.f32 %v5519_v48, %v12003_v23  ;;  %v5529_v44 = vmul.f32 %v5521_v50, %v12012_v40  ;;  %v5492_v8 = vmul.f32 %v5484_v0, %v12091_v49  ;;  %v5493_v51 = vmul.f32 %v5486_v24, %v12096_v61  ;;  %v12394_v49 = vld [vmem:[%s13580_s2 + $0x120] sm:$0xff]  ;;  %v12399_v61 = vld [vmem:[%s13580_s2 + $0x128] sm:$0xff]  ;;  %v12487_v50 = vld [vmem:[%s13580_s2 + $0x78] sm:$0xff] }
 0xae9   : > { %v12381_v28 = vpop.permute.xlu0 %5578  ;;  %v5483_v27 = vpop.permute.xlu1 %5482  ;;  %v8500_v23 = vpack.c.bf16 %v5529_v44, %v5527_v3  ;;  %v8501_v9 = vpack.c.bf16 %v5528_v42, %v5526_v36 }
 0xaea   : > { %v5485_v15 = vsel %vm332_vm1, %v5479_v35, %v5483_v27  ;;  %v5487_v12 = vsel %vm332_vm1, %v5483_v27, %v5479_v35 }
 0xaeb   : > { %v5494_v11 = vmul.f32 %v5485_v15, %v12086_v55  ;;  %v5495_v22 = vmul.f32 %v5487_v12, %v12109_v57  ;;  %5760 = vmatprep.subr.bf16.mxu0 %v8500_v23 }
 0xaec   : > { %5761 = vmatpush1.bf16.msra.mxu0 %v8501_v9  ;;  %v12518_v9 = vld [vmem:[%s13580_s2 + $0x10] sm:$0xff] }
 0xaed   : > { %v5433_v40 = vpop.permute.xlu0 %5432  ;;  %v12389_v38 = vpop.permute.xlu1 %5580  ;;  %v8502_v31 = vpack.c.bf16 %v5495_v22, %v5493_v51  ;;  %v8503_v52 = vpack.c.bf16 %v5494_v11, %v5492_v8  ;;  %v12494_v8 = vld [vmem:[%s13580_s2] sm:$0xff]  ;;  %v12499_v51 = vld [vmem:[%s13580_s2 + $0x8] sm:$0xff] }
 0xaee   : > { %v5436_v55 = vsel %vm303_vm3, %v5429_v5, %v5433_v40  ;;  %v5438_v57 = vsel %vm303_vm3, %v5433_v40, %v5429_v5 }
 0xaef   : > { %v5444_v60 = vmul.f32 %v12394_v49, %v5438_v57  ;;  %v5445_v2 = vmul.f32 %v12399_v61, %v5436_v55  ;;  %5762 = vmatprep.subr.bf16.mxu0 %v8502_v31 }
 0xaf0   : > { %5763 = vmatpush1.bf16.msra.mxu0 %v8503_v52 }
 0xaf1   : > { %v5399_v45 = vpop.permute.xlu0 %5398  ;;  %v5435_v59 = vpop.permute.xlu1 %5434  ;;  %5764 = vmatprep.subr.bf16.mxu0 %v8498_v1 }
 0xaf2   : > { %v5402_v30 = vsel %vm283_vm4, %v5395_v17, %v5399_v45  ;;  %v5404_v19 = vsel %vm283_vm4, %v5399_v45, %v5395_v17  ;;  %v5437_v63 = vsel %vm303_vm3, %v5431_v47, %v5435_v59  ;;  %v5439_v5 = vsel %vm303_vm3, %v5435_v59, %v5431_v47  ;;  %v12448_v17 = vld [vmem:[%s13580_s2 + $0xd8] sm:$0xff] }
 0xaf3   : > { %v5446_v35 = vmul.f32 %v12408_v39, %v5439_v5  ;;  %v5447_v46 = vmul.f32 %v12413_v26, %v5437_v63  ;;  %v5410_v47 = vmul.f32 %v12420_v13, %v5404_v19  ;;  %v5411_v6 = vmul.f32 %v12425_v14, %v5402_v30 }
 0xaf4   : > { %5765 = vmatpush1.bf16.msra.mxu0 %v8499_v43 }
 0xaf5   : > { %v5365_v36 = vpop.permute.xlu0 %5364  ;;  %v5401_v3 = vpop.permute.xlu1 %5400  ;;  %v8504_v42 = vpack.c.bf16 %v5447_v46, %v5445_v2 }
 0xaf6   : > { %v5368_v1 = vsel %vm263_vm5, %v12353_v58, %v5365_v36  ;;  %v5370_v33 = vsel %vm263_vm5, %v5365_v36, %v12353_v58  ;;  %v5403_v16 = vsel %vm283_vm4, %v12355_v37, %v5401_v3  ;;  %v5405_v0 = vsel %vm283_vm4, %v5401_v3, %v12355_v37  ;;  %v12482_v58 = vld [vmem:[%s13580_s2 + $0x70] sm:$0xff] }
 0xaf7   : > { %v5412_v24 = vmul.f32 %v12443_v62, %v5405_v0  ;;  %v5413_v48 = vmul.f32 %v12448_v17, %v5403_v16  ;;  %v8505_v37 = vpack.c.bf16 %v5446_v35, %v5444_v60  ;;  %v5376_v44 = vmul.f32 %v12455_v4, %v5370_v33  ;;  %5766 = vmatprep.subr.bf16.mxu0 %v8504_v42  ;;  %v12546_v33 = vld [vmem:[%s13580_s2 + $0x2a0] sm:$0xff]  ;;  %v12568_v42 = vld [vmem:[%s13580_s2 + $0x2b0] sm:$0xff] }
 0xaf8   : > { %v5377_v25 = vmul.f32 %v12460_v54, %v5368_v1 }
 0xaf9   : > { %v5331_v32 = vpop.permute.xlu0 %5330  ;;  %v5367_v43 = vpop.permute.xlu1 %5366  ;;  %5767 = vmatpush1.bf16.msra.mxu0 %v8505_v37  ;;  %v8506_v40 = vpack.c.bf16 %v5413_v48, %v5411_v6  ;;  %v8507_v55 = vpack.c.bf16 %v5412_v24, %v5410_v47  ;;  %v12573_v37 = vld [vmem:[%s13580_s2 + $0x2b8] sm:$0xff] }
 0xafa   : > { %v5334_v27 = vsel %vm243_vm6, %v12357_v56, %v5331_v32  ;;  %v5336_v15 = vsel %vm243_vm6, %v5331_v32, %v12357_v56  ;;  %v5369_v12 = vsel %vm263_vm5, %v12359_v20, %v5367_v43  ;;  %v5371_v11 = vsel %vm263_vm5, %v5367_v43, %v12359_v20  ;;  %v12523_v56 = vld [vmem:[%s13580_s2 + $0x18] sm:$0xff] }
 0xafb   : > { %v5378_v22 = vmul.f32 %v12482_v58, %v5371_v11  ;;  %v5379_v23 = vmul.f32 %v12487_v50, %v5369_v12  ;;  %v5342_v20 = vmul.f32 %v12494_v8, %v5336_v15  ;;  %v5343_v57 = vmul.f32 %v12499_v51, %v5334_v27  ;;  %5768 = vmatprep.subr.bf16.mxu0 %v8506_v40  ;;  %v8307_v11 = vld [vmem:[%s13579_s1 + $0x160] ss:$16 sps:$4 sm:$0xff]  }
 0xafd   : > { %v5583_v31 = vpop.permute.xlu0 %5582  ;;  %v5333_v52 = vpop.permute.xlu1 %5332  ;;  %5769 = vmatpush1.bf16.msra.mxu0 %v8507_v55  ;;  %v8508_v30 = vpack.c.bf16 %v5379_v23, %v5377_v25  ;;  %v8509_v19 = vpack.c.bf16 %v5378_v22, %v5376_v44  ;;  %v8308_v22 = vld [vmem:[%s13579_s1 + $0x184] ss:$16 sps:$4 sm:$0xff]   ;;  %v13708_v23 = vmov 0  }
 0xafe   : > { %v5335_v60 = vsel %vm243_vm6, %v12361_v41, %v5333_v52  ;;  %v5337_v2 = vsel %vm243_vm6, %v5333_v52, %v12361_v41  ;;  %v5586_v35 = vsel %vm392_vm7, %v12381_v28, %v5583_v31  ;;  %v5588_v46 = vsel %vm392_vm7, %v5583_v31, %v12381_v28  ;;  %v12551_v28 = vld [vmem:[%s13580_s2 + $0x2a8] sm:$0xff] }
 0xaff   : > { %v5344_v45 = vmul.f32 %v12518_v9, %v5337_v2  ;;  %v5345_v59 = vmul.f32 %v12523_v56, %v5335_v60  ;;  %5770 = vmatprep.subr.bf16.mxu0 %v8508_v30  ;;  %v5594_v6 = vmul.f32 %v5586_v35, %v12157_v18  ;;  %v5595_v36 = vmul.f32 %v5588_v46, %v12162_v21  ;;  %v8313_v46 = vld [vmem:[%s13579_s1 + $0x1a4] ss:$16 sps:$4 sm:$0xff]  }
 0xb00   : > { %6667 = vmatprep.mubr.bf16.mxu1 %v8313_v46 }
 0xb01   : > { %v5545_v63 = vpop.permute.xlu0 %5544  ;;  %v5547_v5 = vpop.permute.xlu1 %5546  ;;  %5771 = vmatpush1.bf16.msra.mxu0 %v8509_v19  ;;  %v8510_v41 = vpack.c.bf16 %v5345_v59, %v5343_v57  ;;  %v8511_v47 = vpack.c.bf16 %v5344_v45, %v5342_v20 }
 0xb03   : > { %5772 = vmatprep.subr.bf16.mxu0 %v8510_v41 }
 0xb05   : > { %v5549_v3 = vpop.permute.xlu0 %5548  ;;  %v5585_v1 = vpop.permute.xlu1 %5584  ;;  %5773 = vmatpush1.bf16.msra.mxu0 %v8511_v47 }
 0xb06   : > { %v5552_v16 = vsel %vm372_vm8, %v5545_v63, %v5549_v3  ;;  %v5554_v18 = vsel %vm372_vm8, %v5549_v3, %v5545_v63  ;;  %v5587_v21 = vsel %vm392_vm7, %v12389_v38, %v5585_v1  ;;  %v5589_v0 = vsel %vm392_vm7, %v5585_v1, %v12389_v38  ;;  %5774 = vmatprep.subr.bf16.mxu0 %v11989_v10 }
 0xb07   : > { %v5596_v24 = vmul.f32 %v5587_v21, %v12171_v29  ;;  %v5597_v48 = vmul.f32 %v5589_v0, %v12176_v53  ;;  %v5560_v44 = vmul.f32 %v12546_v33, %v5552_v16  ;;  %v5561_v38 = vmul.f32 %v12551_v28, %v5554_v18 }
 0xb09   : > { %v5551_v29 = vpop.permute.xlu1 %5550  ;;  %5775 = vmatpush1.bf16.msra.mxu0 %v12045_v34  ;;  %v8512_v27 = vpack.c.bf16 %v5597_v48, %v5595_v36  ;;  %v8513_v15 = vpack.c.bf16 %v5596_v24, %v5594_v6  ;;  %v8310_v34 = vld [vmem:[%s13579_s1 + $0x180] ss:$16 sps:$4 sm:$0xff]  }
 0xb0a   : > { %v5553_v53 = vsel %vm372_vm8, %v5547_v5, %v5551_v29  ;;  %v5555_v25 = vsel %vm372_vm8, %v5551_v29, %v5547_v5 }
 0xb0b   : > { %v5562_v32 = vmul.f32 %v12568_v42, %v5553_v53  ;;  %v5563_v43 = vmul.f32 %v12573_v37, %v5555_v25  ;;  %5788 = vmatprep.subr.bf16.mxu0 %v8512_v27 }
 0xb0d   : > { %5789 = vmatpush2.bf16.msra.mxu0 %v8513_v15  ;;  %v8514_v10 = vpack.c.bf16 %v5563_v43, %v5561_v38  ;;  %v8515_v12 = vpack.c.bf16 %v5562_v32, %v5560_v44 }
 0xb0f   : > { %5790 = vmatprep.subr.bf16.mxu0 %v8514_v10 }
 0xb11   : > { %5791 = vmatpush2.bf16.msra.mxu0 %v8515_v12 }
 0xb14   : > { %5793 = vmatmul.mubr.bf16.vlgmr.msra.gmra.mxu0 %v8307_v11 }
 0xb15   : > { %7805 = vmatprep.mubr.msk.bf16.mxu0 %vm539_vm0, %v8308_v22 }
 0xb1c   : > { %5803 = vmatmul.mubr.bf16.gmra.mxu0 %v8310_v34 }
 0xb1d   : > { %6710 = vmatprep.mubr.bf16.mxu0 %v13708_v23 }
 0xbd4   : > { %v12596_v40 = vpop.f32.mrf.mxu0 }
 0xbd5   : > { %6017 = vrot.lane.b32.xlu0 %v12596_v40, %s8665_s8 }
 0xbd6   : > { %v12600_v55 = vpop.f32.mrf.mxu0 }
 0xbd8   : > { %v12602_v20 = vpop.f32.mrf.mxu0 }
 0xbd9   : > { %5949 = vrot.lane.b32.xlu0 %v12596_v40, %s8666_s9  ;;  %6019 = vrot.lane.b32.xlu1 %v12602_v20, %s8665_s8 }
 0xbda   : > { %v12608_v57 = vpop.f32.mrf.mxu0 }
 0xbdc   : > { %v12610_v31 = vpop.f32.mrf.mxu0 }
 0xbdd   : > { %5881 = vrot.lane.b32.xlu0 %v12596_v40, %s13630_s10  ;;  %5951 = vrot.lane.b32.xlu1 %v12602_v20, %s8666_s9 }
 0xbde   : > { %v12616_v52 = vpop.f32.mrf.mxu0 }
 0xbe0   : > { %v12618_v60 = vpop.f32.mrf.mxu0 }
 0xbe1   : > { %5813 = vrot.lane.b32.xlu0 %v12596_v40, %s13628_s11  ;;  %5883 = vrot.lane.b32.xlu1 %v12602_v20, %s13630_s10 }
 0xbe2   : > { %v12624_v2 = vpop.f32.mrf.mxu0 }
 0xbe5   : > { %6249 = vrot.lane.b32.xlu0 %v12596_v40, %s13626_s13  ;;  %5815 = vrot.lane.b32.xlu1 %v12602_v20, %s13628_s11 }
 0xbe9   : > { %6181 = vrot.lane.b32.xlu0 %v12596_v40, %s13705_s14  ;;  %6251 = vrot.lane.b32.xlu1 %v12602_v20, %s13626_s13 }
 0xbed   : > { %6025 = vrot.lane.b32.xlu0 %v12600_v55, %s8665_s8  ;;  %6183 = vrot.lane.b32.xlu1 %v12602_v20, %s13705_s14 }
 0xbf1   : > { %5957 = vrot.lane.b32.xlu0 %v12600_v55, %s8666_s9  ;;  %6027 = vrot.lane.b32.xlu1 %v12608_v57, %s8665_s8 }
 0xbf5   : > { %5889 = vrot.lane.b32.xlu0 %v12600_v55, %s13630_s10  ;;  %5959 = vrot.lane.b32.xlu1 %v12608_v57, %s8666_s9 }
 0xbf9   : > { %5821 = vrot.lane.b32.xlu0 %v12600_v55, %s13628_s11  ;;  %5891 = vrot.lane.b32.xlu1 %v12608_v57, %s13630_s10 }
 0xbfd   : > { %6257 = vrot.lane.b32.xlu0 %v12600_v55, %s13626_s13  ;;  %5823 = vrot.lane.b32.xlu1 %v12608_v57, %s13628_s11 }
 0xc01   : > { %6189 = vrot.lane.b32.xlu0 %v12600_v55, %s13705_s14  ;;  %6259 = vrot.lane.b32.xlu1 %v12608_v57, %s13626_s13 }
 0xc05   : > { %6191 = vrot.lane.b32.xlu1 %v12608_v57, %s13705_s14  ;;  %5953 = vrot.lane.b32.xlu0 %v12610_v31, %s8666_s9 }
 0xc09   : > { %5885 = vrot.lane.b32.xlu0 %v12610_v31, %s13630_s10  ;;  %5955 = vrot.lane.b32.xlu1 %v12618_v60, %s8666_s9 }
 0xc0d   : > { %5817 = vrot.lane.b32.xlu0 %v12610_v31, %s13628_s11  ;;  %5887 = vrot.lane.b32.xlu1 %v12618_v60, %s13630_s10 }
 0xc11   : > { %6185 = vrot.lane.b32.xlu0 %v12610_v31, %s13705_s14  ;;  %5819 = vrot.lane.b32.xlu1 %v12618_v60, %s13628_s11 }
 0xc15   : > { %6117 = vrot.lane.b32.xlu0 %v12610_v31, %s13706_s20  ;;  %6187 = vrot.lane.b32.xlu1 %v12618_v60, %s13705_s14 }
 0xc19   : > { %5961 = vrot.lane.b32.xlu0 %v12616_v52, %s8666_s9  ;;  %6119 = vrot.lane.b32.xlu1 %v12618_v60, %s13706_s20 }
 0xc1d   : > { %6113 = vrot.lane.b32.xlu0 %v12596_v40, %s13706_s20  ;;  %5963 = vrot.lane.b32.xlu1 %v12624_v2, %s8666_s9 }
 0xc21   : > { %5893 = vrot.lane.b32.xlu0 %v12616_v52, %s13630_s10  ;;  %6115 = vrot.lane.b32.xlu1 %v12602_v20, %s13706_s20 }
 0xc25   : > { %5825 = vrot.lane.b32.xlu0 %v12616_v52, %s13628_s11  ;;  %5895 = vrot.lane.b32.xlu1 %v12624_v2, %s13630_s10  ;;  %s7193_s10 = scalar_lea.sflag [#allocation6], %s12263_s23 }
 0xc29   : > { %6193 = vrot.lane.b32.xlu0 %v12616_v52, %s13705_s14  ;;  %6123 = vrot.lane.b32.xlu1 %v12608_v57, %s13706_s20 }
 0xc2d   : > { %6125 = vrot.lane.b32.xlu0 %v12616_v52, %s13706_s20  ;;  %5827 = vrot.lane.b32.xlu1 %v12624_v2, %s13628_s11 }
 0xc31   : > { %6121 = vrot.lane.b32.xlu0 %v12600_v55, %s13706_s20  ;;  %6323 = vrot.lane.b32.xlu1 %v12618_v60, %s13707_s22 }
 0xc35   : > { %6321 = vrot.lane.b32.xlu0 %v12610_v31, %s13707_s22  ;;  %6319 = vrot.lane.b32.xlu1 %v12602_v20, %s13707_s22 }
 0xc39   : > { %6329 = vrot.lane.b32.xlu0 %v12616_v52, %s13707_s22  ;;  %6327 = vrot.lane.b32.xlu1 %v12608_v57, %s13707_s22 }
 0xc3d   : > { %6317 = vrot.lane.b32.xlu0 %v12596_v40, %s13707_s22  ;;  %6195 = vrot.lane.b32.xlu1 %v12624_v2, %s13705_s14 }
 0xc41   : > { %6325 = vrot.lane.b32.xlu0 %v12600_v55, %s13707_s22  ;;  %6023 = vrot.lane.b32.xlu1 %v12618_v60, %s8665_s8 }
 0xc45   : > { %6021 = vrot.lane.b32.xlu0 %v12610_v31, %s8665_s8  ;;  %6127 = vrot.lane.b32.xlu1 %v12624_v2, %s13706_s20 }
 0xc47   : > { %v6018_v30 = vpop.permute.xlu0 %6017 }
 0xc49   : > { %6029 = vrot.lane.b32.xlu0 %v12616_v52, %s8665_s8  ;;  %6255 = vrot.lane.b32.xlu1 %v12618_v60, %s13626_s13 }
 0xc4b   : > { %v5950_v19 = vpop.permute.xlu0 %5949  ;;  %v6020_v63 = vpop.permute.xlu1 %6019 }
 0xc4d   : > { %6253 = vrot.lane.b32.xlu0 %v12610_v31, %s13626_s13  ;;  %6331 = vrot.lane.b32.xlu1 %v12624_v2, %s13707_s22 }
 0xc4f   : > { %v5882_v5 = vpop.permute.xlu0 %5881  ;;  %v5952_v35 = vpop.permute.xlu1 %5951 }
 0xc51   : > { %6261 = vrot.lane.b32.xlu0 %v12616_v52, %s13626_s13  ;;  %6031 = vrot.lane.b32.xlu1 %v12624_v2, %s8665_s8 }
 0xc53   : > { %v5814_v41 = vpop.permute.xlu0 %5813  ;;  %v5884_v47 = vpop.permute.xlu1 %5883 }
 0xc55   : > { %6263 = vrot.lane.b32.xlu1 %v12624_v2, %s13626_s13  ;;  %s8672_s13 = smov [#allocation5]  }
 0xc56   : > { %s8574_s5 = sshll.u32 %s8672_s13, 4  ;;  %s8575_s5 = int_to_ptr.vmem [resolvable:$false] %s8574_s5 }
 0xc57   : > { %v6250_v6 = vpop.permute.xlu0 %6249  ;;  %v5816_v36 = vpop.permute.xlu1 %5815  ;;  %s8576_s29 = scalar_lea.vmem %s8575_s5, 256 }
 0xc5b   : > { %v12747_v3 = vpop.permute.xlu0 %6181  ;;  %v12749_v1 = vpop.permute.xlu1 %6251 }
 0xc5f   : > { %v6026_v16 = vpop.permute.xlu0 %6025  ;;  %v12751_v18 = vpop.permute.xlu1 %6183 }
 0xc60   : > { %v6033_v21 = vsel %vm303_vm3, %v6018_v30, %v6026_v16  ;;  %v6037_v0 = vsel %vm303_vm3, %v6026_v16, %v6018_v30 }
 0xc61   : > { %v6049_v24 = vmul.f32 %v6037_v0, %v12394_v49  ;;  %v6050_v48 = vmul.f32 %v6033_v21, %v12399_v61 }
 0xc63   : > { %v5958_v44 = vpop.permute.xlu0 %5957  ;;  %v6028_v38 = vpop.permute.xlu1 %6027 }
 0xc64   : > { %v5965_v29 = vsel %vm283_vm4, %v5950_v19, %v5958_v44  ;;  %v5969_v53 = vsel %vm283_vm4, %v5958_v44, %v5950_v19  ;;  %v6034_v25 = vsel %vm303_vm3, %v6020_v63, %v6028_v38  ;;  %v6038_v32 = vsel %vm303_vm3, %v6028_v38, %v6020_v63 }
 0xc65   : > { %v6051_v43 = vmul.f32 %v6038_v32, %v12408_v39  ;;  %v6052_v49 = vmul.f32 %v6034_v25, %v12413_v26  ;;  %v12770_v61 = vmul.f32 %v5969_v53, %v12420_v13  ;;  %v12773_v27 = vmul.f32 %v5965_v29, %v12425_v14 }
 0xc67   : > { %v5890_v15 = vpop.permute.xlu0 %5889  ;;  %v5960_v10 = vpop.permute.xlu1 %5959  ;;  %v8518_v14 = vpack.c.bf16 %v6052_v49, %v6050_v48  ;;  %v8519_v34 = vpack.c.bf16 %v6051_v43, %v6049_v24 }
 0xc68   : > { %v5897_v12 = vsel %vm263_vm5, %v5882_v5, %v5890_v15  ;;  %v5901_v11 = vsel %vm263_vm5, %v5890_v15, %v5882_v5  ;;  %v5966_v22 = vsel %vm283_vm4, %v5952_v35, %v5960_v10  ;;  %v5970_v39 = vsel %vm283_vm4, %v5960_v10, %v5952_v35 }
 0xc69   : > { %v12784_v26 = vmul.f32 %v5970_v39, %v12443_v62  ;;  %v12787_v13 = vmul.f32 %v5966_v22, %v12448_v17  ;;  %v12790_v23 = vmul.f32 %v5901_v11, %v12455_v4  ;;  %v12793_v30 = vmul.f32 %v5897_v12, %v12460_v54  ;;  %6635 = vmatprep.subr.bf16.mxu1 %v8518_v14  ;;  %v12882_v12 = vld [vmem:[%s13580_s2 + $0x250] sm:$0xff] }
 0xc6a   : > { %6636 = vmatpush1.bf16.msra.mxu1 %v8519_v34 }
 0xc6b   : > { %v5822_v19 = vpop.permute.xlu0 %5821  ;;  %v5892_v63 = vpop.permute.xlu1 %5891  ;;  %v8520_v46 = vpack.c.bf16 %v12787_v13, %v12773_v27 }
 0xc6c   : > { %v5829_v5 = vsel %vm243_vm6, %v5814_v41, %v5822_v19  ;;  %v5833_v62 = vsel %vm243_vm6, %v5822_v19, %v5814_v41  ;;  %v5898_v17 = vsel %vm263_vm5, %v5884_v47, %v5892_v63  ;;  %v5902_v35 = vsel %vm263_vm5, %v5892_v63, %v5884_v47 }
 0xc6d   : > { %v12804_v4 = vmul.f32 %v5902_v35, %v12482_v58  ;;  %v12807_v54 = vmul.f32 %v5898_v17, %v12487_v50  ;;  %v8521_v41 = vpack.c.bf16 %v12784_v26, %v12770_v61  ;;  %v12814_v16 = vmul.f32 %v5833_v62, %v12494_v8  ;;  %v5843_v61 = vld [vmem:[%s13580_s2 + $0x30] sm:$0xff]  ;;  %v5844_v26 = vld [vmem:[%s13580_s2 + $0x38] sm:$0xff] }
 0xc6e   : > { %v12817_v21 = vmul.f32 %v5829_v5, %v12499_v51 }
 0xc6f   : > { %v6258_v47 = vpop.permute.xlu0 %6257  ;;  %v5824_v0 = vpop.permute.xlu1 %5823 }
 0xc70   : > { %v6265_v58 = vsel %vm372_vm8, %v6250_v6, %v6258_v47  ;;  %v6269_v50 = vsel %vm372_vm8, %v6258_v47, %v6250_v6  ;;  %v5830_v24 = vsel %vm243_vm6, %v5816_v36, %v5824_v0  ;;  %v5834_v48 = vsel %vm243_vm6, %v5824_v0, %v5816_v36  ;;  %v12842_v6 = vld [vmem:[%s13580_s2 + $0x240] sm:$0xff]  ;;  %v12847_v36 = vld [vmem:[%s13580_s2 + $0x248] sm:$0xff] }
 0xc71   : > { %v12828_v8 = vmul.f32 %v6265_v58, %v12546_v33  ;;  %v12831_v51 = vmul.f32 %v6269_v50, %v12551_v28  ;;  %v12834_v44 = vmul.f32 %v5834_v48, %v12518_v9  ;;  %v12837_v38 = vmul.f32 %v5830_v24, %v12523_v56 }
 0xc72   : > { %v8522_v33 = vpack.c.bf16 %v12807_v54, %v12793_v30  ;;  %v13709_v30 = vpack.c.bf16 %v12804_v4, %v12790_v23  ;;  %v13085_v23 = vld [vmem:[%s13580_s2 + $0x318] sm:$0xff] }
 0xc73   : > { %v8168_v56 = vpack.c.bf16 %v12831_v51, %v12828_v8  ;;  %v6190_v28 = vpop.permute.xlu0 %6189  ;;  %v6260_v29 = vpop.permute.xlu1 %6259  ;;  %v13710_v4 = vpack.c.bf16 %v12837_v38, %v12817_v21 }
 0xc74   : > { %v6197_v53 = vsel %vm352_vm2, %v12747_v3, %v6190_v28  ;;  %v6201_v25 = vsel %vm352_vm2, %v6190_v28, %v12747_v3  ;;  %v6266_v32 = vsel %vm372_vm8, %v12749_v1, %v6260_v29  ;;  %v6270_v43 = vsel %vm372_vm8, %v6260_v29, %v12749_v1  ;;  %v12887_v1 = vld [vmem:[%s13580_s2 + $0x258] sm:$0xff]  ;;  %v5977_v28 = vld [vmem:[%s13580_s2 + $0xe0] sm:$0xff]  ;;  %v5978_v29 = vld [vmem:[%s13580_s2 + $0xe8] sm:$0xff] }
 0xc75   : > { %6313 = vst [vmem:[#allocation2 + $0x178] sm:$0xff] %v8168_v56  ;;  %v12868_v49 = vmul.f32 %v12842_v6, %v6197_v53  ;;  %v12871_v15 = vmul.f32 %v12847_v36, %v6201_v25  ;;  %v12874_v10 = vmul.f32 %v6266_v32, %v12568_v42  ;;  %v12877_v3 = vmul.f32 %v6270_v43, %v12573_v37  ;;  %v5979_v32 = vld [vmem:[%s13580_s2 + $0xf0] sm:$0xff]  ;;  %v5980_v43 = vld [vmem:[%s13580_s2 + $0xf8] sm:$0xff]  ;;  %v5909_v42 = vld [vmem:[%s13580_s2 + $0x80] sm:$0xff] }
 0xc77   : > { %v8164_v37 = vpack.c.bf16 %v12871_v15, %v12868_v49  ;;  %v8169_v22 = vpack.c.bf16 %v12877_v3, %v12874_v10  ;;  %v6192_v39 = vpop.permute.xlu1 %6191  ;;  %v5954_v14 = vpop.permute.xlu0 %5953 }
 0xc78   : > { %v6198_v34 = vsel %vm352_vm2, %v12751_v18, %v6192_v39  ;;  %v6202_v19 = vsel %vm352_vm2, %v6192_v39, %v12751_v18 }
 0xc79   : > { %6245 = vst [vmem:[#allocation2 + $0x190] sm:$0xff] %v8164_v37  ;;  %6314 = vst [vmem:[#allocation2 + $0xc8] sm:$0xff] %v8169_v22  ;;  %v12904_v63 = vmul.f32 %v12882_v12, %v6198_v34  ;;  %v12907_v5 = vmul.f32 %v12887_v1, %v6202_v19 }
 0xc7b   : > { %v8165_v62 = vpack.c.bf16 %v12907_v5, %v12904_v63  ;;  %v5886_v17 = vpop.permute.xlu0 %5885  ;;  %v5956_v35 = vpop.permute.xlu1 %5955 }
 0xc7d   : > { %6246 = vst [vmem:[#allocation2 + $0xb8] sm:$0xff] %v8165_v62 }
 0xc7f   : > { %v5818_v47 = vpop.permute.xlu0 %5817  ;;  %v5888_v0 = vpop.permute.xlu1 %5887 }
 0xc83   : > { %v6186_v58 = vpop.permute.xlu0 %6185  ;;  %v12911_v50 = vpop.permute.xlu1 %5819 }
 0xc87   : > { %v12913_v18 = vpop.permute.xlu0 %6117  ;;  %v12915_v24 = vpop.permute.xlu1 %6187 }
 0xc8b   : > { %v5962_v48 = vpop.permute.xlu0 %5961  ;;  %v12917_v56 = vpop.permute.xlu1 %6119 }
 0xc8c   : > { %v5967_v53 = vsel %vm283_vm4, %v5954_v14, %v5962_v48  ;;  %v5971_v25 = vsel %vm283_vm4, %v5962_v48, %v5954_v14 }
 0xc8d   : > { %v5985_v37 = vmul.f32 %v5977_v28, %v5971_v25  ;;  %v5986_v22 = vmul.f32 %v5978_v29, %v5967_v53  ;;  %v5910_v28 = vld [vmem:[%s13580_s2 + $0x88] sm:$0xff] }
 0xc8f   : > { %v12935_v39 = vpop.permute.xlu0 %6113  ;;  %v5964_v34 = vpop.permute.xlu1 %5963 }
 0xc90   : > { %v5968_v19 = vsel %vm283_vm4, %v5956_v35, %v5964_v34  ;;  %v5972_v62 = vsel %vm283_vm4, %v5964_v34, %v5956_v35 }
 0xc91   : > { %v5987_v14 = vmul.f32 %v5979_v32, %v5972_v62  ;;  %v5988_v48 = vmul.f32 %v5980_v43, %v5968_v19  ;;  %v5911_v32 = vld [vmem:[%s13580_s2 + $0x90] sm:$0xff]  ;;  %v5912_v43 = vld [vmem:[%s13580_s2 + $0x98] sm:$0xff] }
 0xc93   : > { %v5894_v45 = vpop.permute.xlu0 %5893  ;;  %v6116_v59 = vpop.permute.xlu1 %6115  ;;  %v8526_v25 = vpack.c.bf16 %v5988_v48, %v5986_v22  ;;  %v8527_v35 = vpack.c.bf16 %v5987_v14, %v5985_v37  ;;  %v6209_v22 = vld [vmem:[%s13580_s2 + $0x260] sm:$0xff]  ;;  %v12973_v14 = vld [vmem:[%s13580_s2 + $0x1f0] sm:$0xff]  ;;  %v5842_v48 = vld [vmem:[%s13580_s2 + $0x28] sm:$0xff] }
 0xc94   : > { %v5899_v29 = vsel %vm263_vm5, %v5886_v17, %v5894_v45  ;;  %v5903_v53 = vsel %vm263_vm5, %v5894_v45, %v5886_v17 }
 0xc95   : > { %v5917_v34 = vmul.f32 %v5909_v42, %v5903_v53  ;;  %v5918_v19 = vmul.f32 %v5910_v28, %v5899_v29  ;;  %6637 = vmatprep.subr.bf16.mxu1 %v8526_v25  ;;  %v6210_v42 = vld [vmem:[%s13580_s2 + $0x268] sm:$0xff] }
 0xc96   : > { %6638 = vmatpush1.bf16.msra.mxu1 %v8527_v35 }
 0xc97   : > { %v5826_v62 = vpop.permute.xlu0 %5825  ;;  %v5896_v11 = vpop.permute.xlu1 %5895  ;;  %6639 = vmatprep.subr.bf16.mxu1 %v8520_v46 }
 0xc98   : > { %v5900_v9 = vsel %vm263_vm5, %v5888_v0, %v5896_v11  ;;  %v5904_v45 = vsel %vm263_vm5, %v5896_v11, %v5888_v0  ;;  %v5831_v11 = vsel %vm243_vm6, %v5818_v47, %v5826_v62  ;;  %v5835_v27 = vsel %vm243_vm6, %v5826_v62, %v5818_v47  ;;  %v5841_v0 = vld [vmem:[%s13580_s2 + $0x20] sm:$0xff] }
 0xc99   : > { %v5919_v17 = vmul.f32 %v5911_v32, %v5904_v45  ;;  %v5920_v37 = vmul.f32 %v5912_v43, %v5900_v9  ;;  %v12978_v9 = vld [vmem:[%s13580_s2 + $0x1f8] sm:$0xff]  ;;  %v5849_v45 = vmul.f32 %v5841_v0, %v5835_v27  ;;  %v13049_v0 = vld [vmem:[%s13580_s2 + $0x1e8] sm:$0xff] }
 0xc9a   : > { %6640 = vmatpush1.bf16.msra.mxu1 %v8521_v41 }
 0xc9b   : > { %v6194_v13 = vpop.permute.xlu0 %6193  ;;  %v6124_v46 = vpop.permute.xlu1 %6123  ;;  %v8528_v41 = vpack.c.bf16 %v5920_v37, %v5918_v19  ;;  %v8529_v62 = vpack.c.bf16 %v5919_v17, %v5917_v34 }
 0xc9c   : > { %v6199_v28 = vsel %vm352_vm2, %v6186_v58, %v6194_v13  ;;  %v6203_v29 = vsel %vm352_vm2, %v6194_v13, %v6186_v58  ;;  %v6130_v53 = vsel %vm332_vm1, %v6116_v59, %v6124_v46  ;;  %v6134_v47 = vsel %vm332_vm1, %v6124_v46, %v6116_v59  ;;  %v6141_v58 = vld [vmem:[%s13580_s2 + $0x200] sm:$0xff]  ;;  %v6142_v59 = vld [vmem:[%s13580_s2 + $0x208] sm:$0xff] }
 0xc9d   : > { %v13001_v25 = vmul.f32 %v6209_v22, %v6199_v28  ;;  %v13003_v35 = vmul.f32 %v6210_v42, %v6203_v29  ;;  %v13006_v32 = vmul.f32 %v12973_v14, %v6130_v53  ;;  %v13009_v43 = vmul.f32 %v12978_v9, %v6134_v47  ;;  %6641 = vmatprep.subr.bf16.mxu1 %v8528_v41  ;;  %v6345_v41 = vld [vmem:[%s13580_s2 + $0x320] sm:$0xff] }
 0xc9e   : > { %v5850_v22 = vmul.f32 %v5842_v48, %v5831_v11  ;;  %6642 = vmatpush1.bf16.msra.mxu1 %v8529_v62  ;;  %v13080_v62 = vld [vmem:[%s13580_s2 + $0x310] sm:$0xff] }
 0xc9f   : > { %v8166_v42 = vpack.c.bf16 %v13003_v35, %v13001_v25  ;;  %v6126_v13 = vpop.permute.xlu0 %6125  ;;  %v5828_v46 = vpop.permute.xlu1 %5827  ;;  %6643 = vmatprep.subr.bf16.mxu1 %v8522_v33 }
 0xca0   : > { %v6131_v28 = vsel %vm332_vm1, %v12913_v18, %v6126_v13  ;;  %v6135_v29 = vsel %vm332_vm1, %v6126_v13, %v12913_v18  ;;  %v5832_v19 = vsel %vm243_vm6, %v12911_v50, %v5828_v46  ;;  %v5836_v34 = vsel %vm243_vm6, %v5828_v46, %v12911_v50  ;;  %v13044_v18 = vld [vmem:[%s13580_s2 + $0x1e0] sm:$0xff] }
 0xca1   : > { %6247 = vst [vmem:[#allocation2 + $0x90] sm:$0xff] %v8166_v42  ;;  %v13037_v17 = vmul.f32 %v6141_v58, %v6131_v28  ;;  %v13039_v37 = vmul.f32 %v6142_v59, %v6135_v29  ;;  %v5851_v11 = vmul.f32 %v5843_v61, %v5836_v34  ;;  %v5852_v27 = vmul.f32 %v5844_v26, %v5832_v19 }
 0xca2   : > { %6644 = vmatpush1.bf16.msra.mxu1 %v13709_v30 }
 0xca3   : > { %v6122_v50 = vpop.permute.xlu0 %6121  ;;  %v13054_v48 = vpop.permute.xlu1 %6323  ;;  %v8530_v54 = vpack.c.bf16 %v5852_v27, %v5850_v22  ;;  %v8531_v33 = vpack.c.bf16 %v5851_v11, %v5849_v45  ;;  %v8323_v45 = vld [vmem:[#allocation2 + $0xb0] sm:$0xff] }
 0xca4   : > { %v6129_v53 = vsel %vm332_vm1, %v12935_v39, %v6122_v50  ;;  %v6133_v47 = vsel %vm332_vm1, %v6122_v50, %v12935_v39  ;;  %v6346_v39 = vld [vmem:[%s13580_s2 + $0x328] sm:$0xff]  ;;  %v13090_v22 = vcombine.high %v8323_v45, %v8323_v45  ;;  %v13092_v46 = vcombine.low %v8323_v45, %v8323_v45 }
 0xca5   : > { %v13063_v58 = vmul.f32 %v13044_v18, %v6129_v53  ;;  %v13066_v59 = vmul.f32 %v13049_v0, %v6133_v47  ;;  %6645 = vmatprep.subr.bf16.mxu1 %v8530_v54  ;;  %v13711_v50 = vpack.c.bf16 %v12834_v44, %v12814_v16  ;;  %v6211_v53 = vld [vmem:[%s13580_s2 + $0x270] sm:$0xff]  ;;  %v6212_v47 = vld [vmem:[%s13580_s2 + $0x278] sm:$0xff]  ;;  %v8532_v44 = vpack.c.bf16 %v12877_v3, %v12831_v51 }
 0xca6   : > { %6646 = vmatpush1.bf16.msra.mxu1 %v8531_v33  ;;  %v8533_v51 = vpack.c.bf16 %v12874_v10, %v12828_v8  ;;  %v6143_v8 = vld [vmem:[%s13580_s2 + $0x210] sm:$0xff]  ;;  %v6144_v10 = vld [vmem:[%s13580_s2 + $0x218] sm:$0xff] }
 0xca7   : > { %v6322_v61 = vpop.permute.xlu0 %6321  ;;  %v6320_v26 = vpop.permute.xlu1 %6319  ;;  %6647 = vmatprep.subr.bf16.mxu1 %v13710_v4 }
 0xcaa   : > { %6648 = vmatpush1.bf16.msra.mxu1 %v13711_v50 }
 0xcab   : > { %v6330_v42 = vpop.permute.xlu0 %6329  ;;  %v6328_v13 = vpop.permute.xlu1 %6327  ;;  %6649 = vmatprep.subr.bf16.mxu1 %v13090_v22 }
 0xcac   : > { %v6335_v28 = vsel %vm392_vm7, %v6322_v61, %v6330_v42  ;;  %v6339_v29 = vsel %vm392_vm7, %v6330_v42, %v6322_v61  ;;  %v6334_v19 = vsel %vm392_vm7, %v6320_v26, %v6328_v13  ;;  %v6338_v21 = vsel %vm392_vm7, %v6328_v13, %v6320_v26 }
 0xcad   : > { %v13102_v38 = vmul.f32 %v6345_v41, %v6335_v28  ;;  %v13104_v34 = vmul.f32 %v6346_v39, %v6339_v29  ;;  %v13107_v11 = vmul.f32 %v13080_v62, %v6334_v19  ;;  %v13110_v27 = vmul.f32 %v13085_v23, %v6338_v21  ;;  %v13134_v41 = vld [vmem:[%s13580_s2 + $0x300] sm:$0xff]  ;;  %v13139_v39 = vld [vmem:[%s13580_s2 + $0x308] sm:$0xff] }
 0xcae   : > { %6650 = vmatpush1.bf16.msra.mxu1 %v13092_v46 }
 0xcaf   : > { %v6318_v30 = vpop.permute.xlu0 %6317  ;;  %v6196_v54 = vpop.permute.xlu1 %6195  ;;  %6651 = vmatprep.subr.bf16.mxu1 %v8532_v44 }
 0xcb0   : > { %v6200_v33 = vsel %vm352_vm2, %v12915_v24, %v6196_v54  ;;  %v6204_v16 = vsel %vm352_vm2, %v6196_v54, %v12915_v24 }
 0xcb1   : > { %v6219_v61 = vmul.f32 %v6211_v53, %v6200_v33  ;;  %v6220_v26 = vmul.f32 %v6212_v47, %v6204_v16  ;;  %v8537_v16 = vpack.c.bf16 %v12904_v63, %v12868_v49 }
 0xcb2   : > { %6652 = vmatpush2.bf16.msra.mxu1 %v8533_v51  ;;  %v6278_v51 = vld [vmem:[%s13580_s2 + $0x2c8] sm:$0xff] }
 0xcb3   : > { %v8167_v4 = vpack.c.bf16 %v6220_v26, %v6219_v61  ;;  %v6326_v24 = vpop.permute.xlu0 %6325  ;;  %v6024_v45 = vpop.permute.xlu1 %6023  ;;  %v8534_v29 = vpack.c.bf16 %v6219_v61, %v13001_v25  ;;  %v8535_v19 = vpack.c.bf16 %v6220_v26, %v13003_v35  ;;  %v8536_v35 = vpack.c.bf16 %v12907_v5, %v12871_v15  ;;  %v6348_v15 = vld [vmem:[%s13580_s2 + $0x338] sm:$0xff] }
 0xcb4   : > { %v6333_v3 = vsel %vm392_vm7, %v6318_v30, %v6326_v24  ;;  %v6337_v42 = vsel %vm392_vm7, %v6326_v24, %v6318_v30  ;;  %v6277_v24 = vld [vmem:[%s13580_s2 + $0x2c0] sm:$0xff] }
 0xcb5   : > { %6248 = vst [vmem:[#allocation2 + $0xc0] sm:$0xff] %v8167_v4  ;;  %v13148_v13 = vmul.f32 %v13134_v41, %v6333_v3  ;;  %v13151_v28 = vmul.f32 %v13139_v39, %v6337_v42  ;;  %6653 = vmatprep.subr.bf16.mxu1 %v8535_v19  ;;  %v6047_v3 = vld [vmem:[%s13580_s2 + $0x150] sm:$0xff] }
 0xcb6   : > { %6654 = vmatpush2.bf16.msra.mxu1 %v8534_v29 }
 0xcb7   : > { %v6022_v21 = vpop.permute.xlu0 %6021  ;;  %v6128_v50 = vpop.permute.xlu1 %6127  ;;  %6655 = vmatprep.subr.bf16.mxu1 %v8536_v35 }
 0xcb8   : > { %v6132_v53 = vsel %vm332_vm1, %v12917_v56, %v6128_v50  ;;  %v6136_v25 = vsel %vm332_vm1, %v6128_v50, %v12917_v56  ;;  %v6347_v56 = vld [vmem:[%s13580_s2 + $0x330] sm:$0xff] }
 0xcb9   : > { %v6151_v47 = vmul.f32 %v6143_v8, %v6132_v53  ;;  %v6152_v30 = vmul.f32 %v6144_v10, %v6136_v25  ;;  %v8541_v10 = vpack.c.bf16 %v13006_v32, %v13063_v58  ;;  %v6279_v32 = vld [vmem:[%s13580_s2 + $0x2d0] sm:$0xff]  ;;  %v6280_v58 = vld [vmem:[%s13580_s2 + $0x2d8] sm:$0xff] }
 0xcba   : > { %6656 = vmatpush2.bf16.msra.mxu1 %v8537_v16 }
 0xcbb   : > { %v6030_v54 = vpop.permute.xlu0 %6029  ;;  %v6256_v33 = vpop.permute.xlu1 %6255  ;;  %v8538_v44 = vpack.c.bf16 %v6151_v47, %v13037_v17  ;;  %v8539_v61 = vpack.c.bf16 %v6152_v30, %v13039_v37  ;;  %v8540_v17 = vpack.c.bf16 %v13009_v43, %v13066_v59  ;;  %v6045_v43 = vld [vmem:[%s13580_s2 + $0x140] sm:$0xff]  ;;  %v6046_v59 = vld [vmem:[%s13580_s2 + $0x148] sm:$0xff] }
 0xcbc   : > { %v6035_v42 = vsel %vm303_vm3, %v6022_v21, %v6030_v54  ;;  %v6039_v29 = vsel %vm303_vm3, %v6030_v54, %v6022_v21 }
 0xcbd   : > { %6657 = vmatprep.subr.bf16.mxu1 %v8539_v61  ;;  %v6053_v16 = vmul.f32 %v6045_v43, %v6039_v29  ;;  %v13712_v61 = vpack.c.bf16 %v12624_v2, %v12616_v52 }
 0xcbe   : > { %6658 = vmatpush2.bf16.msra.mxu1 %v8538_v44  ;;  %v6054_v44 = vmul.f32 %v6046_v59, %v6035_v42 }
 0xcbf   : > { %v6254_v5 = vpop.permute.xlu0 %6253  ;;  %v6332_v26 = vpop.permute.xlu1 %6331  ;;  %6659 = vmatprep.subr.bf16.mxu1 %v8540_v17 }
 0xcc0   : > { %v6336_v49 = vsel %vm392_vm7, %v13054_v48, %v6332_v26  ;;  %v6340_v63 = vsel %vm392_vm7, %v6332_v26, %v13054_v48  ;;  %v6048_v48 = vld [vmem:[%s13580_s2 + $0x158] sm:$0xff] }
 0xcc1   : > { %v6355_v37 = vmul.f32 %v6347_v56, %v6336_v49  ;;  %v6356_v4 = vmul.f32 %v6348_v15, %v6340_v63  ;;  %v8545_v63 = vpack.c.bf16 %v13110_v27, %v13151_v28 }
 0xcc2   : > { %6660 = vmatpush2.bf16.msra.mxu1 %v8541_v10 }
 0xcc3   : > { %v6262_v19 = vpop.permute.xlu0 %6261  ;;  %v6032_v8 = vpop.permute.xlu1 %6031  ;;  %6661 = vmatprep.subr.bf16.mxu1 %v13712_v61  ;;  %v8543_v56 = vpack.c.bf16 %v6356_v4, %v13104_v34 }
 0xcc4   : > { %v6267_v50 = vsel %vm372_vm8, %v6254_v5, %v6262_v19  ;;  %v6271_v53 = vsel %vm372_vm8, %v6262_v19, %v6254_v5  ;;  %v6036_v25 = vsel %vm303_vm3, %v6024_v45, %v6032_v8  ;;  %v6040_v35 = vsel %vm303_vm3, %v6032_v8, %v6024_v45  ;;  %v8315_v19 = vld [vmem:[%s13579_s1 + $0x1c4] ss:$16 sps:$4 sm:$0xff]  }
 0xcc5   : > { %v6285_v47 = vmul.f32 %v6277_v24, %v6267_v50  ;;  %v6286_v30 = vmul.f32 %v6278_v51, %v6271_v53  ;;  %v6055_v21 = vmul.f32 %v6047_v3, %v6040_v35  ;;  %v6056_v54 = vmul.f32 %v6048_v48, %v6036_v25  ;;  %6688 = vmatprep.subr.bf16.mxu0 %v8543_v56 }
 0xcc6   : > { %v8542_v45 = vpack.c.bf16 %v6355_v37, %v13102_v38  ;;  %v8544_v5 = vpack.c.bf16 %v12608_v57, %v12600_v55  ;;  %v13713_v38 = vpack.c.bf16 %v12618_v60, %v12610_v31  ;;  %v8546_v55 = vpack.c.bf16 %v13107_v11, %v13148_v13  ;;  %v8311_v31 = vld [vmem:[%s13579_s1 + $0x1a0] ss:$16 sps:$4 sm:$0xff]   ;;  %v8314_v60 = vld [vmem:[%s13579_s1 + $0x1a8] ss:$16 sps:$4 sm:$0xff]  }
 0xcc7   : > { %v6264_v15 = vpop.permute.xlu1 %6263  ;;  %v8547_v57 = vpack.c.bf16 %v12602_v20, %v12596_v40  ;;  %v8548_v34 = vpack.c.bf16 %v6056_v54, %v6054_v44  ;;  %v8551_v28 = vpack.c.bf16 %v6055_v21, %v6053_v16 }
 0xcc8   : > { %v6268_v26 = vsel %vm372_vm8, %v6256_v33, %v6264_v15  ;;  %v6272_v49 = vsel %vm372_vm8, %v6264_v15, %v6256_v33  ;;  %6662 = vmatpush2.bf16.msra.mxu1 %v13713_v38  ;;  %6689 = vmatpush1.bf16.msra.mxu0 %v8542_v45 }
 0xcc9   : > { %v6287_v52 = vmul.f32 %v6279_v32, %v6268_v26  ;;  %v6288_v2 = vmul.f32 %v6280_v58, %v6272_v49  ;;  %6663 = vmatprep.subr.bf16.mxu1 %v8544_v5  ;;  %6690 = vmatprep.subr.bf16.mxu0 %v8545_v63 }
 0xccb   : > { %v8549_v33 = vpack.c.bf16 %v6287_v52, %v6285_v47  ;;  %v8550_v27 = vpack.c.bf16 %v6288_v2, %v6286_v30 }
 0xccc   : > { %6664 = vmatpush2.bf16.msra.mxu1 %v8547_v57  ;;  %6691 = vmatpush1.bf16.msra.mxu0 %v8546_v55 }
 0xccd   : > { %6665 = vmatprep.subr.bf16.mxu1 %v8548_v34  ;;  %6692 = vmatprep.subr.bf16.mxu0 %v8550_v27 }
 0xcd0   : > { %6666 = vmatpush2.bf16.msra.mxu1 %v8551_v28  ;;  %6693 = vmatpush1.bf16.msra.mxu0 %v8549_v33 }
 0xcd3   : > { %6668 = vmatmul.mubr.bf16.vlgmr.msra.gmra.mxu1 %v8311_v31  ;;  %7883 = vmatmul.mubr.msk.bf16.vlgmr.msra.gmra.mxu0 %vm1923_vm9, %v8314_v60 }
 0xcd4   : > { %7924 = vmatprep.mubr.msk.bf16.mxu0 %vm539_vm0, %v8315_v19  ;;  %v6838_v19 = vld [vmem:[%s13580_s2 + $0x138] sm:$0xff] }
 0xd93   : > { %v6669_v40 = vpop.f32.mrf.mxu1  ;;  %v6712_v20 = vpop.f32.mrf.mxu0 }
 0xd94   : > { %v13252_v11 = vadd.f32 %v6712_v20, %v6669_v40 }
 0xd95   : > { %v6671_v13 = vpop.f32.mrf.mxu1  ;;  %v6714_v17 = vpop.f32.mrf.mxu0 }
 0xd96   : > { %v13254_v37 = vadd.f32 %v6714_v17, %v6671_v13  ;;  %6905 = vrot.lane.b32.xlu0 %v13252_v11, %s13705_s14 }
 0xd97   : > { %v6673_v4 = vpop.f32.mrf.mxu1  ;;  %v6716_v24 = vpop.f32.mrf.mxu0 }
 0xd98   : > { %v8184_v51 = vpack.c.bf16 %v13254_v37, %v13252_v11  ;;  %v13260_v3 = vadd.f32 %v6716_v24, %v6673_v4  ;;  %v6801_v4 = vld [vmem:[%s13580_s2 + $0xc0] sm:$0xff] }
 0xd99   : > { %v6675_v48 = vpop.f32.mrf.mxu1  ;;  %v6718_v43 = vpop.f32.mrf.mxu0 }
 0xd9a   : > { %6869 = vst [vmem:[#allocation2 + $0x118] sm:$0xff] %v8184_v51  ;;  %v13262_v59 = vadd.f32 %v6718_v43, %v6675_v48  ;;  %6871 = vrot.lane.b32.xlu0 %v13252_v11, %s13706_s20  ;;  %6907 = vrot.lane.b32.xlu1 %v13260_v3, %s13705_s14  ;;  %v8552_v42 = vpack.c.bf16 %v13260_v3, %v13252_v11  ;;  %v6802_v48 = vld [vmem:[%s13580_s2 + $0xc8] sm:$0xff]  ;;  %v6837_v43 = vld [vmem:[%s13580_s2 + $0x130] sm:$0xff] }
 0xd9c   : > { %v8553_v29 = vpack.c.bf16 %v13262_v59, %v13254_v37 }
 0xd9e   : > { %6823 = vrot.lane.b32.xlu0 %v13252_v11, %s8665_s8  ;;  %6873 = vrot.lane.b32.xlu1 %v13260_v3, %s13706_s20 }
 0xda2   : > { %6789 = vrot.lane.b32.xlu0 %v13252_v11, %s8666_s9  ;;  %6825 = vrot.lane.b32.xlu1 %v13260_v3, %s8665_s8 }
 0xda6   : > { %6755 = vrot.lane.b32.xlu0 %v13252_v11, %s13714_s7  ;;  %6791 = vrot.lane.b32.xlu1 %v13260_v3, %s8666_s9 }
 0xdaa   : > { %6721 = vrot.lane.b32.xlu0 %v13252_v11, %s13715_s12  ;;  %6757 = vrot.lane.b32.xlu1 %v13260_v3, %s13714_s7 }
 0xdae   : > { %6909 = vrot.lane.b32.xlu0 %v13254_v37, %s13705_s14  ;;  %6723 = vrot.lane.b32.xlu1 %v13260_v3, %s13715_s12 }
 0xdb2   : > { %6875 = vrot.lane.b32.xlu0 %v13254_v37, %s13706_s20  ;;  %6911 = vrot.lane.b32.xlu1 %v13262_v59, %s13705_s14  ;;  %s13716_s14 = smov 112  }
 0xdb6   : > { %6973 = vrot.lane.b32.xlu0 %v13252_v11, %s13707_s22  ;;  %6877 = vrot.lane.b32.xlu1 %v13262_v59, %s13706_s20 }
 0xdba   : > { %6827 = vrot.lane.b32.xlu0 %v13254_v37, %s8665_s8  ;;  %6975 = vrot.lane.b32.xlu1 %v13260_v3, %s13707_s22 }
 0xdbe   : > { %6793 = vrot.lane.b32.xlu0 %v13254_v37, %s8666_s9  ;;  %6829 = vrot.lane.b32.xlu1 %v13262_v59, %s8665_s8 }
 0xdc2   : > { %6759 = vrot.lane.b32.xlu0 %v13254_v37, %s13714_s7  ;;  %6795 = vrot.lane.b32.xlu1 %v13262_v59, %s8666_s9 }
 0xdc6   : > { %6725 = vrot.lane.b32.xlu0 %v13254_v37, %s13715_s12  ;;  %6761 = vrot.lane.b32.xlu1 %v13262_v59, %s13714_s7 }
 0xdca   : > { %6977 = vrot.lane.b32.xlu0 %v13254_v37, %s13707_s22  ;;  %6727 = vrot.lane.b32.xlu1 %v13262_v59, %s13715_s12 }
 0xdce   : > { %6939 = vrot.lane.b32.xlu0 %v13252_v11, %s13716_s14  ;;  %6941 = vrot.lane.b32.xlu1 %v13260_v3, %s13716_s14  ;;  %v6770_v11 = vld [vmem:[%s13580_s2 + $0x78] sm:$0xff] }
 0xdd2   : > { %6943 = vrot.lane.b32.xlu0 %v13254_v37, %s13716_s14  ;;  %6979 = vrot.lane.b32.xlu1 %v13262_v59, %s13707_s22  ;;  %s7221_s22 = sshll.u32 %s12284_s28, 4  ;;  %s7222_s22 = int_to_ptr.vmem [resolvable:$true] %s7221_s22 }
 0xdd3   : > { %s8570_s11 = scalar_lea.vmem %s7222_s22, 128  ;;  %p8577_p0 = scmp.lt.s32.totalorder %s7222_s22, %s8575_s5 }
 0xdd4   : > { %p8571_p11 = scmp.ne.s32.totalorder %s7222_s22, %s8570_s11  ;;  %p8578_p1 = scmp.lt.s32.totalorder %s8576_s29, %s8570_s11 }
 0xdd6   : > { %6945 = vrot.lane.b32.xlu1 %v13262_v59, %s13716_s14  ;;  %s8194_s14 = sshll.u32 %s8720_s19, 7  ;;  %p8572_p12 = pnand %p8571_p11, %p8737_p5 }
 0xdd7   : > { %s7219_s20 = scalar_lea.hbm %s13582_s4, %s8194_s14  ;;  %p8579_p2 = por %p8578_p1, %p8577_p0 }
 0xdd8   : > { %p8573_p13 = pneg %p8572_p12 }
 0xdda   : > { %p8580_p3 = pnand %p8579_p2, %p8573_p13 }
 0xe08   : > { %v6906_v8 = vpop.permute.xlu0 %6905 }
 0xe0c   : > { %v6872_v10 = vpop.permute.xlu0 %6871  ;;  %v6908_v50 = vpop.permute.xlu1 %6907 }
 0xe10   : > { %v6824_v53 = vpop.permute.xlu0 %6823  ;;  %v6874_v25 = vpop.permute.xlu1 %6873 }
 0xe14   : > { %v6790_v35 = vpop.permute.xlu0 %6789  ;;  %v6826_v47 = vpop.permute.xlu1 %6825 }
 0xe18   : > { %v13334_v30 = vpop.permute.xlu0 %6755  ;;  %v13336_v21 = vpop.permute.xlu1 %6791 }
 0xe1c   : > { %v13338_v54 = vpop.permute.xlu0 %6721  ;;  %v13340_v16 = vpop.permute.xlu1 %6757 }
 0xe20   : > { %v6910_v44 = vpop.permute.xlu0 %6909  ;;  %v13342_v32 = vpop.permute.xlu1 %6723 }
 0xe21   : > { %v6913_v58 = vsel %vm352_vm2, %v6906_v8, %v6910_v44  ;;  %v6915_v61 = vsel %vm352_vm2, %v6910_v44, %v6906_v8 }
 0xe22   : > { %v6921_v45 = vmul.f32 %v6913_v58, %v12842_v6  ;;  %v6922_v56 = vmul.f32 %v6915_v61, %v12847_v36 }
 0xe24   : > { %v8188_v15 = vpack.c.bf16 %v6922_v56, %v6921_v45  ;;  %v6876_v5 = vpop.permute.xlu0 %6875  ;;  %v6912_v26 = vpop.permute.xlu1 %6911 }
 0xe25   : > { %v6879_v49 = vsel %vm332_vm1, %v6872_v10, %v6876_v5  ;;  %v6881_v63 = vsel %vm332_vm1, %v6876_v5, %v6872_v10  ;;  %v6914_v52 = vsel %vm352_vm2, %v6908_v50, %v6912_v26  ;;  %v6916_v2 = vsel %vm352_vm2, %v6912_v26, %v6908_v50  ;;  %v6767_v5 = vld [vmem:[%s13580_s2 + $0x60] sm:$0xff]  ;;  %v6804_v26 = vld [vmem:[%s13580_s2 + $0xd8] sm:$0xff] }
 0xe26   : > { %6937 = vst [vmem:[#allocation2 + $0x108] sm:$0xff] %v8188_v15  ;;  %v6887_v6 = vmul.f32 %v6879_v49, %v13044_v18  ;;  %v6888_v36 = vmul.f32 %v6881_v63, %v13049_v0  ;;  %v6923_v38 = vmul.f32 %v6914_v52, %v12882_v12  ;;  %v6924_v55 = vmul.f32 %v6916_v2, %v12887_v1  ;;  %v6835_v12 = vld [vmem:[%s13580_s2 + $0x120] sm:$0xff]  ;;  %v6836_v1 = vld [vmem:[%s13580_s2 + $0x128] sm:$0xff] }
 0xe28   : > { %v8186_v57 = vpack.c.bf16 %v6888_v36, %v6887_v6  ;;  %v13362_v34 = vpop.permute.xlu0 %6973  ;;  %v6878_v33 = vpop.permute.xlu1 %6877  ;;  %v8554_v0 = vpack.c.bf16 %v6923_v38, %v6921_v45  ;;  %v8555_v60 = vpack.c.bf16 %v6924_v55, %v6922_v56 }
 0xe29   : > { %v6880_v27 = vsel %vm332_vm1, %v6874_v25, %v6878_v33  ;;  %v6882_v28 = vsel %vm332_vm1, %v6878_v33, %v6874_v25 }
 0xe2a   : > { %6903 = vst [vmem:[#allocation2 + $0x120] sm:$0xff] %v8186_v57  ;;  %v6889_v31 = vmul.f32 %v6880_v27, %v12973_v14  ;;  %v6890_v18 = vmul.f32 %v6882_v28, %v12978_v9  ;;  %7141 = vmatprep.subr.bf16.mxu0 %v8555_v60  ;;  %v6734_v57 = vld [vmem:[%s13580_s2 + $0x8] sm:$0xff] }
 0xe2b   : > { %7142 = vmatpush1.bf16.msra.mxu0 %v8554_v0 }
 0xe2c   : > { %v6828_v40 = vpop.permute.xlu0 %6827  ;;  %v13376_v20 = vpop.permute.xlu1 %6975  ;;  %v8556_v24 = vpack.c.bf16 %v6889_v31, %v6887_v6  ;;  %v8557_v51 = vpack.c.bf16 %v6890_v18, %v6888_v36 }
 0xe2d   : > { %v6831_v13 = vsel %vm303_vm3, %v6824_v53, %v6828_v40  ;;  %v6833_v14 = vsel %vm303_vm3, %v6828_v40, %v6824_v53 }
 0xe2e   : > { %v6839_v9 = vmul.f32 %v6835_v12, %v6833_v14  ;;  %v6840_v17 = vmul.f32 %v6836_v1, %v6831_v13  ;;  %7143 = vmatprep.subr.bf16.mxu0 %v8557_v51  ;;  %v6735_v14 = vld [vmem:[%s13580_s2 + $0x10] sm:$0xff] }
 0xe2f   : > { %7144 = vmatpush1.bf16.msra.mxu0 %v8556_v24 }
 0xe30   : > { %v8182_v8 = vpack.c.bf16 %v6840_v17, %v6839_v9  ;;  %v6794_v10 = vpop.permute.xlu0 %6793  ;;  %v6830_v50 = vpop.permute.xlu1 %6829  ;;  %7145 = vmatprep.subr.bf16.mxu0 %v8553_v29 }
 0xe31   : > { %v6797_v53 = vsel %vm283_vm4, %v6790_v35, %v6794_v10  ;;  %v6799_v25 = vsel %vm283_vm4, %v6794_v10, %v6790_v35  ;;  %v6832_v44 = vsel %vm303_vm3, %v6826_v47, %v6830_v50  ;;  %v6834_v58 = vsel %vm303_vm3, %v6830_v50, %v6826_v47  ;;  %v6768_v35 = vld [vmem:[%s13580_s2 + $0x68] sm:$0xff]  ;;  %v6803_v47 = vld [vmem:[%s13580_s2 + $0xd0] sm:$0xff] }
 0xe32   : > { %6855 = vst [vmem:[#allocation2 + $0x180] sm:$0xff] %v8182_v8  ;;  %v6805_v61 = vmul.f32 %v6801_v4, %v6799_v25  ;;  %v6806_v45 = vmul.f32 %v6802_v48, %v6797_v53  ;;  %v6841_v56 = vmul.f32 %v6837_v43, %v6834_v58  ;;  %v6842_v15 = vmul.f32 %v6838_v19, %v6832_v44 }
 0xe33   : > { %7146 = vmatpush1.bf16.msra.mxu0 %v8552_v42 }
 0xe34   : > { %v8180_v49 = vpack.c.bf16 %v6806_v45, %v6805_v61  ;;  %v6760_v63 = vpop.permute.xlu0 %6759  ;;  %v6796_v52 = vpop.permute.xlu1 %6795  ;;  %v8558_v3 = vpack.c.bf16 %v6841_v56, %v6839_v9  ;;  %v8559_v42 = vpack.c.bf16 %v6842_v15, %v6840_v17 }
 0xe35   : > { %v6763_v37 = vsel %vm263_vm5, %v13334_v30, %v6760_v63  ;;  %v6765_v59 = vsel %vm263_vm5, %v6760_v63, %v13334_v30  ;;  %v6798_v29 = vsel %vm283_vm4, %v13336_v21, %v6796_v52  ;;  %v6800_v2 = vsel %vm283_vm4, %v6796_v52, %v13336_v21  ;;  %v6733_v30 = vld [vmem:[%s13580_s2] sm:$0xff]  ;;  %v6769_v21 = vld [vmem:[%s13580_s2 + $0x70] sm:$0xff] }
 0xe36   : > { %6821 = vst [vmem:[#allocation2 + $0x130] sm:$0xff] %v8180_v49  ;;  %v6771_v6 = vmul.f32 %v6767_v5, %v6765_v59  ;;  %v6772_v36 = vmul.f32 %v6768_v35, %v6763_v37  ;;  %v6807_v38 = vmul.f32 %v6803_v47, %v6800_v2  ;;  %v6808_v55 = vmul.f32 %v6804_v26, %v6798_v29  ;;  %v6953_v59 = vld [vmem:[%s13580_s2 + $0x2b0] sm:$0xff]  ;;  %v6954_v29 = vld [vmem:[%s13580_s2 + $0x2b8] sm:$0xff] }
 0xe37   : > { %7147 = vmatprep.subr.bf16.mxu0 %v8559_v42 }
 0xe38   : > { %v8178_v33 = vpack.c.bf16 %v6772_v36, %v6771_v6  ;;  %v6726_v27 = vpop.permute.xlu0 %6725  ;;  %v6762_v28 = vpop.permute.xlu1 %6761  ;;  %7148 = vmatpush1.bf16.msra.mxu0 %v8558_v3  ;;  %v8560_v9 = vpack.c.bf16 %v6807_v38, %v6805_v61  ;;  %v8561_v17 = vpack.c.bf16 %v6808_v55, %v6806_v45 }
 0xe39   : > { %v6729_v31 = vsel %vm243_vm6, %v13338_v54, %v6726_v27  ;;  %v6731_v18 = vsel %vm243_vm6, %v6726_v27, %v13338_v54  ;;  %v6764_v0 = vsel %vm263_vm5, %v13340_v16, %v6762_v28  ;;  %v6766_v60 = vsel %vm263_vm5, %v6762_v28, %v13340_v16  ;;  %v6736_v54 = vld [vmem:[%s13580_s2 + $0x18] sm:$0xff] }
 0xe3a   : > { %6787 = vst [vmem:[#allocation2 + $0x50] sm:$0xff] %v8178_v33  ;;  %v6737_v12 = vmul.f32 %v6733_v30, %v6731_v18  ;;  %v6738_v1 = vmul.f32 %v6734_v57, %v6729_v31  ;;  %v6773_v40 = vmul.f32 %v6769_v21, %v6766_v60  ;;  %v6774_v13 = vmul.f32 %v6770_v11, %v6764_v0 }
 0xe3b   : > { %7149 = vmatprep.subr.bf16.mxu0 %v8561_v17 }
 0xe3c   : > { %v8176_v4 = vpack.c.bf16 %v6738_v1, %v6737_v12  ;;  %v6978_v24 = vpop.permute.xlu0 %6977  ;;  %v6728_v16 = vpop.permute.xlu1 %6727  ;;  %7150 = vmatpush1.bf16.msra.mxu0 %v8560_v9  ;;  %v8562_v25 = vpack.c.bf16 %v6773_v40, %v6771_v6  ;;  %v8563_v44 = vpack.c.bf16 %v6774_v13, %v6772_v36 }
 0xe3d   : > { %v6981_v51 = vsel %vm392_vm7, %v13362_v34, %v6978_v24  ;;  %v6983_v48 = vsel %vm392_vm7, %v6978_v24, %v13362_v34  ;;  %v6730_v43 = vsel %vm243_vm6, %v13342_v32, %v6728_v16  ;;  %v6732_v19 = vsel %vm243_vm6, %v6728_v16, %v13342_v32  ;;  %v6951_v32 = vld [vmem:[%s13580_s2 + $0x2a0] sm:$0xff] }
 0xe3e   : > { %6753 = vst [vmem:[#allocation2 + $0xd8] sm:$0xff] %v8176_v4  ;;  %v6989_v8 = vmul.f32 %v6981_v51, %v13134_v41  ;;  %v6990_v10 = vmul.f32 %v6983_v48, %v13139_v39  ;;  %v6739_v50 = vmul.f32 %v6735_v14, %v6732_v19  ;;  %v6740_v53 = vmul.f32 %v6736_v54, %v6730_v43  ;;  %v6952_v41 = vld [vmem:[%s13580_s2 + $0x2a8] sm:$0xff] }
 0xe3f   : > { %7151 = vmatprep.subr.bf16.mxu0 %v8563_v44 }
 0xe40   : > { %v8192_v34 = vpack.c.bf16 %v6990_v10, %v6989_v8  ;;  %v6940_v58 = vpop.permute.xlu0 %6939  ;;  %v6942_v61 = vpop.permute.xlu1 %6941  ;;  %7152 = vmatpush1.bf16.msra.mxu0 %v8562_v25  ;;  %v8564_v45 = vpack.c.bf16 %v6739_v50, %v6737_v12  ;;  %v8565_v56 = vpack.c.bf16 %v6740_v53, %v6738_v1 }
 0xe42   : > { %7005 = vst [vmem:[#allocation2 + $0x138] sm:$0xff] %v8192_v34  ;;  %7153 = vmatprep.subr.bf16.mxu0 %v8565_v56 }
 0xe44   : > { %v6944_v39 = vpop.permute.xlu0 %6943  ;;  %v6980_v15 = vpop.permute.xlu1 %6979  ;;  %7154 = vmatpush1.bf16.msra.mxu0 %v8564_v45 }
 0xe45   : > { %v6947_v5 = vsel %vm372_vm8, %v6940_v58, %v6944_v39  ;;  %v6949_v35 = vsel %vm372_vm8, %v6944_v39, %v6940_v58  ;;  %v6982_v47 = vsel %vm392_vm7, %v13376_v20, %v6980_v15  ;;  %v6984_v26 = vsel %vm392_vm7, %v6980_v15, %v13376_v20  ;;  %7155 = vmatprep.subr.bf16.mxu0 %v13090_v22 }
 0xe46   : > { %v6955_v49 = vmul.f32 %v6951_v32, %v6947_v5  ;;  %v6956_v63 = vmul.f32 %v6952_v41, %v6949_v35  ;;  %v6991_v52 = vmul.f32 %v6982_v47, %v13080_v62  ;;  %v6992_v37 = vmul.f32 %v6984_v26, %v13085_v23 }
 0xe48   : > { %v8190_v2 = vpack.c.bf16 %v6956_v63, %v6955_v49  ;;  %v6946_v6 = vpop.permute.xlu1 %6945  ;;  %7156 = vmatpush1.bf16.msra.mxu0 %v13092_v46  ;;  %v8566_v38 = vpack.c.bf16 %v6991_v52, %v6989_v8  ;;  %v8567_v55 = vpack.c.bf16 %v6992_v37, %v6990_v10 }
 0xe49   : > { %v6948_v20 = vsel %vm372_vm8, %v6942_v61, %v6946_v6  ;;  %v6950_v62 = vsel %vm372_vm8, %v6946_v6, %v6942_v61 }
 0xe4a   : > { %6971 = vst [vmem:[#allocation2 + $0xe0] sm:$0xff] %v8190_v2  ;;  %v6957_v23 = vmul.f32 %v6953_v59, %v6948_v20  ;;  %v6958_v36 = vmul.f32 %v6954_v29, %v6950_v62  ;;  %7169 = vmatprep.subr.bf16.mxu0 %v8567_v55 }
 0xe4c   : > { %7170 = vmatpush2.bf16.msra.mxu0 %v8566_v38  ;;  %v8568_v22 = vpack.c.bf16 %v6957_v23, %v6955_v49  ;;  %v8569_v30 = vpack.c.bf16 %v6958_v36, %v6956_v63 }
 0xe4e   : > { %7171 = vmatprep.subr.bf16.mxu0 %v8569_v30 }
 0xe50   : > { %7172 = vmatpush2.bf16.msra.mxu0 %v8568_v22 }
 0xe53   : > { %7174 = vmatmul.mubr.bf16.vlgmr.msra.gmra.mxu0 %v8317_v7 }
 0xe54   : > { %8583 = shalt.err (!%p8580_p3)
}
 0xe55   : > { %s8584_s30 = scalar_lea.hbm %s7219_s20, 128  ;;  %s8588_s27 = scalar_lea.hbm %s13582_s4, 256 }
 0xe56   : > { %p8585_p4 = scmp.ne.s32.totalorder %s7219_s20, %s8584_s30  ;;  %p8589_p9 = scmp.lt.s32.totalorder %s7219_s20, %s13582_s4 }
 0xe57   : > { %p8590_p10 = scmp.lt.s32.totalorder %s8588_s27, %s8584_s30 }
 0xe58   : > { %p8586_p7 = pnand %p8585_p4, %p8737_p5 }
 0xe59   : > { %p8591_p11 = por %p8590_p10, %p8589_p9 }
 0xe5a   : > { %p8587_p8 = pneg %p8586_p7 }
 0xe5c   : > { %p8592_p12 = pnand %p8591_p11, %p8587_p8 }
 0xe5e   : > { %8595 = shalt.err (!%p8592_p12)
}
 0xe5f   : > { %8197 = dma.vmem_to_hbm [thread:$0]  (%p8737_p5), %s7222_s22, 128, %s7219_s20, %s7193_s10  }
 0xe60   : > { %s13717_s8 = sshll.u32 %s12263_s23, 3  ;;  %s13536_s29 = scalar_lea.hbm %s13581_s3, %s8194_s14 }
 0xe61   : > { %s195_s9 = scalar_lea.vmem [#allocation3], %s13717_s8  ;;  %s7188_s20 = scalar_lea.sflag [#allocation4], %s12263_s23 }
 0xe62   : > { %s7207_s11 = sshll.u32 %s195_s9, 4  ;;  %s8673_s19 = smov [#allocation3]   ;;  %s13538_s11 = int_to_ptr.vmem [resolvable:$true] %s7207_s11 }
 0xe63   : > { %s8596_s22 = scalar_lea.vmem %s13538_s11, 128  ;;  %s8600_s10 = sshll.u32 %s8673_s19, 4  ;;  %s8601_s10 = int_to_ptr.vmem [resolvable:$false] %s8600_s10 }
 0xe64   : > { %p8597_p13 = scmp.ne.s32.totalorder %s13538_s11, %s8596_s22  ;;  %s8602_s30 = scalar_lea.vmem %s8601_s10, 256 }
 0xe65   : > { %p8603_p2 = scmp.lt.s32.totalorder %s13538_s11, %s8601_s10  ;;  %p8604_p3 = scmp.lt.s32.totalorder %s8602_s30, %s8596_s22 }
 0xe66   : > { %p8598_p0 = pnand %p8597_p13, %p8737_p5 }
 0xe67   : > { %p8605_p4 = por %p8604_p3, %p8603_p2 }
 0xe68   : > { %p8599_p1 = pneg %p8598_p0 }
 0xe6a   : > { %p8606_p7 = pnand %p8605_p4, %p8599_p1 }
 0xf13   : > { %v7175_v46 = vpop.f32.mrf.mxu0 }
 0xf15   : > { %v7177_v57 = vpop.f32.mrf.mxu0 }
 0xf16   : > { %v7184_v21 = vcombine.low %v7175_v46, %v7177_v57 }
 0xf17   : > { %v7179_v11 = vpop.f32.mrf.mxu0 }
 0xf18   : > { %7186 = vst [vmem:[%s195_s9] sm:$0xff] %v7184_v21 }
 0xf19   : > { %v7180_v3 = vpop.f32.mrf.mxu0 }
 0xf1a   : > { %8609 = shalt.err (!%p8606_p7)
}
 0xf1b   : > { %s8610_s14 = scalar_lea.hbm %s13536_s29, 128  ;;  %s8614_s6 = scalar_lea.hbm %s13581_s3, 256 }
 0xf1c   : > { %p8611_p8 = scmp.ne.s32.totalorder %s13536_s29, %s8610_s14  ;;  %p8615_p11 = scmp.lt.s32.totalorder %s13536_s29, %s13581_s3 }
 0xf1d   : > { %p8616_p12 = scmp.lt.s32.totalorder %s8614_s6, %s8610_s14 }
 0xf1e   : > { %p8612_p9 = pnand %p8611_p8, %p8737_p5 }
 0xf1f   : > { %p8617_p13 = por %p8616_p12, %p8615_p11 }
 0xf20   : > { %p8613_p10 = pneg %p8612_p9 }
 0xf22   : > { %p8618_p0 = pnand %p8617_p13, %p8613_p10 }
 0xf24   : > { %8621 = shalt.err (!%p8618_p0)
}
 0xf25   : > { %8196 = dma.vmem_to_hbm [thread:$0]  (%p8737_p5), %s13538_s11, 128, %s13536_s29, %s7188_s20  }
 0xf26 PF: > { %p8207_p1 = scmp.ge.s32.totalorder %s8660_s18, 2  ;;  %s7233_s12 = sand.u32 1, %s8648_s15  }
 0xf27   : > { %s7234_s8 = scalar_lea.sflag [#allocation4], %s7233_s12 }
 0xf28   : > { %p8201_p2 = pnand %p8207_p1, %p8741_p6 }
 0xf2a   : > { %p8202_p3 = pneg %p8201_p2 }
 0xf2c   : > { %8639 = dma.done.wait (%p8202_p3), %s7234_s8, 128  }
 0xf2d   : > { %8641 = vsyncadd (%p8202_p3), %s7234_s8, 4294967168  ;;  %s7243_s9 = scalar_lea.sflag [#allocation6], %s7233_s12 }
 0xf2e   : > { %8643 = dma.done.wait (%p8202_p3), %s7243_s9, 128  }
 0xf2f   : > { %8645 = vsyncadd (%p8202_p3), %s7243_s9, 4294967168  ;;  %p18_p5 = scmp.ge.s32.totalorder %s8724_s21, 4   ;;  %s13718_s15 = smov %s8652_s16 }
 0xf30   : > { %s13719_s16 = smov %s8656_s17  ;;  %s13720_s17 = smov %s8735_s24 }
 0xf31   : > { %s13721_s18 = smov %s8724_s21  ;;  %20 = sbr.rel (!%p18_p5) target bundleno = 5 (0x5), region = 84 }
 0xf36   :  { %7248 = vsyncpa [#allocation4], 1 }
 0xf37   :  { %7250 = vsyncpa [#allocation4 + $0x1], 1 }
 0xf38   :  { %7251 = vsyncpa [#allocation6], 1 }
 0xf39   :  { %7253 = vsyncpa [#allocation6 + $0x1], 1 }

</bundles_post_ra>
